<compile_context>
chip_gen: v7x
topology: tpu7x:2x2x1
jax: 0.10.0
libtpu: 0.0.40
codegen_flags: <defaults>
</compile_context>

<pallas_src>
import jax
import jax.numpy as jnp
from jax import lax
from jax.experimental import pallas as pl
from jax.experimental.pallas import tpu as pltpu

# ----------------------------- hyper-parameters ------------------------------
BATCH = 2                             # real batch
BPAD = 8                              # batch padded to a full sublane tile
SEQ_LEN = 8
NUM_INPUTS = 64
N_E = 64
N_VIP = 32
N_SST = 32
PACK = N_E + N_VIP + N_SST            # 128, lane-dense
E0, E1 = 0, N_E                       # E lanes   [0, 64)
V0, V1 = N_E, N_E + N_VIP             # VIP lanes [64, 96)
S0, S1 = N_E + N_VIP, PACK            # SST lanes [96, 128)

TAU_E = 20.0
TAU_VIP = 20.0
TAU_SST = 20.0
TAU_A = 200.0
G_E = 1.0
G_VIP = 1.0
G_SST = 0.5
ETA = 0.001
ALPHA = 0.001
DT = 1.0


# ------------------------------ Pallas kernel ---------------------------------
def adaptation_seq_kernel(x_ref, wstk0_ref, rhist_ref, r_ref, a_ref, wstk_ref,
                          szd_ref):
  T = x_ref.shape[0]

  # ---- one-time setup (single grid invocation) -------------------------------
  lane = lax.broadcasted_iota(jnp.int32, (1, PACK), 1)
  emask = (lane < V0).astype(jnp.float32)
  vmask = jnp.logical_and(lane >= V0, lane < S0).astype(jnp.float32)
  smask = (lane >= S0).astype(jnp.float32)
  g_vec = G_E * emask + G_VIP * vmask + G_SST * smask
  dtt = (DT / TAU_E) * emask + (DT / TAU_VIP) * vmask + (DT / TAU_SST) * smask

  # Signed structural mask for the packed recurrent matrix (rows 128:256 of the
  # weight stack): +1 excitatory (pre=E), -1 inhibitory, 0 for structural zeros
  # (SST->VIP, E->SST) and the self-connection diagonal.
  row = lax.broadcasted_iota(jnp.int32, (PACK, PACK), 0)
  col = lax.broadcasted_iota(jnp.int32, (PACK, PACK), 1)
  is_sst_vip = jnp.logical_and(row >= S0, jnp.logical_and(col >= V0, col < S0))
  is_e_sst = jnp.logical_and(row < V0, col >= S0)
  keep = jnp.logical_and(
      jnp.logical_not(is_sst_vip),
      jnp.logical_and(jnp.logical_not(is_e_sst), row != col))
  sign = jnp.where(row < V0, 1.0, -1.0)
  szd_ref[...] = jnp.where(keep, sign, 0.0).astype(jnp.float32)

  # Weight stack becomes resident in the output ref's VMEM window (written back
  # to HBM only once, at the end of the single invocation).
  wstk_ref[...] = wstk0_ref[...]

  inv_b = 1.0 / BATCH
  dt_a = DT / TAU_A

  r = jnp.zeros((BPAD, PACK), jnp.float32)
  a = jnp.zeros((BPAD, PACK), jnp.float32)

  for t in range(T):                  # fully unrolled timestep loop
    x = x_ref[t]                      # [BPAD, 128]; lanes 64:128 are zero pad

    # ---- adaptation update (uses previous rates) ----------------------------
    a = a + (g_vec * r - a) * dt_a

    # ---- fused input + recurrent projection: one [B,256]@[256,128] MXU op ----
    xr = jnp.concatenate([x, r], axis=-1)
    net0 = jnp.dot(xr, wstk_ref[...], preferred_element_type=jnp.float32) - a

    # ---- E pass --------------------------------------------------------------
    cand0 = r + (jnp.maximum(net0, 0.0) - r) * dtt
    d0 = cand0 - r
    r = r + emask * d0
    # Only the E pre-rows changed: incremental [B,64]@[64,128] update.
    net1 = net0 + jnp.dot(d0[:, E0:E1], wstk_ref[PACK + E0:PACK + E1, :],
                          preferred_element_type=jnp.float32)

    # ---- VIP pass (sees updated r_E) -----------------------------------------
    cand1 = r + (jnp.maximum(net1, 0.0) - r) * dtt
    d1 = cand1 - r
    r = r + vmask * d1
    # Only the VIP pre-rows changed: incremental [B,32]@[32,128] update.
    net2 = net1 + jnp.dot(d1[:, V0:V1], wstk_ref[PACK + V0:PACK + V1, :],
                          preferred_element_type=jnp.float32)

    # ---- SST pass (sees updated r_VIP) ---------------------------------------
    cand2 = r + (jnp.maximum(net2, 0.0) - r) * dtt
    r = r + smask * (cand2 - r)

    rhist_ref[t] = r                  # full (8,128) unmasked store

    # ---- Hebbian plasticity (sequenced to bound live ranges) -----------------
    # (1) input-weight rows + E_to_SST rows share one packed outer product:
    #     lhs lanes 0:64 = input features, lanes 64:128 = r_E(new).
    lhs_top = jnp.concatenate([x[:, 0:NUM_INPUTS], r[:, E0:E1]], axis=-1)
    corr_top = lax.dot_general(lhs_top, r, (((0,), (0,)), ((), ())),
                               preferred_element_type=jnp.float32) * inv_b

    # I_to_E plastic (E columns only); I_to_SST stays fixed.
    w_ie = wstk_ref[0:NUM_INPUTS, :]
    wstk_ref[0:NUM_INPUTS, :] = (
        w_ie + ETA * emask * (corr_top[0:NUM_INPUTS, :] - ALPHA * w_ie))

    # E_to_SST: plastic (SST columns), Positive, L2-normalized over pre (E).
    w_es = wstk_ref[NUM_INPUTS:PACK, :]
    w_es = w_es + ETA * smask * (corr_top[NUM_INPUTS:PACK, :] - ALPHA * w_es)
    w_es = jnp.maximum(w_es, 0.0)
    ss_es = jnp.sum(w_es * w_es, axis=0, keepdims=True)
    wstk_ref[NUM_INPUTS:PACK, :] = (
        w_es * jnp.where(ss_es > 0, lax.rsqrt(ss_es), 0.0))

    # (2) recurrent block: one packed outer product r(new) x r(new).
    corr = lax.dot_general(r, r, (((0,), (0,)), ((), ())),
                           preferred_element_type=jnp.float32) * inv_b
    w_rec = wstk_ref[PACK:2 * PACK, :]
    w_rec = w_rec + ETA * (corr - ALPHA * w_rec)
    # Sign constraints + zero diagonal + structural zeros in one fused select.
    szd = szd_ref[...]
    w_rec = szd * jnp.maximum(szd * w_rec, 0.0)
    # Per-(pre-population, post-neuron) L2 normalization; single full store.
    sq = w_rec * w_rec
    ss_e = jnp.sum(sq[E0:E1, :], axis=0, keepdims=True)
    ss_v = jnp.sum(sq[V0:V1, :], axis=0, keepdims=True)
    ss_s = jnp.sum(sq[S0:S1, :], axis=0, keepdims=True)
    inv_e = jnp.where(ss_e > 0, lax.rsqrt(ss_e), 0.0)
    inv_v = jnp.where(ss_v > 0, lax.rsqrt(ss_v), 0.0)
    inv_s = jnp.where(ss_s > 0, lax.rsqrt(ss_s), 0.0)
    wstk_ref[PACK:2 * PACK, :] = jnp.concatenate(
        [w_rec[E0:E1, :] * inv_e,
         w_rec[V0:V1, :] * inv_v,
         w_rec[S0:S1, :] * inv_s], axis=0)

  # ---- final state written back once ----------------------------------------
  r_ref[...] = r
  a_ref[...] = a


# ------------------------------ packing helpers --------------------------------
def _pack_params(params):
  (W_IE, W_IS, W_EV, W_VE, W_ES, W_SE, W_VS, W_EE, W_VV, W_SS) = params
  w = jnp.zeros((2 * PACK, PACK), jnp.float32)
  # input / E_to_SST half (rows = xr lanes 0:128)
  w = w.at[0:NUM_INPUTS, E0:E1].set(W_IE.T)          # input -> E
  w = w.at[0:NUM_INPUTS, S0:S1].set(W_IS.T)          # input -> SST (static)
  w = w.at[NUM_INPUTS:PACK, S0:S1].set(W_ES.T)       # E -> SST (plastic only)
  # recurrent half (rows = PACK + packed pre index), stored [pre, post]
  w = w.at[PACK + E0:PACK + E1, E0:E1].set(W_EE.T)
  w = w.at[PACK + V0:PACK + V1, E0:E1].set(W_VE.T)
  w = w.at[PACK + S0:PACK + S1, E0:E1].set(W_SE.T)
  w = w.at[PACK + E0:PACK + E1, V0:V1].set(W_EV.T)
  w = w.at[PACK + V0:PACK + V1, V0:V1].set(W_VV.T)
  w = w.at[PACK + V0:PACK + V1, S0:S1].set(W_VS.T)
  w = w.at[PACK + S0:PACK + S1, S0:S1].set(W_SS.T)
  return w


def _unpack_params(w):
  W_IE = w[0:NUM_INPUTS, E0:E1].T
  W_IS = w[0:NUM_INPUTS, S0:S1].T
  W_ES = w[NUM_INPUTS:PACK, S0:S1].T
  W_EE = w[PACK + E0:PACK + E1, E0:E1].T
  W_VE = w[PACK + V0:PACK + V1, E0:E1].T
  W_SE = w[PACK + S0:PACK + S1, E0:E1].T
  W_EV = w[PACK + E0:PACK + E1, V0:V1].T
  W_VV = w[PACK + V0:PACK + V1, V0:V1].T
  W_VS = w[PACK + V0:PACK + V1, S0:S1].T
  W_SS = w[PACK + S0:PACK + S1, S0:S1].T
  return (W_IE, W_IS, W_EV, W_VE, W_ES, W_SE, W_VS, W_EE, W_VV, W_SS)


# ------------------------------- wrapper ---------------------------------------
@jax.jit
def forward_sequence_pallas(input_seq, params):
  B, T, _ = input_seq.shape
  # forward_sequence semantics: step 0 sees a zero input, step t sees seq[:, t-1]
  x = jnp.concatenate(
      [jnp.zeros((B, 1, NUM_INPUTS), jnp.float32), input_seq[:, :-1]], axis=1)
  x = jnp.transpose(x, (1, 0, 2))                                 # [T, B, 64]
  x = jnp.pad(x, ((0, 0), (0, BPAD - B), (0, PACK - NUM_INPUTS)))  # [T, 8, 128]

  wstk0 = _pack_params(params)

  grid_spec = pltpu.PrefetchScalarGridSpec(
      num_scalar_prefetch=0,
      grid=(1,),
      in_specs=[
          pl.BlockSpec((T, BPAD, PACK), lambda i: (0, 0, 0)),     # inputs
          pl.BlockSpec((2 * PACK, PACK), lambda i: (0, 0)),        # weight stack
      ],
      out_specs=(
          pl.BlockSpec((T, BPAD, PACK), lambda i: (0, 0, 0)),     # rate history
          pl.BlockSpec((BPAD, PACK), lambda i: (0, 0)),            # final rates
          pl.BlockSpec((BPAD, PACK), lambda i: (0, 0)),            # final adapt.
          pl.BlockSpec((2 * PACK, PACK), lambda i: (0, 0)),        # weight stack
      ),
      scratch_shapes=[
          pltpu.VMEM((PACK, PACK), jnp.float32),   # signed structural mask
      ],
  )
  out_shape = (
      jax.ShapeDtypeStruct((T, BPAD, PACK), jnp.float32),
      jax.ShapeDtypeStruct((BPAD, PACK), jnp.float32),
      jax.ShapeDtypeStruct((BPAD, PACK), jnp.float32),
      jax.ShapeDtypeStruct((2 * PACK, PACK), jnp.float32),
  )
  rhist, r_f, a_f, wstk_f = pl.pallas_call(
      adaptation_seq_kernel,
      grid_spec=grid_spec,
      out_shape=out_shape,
      compiler_params=pltpu.CompilerParams(
          dimension_semantics=("arbitrary",)),
  )(x, wstk0)

  rhist = rhist[:, :B, :]
  hist = {"E": jnp.transpose(rhist[:, :, E0:E1], (1, 0, 2)),
          "VIP": jnp.transpose(rhist[:, :, V0:V1], (1, 0, 2)),
          "SST": jnp.transpose(rhist[:, :, S0:S1], (1, 0, 2))}
  r_f = r_f[:B]
  a_f = a_f[:B]
  state = (r_f[:, E0:E1], r_f[:, V0:V1], r_f[:, S0:S1],
           a_f[:, E0:E1], a_f[:, V0:V1], a_f[:, S0:S1])
  new_params = _unpack_params(wstk_f)
  return hist, state, new_params


# ---------------------------- pure-JAX reference --------------------------------
_PREC = lax.Precision.HIGHEST


def _lin(x, w):
  return lax.dot_general(x, w, (((1,), (1,)), ((), ())),
                         preferred_element_type=jnp.float32, precision=_PREC)


def _hebb(w, pre, post, batch):
  corr = lax.dot_general(post, pre, (((0,), (0,)), ((), ())),
                         preferred_element_type=jnp.float32,
                         precision=_PREC) / batch
  return w + ETA * (corr - ALPHA * w)


def _positive(w):
  return jnp.maximum(w, 0.0)


def _negative(w):
  return -jnp.maximum(-w, 0.0)


def _zero_diag(w):
  r = lax.broadcasted_iota(jnp.int32, w.shape, 0)
  c = lax.broadcasted_iota(jnp.int32, w.shape, 1)
  return jnp.where(r == c, jnp.zeros_like(w), w)


def _row_normalize(w):
  ss = jnp.sum(w * w, axis=1, keepdims=True)
  return w * jnp.where(ss > 0, lax.rsqrt(ss), 0.0)


@jax.jit
def _step_ref(x, state, params):
  r_E, r_VIP, r_SST, A_E, A_VIP, A_SST = state
  (W_IE, W_IS, W_EV, W_VE, W_ES, W_SE, W_VS, W_EE, W_VV, W_SS) = params
  batch = x.shape[0]

  I_E = _lin(x, W_IE)
  A_E = A_E + (-A_E + G_E * r_E) * (DT / TAU_A)
  A_VIP = A_VIP + (-A_VIP + G_VIP * r_VIP) * (DT / TAU_A)
  A_SST = A_SST + (-A_SST + G_SST * r_SST) * (DT / TAU_A)

  net_E = I_E + _lin(r_SST, W_SE) + _lin(r_VIP, W_VE) + _lin(r_E, W_EE) - A_E
  r_E = r_E + (-r_E + jnp.maximum(net_E, 0.0)) * (DT / TAU_E)
  net_VIP = _lin(r_E, W_EV) + _lin(r_VIP, W_VV) - A_VIP
  r_VIP = r_VIP + (-r_VIP + jnp.maximum(net_VIP, 0.0)) * (DT / TAU_VIP)
  net_SST = _lin(r_VIP, W_VS) + _lin(r_SST, W_SS) + _lin(x, W_IS) - A_SST
  r_SST = r_SST + (-r_SST + jnp.maximum(net_SST, 0.0)) * (DT / TAU_SST)

  W_IE = _hebb(W_IE, x, r_E, batch)
  W_EV = _hebb(W_EV, r_E, r_VIP, batch)
  W_VE = _hebb(W_VE, r_VIP, r_E, batch)
  W_ES = _hebb(W_ES, r_E, r_SST, batch)
  W_SE = _hebb(W_SE, r_SST, r_E, batch)
  W_VS = _hebb(W_VS, r_VIP, r_SST, batch)
  W_EE = _hebb(W_EE, r_E, r_E, batch)
  W_VV = _hebb(W_VV, r_VIP, r_VIP, batch)
  W_SS = _hebb(W_SS, r_SST, r_SST, batch)

  W_EV = _positive(W_EV)
  W_ES = _positive(W_ES)
  W_VE = _negative(W_VE)
  W_SE = _negative(W_SE)
  W_VS = _negative(W_VS)
  W_EE = _zero_diag(_positive(W_EE))
  W_VV = _zero_diag(_negative(W_VV))
  W_SS = _zero_diag(_negative(W_SS))

  W_EV = _row_normalize(W_EV)
  W_VE = _row_normalize(W_VE)
  W_ES = _row_normalize(W_ES)
  W_SE = _row_normalize(W_SE)
  W_VS = _row_normalize(W_VS)
  W_EE = _row_normalize(W_EE)
  W_VV = _row_normalize(W_VV)
  W_SS = _row_normalize(W_SS)

  new_state = (r_E, r_VIP, r_SST, A_E, A_VIP, A_SST)
  new_params = (W_IE, W_IS, W_EV, W_VE, W_ES, W_SE, W_VS, W_EE, W_VV, W_SS)
  return new_state, new_params


def forward_sequence_ref(input_seq, params):
  B, T, _ = input_seq.shape
  z = lambda n: jnp.zeros((B, n), jnp.float32)
  state = (z(N_E), z(N_VIP), z(N_SST), z(N_E), z(N_VIP), z(N_SST))
  params = tuple(params)
  hE, hV, hS = [], [], []
  for t in range(T):
    xt = jnp.zeros((B, NUM_INPUTS), jnp.float32) if t == 0 else input_seq[:, t - 1]
    state, params = _step_ref(xt, state, params)
    hE.append(state[0]); hV.append(state[1]); hS.append(state[2])
  hist = {"E": jnp.stack(hE, axis=1), "VIP": jnp.stack(hV, axis=1),
          "SST": jnp.stack(hS, axis=1)}
  return hist, state, params


# ------------------------- parameter initialization -----------------------------
def init_params(key):
  def linear_init(k, out_f, in_f):
    bound = 1.0 / jnp.sqrt(jnp.float32(in_f))
    return jax.random.uniform(k, (out_f, in_f), jnp.float32, -bound, bound)

  ks = jax.random.split(key, 10)
  W_IE = linear_init(ks[0], N_E, NUM_INPUTS)
  W_IS = linear_init(ks[1], N_SST, NUM_INPUTS)
  W_EV = linear_init(ks[2], N_VIP, N_E)
  W_VE = linear_init(ks[3], N_E, N_VIP)
  W_ES = linear_init(ks[4], N_SST, N_E)
  W_SE = linear_init(ks[5], N_E, N_SST)
  W_VS = linear_init(ks[6], N_SST, N_VIP)
  W_EE = linear_init(ks[7], N_E, N_E)
  W_VV = linear_init(ks[8], N_VIP, N_VIP)
  W_SS = linear_init(ks[9], N_SST, N_SST)

  # __init__ calls enforce_weight_constraints() once (no normalization).
  W_EV = _positive(W_EV)
  W_ES = _positive(W_ES)
  W_VE = _negative(W_VE)
  W_SE = _negative(W_SE)
  W_VS = _negative(W_VS)
  W_EE = _zero_diag(_positive(W_EE))
  W_VV = _zero_diag(_negative(W_VV))
  W_SS = _zero_diag(_negative(W_SS))
  return (W_IE, W_IS, W_EV, W_VE, W_ES, W_SE, W_VS, W_EE, W_VV, W_SS)


# ----------------------------------- main ----------------------------------------
if __name__ == "__main__":
  key = jax.random.PRNGKey(0)
  k_params, k_seq = jax.random.split(key)

  params = init_params(k_params)
  input_seq = jax.random.normal(k_seq, (BATCH, SEQ_LEN, NUM_INPUTS), jnp.float32)

  hist_p, state_p, params_p = forward_sequence_pallas(input_seq, params)
  hist_p = jax.block_until_ready(hist_p)
  state_p = jax.block_until_ready(state_p)
  params_p = jax.block_until_ready(params_p)

  hist_r, state_r, params_r = forward_sequence_ref(input_seq, params)

  pairs = ([(hist_p[k], hist_r[k]) for k in ("E", "VIP", "SST")]
           + list(zip(state_p, state_r))
           + list(zip(params_p, params_r)))
  ok = True
  for a, b in pairs:
    ok &= bool(jnp.all(jnp.isfinite(a)))
    ok &= bool(jnp.allclose(a, b, rtol=2e-3, atol=1e-4))

  print("KERNEL_OK" if ok else "MISMATCH")
</pallas_src>

<mosaic_0001>
module attributes {stable_mosaic.version = 11 : i64} {
  func.func @adaptation_seq_kernel(%arg0: i32, %arg1: memref<8x8x128xf32, #tpu.memory_space<vmem>>, %arg2: memref<256x128xf32, #tpu.memory_space<vmem>>, %arg3: memref<8x8x128xf32, #tpu.memory_space<vmem>>, %arg4: memref<8x128xf32, #tpu.memory_space<vmem>>, %arg5: memref<8x128xf32, #tpu.memory_space<vmem>>, %arg6: memref<256x128xf32, #tpu.memory_space<vmem>>, %arg7: memref<128x128xf32, #tpu.memory_space<vmem>>) attributes {dimension_semantics = [#tpu.dimension_semantics<arbitrary>], iteration_bounds = array<i64: 1>, scalar_prefetch = 0 : i64, scratch_operands = 1 : i64, tpu.core_type = #tpu.core_type<tc>, window_params = [{pipeline_mode = #tpu.pipeline_mode<synchronous>, transform_indices = @transform_0, window_bounds = array<i64: 8, 8, 128>}, {pipeline_mode = #tpu.pipeline_mode<synchronous>, transform_indices = @transform_1, window_bounds = array<i64: 256, 128>}, {pipeline_mode = #tpu.pipeline_mode<synchronous>, transform_indices = @transform_2, window_bounds = array<i64: 8, 8, 128>}, {pipeline_mode = #tpu.pipeline_mode<synchronous>, transform_indices = @transform_3, window_bounds = array<i64: 8, 128>}, {pipeline_mode = #tpu.pipeline_mode<synchronous>, transform_indices = @transform_4, window_bounds = array<i64: 8, 128>}, {pipeline_mode = #tpu.pipeline_mode<synchronous>, transform_indices = @transform_5, window_bounds = array<i64: 256, 128>}]} {
    %0 = tpu.iota {dimensions = array<i32: 1>} : vector<1x128xi32>
    %c64_i32 = arith.constant 64 : i32
    %1 = vector.broadcast %c64_i32 : i32 to vector<1x128xi32>
    %2 = arith.cmpi slt, %0, %1 : vector<1x128xi32>
    %3 = arith.extui %2 : vector<1x128xi1> to vector<1x128xi32>
    %4 = arith.sitofp %3 : vector<1x128xi32> to vector<1x128xf32>
    %c64_i32_0 = arith.constant 64 : i32
    %5 = vector.broadcast %c64_i32_0 : i32 to vector<1x128xi32>
    %6 = arith.cmpi sge, %0, %5 : vector<1x128xi32>
    %c96_i32 = arith.constant 96 : i32
    %7 = vector.broadcast %c96_i32 : i32 to vector<1x128xi32>
    %8 = arith.cmpi slt, %0, %7 : vector<1x128xi32>
    %9 = arith.andi %6, %8 : vector<1x128xi1>
    %10 = arith.extui %9 : vector<1x128xi1> to vector<1x128xi32>
    %11 = arith.sitofp %10 : vector<1x128xi32> to vector<1x128xf32>
    %c96_i32_1 = arith.constant 96 : i32
    %12 = vector.broadcast %c96_i32_1 : i32 to vector<1x128xi32>
    %13 = arith.cmpi sge, %0, %12 : vector<1x128xi32>
    %14 = arith.extui %13 : vector<1x128xi1> to vector<1x128xi32>
    %15 = arith.sitofp %14 : vector<1x128xi32> to vector<1x128xf32>
    %cst = arith.constant 1.000000e+00 : f32
    %16 = vector.broadcast %cst : f32 to vector<1x128xf32>
    %17 = arith.mulf %16, %4 : vector<1x128xf32>
    %cst_2 = arith.constant 1.000000e+00 : f32
    %18 = vector.broadcast %cst_2 : f32 to vector<1x128xf32>
    %19 = arith.mulf %18, %11 : vector<1x128xf32>
    %20 = arith.addf %17, %19 : vector<1x128xf32>
    %cst_3 = arith.constant 5.000000e-01 : f32
    %21 = vector.broadcast %cst_3 : f32 to vector<1x128xf32>
    %22 = arith.mulf %21, %15 : vector<1x128xf32>
    %23 = arith.addf %20, %22 : vector<1x128xf32>
    %cst_4 = arith.constant 5.000000e-02 : f32
    %24 = vector.broadcast %cst_4 : f32 to vector<1x128xf32>
    %25 = arith.mulf %24, %4 : vector<1x128xf32>
    %cst_5 = arith.constant 5.000000e-02 : f32
    %26 = vector.broadcast %cst_5 : f32 to vector<1x128xf32>
    %27 = arith.mulf %26, %11 : vector<1x128xf32>
    %28 = arith.addf %25, %27 : vector<1x128xf32>
    %cst_6 = arith.constant 5.000000e-02 : f32
    %29 = vector.broadcast %cst_6 : f32 to vector<1x128xf32>
    %30 = arith.mulf %29, %15 : vector<1x128xf32>
    %31 = arith.addf %28, %30 : vector<1x128xf32>
    %32 = tpu.iota {dimensions = array<i32: 0>} : vector<128x128xi32>
    %33 = tpu.iota {dimensions = array<i32: 1>} : vector<128x128xi32>
    %c96_i32_7 = arith.constant 96 : i32
    %34 = vector.broadcast %c96_i32_7 : i32 to vector<128x128xi32>
    %35 = arith.cmpi sge, %32, %34 : vector<128x128xi32>
    %c64_i32_8 = arith.constant 64 : i32
    %36 = vector.broadcast %c64_i32_8 : i32 to vector<128x128xi32>
    %37 = arith.cmpi sge, %33, %36 : vector<128x128xi32>
    %c96_i32_9 = arith.constant 96 : i32
    %38 = vector.broadcast %c96_i32_9 : i32 to vector<128x128xi32>
    %39 = arith.cmpi slt, %33, %38 : vector<128x128xi32>
    %40 = arith.andi %37, %39 : vector<128x128xi1>
    %41 = arith.andi %35, %40 : vector<128x128xi1>
    %c64_i32_10 = arith.constant 64 : i32
    %42 = vector.broadcast %c64_i32_10 : i32 to vector<128x128xi32>
    %43 = arith.cmpi slt, %32, %42 : vector<128x128xi32>
    %c96_i32_11 = arith.constant 96 : i32
    %44 = vector.broadcast %c96_i32_11 : i32 to vector<128x128xi32>
    %45 = arith.cmpi sge, %33, %44 : vector<128x128xi32>
    %46 = arith.andi %43, %45 : vector<128x128xi1>
    %cst_12 = arith.constant dense<true> : vector<128x128xi1>
    %47 = arith.xori %41, %cst_12 : vector<128x128xi1>
    %cst_13 = arith.constant dense<true> : vector<128x128xi1>
    %48 = arith.xori %46, %cst_13 : vector<128x128xi1>
    %49 = arith.cmpi ne, %32, %33 : vector<128x128xi32>
    %50 = arith.andi %48, %49 : vector<128x128xi1>
    %51 = arith.andi %47, %50 : vector<128x128xi1>
    %c64_i32_14 = arith.constant 64 : i32
    %52 = vector.broadcast %c64_i32_14 : i32 to vector<128x128xi32>
    %53 = arith.cmpi slt, %32, %52 : vector<128x128xi32>
    %cst_15 = arith.constant 1.000000e+00 : f32
    %cst_16 = arith.constant -1.000000e+00 : f32
    %54 = vector.broadcast %cst_15 : f32 to vector<128x128xf32>
    %55 = vector.broadcast %cst_16 : f32 to vector<128x128xf32>
    %56 = arith.select %53, %54, %55 : vector<128x128xi1>, vector<128x128xf32>
    %cst_17 = arith.constant 0.000000e+00 : f32
    %57 = vector.broadcast %cst_17 : f32 to vector<128x128xf32>
    %58 = arith.select %51, %56, %57 : vector<128x128xi1>, vector<128x128xf32>
    %c0 = arith.constant 0 : index
    %c0_18 = arith.constant 0 : index
    %59 = vector.load %arg7[%c0, %c0_18] : memref<128x128xf32, #tpu.memory_space<vmem>>, vector<128x128xf32>
    tpu.vector_store %arg7[%c0, %c0_18], %58 {strides = array<i32>} : memref<128x128xf32, #tpu.memory_space<vmem>>, vector<128x128xf32>,
    %c0_19 = arith.constant 0 : index
    %c0_20 = arith.constant 0 : index
    %60 = vector.load %arg2[%c0_19, %c0_20] : memref<256x128xf32, #tpu.memory_space<vmem>>, vector<256x128xf32>
    %c0_21 = arith.constant 0 : index
    %c0_22 = arith.constant 0 : index
    %61 = vector.load %arg6[%c0_21, %c0_22] : memref<256x128xf32, #tpu.memory_space<vmem>>, vector<256x128xf32>
    tpu.vector_store %arg6[%c0_21, %c0_22], %60 {strides = array<i32>} : memref<256x128xf32, #tpu.memory_space<vmem>>, vector<256x128xf32>,
    %cst_23 = arith.constant 0.000000e+00 : f32
    %62 = vector.broadcast %cst_23 : f32 to vector<8x128xf32>
    %cst_24 = arith.constant 0.000000e+00 : f32
    %63 = vector.broadcast %cst_24 : f32 to vector<8x128xf32>
    %c0_25 = arith.constant 0 : index
    %c0_26 = arith.constant 0 : index
    %c0_27 = arith.constant 0 : index
    %64 = vector.load %arg1[%c0_25, %c0_26, %c0_27] : memref<8x8x128xf32, #tpu.memory_space<vmem>>, vector<1x8x128xf32>
    %65 = vector.shape_cast %64 : vector<1x8x128xf32> to vector<8x128xf32>
    %66 = vector.broadcast %23 : vector<1x128xf32> to vector<8x128xf32>
    %67 = arith.mulf %66, %62 : vector<8x128xf32>
    %68 = arith.subf %67, %63 : vector<8x128xf32>
    %cst_28 = arith.constant 5.000000e-03 : f32
    %69 = vector.broadcast %cst_28 : f32 to vector<8x128xf32>
    %70 = arith.mulf %68, %69 : vector<8x128xf32>
    %71 = arith.addf %63, %70 : vector<8x128xf32>
    %72 = tpu.concatenate %65, %62 in 1 : vector<8x128xf32>, vector<8x128xf32> -> vector<8x256xf32>
    %c0_29 = arith.constant 0 : index
    %c0_30 = arith.constant 0 : index
    %73 = vector.load %arg6[%c0_29, %c0_30] : memref<256x128xf32, #tpu.memory_space<vmem>>, vector<256x128xf32>
    %cst_31 = arith.constant dense<0.000000e+00> : vector<8x128xf32>
    %74 = tpu.matmul %72, %73, %cst_31 {dimension_numbers = #tpu.dot_dimension_numbers<[1], [0], [0], [1], [0, 0, 1, 1], [], []>} : vector<8x256xf32>, vector<256x128xf32>, vector<8x128xf32> -> vector<8x128xf32>
    %75 = arith.subf %74, %71 : vector<8x128xf32>
    %cst_32 = arith.constant 0.000000e+00 : f32
    %76 = vector.broadcast %cst_32 : f32 to vector<8x128xf32>
    %77 = arith.maximumf %75, %76 : vector<8x128xf32>
    %78 = arith.subf %77, %62 : vector<8x128xf32>
    %79 = vector.broadcast %31 : vector<1x128xf32> to vector<8x128xf32>
    %80 = arith.mulf %78, %79 : vector<8x128xf32>
    %81 = arith.addf %62, %80 : vector<8x128xf32>
    %82 = arith.subf %81, %62 : vector<8x128xf32>
    %83 = vector.broadcast %4 : vector<1x128xf32> to vector<8x128xf32>
    %84 = arith.mulf %83, %82 : vector<8x128xf32>
    %85 = arith.addf %62, %84 : vector<8x128xf32>
    %86 = vector.extract_strided_slice %82 {offsets = [0, 0], sizes = [8, 64], strides = [1, 1]} : vector<8x128xf32> to vector<8x64xf32>
    %c128 = arith.constant 128 : index
    %c0_33 = arith.constant 0 : index
    %87 = vector.load %arg6[%c128, %c0_33] : memref<256x128xf32, #tpu.memory_space<vmem>>, vector<64x128xf32>
    %cst_34 = arith.constant dense<0.000000e+00> : vector<8x128xf32>
    %88 = tpu.matmul %86, %87, %cst_34 {dimension_numbers = #tpu.dot_dimension_numbers<[1], [0], [0], [1], [0, 0, 1, 1], [], []>} : vector<8x64xf32>, vector<64x128xf32>, vector<8x128xf32> -> vector<8x128xf32>
    %89 = arith.addf %75, %88 : vector<8x128xf32>
    %cst_35 = arith.constant 0.000000e+00 : f32
    %90 = vector.broadcast %cst_35 : f32 to vector<8x128xf32>
    %91 = arith.maximumf %89, %90 : vector<8x128xf32>
    %92 = arith.subf %91, %85 : vector<8x128xf32>
    %93 = vector.broadcast %31 : vector<1x128xf32> to vector<8x128xf32>
    %94 = arith.mulf %92, %93 : vector<8x128xf32>
    %95 = arith.addf %85, %94 : vector<8x128xf32>
    %96 = arith.subf %95, %85 : vector<8x128xf32>
    %97 = vector.broadcast %11 : vector<1x128xf32> to vector<8x128xf32>
    %98 = arith.mulf %97, %96 : vector<8x128xf32>
    %99 = arith.addf %85, %98 : vector<8x128xf32>
    %100 = vector.extract_strided_slice %96 {offsets = [0, 64], sizes = [8, 32], strides = [1, 1]} : vector<8x128xf32> to vector<8x32xf32>
    %c192 = arith.constant 192 : index
    %c0_36 = arith.constant 0 : index
    %101 = vector.load %arg6[%c192, %c0_36] : memref<256x128xf32, #tpu.memory_space<vmem>>, vector<32x128xf32>
    %cst_37 = arith.constant dense<0.000000e+00> : vector<8x128xf32>
    %102 = tpu.matmul %100, %101, %cst_37 {dimension_numbers = #tpu.dot_dimension_numbers<[1], [0], [0], [1], [0, 0, 1, 1], [], []>} : vector<8x32xf32>, vector<32x128xf32>, vector<8x128xf32> -> vector<8x128xf32>
    %103 = arith.addf %89, %102 : vector<8x128xf32>
    %cst_38 = arith.constant 0.000000e+00 : f32
    %104 = vector.broadcast %cst_38 : f32 to vector<8x128xf32>
    %105 = arith.maximumf %103, %104 : vector<8x128xf32>
    %106 = arith.subf %105, %99 : vector<8x128xf32>
    %107 = vector.broadcast %31 : vector<1x128xf32> to vector<8x128xf32>
    %108 = arith.mulf %106, %107 : vector<8x128xf32>
    %109 = arith.addf %99, %108 : vector<8x128xf32>
    %110 = arith.subf %109, %99 : vector<8x128xf32>
    %111 = vector.broadcast %15 : vector<1x128xf32> to vector<8x128xf32>
    %112 = arith.mulf %111, %110 : vector<8x128xf32>
    %113 = arith.addf %99, %112 : vector<8x128xf32>
    %c0_39 = arith.constant 0 : index
    %c0_40 = arith.constant 0 : index
    %c0_41 = arith.constant 0 : index
    %114 = vector.load %arg3[%c0_39, %c0_40, %c0_41] : memref<8x8x128xf32, #tpu.memory_space<vmem>>, vector<1x8x128xf32>
    %115 = vector.shape_cast %114 : vector<1x8x128xf32> to vector<8x128xf32>
    %116 = vector.shape_cast %113 : vector<8x128xf32> to vector<1x8x128xf32>
    tpu.vector_store %arg3[%c0_39, %c0_40, %c0_41], %116 {strides = array<i32>} : memref<8x8x128xf32, #tpu.memory_space<vmem>>, vector<1x8x128xf32>,
    %117 = vector.extract_strided_slice %65 {offsets = [0, 0], sizes = [8, 64], strides = [1, 1]} : vector<8x128xf32> to vector<8x64xf32>
    %118 = vector.extract_strided_slice %113 {offsets = [0, 0], sizes = [8, 64], strides = [1, 1]} : vector<8x128xf32> to vector<8x64xf32>
    %119 = tpu.concatenate %117, %118 in 1 : vector<8x64xf32>, vector<8x64xf32> -> vector<8x128xf32>
    %cst_42 = arith.constant dense<0.000000e+00> : vector<128x128xf32>
    %120 = tpu.matmul %119, %113, %cst_42 {dimension_numbers = #tpu.dot_dimension_numbers<[0], [0], [1], [1], [0, 1, 1, 1], [], []>} : vector<8x128xf32>, vector<8x128xf32>, vector<128x128xf32> -> vector<128x128xf32>
    %cst_43 = arith.constant 5.000000e-01 : f32
    %121 = vector.broadcast %cst_43 : f32 to vector<128x128xf32>
    %122 = arith.mulf %120, %121 : vector<128x128xf32>
    %c0_44 = arith.constant 0 : index
    %c0_45 = arith.constant 0 : index
    %123 = vector.load %arg6[%c0_44, %c0_45] : memref<256x128xf32, #tpu.memory_space<vmem>>, vector<64x128xf32>
    %cst_46 = arith.constant 1.000000e-03 : f32
    %124 = vector.broadcast %cst_46 : f32 to vector<1x128xf32>
    %125 = arith.mulf %124, %4 : vector<1x128xf32>
    %126 = vector.extract_strided_slice %122 {offsets = [0, 0], sizes = [64, 128], strides = [1, 1]} : vector<128x128xf32> to vector<64x128xf32>
    %cst_47 = arith.constant 1.000000e-03 : f32
    %127 = vector.broadcast %cst_47 : f32 to vector<64x128xf32>
    %128 = arith.mulf %127, %123 : vector<64x128xf32>
    %129 = arith.subf %126, %128 : vector<64x128xf32>
    %130 = vector.broadcast %125 : vector<1x128xf32> to vector<64x128xf32>
    %131 = arith.mulf %130, %129 : vector<64x128xf32>
    %132 = arith.addf %123, %131 : vector<64x128xf32>
    %c0_48 = arith.constant 0 : index
    %c0_49 = arith.constant 0 : index
    %133 = vector.load %arg6[%c0_48, %c0_49] : memref<256x128xf32, #tpu.memory_space<vmem>>, vector<64x128xf32>
    tpu.vector_store %arg6[%c0_48, %c0_49], %132 {strides = array<i32>} : memref<256x128xf32, #tpu.memory_space<vmem>>, vector<64x128xf32>,
    %c64 = arith.constant 64 : index
    %c0_50 = arith.constant 0 : index
    %134 = vector.load %arg6[%c64, %c0_50] : memref<256x128xf32, #tpu.memory_space<vmem>>, vector<64x128xf32>
    %cst_51 = arith.constant 1.000000e-03 : f32
    %135 = vector.broadcast %cst_51 : f32 to vector<1x128xf32>
    %136 = arith.mulf %135, %15 : vector<1x128xf32>
    %137 = vector.extract_strided_slice %122 {offsets = [64, 0], sizes = [64, 128], strides = [1, 1]} : vector<128x128xf32> to vector<64x128xf32>
    %cst_52 = arith.constant 1.000000e-03 : f32
    %138 = vector.broadcast %cst_52 : f32 to vector<64x128xf32>
    %139 = arith.mulf %138, %134 : vector<64x128xf32>
    %140 = arith.subf %137, %139 : vector<64x128xf32>
    %141 = vector.broadcast %136 : vector<1x128xf32> to vector<64x128xf32>
    %142 = arith.mulf %141, %140 : vector<64x128xf32>
    %143 = arith.addf %134, %142 : vector<64x128xf32>
    %cst_53 = arith.constant 0.000000e+00 : f32
    %144 = vector.broadcast %cst_53 : f32 to vector<64x128xf32>
    %145 = arith.maximumf %143, %144 : vector<64x128xf32>
    %146 = arith.mulf %145, %145 : vector<64x128xf32>
    %cst_54 = arith.constant dense<0.000000e+00> : vector<128xf32>
    %147 = vector.multi_reduction <add>, %146, %cst_54 [0] : vector<64x128xf32> to vector<128xf32>
    %148 = vector.shape_cast %147 : vector<128xf32> to vector<1x128xf32>
    %cst_55 = arith.constant 0.000000e+00 : f32
    %149 = vector.broadcast %cst_55 : f32 to vector<1x128xf32>
    %150 = arith.cmpf ogt, %148, %149 : vector<1x128xf32>
    %151 = math.rsqrt %148 : vector<1x128xf32>
    %cst_56 = arith.constant 0.000000e+00 : f32
    %152 = vector.broadcast %cst_56 : f32 to vector<1x128xf32>
    %153 = arith.select %150, %151, %152 : vector<1x128xi1>, vector<1x128xf32>
    %154 = vector.broadcast %153 : vector<1x128xf32> to vector<64x128xf32>
    %155 = arith.mulf %145, %154 : vector<64x128xf32>
    %c64_57 = arith.constant 64 : index
    %c0_58 = arith.constant 0 : index
    %156 = vector.load %arg6[%c64_57, %c0_58] : memref<256x128xf32, #tpu.memory_space<vmem>>, vector<64x128xf32>
    tpu.vector_store %arg6[%c64_57, %c0_58], %155 {strides = array<i32>} : memref<256x128xf32, #tpu.memory_space<vmem>>, vector<64x128xf32>,
    %cst_59 = arith.constant dense<0.000000e+00> : vector<128x128xf32>
    %157 = tpu.matmul %113, %113, %cst_59 {dimension_numbers = #tpu.dot_dimension_numbers<[0], [0], [1], [1], [0, 1, 1, 1], [], []>} : vector<8x128xf32>, vector<8x128xf32>, vector<128x128xf32> -> vector<128x128xf32>
    %cst_60 = arith.constant 5.000000e-01 : f32
    %158 = vector.broadcast %cst_60 : f32 to vector<128x128xf32>
    %159 = arith.mulf %157, %158 : vector<128x128xf32>
    %c128_61 = arith.constant 128 : index
    %c0_62 = arith.constant 0 : index
    %160 = vector.load %arg6[%c128_61, %c0_62] : memref<256x128xf32, #tpu.memory_space<vmem>>, vector<128x128xf32>
    %cst_63 = arith.constant 1.000000e-03 : f32
    %161 = vector.broadcast %cst_63 : f32 to vector<128x128xf32>
    %162 = arith.mulf %161, %160 : vector<128x128xf32>
    %163 = arith.subf %159, %162 : vector<128x128xf32>
    %cst_64 = arith.constant 1.000000e-03 : f32
    %164 = vector.broadcast %cst_64 : f32 to vector<128x128xf32>
    %165 = arith.mulf %164, %163 : vector<128x128xf32>
    %166 = arith.addf %160, %165 : vector<128x128xf32>
    %c0_65 = arith.constant 0 : index
    %c0_66 = arith.constant 0 : index
    %167 = vector.load %arg7[%c0_65, %c0_66] : memref<128x128xf32, #tpu.memory_space<vmem>>, vector<128x128xf32>
    %168 = arith.mulf %167, %166 : vector<128x128xf32>
    %cst_67 = arith.constant 0.000000e+00 : f32
    %169 = vector.broadcast %cst_67 : f32 to vector<128x128xf32>
    %170 = arith.maximumf %168, %169 : vector<128x128xf32>
    %171 = arith.mulf %167, %170 : vector<128x128xf32>
    %172 = arith.mulf %171, %171 : vector<128x128xf32>
    %173 = vector.extract_strided_slice %172 {offsets = [0, 0], sizes = [64, 128], strides = [1, 1]} : vector<128x128xf32> to vector<64x128xf32>
    %cst_68 = arith.constant dense<0.000000e+00> : vector<128xf32>
    %174 = vector.multi_reduction <add>, %173, %cst_68 [0] : vector<64x128xf32> to vector<128xf32>
    %175 = vector.shape_cast %174 : vector<128xf32> to vector<1x128xf32>
    %176 = vector.extract_strided_slice %172 {offsets = [64, 0], sizes = [32, 128], strides = [1, 1]} : vector<128x128xf32> to vector<32x128xf32>
    %cst_69 = arith.constant dense<0.000000e+00> : vector<128xf32>
    %177 = vector.multi_reduction <add>, %176, %cst_69 [0] : vector<32x128xf32> to vector<128xf32>
    %178 = vector.shape_cast %177 : vector<128xf32> to vector<1x128xf32>
    %179 = vector.extract_strided_slice %172 {offsets = [96, 0], sizes = [32, 128], strides = [1, 1]} : vector<128x128xf32> to vector<32x128xf32>
    %cst_70 = arith.constant dense<0.000000e+00> : vector<128xf32>
    %180 = vector.multi_reduction <add>, %179, %cst_70 [0] : vector<32x128xf32> to vector<128xf32>
    %181 = vector.shape_cast %180 : vector<128xf32> to vector<1x128xf32>
    %cst_71 = arith.constant 0.000000e+00 : f32
    %182 = vector.broadcast %cst_71 : f32 to vector<1x128xf32>
    %183 = arith.cmpf ogt, %175, %182 : vector<1x128xf32>
    %184 = math.rsqrt %175 : vector<1x128xf32>
    %cst_72 = arith.constant 0.000000e+00 : f32
    %185 = vector.broadcast %cst_72 : f32 to vector<1x128xf32>
    %186 = arith.select %183, %184, %185 : vector<1x128xi1>, vector<1x128xf32>
    %cst_73 = arith.constant 0.000000e+00 : f32
    %187 = vector.broadcast %cst_73 : f32 to vector<1x128xf32>
    %188 = arith.cmpf ogt, %178, %187 : vector<1x128xf32>
    %189 = math.rsqrt %178 : vector<1x128xf32>
    %cst_74 = arith.constant 0.000000e+00 : f32
    %190 = vector.broadcast %cst_74 : f32 to vector<1x128xf32>
    %191 = arith.select %188, %189, %190 : vector<1x128xi1>, vector<1x128xf32>
    %cst_75 = arith.constant 0.000000e+00 : f32
    %192 = vector.broadcast %cst_75 : f32 to vector<1x128xf32>
    %193 = arith.cmpf ogt, %181, %192 : vector<1x128xf32>
    %194 = math.rsqrt %181 : vector<1x128xf32>
    %cst_76 = arith.constant 0.000000e+00 : f32
    %195 = vector.broadcast %cst_76 : f32 to vector<1x128xf32>
    %196 = arith.select %193, %194, %195 : vector<1x128xi1>, vector<1x128xf32>
    %197 = vector.extract_strided_slice %171 {offsets = [0, 0], sizes = [64, 128], strides = [1, 1]} : vector<128x128xf32> to vector<64x128xf32>
    %198 = vector.broadcast %186 : vector<1x128xf32> to vector<64x128xf32>
    %199 = arith.mulf %197, %198 : vector<64x128xf32>
    %200 = vector.extract_strided_slice %171 {offsets = [64, 0], sizes = [32, 128], strides = [1, 1]} : vector<128x128xf32> to vector<32x128xf32>
    %201 = vector.broadcast %191 : vector<1x128xf32> to vector<32x128xf32>
    %202 = arith.mulf %200, %201 : vector<32x128xf32>
    %203 = vector.extract_strided_slice %171 {offsets = [96, 0], sizes = [32, 128], strides = [1, 1]} : vector<128x128xf32> to vector<32x128xf32>
    %204 = vector.broadcast %196 : vector<1x128xf32> to vector<32x128xf32>
    %205 = arith.mulf %203, %204 : vector<32x128xf32>
    %206 = tpu.concatenate %199, %202, %205 in 0 : vector<64x128xf32>, vector<32x128xf32>, vector<32x128xf32> -> vector<128x128xf32>
    %c128_77 = arith.constant 128 : index
    %c0_78 = arith.constant 0 : index
    %207 = vector.load %arg6[%c128_77, %c0_78] : memref<256x128xf32, #tpu.memory_space<vmem>>, vector<128x128xf32>
    tpu.vector_store %arg6[%c128_77, %c0_78], %206 {strides = array<i32>} : memref<256x128xf32, #tpu.memory_space<vmem>>, vector<128x128xf32>,
    %c1 = arith.constant 1 : index
    %c0_79 = arith.constant 0 : index
    %c0_80 = arith.constant 0 : index
    %208 = vector.load %arg1[%c1, %c0_79, %c0_80] : memref<8x8x128xf32, #tpu.memory_space<vmem>>, vector<1x8x128xf32>
    %209 = vector.shape_cast %208 : vector<1x8x128xf32> to vector<8x128xf32>
    %210 = vector.broadcast %23 : vector<1x128xf32> to vector<8x128xf32>
    %211 = arith.mulf %210, %113 : vector<8x128xf32>
    %212 = arith.subf %211, %71 : vector<8x128xf32>
    %cst_81 = arith.constant 5.000000e-03 : f32
    %213 = vector.broadcast %cst_81 : f32 to vector<8x128xf32>
    %214 = arith.mulf %212, %213 : vector<8x128xf32>
    %215 = arith.addf %71, %214 : vector<8x128xf32>
    %216 = tpu.concatenate %209, %113 in 1 : vector<8x128xf32>, vector<8x128xf32> -> vector<8x256xf32>
    %c0_82 = arith.constant 0 : index
    %c0_83 = arith.constant 0 : index
    %217 = vector.load %arg6[%c0_82, %c0_83] : memref<256x128xf32, #tpu.memory_space<vmem>>, vector<256x128xf32>
    %cst_84 = arith.constant dense<0.000000e+00> : vector<8x128xf32>
    %218 = tpu.matmul %216, %217, %cst_84 {dimension_numbers = #tpu.dot_dimension_numbers<[1], [0], [0], [1], [0, 0, 1, 1], [], []>} : vector<8x256xf32>, vector<256x128xf32>, vector<8x128xf32> -> vector<8x128xf32>
    %219 = arith.subf %218, %215 : vector<8x128xf32>
    %cst_85 = arith.constant 0.000000e+00 : f32
    %220 = vector.broadcast %cst_85 : f32 to vector<8x128xf32>
    %221 = arith.maximumf %219, %220 : vector<8x128xf32>
    %222 = arith.subf %221, %113 : vector<8x128xf32>
    %223 = vector.broadcast %31 : vector<1x128xf32> to vector<8x128xf32>
    %224 = arith.mulf %222, %223 : vector<8x128xf32>
    %225 = arith.addf %113, %224 : vector<8x128xf32>
    %226 = arith.subf %225, %113 : vector<8x128xf32>
    %227 = vector.broadcast %4 : vector<1x128xf32> to vector<8x128xf32>
    %228 = arith.mulf %227, %226 : vector<8x128xf32>
    %229 = arith.addf %113, %228 : vector<8x128xf32>
    %230 = vector.extract_strided_slice %226 {offsets = [0, 0], sizes = [8, 64], strides = [1, 1]} : vector<8x128xf32> to vector<8x64xf32>
    %c128_86 = arith.constant 128 : index
    %c0_87 = arith.constant 0 : index
    %231 = vector.load %arg6[%c128_86, %c0_87] : memref<256x128xf32, #tpu.memory_space<vmem>>, vector<64x128xf32>
    %cst_88 = arith.constant dense<0.000000e+00> : vector<8x128xf32>
    %232 = tpu.matmul %230, %231, %cst_88 {dimension_numbers = #tpu.dot_dimension_numbers<[1], [0], [0], [1], [0, 0, 1, 1], [], []>} : vector<8x64xf32>, vector<64x128xf32>, vector<8x128xf32> -> vector<8x128xf32>
    %233 = arith.addf %219, %232 : vector<8x128xf32>
    %cst_89 = arith.constant 0.000000e+00 : f32
    %234 = vector.broadcast %cst_89 : f32 to vector<8x128xf32>
    %235 = arith.maximumf %233, %234 : vector<8x128xf32>
    %236 = arith.subf %235, %229 : vector<8x128xf32>
    %237 = vector.broadcast %31 : vector<1x128xf32> to vector<8x128xf32>
    %238 = arith.mulf %236, %237 : vector<8x128xf32>
    %239 = arith.addf %229, %238 : vector<8x128xf32>
    %240 = arith.subf %239, %229 : vector<8x128xf32>
    %241 = vector.broadcast %11 : vector<1x128xf32> to vector<8x128xf32>
    %242 = arith.mulf %241, %240 : vector<8x128xf32>
    %243 = arith.addf %229, %242 : vector<8x128xf32>
    %244 = vector.extract_strided_slice %240 {offsets = [0, 64], sizes = [8, 32], strides = [1, 1]} : vector<8x128xf32> to vector<8x32xf32>
    %c192_90 = arith.constant 192 : index
    %c0_91 = arith.constant 0 : index
    %245 = vector.load %arg6[%c192_90, %c0_91] : memref<256x128xf32, #tpu.memory_space<vmem>>, vector<32x128xf32>
    %cst_92 = arith.constant dense<0.000000e+00> : vector<8x128xf32>
    %246 = tpu.matmul %244, %245, %cst_92 {dimension_numbers = #tpu.dot_dimension_numbers<[1], [0], [0], [1], [0, 0, 1, 1], [], []>} : vector<8x32xf32>, vector<32x128xf32>, vector<8x128xf32> -> vector<8x128xf32>
    %247 = arith.addf %233, %246 : vector<8x128xf32>
    %cst_93 = arith.constant 0.000000e+00 : f32
    %248 = vector.broadcast %cst_93 : f32 to vector<8x128xf32>
    %249 = arith.maximumf %247, %248 : vector<8x128xf32>
    %250 = arith.subf %249, %243 : vector<8x128xf32>
    %251 = vector.broadcast %31 : vector<1x128xf32> to vector<8x128xf32>
    %252 = arith.mulf %250, %251 : vector<8x128xf32>
    %253 = arith.addf %243, %252 : vector<8x128xf32>
    %254 = arith.subf %253, %243 : vector<8x128xf32>
    %255 = vector.broadcast %15 : vector<1x128xf32> to vector<8x128xf32>
    %256 = arith.mulf %255, %254 : vector<8x128xf32>
    %257 = arith.addf %243, %256 : vector<8x128xf32>
    %c1_94 = arith.constant 1 : index
    %c0_95 = arith.constant 0 : index
    %c0_96 = arith.constant 0 : index
    %258 = vector.load %arg3[%c1_94, %c0_95, %c0_96] : memref<8x8x128xf32, #tpu.memory_space<vmem>>, vector<1x8x128xf32>
    %259 = vector.shape_cast %258 : vector<1x8x128xf32> to vector<8x128xf32>
    %260 = vector.shape_cast %257 : vector<8x128xf32> to vector<1x8x128xf32>
    tpu.vector_store %arg3[%c1_94, %c0_95, %c0_96], %260 {strides = array<i32>} : memref<8x8x128xf32, #tpu.memory_space<vmem>>, vector<1x8x128xf32>,
    %261 = vector.extract_strided_slice %209 {offsets = [0, 0], sizes = [8, 64], strides = [1, 1]} : vector<8x128xf32> to vector<8x64xf32>
    %262 = vector.extract_strided_slice %257 {offsets = [0, 0], sizes = [8, 64], strides = [1, 1]} : vector<8x128xf32> to vector<8x64xf32>
    %263 = tpu.concatenate %261, %262 in 1 : vector<8x64xf32>, vector<8x64xf32> -> vector<8x128xf32>
    %cst_97 = arith.constant dense<0.000000e+00> : vector<128x128xf32>
    %264 = tpu.matmul %263, %257, %cst_97 {dimension_numbers = #tpu.dot_dimension_numbers<[0], [0], [1], [1], [0, 1, 1, 1], [], []>} : vector<8x128xf32>, vector<8x128xf32>, vector<128x128xf32> -> vector<128x128xf32>
    %cst_98 = arith.constant 5.000000e-01 : f32
    %265 = vector.broadcast %cst_98 : f32 to vector<128x128xf32>
    %266 = arith.mulf %264, %265 : vector<128x128xf32>
    %c0_99 = arith.constant 0 : index
    %c0_100 = arith.constant 0 : index
    %267 = vector.load %arg6[%c0_99, %c0_100] : memref<256x128xf32, #tpu.memory_space<vmem>>, vector<64x128xf32>
    %cst_101 = arith.constant 1.000000e-03 : f32
    %268 = vector.broadcast %cst_101 : f32 to vector<1x128xf32>
    %269 = arith.mulf %268, %4 : vector<1x128xf32>
    %270 = vector.extract_strided_slice %266 {offsets = [0, 0], sizes = [64, 128], strides = [1, 1]} : vector<128x128xf32> to vector<64x128xf32>
    %cst_102 = arith.constant 1.000000e-03 : f32
    %271 = vector.broadcast %cst_102 : f32 to vector<64x128xf32>
    %272 = arith.mulf %271, %267 : vector<64x128xf32>
    %273 = arith.subf %270, %272 : vector<64x128xf32>
    %274 = vector.broadcast %269 : vector<1x128xf32> to vector<64x128xf32>
    %275 = arith.mulf %274, %273 : vector<64x128xf32>
    %276 = arith.addf %267, %275 : vector<64x128xf32>
    %c0_103 = arith.constant 0 : index
    %c0_104 = arith.constant 0 : index
    %277 = vector.load %arg6[%c0_103, %c0_104] : memref<256x128xf32, #tpu.memory_space<vmem>>, vector<64x128xf32>
    tpu.vector_store %arg6[%c0_103, %c0_104], %276 {strides = array<i32>} : memref<256x128xf32, #tpu.memory_space<vmem>>, vector<64x128xf32>,
    %c64_105 = arith.constant 64 : index
    %c0_106 = arith.constant 0 : index
    %278 = vector.load %arg6[%c64_105, %c0_106] : memref<256x128xf32, #tpu.memory_space<vmem>>, vector<64x128xf32>
    %cst_107 = arith.constant 1.000000e-03 : f32
    %279 = vector.broadcast %cst_107 : f32 to vector<1x128xf32>
    %280 = arith.mulf %279, %15 : vector<1x128xf32>
    %281 = vector.extract_strided_slice %266 {offsets = [64, 0], sizes = [64, 128], strides = [1, 1]} : vector<128x128xf32> to vector<64x128xf32>
    %cst_108 = arith.constant 1.000000e-03 : f32
    %282 = vector.broadcast %cst_108 : f32 to vector<64x128xf32>
    %283 = arith.mulf %282, %278 : vector<64x128xf32>
    %284 = arith.subf %281, %283 : vector<64x128xf32>
    %285 = vector.broadcast %280 : vector<1x128xf32> to vector<64x128xf32>
    %286 = arith.mulf %285, %284 : vector<64x128xf32>
    %287 = arith.addf %278, %286 : vector<64x128xf32>
    %cst_109 = arith.constant 0.000000e+00 : f32
    %288 = vector.broadcast %cst_109 : f32 to vector<64x128xf32>
    %289 = arith.maximumf %287, %288 : vector<64x128xf32>
    %290 = arith.mulf %289, %289 : vector<64x128xf32>
    %cst_110 = arith.constant dense<0.000000e+00> : vector<128xf32>
    %291 = vector.multi_reduction <add>, %290, %cst_110 [0] : vector<64x128xf32> to vector<128xf32>
    %292 = vector.shape_cast %291 : vector<128xf32> to vector<1x128xf32>
    %cst_111 = arith.constant 0.000000e+00 : f32
    %293 = vector.broadcast %cst_111 : f32 to vector<1x128xf32>
    %294 = arith.cmpf ogt, %292, %293 : vector<1x128xf32>
    %295 = math.rsqrt %292 : vector<1x128xf32>
    %cst_112 = arith.constant 0.000000e+00 : f32
    %296 = vector.broadcast %cst_112 : f32 to vector<1x128xf32>
    %297 = arith.select %294, %295, %296 : vector<1x128xi1>, vector<1x128xf32>
    %298 = vector.broadcast %297 : vector<1x128xf32> to vector<64x128xf32>
    %299 = arith.mulf %289, %298 : vector<64x128xf32>
    %c64_113 = arith.constant 64 : index
    %c0_114 = arith.constant 0 : index
    %300 = vector.load %arg6[%c64_113, %c0_114] : memref<256x128xf32, #tpu.memory_space<vmem>>, vector<64x128xf32>
    tpu.vector_store %arg6[%c64_113, %c0_114], %299 {strides = array<i32>} : memref<256x128xf32, #tpu.memory_space<vmem>>, vector<64x128xf32>,
    %cst_115 = arith.constant dense<0.000000e+00> : vector<128x128xf32>
    %301 = tpu.matmul %257, %257, %cst_115 {dimension_numbers = #tpu.dot_dimension_numbers<[0], [0], [1], [1], [0, 1, 1, 1], [], []>} : vector<8x128xf32>, vector<8x128xf32>, vector<128x128xf32> -> vector<128x128xf32>
    %cst_116 = arith.constant 5.000000e-01 : f32
    %302 = vector.broadcast %cst_116 : f32 to vector<128x128xf32>
    %303 = arith.mulf %301, %302 : vector<128x128xf32>
    %c128_117 = arith.constant 128 : index
    %c0_118 = arith.constant 0 : index
    %304 = vector.load %arg6[%c128_117, %c0_118] : memref<256x128xf32, #tpu.memory_space<vmem>>, vector<128x128xf32>
    %cst_119 = arith.constant 1.000000e-03 : f32
    %305 = vector.broadcast %cst_119 : f32 to vector<128x128xf32>
    %306 = arith.mulf %305, %304 : vector<128x128xf32>
    %307 = arith.subf %303, %306 : vector<128x128xf32>
    %cst_120 = arith.constant 1.000000e-03 : f32
    %308 = vector.broadcast %cst_120 : f32 to vector<128x128xf32>
    %309 = arith.mulf %308, %307 : vector<128x128xf32>
    %310 = arith.addf %304, %309 : vector<128x128xf32>
    %c0_121 = arith.constant 0 : index
    %c0_122 = arith.constant 0 : index
    %311 = vector.load %arg7[%c0_121, %c0_122] : memref<128x128xf32, #tpu.memory_space<vmem>>, vector<128x128xf32>
    %312 = arith.mulf %311, %310 : vector<128x128xf32>
    %cst_123 = arith.constant 0.000000e+00 : f32
    %313 = vector.broadcast %cst_123 : f32 to vector<128x128xf32>
    %314 = arith.maximumf %312, %313 : vector<128x128xf32>
    %315 = arith.mulf %311, %314 : vector<128x128xf32>
    %316 = arith.mulf %315, %315 : vector<128x128xf32>
    %317 = vector.extract_strided_slice %316 {offsets = [0, 0], sizes = [64, 128], strides = [1, 1]} : vector<128x128xf32> to vector<64x128xf32>
    %cst_124 = arith.constant dense<0.000000e+00> : vector<128xf32>
    %318 = vector.multi_reduction <add>, %317, %cst_124 [0] : vector<64x128xf32> to vector<128xf32>
    %319 = vector.shape_cast %318 : vector<128xf32> to vector<1x128xf32>
    %320 = vector.extract_strided_slice %316 {offsets = [64, 0], sizes = [32, 128], strides = [1, 1]} : vector<128x128xf32> to vector<32x128xf32>
    %cst_125 = arith.constant dense<0.000000e+00> : vector<128xf32>
    %321 = vector.multi_reduction <add>, %320, %cst_125 [0] : vector<32x128xf32> to vector<128xf32>
    %322 = vector.shape_cast %321 : vector<128xf32> to vector<1x128xf32>
    %323 = vector.extract_strided_slice %316 {offsets = [96, 0], sizes = [32, 128], strides = [1, 1]} : vector<128x128xf32> to vector<32x128xf32>
    %cst_126 = arith.constant dense<0.000000e+00> : vector<128xf32>
    %324 = vector.multi_reduction <add>, %323, %cst_126 [0] : vector<32x128xf32> to vector<128xf32>
    %325 = vector.shape_cast %324 : vector<128xf32> to vector<1x128xf32>
    %cst_127 = arith.constant 0.000000e+00 : f32
    %326 = vector.broadcast %cst_127 : f32 to vector<1x128xf32>
    %327 = arith.cmpf ogt, %319, %326 : vector<1x128xf32>
    %328 = math.rsqrt %319 : vector<1x128xf32>
    %cst_128 = arith.constant 0.000000e+00 : f32
    %329 = vector.broadcast %cst_128 : f32 to vector<1x128xf32>
    %330 = arith.select %327, %328, %329 : vector<1x128xi1>, vector<1x128xf32>
    %cst_129 = arith.constant 0.000000e+00 : f32
    %331 = vector.broadcast %cst_129 : f32 to vector<1x128xf32>
    %332 = arith.cmpf ogt, %322, %331 : vector<1x128xf32>
    %333 = math.rsqrt %322 : vector<1x128xf32>
    %cst_130 = arith.constant 0.000000e+00 : f32
    %334 = vector.broadcast %cst_130 : f32 to vector<1x128xf32>
    %335 = arith.select %332, %333, %334 : vector<1x128xi1>, vector<1x128xf32>
    %cst_131 = arith.constant 0.000000e+00 : f32
    %336 = vector.broadcast %cst_131 : f32 to vector<1x128xf32>
    %337 = arith.cmpf ogt, %325, %336 : vector<1x128xf32>
    %338 = math.rsqrt %325 : vector<1x128xf32>
    %cst_132 = arith.constant 0.000000e+00 : f32
    %339 = vector.broadcast %cst_132 : f32 to vector<1x128xf32>
    %340 = arith.select %337, %338, %339 : vector<1x128xi1>, vector<1x128xf32>
    %341 = vector.extract_strided_slice %315 {offsets = [0, 0], sizes = [64, 128], strides = [1, 1]} : vector<128x128xf32> to vector<64x128xf32>
    %342 = vector.broadcast %330 : vector<1x128xf32> to vector<64x128xf32>
    %343 = arith.mulf %341, %342 : vector<64x128xf32>
    %344 = vector.extract_strided_slice %315 {offsets = [64, 0], sizes = [32, 128], strides = [1, 1]} : vector<128x128xf32> to vector<32x128xf32>
    %345 = vector.broadcast %335 : vector<1x128xf32> to vector<32x128xf32>
    %346 = arith.mulf %344, %345 : vector<32x128xf32>
    %347 = vector.extract_strided_slice %315 {offsets = [96, 0], sizes = [32, 128], strides = [1, 1]} : vector<128x128xf32> to vector<32x128xf32>
    %348 = vector.broadcast %340 : vector<1x128xf32> to vector<32x128xf32>
    %349 = arith.mulf %347, %348 : vector<32x128xf32>
    %350 = tpu.concatenate %343, %346, %349 in 0 : vector<64x128xf32>, vector<32x128xf32>, vector<32x128xf32> -> vector<128x128xf32>
    %c128_133 = arith.constant 128 : index
    %c0_134 = arith.constant 0 : index
    %351 = vector.load %arg6[%c128_133, %c0_134] : memref<256x128xf32, #tpu.memory_space<vmem>>, vector<128x128xf32>
    tpu.vector_store %arg6[%c128_133, %c0_134], %350 {strides = array<i32>} : memref<256x128xf32, #tpu.memory_space<vmem>>, vector<128x128xf32>,
    %c2 = arith.constant 2 : index
    %c0_135 = arith.constant 0 : index
    %c0_136 = arith.constant 0 : index
    %352 = vector.load %arg1[%c2, %c0_135, %c0_136] : memref<8x8x128xf32, #tpu.memory_space<vmem>>, vector<1x8x128xf32>
    %353 = vector.shape_cast %352 : vector<1x8x128xf32> to vector<8x128xf32>
    %354 = vector.broadcast %23 : vector<1x128xf32> to vector<8x128xf32>
    %355 = arith.mulf %354, %257 : vector<8x128xf32>
    %356 = arith.subf %355, %215 : vector<8x128xf32>
    %cst_137 = arith.constant 5.000000e-03 : f32
    %357 = vector.broadcast %cst_137 : f32 to vector<8x128xf32>
    %358 = arith.mulf %356, %357 : vector<8x128xf32>
    %359 = arith.addf %215, %358 : vector<8x128xf32>
    %360 = tpu.concatenate %353, %257 in 1 : vector<8x128xf32>, vector<8x128xf32> -> vector<8x256xf32>
    %c0_138 = arith.constant 0 : index
    %c0_139 = arith.constant 0 : index
    %361 = vector.load %arg6[%c0_138, %c0_139] : memref<256x128xf32, #tpu.memory_space<vmem>>, vector<256x128xf32>
    %cst_140 = arith.constant dense<0.000000e+00> : vector<8x128xf32>
    %362 = tpu.matmul %360, %361, %cst_140 {dimension_numbers = #tpu.dot_dimension_numbers<[1], [0], [0], [1], [0, 0, 1, 1], [], []>} : vector<8x256xf32>, vector<256x128xf32>, vector<8x128xf32> -> vector<8x128xf32>
    %363 = arith.subf %362, %359 : vector<8x128xf32>
    %cst_141 = arith.constant 0.000000e+00 : f32
    %364 = vector.broadcast %cst_141 : f32 to vector<8x128xf32>
    %365 = arith.maximumf %363, %364 : vector<8x128xf32>
    %366 = arith.subf %365, %257 : vector<8x128xf32>
    %367 = vector.broadcast %31 : vector<1x128xf32> to vector<8x128xf32>
    %368 = arith.mulf %366, %367 : vector<8x128xf32>
    %369 = arith.addf %257, %368 : vector<8x128xf32>
    %370 = arith.subf %369, %257 : vector<8x128xf32>
    %371 = vector.broadcast %4 : vector<1x128xf32> to vector<8x128xf32>
    %372 = arith.mulf %371, %370 : vector<8x128xf32>
    %373 = arith.addf %257, %372 : vector<8x128xf32>
    %374 = vector.extract_strided_slice %370 {offsets = [0, 0], sizes = [8, 64], strides = [1, 1]} : vector<8x128xf32> to vector<8x64xf32>
    %c128_142 = arith.constant 128 : index
    %c0_143 = arith.constant 0 : index
    %375 = vector.load %arg6[%c128_142, %c0_143] : memref<256x128xf32, #tpu.memory_space<vmem>>, vector<64x128xf32>
    %cst_144 = arith.constant dense<0.000000e+00> : vector<8x128xf32>
    %376 = tpu.matmul %374, %375, %cst_144 {dimension_numbers = #tpu.dot_dimension_numbers<[1], [0], [0], [1], [0, 0, 1, 1], [], []>} : vector<8x64xf32>, vector<64x128xf32>, vector<8x128xf32> -> vector<8x128xf32>
    %377 = arith.addf %363, %376 : vector<8x128xf32>
    %cst_145 = arith.constant 0.000000e+00 : f32
    %378 = vector.broadcast %cst_145 : f32 to vector<8x128xf32>
    %379 = arith.maximumf %377, %378 : vector<8x128xf32>
    %380 = arith.subf %379, %373 : vector<8x128xf32>
    %381 = vector.broadcast %31 : vector<1x128xf32> to vector<8x128xf32>
    %382 = arith.mulf %380, %381 : vector<8x128xf32>
    %383 = arith.addf %373, %382 : vector<8x128xf32>
    %384 = arith.subf %383, %373 : vector<8x128xf32>
    %385 = vector.broadcast %11 : vector<1x128xf32> to vector<8x128xf32>
    %386 = arith.mulf %385, %384 : vector<8x128xf32>
    %387 = arith.addf %373, %386 : vector<8x128xf32>
    %388 = vector.extract_strided_slice %384 {offsets = [0, 64], sizes = [8, 32], strides = [1, 1]} : vector<8x128xf32> to vector<8x32xf32>
    %c192_146 = arith.constant 192 : index
    %c0_147 = arith.constant 0 : index
    %389 = vector.load %arg6[%c192_146, %c0_147] : memref<256x128xf32, #tpu.memory_space<vmem>>, vector<32x128xf32>
    %cst_148 = arith.constant dense<0.000000e+00> : vector<8x128xf32>
    %390 = tpu.matmul %388, %389, %cst_148 {dimension_numbers = #tpu.dot_dimension_numbers<[1], [0], [0], [1], [0, 0, 1, 1], [], []>} : vector<8x32xf32>, vector<32x128xf32>, vector<8x128xf32> -> vector<8x128xf32>
    %391 = arith.addf %377, %390 : vector<8x128xf32>
    %cst_149 = arith.constant 0.000000e+00 : f32
    %392 = vector.broadcast %cst_149 : f32 to vector<8x128xf32>
    %393 = arith.maximumf %391, %392 : vector<8x128xf32>
    %394 = arith.subf %393, %387 : vector<8x128xf32>
    %395 = vector.broadcast %31 : vector<1x128xf32> to vector<8x128xf32>
    %396 = arith.mulf %394, %395 : vector<8x128xf32>
    %397 = arith.addf %387, %396 : vector<8x128xf32>
    %398 = arith.subf %397, %387 : vector<8x128xf32>
    %399 = vector.broadcast %15 : vector<1x128xf32> to vector<8x128xf32>
    %400 = arith.mulf %399, %398 : vector<8x128xf32>
    %401 = arith.addf %387, %400 : vector<8x128xf32>
    %c2_150 = arith.constant 2 : index
    %c0_151 = arith.constant 0 : index
    %c0_152 = arith.constant 0 : index
    %402 = vector.load %arg3[%c2_150, %c0_151, %c0_152] : memref<8x8x128xf32, #tpu.memory_space<vmem>>, vector<1x8x128xf32>
    %403 = vector.shape_cast %402 : vector<1x8x128xf32> to vector<8x128xf32>
    %404 = vector.shape_cast %401 : vector<8x128xf32> to vector<1x8x128xf32>
    tpu.vector_store %arg3[%c2_150, %c0_151, %c0_152], %404 {strides = array<i32>} : memref<8x8x128xf32, #tpu.memory_space<vmem>>, vector<1x8x128xf32>,
    %405 = vector.extract_strided_slice %353 {offsets = [0, 0], sizes = [8, 64], strides = [1, 1]} : vector<8x128xf32> to vector<8x64xf32>
    %406 = vector.extract_strided_slice %401 {offsets = [0, 0], sizes = [8, 64], strides = [1, 1]} : vector<8x128xf32> to vector<8x64xf32>
    %407 = tpu.concatenate %405, %406 in 1 : vector<8x64xf32>, vector<8x64xf32> -> vector<8x128xf32>
    %cst_153 = arith.constant dense<0.000000e+00> : vector<128x128xf32>
    %408 = tpu.matmul %407, %401, %cst_153 {dimension_numbers = #tpu.dot_dimension_numbers<[0], [0], [1], [1], [0, 1, 1, 1], [], []>} : vector<8x128xf32>, vector<8x128xf32>, vector<128x128xf32> -> vector<128x128xf32>
    %cst_154 = arith.constant 5.000000e-01 : f32
    %409 = vector.broadcast %cst_154 : f32 to vector<128x128xf32>
    %410 = arith.mulf %408, %409 : vector<128x128xf32>
    %c0_155 = arith.constant 0 : index
    %c0_156 = arith.constant 0 : index
    %411 = vector.load %arg6[%c0_155, %c0_156] : memref<256x128xf32, #tpu.memory_space<vmem>>, vector<64x128xf32>
    %cst_157 = arith.constant 1.000000e-03 : f32
    %412 = vector.broadcast %cst_157 : f32 to vector<1x128xf32>
    %413 = arith.mulf %412, %4 : vector<1x128xf32>
    %414 = vector.extract_strided_slice %410 {offsets = [0, 0], sizes = [64, 128], strides = [1, 1]} : vector<128x128xf32> to vector<64x128xf32>
    %cst_158 = arith.constant 1.000000e-03 : f32
    %415 = vector.broadcast %cst_158 : f32 to vector<64x128xf32>
    %416 = arith.mulf %415, %411 : vector<64x128xf32>
    %417 = arith.subf %414, %416 : vector<64x128xf32>
    %418 = vector.broadcast %413 : vector<1x128xf32> to vector<64x128xf32>
    %419 = arith.mulf %418, %417 : vector<64x128xf32>
    %420 = arith.addf %411, %419 : vector<64x128xf32>
    %c0_159 = arith.constant 0 : index
    %c0_160 = arith.constant 0 : index
    %421 = vector.load %arg6[%c0_159, %c0_160] : memref<256x128xf32, #tpu.memory_space<vmem>>, vector<64x128xf32>
    tpu.vector_store %arg6[%c0_159, %c0_160], %420 {strides = array<i32>} : memref<256x128xf32, #tpu.memory_space<vmem>>, vector<64x128xf32>,
    %c64_161 = arith.constant 64 : index
    %c0_162 = arith.constant 0 : index
    %422 = vector.load %arg6[%c64_161, %c0_162] : memref<256x128xf32, #tpu.memory_space<vmem>>, vector<64x128xf32>
    %cst_163 = arith.constant 1.000000e-03 : f32
    %423 = vector.broadcast %cst_163 : f32 to vector<1x128xf32>
    %424 = arith.mulf %423, %15 : vector<1x128xf32>
    %425 = vector.extract_strided_slice %410 {offsets = [64, 0], sizes = [64, 128], strides = [1, 1]} : vector<128x128xf32> to vector<64x128xf32>
    %cst_164 = arith.constant 1.000000e-03 : f32
    %426 = vector.broadcast %cst_164 : f32 to vector<64x128xf32>
    %427 = arith.mulf %426, %422 : vector<64x128xf32>
    %428 = arith.subf %425, %427 : vector<64x128xf32>
    %429 = vector.broadcast %424 : vector<1x128xf32> to vector<64x128xf32>
    %430 = arith.mulf %429, %428 : vector<64x128xf32>
    %431 = arith.addf %422, %430 : vector<64x128xf32>
    %cst_165 = arith.constant 0.000000e+00 : f32
    %432 = vector.broadcast %cst_165 : f32 to vector<64x128xf32>
    %433 = arith.maximumf %431, %432 : vector<64x128xf32>
    %434 = arith.mulf %433, %433 : vector<64x128xf32>
    %cst_166 = arith.constant dense<0.000000e+00> : vector<128xf32>
    %435 = vector.multi_reduction <add>, %434, %cst_166 [0] : vector<64x128xf32> to vector<128xf32>
    %436 = vector.shape_cast %435 : vector<128xf32> to vector<1x128xf32>
    %cst_167 = arith.constant 0.000000e+00 : f32
    %437 = vector.broadcast %cst_167 : f32 to vector<1x128xf32>
    %438 = arith.cmpf ogt, %436, %437 : vector<1x128xf32>
    %439 = math.rsqrt %436 : vector<1x128xf32>
    %cst_168 = arith.constant 0.000000e+00 : f32
    %440 = vector.broadcast %cst_168 : f32 to vector<1x128xf32>
    %441 = arith.select %438, %439, %440 : vector<1x128xi1>, vector<1x128xf32>
    %442 = vector.broadcast %441 : vector<1x128xf32> to vector<64x128xf32>
    %443 = arith.mulf %433, %442 : vector<64x128xf32>
    %c64_169 = arith.constant 64 : index
    %c0_170 = arith.constant 0 : index
    %444 = vector.load %arg6[%c64_169, %c0_170] : memref<256x128xf32, #tpu.memory_space<vmem>>, vector<64x128xf32>
    tpu.vector_store %arg6[%c64_169, %c0_170], %443 {strides = array<i32>} : memref<256x128xf32, #tpu.memory_space<vmem>>, vector<64x128xf32>,
    %cst_171 = arith.constant dense<0.000000e+00> : vector<128x128xf32>
    %445 = tpu.matmul %401, %401, %cst_171 {dimension_numbers = #tpu.dot_dimension_numbers<[0], [0], [1], [1], [0, 1, 1, 1], [], []>} : vector<8x128xf32>, vector<8x128xf32>, vector<128x128xf32> -> vector<128x128xf32>
    %cst_172 = arith.constant 5.000000e-01 : f32
    %446 = vector.broadcast %cst_172 : f32 to vector<128x128xf32>
    %447 = arith.mulf %445, %446 : vector<128x128xf32>
    %c128_173 = arith.constant 128 : index
    %c0_174 = arith.constant 0 : index
    %448 = vector.load %arg6[%c128_173, %c0_174] : memref<256x128xf32, #tpu.memory_space<vmem>>, vector<128x128xf32>
    %cst_175 = arith.constant 1.000000e-03 : f32
    %449 = vector.broadcast %cst_175 : f32 to vector<128x128xf32>
    %450 = arith.mulf %449, %448 : vector<128x128xf32>
    %451 = arith.subf %447, %450 : vector<128x128xf32>
    %cst_176 = arith.constant 1.000000e-03 : f32
    %452 = vector.broadcast %cst_176 : f32 to vector<128x128xf32>
    %453 = arith.mulf %452, %451 : vector<128x128xf32>
    %454 = arith.addf %448, %453 : vector<128x128xf32>
    %c0_177 = arith.constant 0 : index
    %c0_178 = arith.constant 0 : index
    %455 = vector.load %arg7[%c0_177, %c0_178] : memref<128x128xf32, #tpu.memory_space<vmem>>, vector<128x128xf32>
    %456 = arith.mulf %455, %454 : vector<128x128xf32>
    %cst_179 = arith.constant 0.000000e+00 : f32
    %457 = vector.broadcast %cst_179 : f32 to vector<128x128xf32>
    %458 = arith.maximumf %456, %457 : vector<128x128xf32>
    %459 = arith.mulf %455, %458 : vector<128x128xf32>
    %460 = arith.mulf %459, %459 : vector<128x128xf32>
    %461 = vector.extract_strided_slice %460 {offsets = [0, 0], sizes = [64, 128], strides = [1, 1]} : vector<128x128xf32> to vector<64x128xf32>
    %cst_180 = arith.constant dense<0.000000e+00> : vector<128xf32>
    %462 = vector.multi_reduction <add>, %461, %cst_180 [0] : vector<64x128xf32> to vector<128xf32>
    %463 = vector.shape_cast %462 : vector<128xf32> to vector<1x128xf32>
    %464 = vector.extract_strided_slice %460 {offsets = [64, 0], sizes = [32, 128], strides = [1, 1]} : vector<128x128xf32> to vector<32x128xf32>
    %cst_181 = arith.constant dense<0.000000e+00> : vector<128xf32>
    %465 = vector.multi_reduction <add>, %464, %cst_181 [0] : vector<32x128xf32> to vector<128xf32>
    %466 = vector.shape_cast %465 : vector<128xf32> to vector<1x128xf32>
    %467 = vector.extract_strided_slice %460 {offsets = [96, 0], sizes = [32, 128], strides = [1, 1]} : vector<128x128xf32> to vector<32x128xf32>
    %cst_182 = arith.constant dense<0.000000e+00> : vector<128xf32>
    %468 = vector.multi_reduction <add>, %467, %cst_182 [0] : vector<32x128xf32> to vector<128xf32>
    %469 = vector.shape_cast %468 : vector<128xf32> to vector<1x128xf32>
    %cst_183 = arith.constant 0.000000e+00 : f32
    %470 = vector.broadcast %cst_183 : f32 to vector<1x128xf32>
    %471 = arith.cmpf ogt, %463, %470 : vector<1x128xf32>
    %472 = math.rsqrt %463 : vector<1x128xf32>
    %cst_184 = arith.constant 0.000000e+00 : f32
    %473 = vector.broadcast %cst_184 : f32 to vector<1x128xf32>
    %474 = arith.select %471, %472, %473 : vector<1x128xi1>, vector<1x128xf32>
    %cst_185 = arith.constant 0.000000e+00 : f32
    %475 = vector.broadcast %cst_185 : f32 to vector<1x128xf32>
    %476 = arith.cmpf ogt, %466, %475 : vector<1x128xf32>
    %477 = math.rsqrt %466 : vector<1x128xf32>
    %cst_186 = arith.constant 0.000000e+00 : f32
    %478 = vector.broadcast %cst_186 : f32 to vector<1x128xf32>
    %479 = arith.select %476, %477, %478 : vector<1x128xi1>, vector<1x128xf32>
    %cst_187 = arith.constant 0.000000e+00 : f32
    %480 = vector.broadcast %cst_187 : f32 to vector<1x128xf32>
    %481 = arith.cmpf ogt, %469, %480 : vector<1x128xf32>
    %482 = math.rsqrt %469 : vector<1x128xf32>
    %cst_188 = arith.constant 0.000000e+00 : f32
    %483 = vector.broadcast %cst_188 : f32 to vector<1x128xf32>
    %484 = arith.select %481, %482, %483 : vector<1x128xi1>, vector<1x128xf32>
    %485 = vector.extract_strided_slice %459 {offsets = [0, 0], sizes = [64, 128], strides = [1, 1]} : vector<128x128xf32> to vector<64x128xf32>
    %486 = vector.broadcast %474 : vector<1x128xf32> to vector<64x128xf32>
    %487 = arith.mulf %485, %486 : vector<64x128xf32>
    %488 = vector.extract_strided_slice %459 {offsets = [64, 0], sizes = [32, 128], strides = [1, 1]} : vector<128x128xf32> to vector<32x128xf32>
    %489 = vector.broadcast %479 : vector<1x128xf32> to vector<32x128xf32>
    %490 = arith.mulf %488, %489 : vector<32x128xf32>
    %491 = vector.extract_strided_slice %459 {offsets = [96, 0], sizes = [32, 128], strides = [1, 1]} : vector<128x128xf32> to vector<32x128xf32>
    %492 = vector.broadcast %484 : vector<1x128xf32> to vector<32x128xf32>
    %493 = arith.mulf %491, %492 : vector<32x128xf32>
    %494 = tpu.concatenate %487, %490, %493 in 0 : vector<64x128xf32>, vector<32x128xf32>, vector<32x128xf32> -> vector<128x128xf32>
    %c128_189 = arith.constant 128 : index
    %c0_190 = arith.constant 0 : index
    %495 = vector.load %arg6[%c128_189, %c0_190] : memref<256x128xf32, #tpu.memory_space<vmem>>, vector<128x128xf32>
    tpu.vector_store %arg6[%c128_189, %c0_190], %494 {strides = array<i32>} : memref<256x128xf32, #tpu.memory_space<vmem>>, vector<128x128xf32>,
    %c3 = arith.constant 3 : index
    %c0_191 = arith.constant 0 : index
    %c0_192 = arith.constant 0 : index
    %496 = vector.load %arg1[%c3, %c0_191, %c0_192] : memref<8x8x128xf32, #tpu.memory_space<vmem>>, vector<1x8x128xf32>
    %497 = vector.shape_cast %496 : vector<1x8x128xf32> to vector<8x128xf32>
    %498 = vector.broadcast %23 : vector<1x128xf32> to vector<8x128xf32>
    %499 = arith.mulf %498, %401 : vector<8x128xf32>
    %500 = arith.subf %499, %359 : vector<8x128xf32>
    %cst_193 = arith.constant 5.000000e-03 : f32
    %501 = vector.broadcast %cst_193 : f32 to vector<8x128xf32>
    %502 = arith.mulf %500, %501 : vector<8x128xf32>
    %503 = arith.addf %359, %502 : vector<8x128xf32>
    %504 = tpu.concatenate %497, %401 in 1 : vector<8x128xf32>, vector<8x128xf32> -> vector<8x256xf32>
    %c0_194 = arith.constant 0 : index
    %c0_195 = arith.constant 0 : index
    %505 = vector.load %arg6[%c0_194, %c0_195] : memref<256x128xf32, #tpu.memory_space<vmem>>, vector<256x128xf32>
    %cst_196 = arith.constant dense<0.000000e+00> : vector<8x128xf32>
    %506 = tpu.matmul %504, %505, %cst_196 {dimension_numbers = #tpu.dot_dimension_numbers<[1], [0], [0], [1], [0, 0, 1, 1], [], []>} : vector<8x256xf32>, vector<256x128xf32>, vector<8x128xf32> -> vector<8x128xf32>
    %507 = arith.subf %506, %503 : vector<8x128xf32>
    %cst_197 = arith.constant 0.000000e+00 : f32
    %508 = vector.broadcast %cst_197 : f32 to vector<8x128xf32>
    %509 = arith.maximumf %507, %508 : vector<8x128xf32>
    %510 = arith.subf %509, %401 : vector<8x128xf32>
    %511 = vector.broadcast %31 : vector<1x128xf32> to vector<8x128xf32>
    %512 = arith.mulf %510, %511 : vector<8x128xf32>
    %513 = arith.addf %401, %512 : vector<8x128xf32>
    %514 = arith.subf %513, %401 : vector<8x128xf32>
    %515 = vector.broadcast %4 : vector<1x128xf32> to vector<8x128xf32>
    %516 = arith.mulf %515, %514 : vector<8x128xf32>
    %517 = arith.addf %401, %516 : vector<8x128xf32>
    %518 = vector.extract_strided_slice %514 {offsets = [0, 0], sizes = [8, 64], strides = [1, 1]} : vector<8x128xf32> to vector<8x64xf32>
    %c128_198 = arith.constant 128 : index
    %c0_199 = arith.constant 0 : index
    %519 = vector.load %arg6[%c128_198, %c0_199] : memref<256x128xf32, #tpu.memory_space<vmem>>, vector<64x128xf32>
    %cst_200 = arith.constant dense<0.000000e+00> : vector<8x128xf32>
    %520 = tpu.matmul %518, %519, %cst_200 {dimension_numbers = #tpu.dot_dimension_numbers<[1], [0], [0], [1], [0, 0, 1, 1], [], []>} : vector<8x64xf32>, vector<64x128xf32>, vector<8x128xf32> -> vector<8x128xf32>
    %521 = arith.addf %507, %520 : vector<8x128xf32>
    %cst_201 = arith.constant 0.000000e+00 : f32
    %522 = vector.broadcast %cst_201 : f32 to vector<8x128xf32>
    %523 = arith.maximumf %521, %522 : vector<8x128xf32>
    %524 = arith.subf %523, %517 : vector<8x128xf32>
    %525 = vector.broadcast %31 : vector<1x128xf32> to vector<8x128xf32>
    %526 = arith.mulf %524, %525 : vector<8x128xf32>
    %527 = arith.addf %517, %526 : vector<8x128xf32>
    %528 = arith.subf %527, %517 : vector<8x128xf32>
    %529 = vector.broadcast %11 : vector<1x128xf32> to vector<8x128xf32>
    %530 = arith.mulf %529, %528 : vector<8x128xf32>
    %531 = arith.addf %517, %530 : vector<8x128xf32>
    %532 = vector.extract_strided_slice %528 {offsets = [0, 64], sizes = [8, 32], strides = [1, 1]} : vector<8x128xf32> to vector<8x32xf32>
    %c192_202 = arith.constant 192 : index
    %c0_203 = arith.constant 0 : index
    %533 = vector.load %arg6[%c192_202, %c0_203] : memref<256x128xf32, #tpu.memory_space<vmem>>, vector<32x128xf32>
    %cst_204 = arith.constant dense<0.000000e+00> : vector<8x128xf32>
    %534 = tpu.matmul %532, %533, %cst_204 {dimension_numbers = #tpu.dot_dimension_numbers<[1], [0], [0], [1], [0, 0, 1, 1], [], []>} : vector<8x32xf32>, vector<32x128xf32>, vector<8x128xf32> -> vector<8x128xf32>
    %535 = arith.addf %521, %534 : vector<8x128xf32>
    %cst_205 = arith.constant 0.000000e+00 : f32
    %536 = vector.broadcast %cst_205 : f32 to vector<8x128xf32>
    %537 = arith.maximumf %535, %536 : vector<8x128xf32>
    %538 = arith.subf %537, %531 : vector<8x128xf32>
    %539 = vector.broadcast %31 : vector<1x128xf32> to vector<8x128xf32>
    %540 = arith.mulf %538, %539 : vector<8x128xf32>
    %541 = arith.addf %531, %540 : vector<8x128xf32>
    %542 = arith.subf %541, %531 : vector<8x128xf32>
    %543 = vector.broadcast %15 : vector<1x128xf32> to vector<8x128xf32>
    %544 = arith.mulf %543, %542 : vector<8x128xf32>
    %545 = arith.addf %531, %544 : vector<8x128xf32>
    %c3_206 = arith.constant 3 : index
    %c0_207 = arith.constant 0 : index
    %c0_208 = arith.constant 0 : index
    %546 = vector.load %arg3[%c3_206, %c0_207, %c0_208] : memref<8x8x128xf32, #tpu.memory_space<vmem>>, vector<1x8x128xf32>
    %547 = vector.shape_cast %546 : vector<1x8x128xf32> to vector<8x128xf32>
    %548 = vector.shape_cast %545 : vector<8x128xf32> to vector<1x8x128xf32>
    tpu.vector_store %arg3[%c3_206, %c0_207, %c0_208], %548 {strides = array<i32>} : memref<8x8x128xf32, #tpu.memory_space<vmem>>, vector<1x8x128xf32>,
    %549 = vector.extract_strided_slice %497 {offsets = [0, 0], sizes = [8, 64], strides = [1, 1]} : vector<8x128xf32> to vector<8x64xf32>
    %550 = vector.extract_strided_slice %545 {offsets = [0, 0], sizes = [8, 64], strides = [1, 1]} : vector<8x128xf32> to vector<8x64xf32>
    %551 = tpu.concatenate %549, %550 in 1 : vector<8x64xf32>, vector<8x64xf32> -> vector<8x128xf32>
    %cst_209 = arith.constant dense<0.000000e+00> : vector<128x128xf32>
    %552 = tpu.matmul %551, %545, %cst_209 {dimension_numbers = #tpu.dot_dimension_numbers<[0], [0], [1], [1], [0, 1, 1, 1], [], []>} : vector<8x128xf32>, vector<8x128xf32>, vector<128x128xf32> -> vector<128x128xf32>
    %cst_210 = arith.constant 5.000000e-01 : f32
    %553 = vector.broadcast %cst_210 : f32 to vector<128x128xf32>
    %554 = arith.mulf %552, %553 : vector<128x128xf32>
    %c0_211 = arith.constant 0 : index
    %c0_212 = arith.constant 0 : index
    %555 = vector.load %arg6[%c0_211, %c0_212] : memref<256x128xf32, #tpu.memory_space<vmem>>, vector<64x128xf32>
    %cst_213 = arith.constant 1.000000e-03 : f32
    %556 = vector.broadcast %cst_213 : f32 to vector<1x128xf32>
    %557 = arith.mulf %556, %4 : vector<1x128xf32>
    %558 = vector.extract_strided_slice %554 {offsets = [0, 0], sizes = [64, 128], strides = [1, 1]} : vector<128x128xf32> to vector<64x128xf32>
    %cst_214 = arith.constant 1.000000e-03 : f32
    %559 = vector.broadcast %cst_214 : f32 to vector<64x128xf32>
    %560 = arith.mulf %559, %555 : vector<64x128xf32>
    %561 = arith.subf %558, %560 : vector<64x128xf32>
    %562 = vector.broadcast %557 : vector<1x128xf32> to vector<64x128xf32>
    %563 = arith.mulf %562, %561 : vector<64x128xf32>
    %564 = arith.addf %555, %563 : vector<64x128xf32>
    %c0_215 = arith.constant 0 : index
    %c0_216 = arith.constant 0 : index
    %565 = vector.load %arg6[%c0_215, %c0_216] : memref<256x128xf32, #tpu.memory_space<vmem>>, vector<64x128xf32>
    tpu.vector_store %arg6[%c0_215, %c0_216], %564 {strides = array<i32>} : memref<256x128xf32, #tpu.memory_space<vmem>>, vector<64x128xf32>,
    %c64_217 = arith.constant 64 : index
    %c0_218 = arith.constant 0 : index
    %566 = vector.load %arg6[%c64_217, %c0_218] : memref<256x128xf32, #tpu.memory_space<vmem>>, vector<64x128xf32>
    %cst_219 = arith.constant 1.000000e-03 : f32
    %567 = vector.broadcast %cst_219 : f32 to vector<1x128xf32>
    %568 = arith.mulf %567, %15 : vector<1x128xf32>
    %569 = vector.extract_strided_slice %554 {offsets = [64, 0], sizes = [64, 128], strides = [1, 1]} : vector<128x128xf32> to vector<64x128xf32>
    %cst_220 = arith.constant 1.000000e-03 : f32
    %570 = vector.broadcast %cst_220 : f32 to vector<64x128xf32>
    %571 = arith.mulf %570, %566 : vector<64x128xf32>
    %572 = arith.subf %569, %571 : vector<64x128xf32>
    %573 = vector.broadcast %568 : vector<1x128xf32> to vector<64x128xf32>
    %574 = arith.mulf %573, %572 : vector<64x128xf32>
    %575 = arith.addf %566, %574 : vector<64x128xf32>
    %cst_221 = arith.constant 0.000000e+00 : f32
    %576 = vector.broadcast %cst_221 : f32 to vector<64x128xf32>
    %577 = arith.maximumf %575, %576 : vector<64x128xf32>
    %578 = arith.mulf %577, %577 : vector<64x128xf32>
    %cst_222 = arith.constant dense<0.000000e+00> : vector<128xf32>
    %579 = vector.multi_reduction <add>, %578, %cst_222 [0] : vector<64x128xf32> to vector<128xf32>
    %580 = vector.shape_cast %579 : vector<128xf32> to vector<1x128xf32>
    %cst_223 = arith.constant 0.000000e+00 : f32
    %581 = vector.broadcast %cst_223 : f32 to vector<1x128xf32>
    %582 = arith.cmpf ogt, %580, %581 : vector<1x128xf32>
    %583 = math.rsqrt %580 : vector<1x128xf32>
    %cst_224 = arith.constant 0.000000e+00 : f32
    %584 = vector.broadcast %cst_224 : f32 to vector<1x128xf32>
    %585 = arith.select %582, %583, %584 : vector<1x128xi1>, vector<1x128xf32>
    %586 = vector.broadcast %585 : vector<1x128xf32> to vector<64x128xf32>
    %587 = arith.mulf %577, %586 : vector<64x128xf32>
    %c64_225 = arith.constant 64 : index
    %c0_226 = arith.constant 0 : index
    %588 = vector.load %arg6[%c64_225, %c0_226] : memref<256x128xf32, #tpu.memory_space<vmem>>, vector<64x128xf32>
    tpu.vector_store %arg6[%c64_225, %c0_226], %587 {strides = array<i32>} : memref<256x128xf32, #tpu.memory_space<vmem>>, vector<64x128xf32>,
    %cst_227 = arith.constant dense<0.000000e+00> : vector<128x128xf32>
    %589 = tpu.matmul %545, %545, %cst_227 {dimension_numbers = #tpu.dot_dimension_numbers<[0], [0], [1], [1], [0, 1, 1, 1], [], []>} : vector<8x128xf32>, vector<8x128xf32>, vector<128x128xf32> -> vector<128x128xf32>
    %cst_228 = arith.constant 5.000000e-01 : f32
    %590 = vector.broadcast %cst_228 : f32 to vector<128x128xf32>
    %591 = arith.mulf %589, %590 : vector<128x128xf32>
    %c128_229 = arith.constant 128 : index
    %c0_230 = arith.constant 0 : index
    %592 = vector.load %arg6[%c128_229, %c0_230] : memref<256x128xf32, #tpu.memory_space<vmem>>, vector<128x128xf32>
    %cst_231 = arith.constant 1.000000e-03 : f32
    %593 = vector.broadcast %cst_231 : f32 to vector<128x128xf32>
    %594 = arith.mulf %593, %592 : vector<128x128xf32>
    %595 = arith.subf %591, %594 : vector<128x128xf32>
    %cst_232 = arith.constant 1.000000e-03 : f32
    %596 = vector.broadcast %cst_232 : f32 to vector<128x128xf32>
    %597 = arith.mulf %596, %595 : vector<128x128xf32>
    %598 = arith.addf %592, %597 : vector<128x128xf32>
    %c0_233 = arith.constant 0 : index
    %c0_234 = arith.constant 0 : index
    %599 = vector.load %arg7[%c0_233, %c0_234] : memref<128x128xf32, #tpu.memory_space<vmem>>, vector<128x128xf32>
    %600 = arith.mulf %599, %598 : vector<128x128xf32>
    %cst_235 = arith.constant 0.000000e+00 : f32
    %601 = vector.broadcast %cst_235 : f32 to vector<128x128xf32>
    %602 = arith.maximumf %600, %601 : vector<128x128xf32>
    %603 = arith.mulf %599, %602 : vector<128x128xf32>
    %604 = arith.mulf %603, %603 : vector<128x128xf32>
    %605 = vector.extract_strided_slice %604 {offsets = [0, 0], sizes = [64, 128], strides = [1, 1]} : vector<128x128xf32> to vector<64x128xf32>
    %cst_236 = arith.constant dense<0.000000e+00> : vector<128xf32>
    %606 = vector.multi_reduction <add>, %605, %cst_236 [0] : vector<64x128xf32> to vector<128xf32>
    %607 = vector.shape_cast %606 : vector<128xf32> to vector<1x128xf32>
    %608 = vector.extract_strided_slice %604 {offsets = [64, 0], sizes = [32, 128], strides = [1, 1]} : vector<128x128xf32> to vector<32x128xf32>
    %cst_237 = arith.constant dense<0.000000e+00> : vector<128xf32>
    %609 = vector.multi_reduction <add>, %608, %cst_237 [0] : vector<32x128xf32> to vector<128xf32>
    %610 = vector.shape_cast %609 : vector<128xf32> to vector<1x128xf32>
    %611 = vector.extract_strided_slice %604 {offsets = [96, 0], sizes = [32, 128], strides = [1, 1]} : vector<128x128xf32> to vector<32x128xf32>
    %cst_238 = arith.constant dense<0.000000e+00> : vector<128xf32>
    %612 = vector.multi_reduction <add>, %611, %cst_238 [0] : vector<32x128xf32> to vector<128xf32>
    %613 = vector.shape_cast %612 : vector<128xf32> to vector<1x128xf32>
    %cst_239 = arith.constant 0.000000e+00 : f32
    %614 = vector.broadcast %cst_239 : f32 to vector<1x128xf32>
    %615 = arith.cmpf ogt, %607, %614 : vector<1x128xf32>
    %616 = math.rsqrt %607 : vector<1x128xf32>
    %cst_240 = arith.constant 0.000000e+00 : f32
    %617 = vector.broadcast %cst_240 : f32 to vector<1x128xf32>
    %618 = arith.select %615, %616, %617 : vector<1x128xi1>, vector<1x128xf32>
    %cst_241 = arith.constant 0.000000e+00 : f32
    %619 = vector.broadcast %cst_241 : f32 to vector<1x128xf32>
    %620 = arith.cmpf ogt, %610, %619 : vector<1x128xf32>
    %621 = math.rsqrt %610 : vector<1x128xf32>
    %cst_242 = arith.constant 0.000000e+00 : f32
    %622 = vector.broadcast %cst_242 : f32 to vector<1x128xf32>
    %623 = arith.select %620, %621, %622 : vector<1x128xi1>, vector<1x128xf32>
    %cst_243 = arith.constant 0.000000e+00 : f32
    %624 = vector.broadcast %cst_243 : f32 to vector<1x128xf32>
    %625 = arith.cmpf ogt, %613, %624 : vector<1x128xf32>
    %626 = math.rsqrt %613 : vector<1x128xf32>
    %cst_244 = arith.constant 0.000000e+00 : f32
    %627 = vector.broadcast %cst_244 : f32 to vector<1x128xf32>
    %628 = arith.select %625, %626, %627 : vector<1x128xi1>, vector<1x128xf32>
    %629 = vector.extract_strided_slice %603 {offsets = [0, 0], sizes = [64, 128], strides = [1, 1]} : vector<128x128xf32> to vector<64x128xf32>
    %630 = vector.broadcast %618 : vector<1x128xf32> to vector<64x128xf32>
    %631 = arith.mulf %629, %630 : vector<64x128xf32>
    %632 = vector.extract_strided_slice %603 {offsets = [64, 0], sizes = [32, 128], strides = [1, 1]} : vector<128x128xf32> to vector<32x128xf32>
    %633 = vector.broadcast %623 : vector<1x128xf32> to vector<32x128xf32>
    %634 = arith.mulf %632, %633 : vector<32x128xf32>
    %635 = vector.extract_strided_slice %603 {offsets = [96, 0], sizes = [32, 128], strides = [1, 1]} : vector<128x128xf32> to vector<32x128xf32>
    %636 = vector.broadcast %628 : vector<1x128xf32> to vector<32x128xf32>
    %637 = arith.mulf %635, %636 : vector<32x128xf32>
    %638 = tpu.concatenate %631, %634, %637 in 0 : vector<64x128xf32>, vector<32x128xf32>, vector<32x128xf32> -> vector<128x128xf32>
    %c128_245 = arith.constant 128 : index
    %c0_246 = arith.constant 0 : index
    %639 = vector.load %arg6[%c128_245, %c0_246] : memref<256x128xf32, #tpu.memory_space<vmem>>, vector<128x128xf32>
    tpu.vector_store %arg6[%c128_245, %c0_246], %638 {strides = array<i32>} : memref<256x128xf32, #tpu.memory_space<vmem>>, vector<128x128xf32>,
    %c4 = arith.constant 4 : index
    %c0_247 = arith.constant 0 : index
    %c0_248 = arith.constant 0 : index
    %640 = vector.load %arg1[%c4, %c0_247, %c0_248] : memref<8x8x128xf32, #tpu.memory_space<vmem>>, vector<1x8x128xf32>
    %641 = vector.shape_cast %640 : vector<1x8x128xf32> to vector<8x128xf32>
    %642 = vector.broadcast %23 : vector<1x128xf32> to vector<8x128xf32>
    %643 = arith.mulf %642, %545 : vector<8x128xf32>
    %644 = arith.subf %643, %503 : vector<8x128xf32>
    %cst_249 = arith.constant 5.000000e-03 : f32
    %645 = vector.broadcast %cst_249 : f32 to vector<8x128xf32>
    %646 = arith.mulf %644, %645 : vector<8x128xf32>
    %647 = arith.addf %503, %646 : vector<8x128xf32>
    %648 = tpu.concatenate %641, %545 in 1 : vector<8x128xf32>, vector<8x128xf32> -> vector<8x256xf32>
    %c0_250 = arith.constant 0 : index
    %c0_251 = arith.constant 0 : index
    %649 = vector.load %arg6[%c0_250, %c0_251] : memref<256x128xf32, #tpu.memory_space<vmem>>, vector<256x128xf32>
    %cst_252 = arith.constant dense<0.000000e+00> : vector<8x128xf32>
    %650 = tpu.matmul %648, %649, %cst_252 {dimension_numbers = #tpu.dot_dimension_numbers<[1], [0], [0], [1], [0, 0, 1, 1], [], []>} : vector<8x256xf32>, vector<256x128xf32>, vector<8x128xf32> -> vector<8x128xf32>
    %651 = arith.subf %650, %647 : vector<8x128xf32>
    %cst_253 = arith.constant 0.000000e+00 : f32
    %652 = vector.broadcast %cst_253 : f32 to vector<8x128xf32>
    %653 = arith.maximumf %651, %652 : vector<8x128xf32>
    %654 = arith.subf %653, %545 : vector<8x128xf32>
    %655 = vector.broadcast %31 : vector<1x128xf32> to vector<8x128xf32>
    %656 = arith.mulf %654, %655 : vector<8x128xf32>
    %657 = arith.addf %545, %656 : vector<8x128xf32>
    %658 = arith.subf %657, %545 : vector<8x128xf32>
    %659 = vector.broadcast %4 : vector<1x128xf32> to vector<8x128xf32>
    %660 = arith.mulf %659, %658 : vector<8x128xf32>
    %661 = arith.addf %545, %660 : vector<8x128xf32>
    %662 = vector.extract_strided_slice %658 {offsets = [0, 0], sizes = [8, 64], strides = [1, 1]} : vector<8x128xf32> to vector<8x64xf32>
    %c128_254 = arith.constant 128 : index
    %c0_255 = arith.constant 0 : index
    %663 = vector.load %arg6[%c128_254, %c0_255] : memref<256x128xf32, #tpu.memory_space<vmem>>, vector<64x128xf32>
    %cst_256 = arith.constant dense<0.000000e+00> : vector<8x128xf32>
    %664 = tpu.matmul %662, %663, %cst_256 {dimension_numbers = #tpu.dot_dimension_numbers<[1], [0], [0], [1], [0, 0, 1, 1], [], []>} : vector<8x64xf32>, vector<64x128xf32>, vector<8x128xf32> -> vector<8x128xf32>
    %665 = arith.addf %651, %664 : vector<8x128xf32>
    %cst_257 = arith.constant 0.000000e+00 : f32
    %666 = vector.broadcast %cst_257 : f32 to vector<8x128xf32>
    %667 = arith.maximumf %665, %666 : vector<8x128xf32>
    %668 = arith.subf %667, %661 : vector<8x128xf32>
    %669 = vector.broadcast %31 : vector<1x128xf32> to vector<8x128xf32>
    %670 = arith.mulf %668, %669 : vector<8x128xf32>
    %671 = arith.addf %661, %670 : vector<8x128xf32>
    %672 = arith.subf %671, %661 : vector<8x128xf32>
    %673 = vector.broadcast %11 : vector<1x128xf32> to vector<8x128xf32>
    %674 = arith.mulf %673, %672 : vector<8x128xf32>
    %675 = arith.addf %661, %674 : vector<8x128xf32>
    %676 = vector.extract_strided_slice %672 {offsets = [0, 64], sizes = [8, 32], strides = [1, 1]} : vector<8x128xf32> to vector<8x32xf32>
    %c192_258 = arith.constant 192 : index
    %c0_259 = arith.constant 0 : index
    %677 = vector.load %arg6[%c192_258, %c0_259] : memref<256x128xf32, #tpu.memory_space<vmem>>, vector<32x128xf32>
    %cst_260 = arith.constant dense<0.000000e+00> : vector<8x128xf32>
    %678 = tpu.matmul %676, %677, %cst_260 {dimension_numbers = #tpu.dot_dimension_numbers<[1], [0], [0], [1], [0, 0, 1, 1], [], []>} : vector<8x32xf32>, vector<32x128xf32>, vector<8x128xf32> -> vector<8x128xf32>
    %679 = arith.addf %665, %678 : vector<8x128xf32>
    %cst_261 = arith.constant 0.000000e+00 : f32
    %680 = vector.broadcast %cst_261 : f32 to vector<8x128xf32>
    %681 = arith.maximumf %679, %680 : vector<8x128xf32>
    %682 = arith.subf %681, %675 : vector<8x128xf32>
    %683 = vector.broadcast %31 : vector<1x128xf32> to vector<8x128xf32>
    %684 = arith.mulf %682, %683 : vector<8x128xf32>
    %685 = arith.addf %675, %684 : vector<8x128xf32>
    %686 = arith.subf %685, %675 : vector<8x128xf32>
    %687 = vector.broadcast %15 : vector<1x128xf32> to vector<8x128xf32>
    %688 = arith.mulf %687, %686 : vector<8x128xf32>
    %689 = arith.addf %675, %688 : vector<8x128xf32>
    %c4_262 = arith.constant 4 : index
    %c0_263 = arith.constant 0 : index
    %c0_264 = arith.constant 0 : index
    %690 = vector.load %arg3[%c4_262, %c0_263, %c0_264] : memref<8x8x128xf32, #tpu.memory_space<vmem>>, vector<1x8x128xf32>
    %691 = vector.shape_cast %690 : vector<1x8x128xf32> to vector<8x128xf32>
    %692 = vector.shape_cast %689 : vector<8x128xf32> to vector<1x8x128xf32>
    tpu.vector_store %arg3[%c4_262, %c0_263, %c0_264], %692 {strides = array<i32>} : memref<8x8x128xf32, #tpu.memory_space<vmem>>, vector<1x8x128xf32>,
    %693 = vector.extract_strided_slice %641 {offsets = [0, 0], sizes = [8, 64], strides = [1, 1]} : vector<8x128xf32> to vector<8x64xf32>
    %694 = vector.extract_strided_slice %689 {offsets = [0, 0], sizes = [8, 64], strides = [1, 1]} : vector<8x128xf32> to vector<8x64xf32>
    %695 = tpu.concatenate %693, %694 in 1 : vector<8x64xf32>, vector<8x64xf32> -> vector<8x128xf32>
    %cst_265 = arith.constant dense<0.000000e+00> : vector<128x128xf32>
    %696 = tpu.matmul %695, %689, %cst_265 {dimension_numbers = #tpu.dot_dimension_numbers<[0], [0], [1], [1], [0, 1, 1, 1], [], []>} : vector<8x128xf32>, vector<8x128xf32>, vector<128x128xf32> -> vector<128x128xf32>
    %cst_266 = arith.constant 5.000000e-01 : f32
    %697 = vector.broadcast %cst_266 : f32 to vector<128x128xf32>
    %698 = arith.mulf %696, %697 : vector<128x128xf32>
    %c0_267 = arith.constant 0 : index
    %c0_268 = arith.constant 0 : index
    %699 = vector.load %arg6[%c0_267, %c0_268] : memref<256x128xf32, #tpu.memory_space<vmem>>, vector<64x128xf32>
    %cst_269 = arith.constant 1.000000e-03 : f32
    %700 = vector.broadcast %cst_269 : f32 to vector<1x128xf32>
    %701 = arith.mulf %700, %4 : vector<1x128xf32>
    %702 = vector.extract_strided_slice %698 {offsets = [0, 0], sizes = [64, 128], strides = [1, 1]} : vector<128x128xf32> to vector<64x128xf32>
    %cst_270 = arith.constant 1.000000e-03 : f32
    %703 = vector.broadcast %cst_270 : f32 to vector<64x128xf32>
    %704 = arith.mulf %703, %699 : vector<64x128xf32>
    %705 = arith.subf %702, %704 : vector<64x128xf32>
    %706 = vector.broadcast %701 : vector<1x128xf32> to vector<64x128xf32>
    %707 = arith.mulf %706, %705 : vector<64x128xf32>
    %708 = arith.addf %699, %707 : vector<64x128xf32>
    %c0_271 = arith.constant 0 : index
    %c0_272 = arith.constant 0 : index
    %709 = vector.load %arg6[%c0_271, %c0_272] : memref<256x128xf32, #tpu.memory_space<vmem>>, vector<64x128xf32>
    tpu.vector_store %arg6[%c0_271, %c0_272], %708 {strides = array<i32>} : memref<256x128xf32, #tpu.memory_space<vmem>>, vector<64x128xf32>,
    %c64_273 = arith.constant 64 : index
    %c0_274 = arith.constant 0 : index
    %710 = vector.load %arg6[%c64_273, %c0_274] : memref<256x128xf32, #tpu.memory_space<vmem>>, vector<64x128xf32>
    %cst_275 = arith.constant 1.000000e-03 : f32
    %711 = vector.broadcast %cst_275 : f32 to vector<1x128xf32>
    %712 = arith.mulf %711, %15 : vector<1x128xf32>
    %713 = vector.extract_strided_slice %698 {offsets = [64, 0], sizes = [64, 128], strides = [1, 1]} : vector<128x128xf32> to vector<64x128xf32>
    %cst_276 = arith.constant 1.000000e-03 : f32
    %714 = vector.broadcast %cst_276 : f32 to vector<64x128xf32>
    %715 = arith.mulf %714, %710 : vector<64x128xf32>
    %716 = arith.subf %713, %715 : vector<64x128xf32>
    %717 = vector.broadcast %712 : vector<1x128xf32> to vector<64x128xf32>
    %718 = arith.mulf %717, %716 : vector<64x128xf32>
    %719 = arith.addf %710, %718 : vector<64x128xf32>
    %cst_277 = arith.constant 0.000000e+00 : f32
    %720 = vector.broadcast %cst_277 : f32 to vector<64x128xf32>
    %721 = arith.maximumf %719, %720 : vector<64x128xf32>
    %722 = arith.mulf %721, %721 : vector<64x128xf32>
    %cst_278 = arith.constant dense<0.000000e+00> : vector<128xf32>
    %723 = vector.multi_reduction <add>, %722, %cst_278 [0] : vector<64x128xf32> to vector<128xf32>
    %724 = vector.shape_cast %723 : vector<128xf32> to vector<1x128xf32>
    %cst_279 = arith.constant 0.000000e+00 : f32
    %725 = vector.broadcast %cst_279 : f32 to vector<1x128xf32>
    %726 = arith.cmpf ogt, %724, %725 : vector<1x128xf32>
    %727 = math.rsqrt %724 : vector<1x128xf32>
    %cst_280 = arith.constant 0.000000e+00 : f32
    %728 = vector.broadcast %cst_280 : f32 to vector<1x128xf32>
    %729 = arith.select %726, %727, %728 : vector<1x128xi1>, vector<1x128xf32>
    %730 = vector.broadcast %729 : vector<1x128xf32> to vector<64x128xf32>
    %731 = arith.mulf %721, %730 : vector<64x128xf32>
    %c64_281 = arith.constant 64 : index
    %c0_282 = arith.constant 0 : index
    %732 = vector.load %arg6[%c64_281, %c0_282] : memref<256x128xf32, #tpu.memory_space<vmem>>, vector<64x128xf32>
    tpu.vector_store %arg6[%c64_281, %c0_282], %731 {strides = array<i32>} : memref<256x128xf32, #tpu.memory_space<vmem>>, vector<64x128xf32>,
    %cst_283 = arith.constant dense<0.000000e+00> : vector<128x128xf32>
    %733 = tpu.matmul %689, %689, %cst_283 {dimension_numbers = #tpu.dot_dimension_numbers<[0], [0], [1], [1], [0, 1, 1, 1], [], []>} : vector<8x128xf32>, vector<8x128xf32>, vector<128x128xf32> -> vector<128x128xf32>
    %cst_284 = arith.constant 5.000000e-01 : f32
    %734 = vector.broadcast %cst_284 : f32 to vector<128x128xf32>
    %735 = arith.mulf %733, %734 : vector<128x128xf32>
    %c128_285 = arith.constant 128 : index
    %c0_286 = arith.constant 0 : index
    %736 = vector.load %arg6[%c128_285, %c0_286] : memref<256x128xf32, #tpu.memory_space<vmem>>, vector<128x128xf32>
    %cst_287 = arith.constant 1.000000e-03 : f32
    %737 = vector.broadcast %cst_287 : f32 to vector<128x128xf32>
    %738 = arith.mulf %737, %736 : vector<128x128xf32>
    %739 = arith.subf %735, %738 : vector<128x128xf32>
    %cst_288 = arith.constant 1.000000e-03 : f32
    %740 = vector.broadcast %cst_288 : f32 to vector<128x128xf32>
    %741 = arith.mulf %740, %739 : vector<128x128xf32>
    %742 = arith.addf %736, %741 : vector<128x128xf32>
    %c0_289 = arith.constant 0 : index
    %c0_290 = arith.constant 0 : index
    %743 = vector.load %arg7[%c0_289, %c0_290] : memref<128x128xf32, #tpu.memory_space<vmem>>, vector<128x128xf32>
    %744 = arith.mulf %743, %742 : vector<128x128xf32>
    %cst_291 = arith.constant 0.000000e+00 : f32
    %745 = vector.broadcast %cst_291 : f32 to vector<128x128xf32>
    %746 = arith.maximumf %744, %745 : vector<128x128xf32>
    %747 = arith.mulf %743, %746 : vector<128x128xf32>
    %748 = arith.mulf %747, %747 : vector<128x128xf32>
    %749 = vector.extract_strided_slice %748 {offsets = [0, 0], sizes = [64, 128], strides = [1, 1]} : vector<128x128xf32> to vector<64x128xf32>
    %cst_292 = arith.constant dense<0.000000e+00> : vector<128xf32>
    %750 = vector.multi_reduction <add>, %749, %cst_292 [0] : vector<64x128xf32> to vector<128xf32>
    %751 = vector.shape_cast %750 : vector<128xf32> to vector<1x128xf32>
    %752 = vector.extract_strided_slice %748 {offsets = [64, 0], sizes = [32, 128], strides = [1, 1]} : vector<128x128xf32> to vector<32x128xf32>
    %cst_293 = arith.constant dense<0.000000e+00> : vector<128xf32>
    %753 = vector.multi_reduction <add>, %752, %cst_293 [0] : vector<32x128xf32> to vector<128xf32>
    %754 = vector.shape_cast %753 : vector<128xf32> to vector<1x128xf32>
    %755 = vector.extract_strided_slice %748 {offsets = [96, 0], sizes = [32, 128], strides = [1, 1]} : vector<128x128xf32> to vector<32x128xf32>
    %cst_294 = arith.constant dense<0.000000e+00> : vector<128xf32>
    %756 = vector.multi_reduction <add>, %755, %cst_294 [0] : vector<32x128xf32> to vector<128xf32>
    %757 = vector.shape_cast %756 : vector<128xf32> to vector<1x128xf32>
    %cst_295 = arith.constant 0.000000e+00 : f32
    %758 = vector.broadcast %cst_295 : f32 to vector<1x128xf32>
    %759 = arith.cmpf ogt, %751, %758 : vector<1x128xf32>
    %760 = math.rsqrt %751 : vector<1x128xf32>
    %cst_296 = arith.constant 0.000000e+00 : f32
    %761 = vector.broadcast %cst_296 : f32 to vector<1x128xf32>
    %762 = arith.select %759, %760, %761 : vector<1x128xi1>, vector<1x128xf32>
    %cst_297 = arith.constant 0.000000e+00 : f32
    %763 = vector.broadcast %cst_297 : f32 to vector<1x128xf32>
    %764 = arith.cmpf ogt, %754, %763 : vector<1x128xf32>
    %765 = math.rsqrt %754 : vector<1x128xf32>
    %cst_298 = arith.constant 0.000000e+00 : f32
    %766 = vector.broadcast %cst_298 : f32 to vector<1x128xf32>
    %767 = arith.select %764, %765, %766 : vector<1x128xi1>, vector<1x128xf32>
    %cst_299 = arith.constant 0.000000e+00 : f32
    %768 = vector.broadcast %cst_299 : f32 to vector<1x128xf32>
    %769 = arith.cmpf ogt, %757, %768 : vector<1x128xf32>
    %770 = math.rsqrt %757 : vector<1x128xf32>
    %cst_300 = arith.constant 0.000000e+00 : f32
    %771 = vector.broadcast %cst_300 : f32 to vector<1x128xf32>
    %772 = arith.select %769, %770, %771 : vector<1x128xi1>, vector<1x128xf32>
    %773 = vector.extract_strided_slice %747 {offsets = [0, 0], sizes = [64, 128], strides = [1, 1]} : vector<128x128xf32> to vector<64x128xf32>
    %774 = vector.broadcast %762 : vector<1x128xf32> to vector<64x128xf32>
    %775 = arith.mulf %773, %774 : vector<64x128xf32>
    %776 = vector.extract_strided_slice %747 {offsets = [64, 0], sizes = [32, 128], strides = [1, 1]} : vector<128x128xf32> to vector<32x128xf32>
    %777 = vector.broadcast %767 : vector<1x128xf32> to vector<32x128xf32>
    %778 = arith.mulf %776, %777 : vector<32x128xf32>
    %779 = vector.extract_strided_slice %747 {offsets = [96, 0], sizes = [32, 128], strides = [1, 1]} : vector<128x128xf32> to vector<32x128xf32>
    %780 = vector.broadcast %772 : vector<1x128xf32> to vector<32x128xf32>
    %781 = arith.mulf %779, %780 : vector<32x128xf32>
    %782 = tpu.concatenate %775, %778, %781 in 0 : vector<64x128xf32>, vector<32x128xf32>, vector<32x128xf32> -> vector<128x128xf32>
    %c128_301 = arith.constant 128 : index
    %c0_302 = arith.constant 0 : index
    %783 = vector.load %arg6[%c128_301, %c0_302] : memref<256x128xf32, #tpu.memory_space<vmem>>, vector<128x128xf32>
    tpu.vector_store %arg6[%c128_301, %c0_302], %782 {strides = array<i32>} : memref<256x128xf32, #tpu.memory_space<vmem>>, vector<128x128xf32>,
    %c5 = arith.constant 5 : index
    %c0_303 = arith.constant 0 : index
    %c0_304 = arith.constant 0 : index
    %784 = vector.load %arg1[%c5, %c0_303, %c0_304] : memref<8x8x128xf32, #tpu.memory_space<vmem>>, vector<1x8x128xf32>
    %785 = vector.shape_cast %784 : vector<1x8x128xf32> to vector<8x128xf32>
    %786 = vector.broadcast %23 : vector<1x128xf32> to vector<8x128xf32>
    %787 = arith.mulf %786, %689 : vector<8x128xf32>
    %788 = arith.subf %787, %647 : vector<8x128xf32>
    %cst_305 = arith.constant 5.000000e-03 : f32
    %789 = vector.broadcast %cst_305 : f32 to vector<8x128xf32>
    %790 = arith.mulf %788, %789 : vector<8x128xf32>
    %791 = arith.addf %647, %790 : vector<8x128xf32>
    %792 = tpu.concatenate %785, %689 in 1 : vector<8x128xf32>, vector<8x128xf32> -> vector<8x256xf32>
    %c0_306 = arith.constant 0 : index
    %c0_307 = arith.constant 0 : index
    %793 = vector.load %arg6[%c0_306, %c0_307] : memref<256x128xf32, #tpu.memory_space<vmem>>, vector<256x128xf32>
    %cst_308 = arith.constant dense<0.000000e+00> : vector<8x128xf32>
    %794 = tpu.matmul %792, %793, %cst_308 {dimension_numbers = #tpu.dot_dimension_numbers<[1], [0], [0], [1], [0, 0, 1, 1], [], []>} : vector<8x256xf32>, vector<256x128xf32>, vector<8x128xf32> -> vector<8x128xf32>
    %795 = arith.subf %794, %791 : vector<8x128xf32>
    %cst_309 = arith.constant 0.000000e+00 : f32
    %796 = vector.broadcast %cst_309 : f32 to vector<8x128xf32>
    %797 = arith.maximumf %795, %796 : vector<8x128xf32>
    %798 = arith.subf %797, %689 : vector<8x128xf32>
    %799 = vector.broadcast %31 : vector<1x128xf32> to vector<8x128xf32>
    %800 = arith.mulf %798, %799 : vector<8x128xf32>
    %801 = arith.addf %689, %800 : vector<8x128xf32>
    %802 = arith.subf %801, %689 : vector<8x128xf32>
    %803 = vector.broadcast %4 : vector<1x128xf32> to vector<8x128xf32>
    %804 = arith.mulf %803, %802 : vector<8x128xf32>
    %805 = arith.addf %689, %804 : vector<8x128xf32>
    %806 = vector.extract_strided_slice %802 {offsets = [0, 0], sizes = [8, 64], strides = [1, 1]} : vector<8x128xf32> to vector<8x64xf32>
    %c128_310 = arith.constant 128 : index
    %c0_311 = arith.constant 0 : index
    %807 = vector.load %arg6[%c128_310, %c0_311] : memref<256x128xf32, #tpu.memory_space<vmem>>, vector<64x128xf32>
    %cst_312 = arith.constant dense<0.000000e+00> : vector<8x128xf32>
    %808 = tpu.matmul %806, %807, %cst_312 {dimension_numbers = #tpu.dot_dimension_numbers<[1], [0], [0], [1], [0, 0, 1, 1], [], []>} : vector<8x64xf32>, vector<64x128xf32>, vector<8x128xf32> -> vector<8x128xf32>
    %809 = arith.addf %795, %808 : vector<8x128xf32>
    %cst_313 = arith.constant 0.000000e+00 : f32
    %810 = vector.broadcast %cst_313 : f32 to vector<8x128xf32>
    %811 = arith.maximumf %809, %810 : vector<8x128xf32>
    %812 = arith.subf %811, %805 : vector<8x128xf32>
    %813 = vector.broadcast %31 : vector<1x128xf32> to vector<8x128xf32>
    %814 = arith.mulf %812, %813 : vector<8x128xf32>
    %815 = arith.addf %805, %814 : vector<8x128xf32>
    %816 = arith.subf %815, %805 : vector<8x128xf32>
    %817 = vector.broadcast %11 : vector<1x128xf32> to vector<8x128xf32>
    %818 = arith.mulf %817, %816 : vector<8x128xf32>
    %819 = arith.addf %805, %818 : vector<8x128xf32>
    %820 = vector.extract_strided_slice %816 {offsets = [0, 64], sizes = [8, 32], strides = [1, 1]} : vector<8x128xf32> to vector<8x32xf32>
    %c192_314 = arith.constant 192 : index
    %c0_315 = arith.constant 0 : index
    %821 = vector.load %arg6[%c192_314, %c0_315] : memref<256x128xf32, #tpu.memory_space<vmem>>, vector<32x128xf32>
    %cst_316 = arith.constant dense<0.000000e+00> : vector<8x128xf32>
    %822 = tpu.matmul %820, %821, %cst_316 {dimension_numbers = #tpu.dot_dimension_numbers<[1], [0], [0], [1], [0, 0, 1, 1], [], []>} : vector<8x32xf32>, vector<32x128xf32>, vector<8x128xf32> -> vector<8x128xf32>
    %823 = arith.addf %809, %822 : vector<8x128xf32>
    %cst_317 = arith.constant 0.000000e+00 : f32
    %824 = vector.broadcast %cst_317 : f32 to vector<8x128xf32>
    %825 = arith.maximumf %823, %824 : vector<8x128xf32>
    %826 = arith.subf %825, %819 : vector<8x128xf32>
    %827 = vector.broadcast %31 : vector<1x128xf32> to vector<8x128xf32>
    %828 = arith.mulf %826, %827 : vector<8x128xf32>
    %829 = arith.addf %819, %828 : vector<8x128xf32>
    %830 = arith.subf %829, %819 : vector<8x128xf32>
    %831 = vector.broadcast %15 : vector<1x128xf32> to vector<8x128xf32>
    %832 = arith.mulf %831, %830 : vector<8x128xf32>
    %833 = arith.addf %819, %832 : vector<8x128xf32>
    %c5_318 = arith.constant 5 : index
    %c0_319 = arith.constant 0 : index
    %c0_320 = arith.constant 0 : index
    %834 = vector.load %arg3[%c5_318, %c0_319, %c0_320] : memref<8x8x128xf32, #tpu.memory_space<vmem>>, vector<1x8x128xf32>
    %835 = vector.shape_cast %834 : vector<1x8x128xf32> to vector<8x128xf32>
    %836 = vector.shape_cast %833 : vector<8x128xf32> to vector<1x8x128xf32>
    tpu.vector_store %arg3[%c5_318, %c0_319, %c0_320], %836 {strides = array<i32>} : memref<8x8x128xf32, #tpu.memory_space<vmem>>, vector<1x8x128xf32>,
    %837 = vector.extract_strided_slice %785 {offsets = [0, 0], sizes = [8, 64], strides = [1, 1]} : vector<8x128xf32> to vector<8x64xf32>
    %838 = vector.extract_strided_slice %833 {offsets = [0, 0], sizes = [8, 64], strides = [1, 1]} : vector<8x128xf32> to vector<8x64xf32>
    %839 = tpu.concatenate %837, %838 in 1 : vector<8x64xf32>, vector<8x64xf32> -> vector<8x128xf32>
    %cst_321 = arith.constant dense<0.000000e+00> : vector<128x128xf32>
    %840 = tpu.matmul %839, %833, %cst_321 {dimension_numbers = #tpu.dot_dimension_numbers<[0], [0], [1], [1], [0, 1, 1, 1], [], []>} : vector<8x128xf32>, vector<8x128xf32>, vector<128x128xf32> -> vector<128x128xf32>
    %cst_322 = arith.constant 5.000000e-01 : f32
    %841 = vector.broadcast %cst_322 : f32 to vector<128x128xf32>
    %842 = arith.mulf %840, %841 : vector<128x128xf32>
    %c0_323 = arith.constant 0 : index
    %c0_324 = arith.constant 0 : index
    %843 = vector.load %arg6[%c0_323, %c0_324] : memref<256x128xf32, #tpu.memory_space<vmem>>, vector<64x128xf32>
    %cst_325 = arith.constant 1.000000e-03 : f32
    %844 = vector.broadcast %cst_325 : f32 to vector<1x128xf32>
    %845 = arith.mulf %844, %4 : vector<1x128xf32>
    %846 = vector.extract_strided_slice %842 {offsets = [0, 0], sizes = [64, 128], strides = [1, 1]} : vector<128x128xf32> to vector<64x128xf32>
    %cst_326 = arith.constant 1.000000e-03 : f32
    %847 = vector.broadcast %cst_326 : f32 to vector<64x128xf32>
    %848 = arith.mulf %847, %843 : vector<64x128xf32>
    %849 = arith.subf %846, %848 : vector<64x128xf32>
    %850 = vector.broadcast %845 : vector<1x128xf32> to vector<64x128xf32>
    %851 = arith.mulf %850, %849 : vector<64x128xf32>
    %852 = arith.addf %843, %851 : vector<64x128xf32>
    %c0_327 = arith.constant 0 : index
    %c0_328 = arith.constant 0 : index
    %853 = vector.load %arg6[%c0_327, %c0_328] : memref<256x128xf32, #tpu.memory_space<vmem>>, vector<64x128xf32>
    tpu.vector_store %arg6[%c0_327, %c0_328], %852 {strides = array<i32>} : memref<256x128xf32, #tpu.memory_space<vmem>>, vector<64x128xf32>,
    %c64_329 = arith.constant 64 : index
    %c0_330 = arith.constant 0 : index
    %854 = vector.load %arg6[%c64_329, %c0_330] : memref<256x128xf32, #tpu.memory_space<vmem>>, vector<64x128xf32>
    %cst_331 = arith.constant 1.000000e-03 : f32
    %855 = vector.broadcast %cst_331 : f32 to vector<1x128xf32>
    %856 = arith.mulf %855, %15 : vector<1x128xf32>
    %857 = vector.extract_strided_slice %842 {offsets = [64, 0], sizes = [64, 128], strides = [1, 1]} : vector<128x128xf32> to vector<64x128xf32>
    %cst_332 = arith.constant 1.000000e-03 : f32
    %858 = vector.broadcast %cst_332 : f32 to vector<64x128xf32>
    %859 = arith.mulf %858, %854 : vector<64x128xf32>
    %860 = arith.subf %857, %859 : vector<64x128xf32>
    %861 = vector.broadcast %856 : vector<1x128xf32> to vector<64x128xf32>
    %862 = arith.mulf %861, %860 : vector<64x128xf32>
    %863 = arith.addf %854, %862 : vector<64x128xf32>
    %cst_333 = arith.constant 0.000000e+00 : f32
    %864 = vector.broadcast %cst_333 : f32 to vector<64x128xf32>
    %865 = arith.maximumf %863, %864 : vector<64x128xf32>
    %866 = arith.mulf %865, %865 : vector<64x128xf32>
    %cst_334 = arith.constant dense<0.000000e+00> : vector<128xf32>
    %867 = vector.multi_reduction <add>, %866, %cst_334 [0] : vector<64x128xf32> to vector<128xf32>
    %868 = vector.shape_cast %867 : vector<128xf32> to vector<1x128xf32>
    %cst_335 = arith.constant 0.000000e+00 : f32
    %869 = vector.broadcast %cst_335 : f32 to vector<1x128xf32>
    %870 = arith.cmpf ogt, %868, %869 : vector<1x128xf32>
    %871 = math.rsqrt %868 : vector<1x128xf32>
    %cst_336 = arith.constant 0.000000e+00 : f32
    %872 = vector.broadcast %cst_336 : f32 to vector<1x128xf32>
    %873 = arith.select %870, %871, %872 : vector<1x128xi1>, vector<1x128xf32>
    %874 = vector.broadcast %873 : vector<1x128xf32> to vector<64x128xf32>
    %875 = arith.mulf %865, %874 : vector<64x128xf32>
    %c64_337 = arith.constant 64 : index
    %c0_338 = arith.constant 0 : index
    %876 = vector.load %arg6[%c64_337, %c0_338] : memref<256x128xf32, #tpu.memory_space<vmem>>, vector<64x128xf32>
    tpu.vector_store %arg6[%c64_337, %c0_338], %875 {strides = array<i32>} : memref<256x128xf32, #tpu.memory_space<vmem>>, vector<64x128xf32>,
    %cst_339 = arith.constant dense<0.000000e+00> : vector<128x128xf32>
    %877 = tpu.matmul %833, %833, %cst_339 {dimension_numbers = #tpu.dot_dimension_numbers<[0], [0], [1], [1], [0, 1, 1, 1], [], []>} : vector<8x128xf32>, vector<8x128xf32>, vector<128x128xf32> -> vector<128x128xf32>
    %cst_340 = arith.constant 5.000000e-01 : f32
    %878 = vector.broadcast %cst_340 : f32 to vector<128x128xf32>
    %879 = arith.mulf %877, %878 : vector<128x128xf32>
    %c128_341 = arith.constant 128 : index
    %c0_342 = arith.constant 0 : index
    %880 = vector.load %arg6[%c128_341, %c0_342] : memref<256x128xf32, #tpu.memory_space<vmem>>, vector<128x128xf32>
    %cst_343 = arith.constant 1.000000e-03 : f32
    %881 = vector.broadcast %cst_343 : f32 to vector<128x128xf32>
    %882 = arith.mulf %881, %880 : vector<128x128xf32>
    %883 = arith.subf %879, %882 : vector<128x128xf32>
    %cst_344 = arith.constant 1.000000e-03 : f32
    %884 = vector.broadcast %cst_344 : f32 to vector<128x128xf32>
    %885 = arith.mulf %884, %883 : vector<128x128xf32>
    %886 = arith.addf %880, %885 : vector<128x128xf32>
    %c0_345 = arith.constant 0 : index
    %c0_346 = arith.constant 0 : index
    %887 = vector.load %arg7[%c0_345, %c0_346] : memref<128x128xf32, #tpu.memory_space<vmem>>, vector<128x128xf32>
    %888 = arith.mulf %887, %886 : vector<128x128xf32>
    %cst_347 = arith.constant 0.000000e+00 : f32
    %889 = vector.broadcast %cst_347 : f32 to vector<128x128xf32>
    %890 = arith.maximumf %888, %889 : vector<128x128xf32>
    %891 = arith.mulf %887, %890 : vector<128x128xf32>
    %892 = arith.mulf %891, %891 : vector<128x128xf32>
    %893 = vector.extract_strided_slice %892 {offsets = [0, 0], sizes = [64, 128], strides = [1, 1]} : vector<128x128xf32> to vector<64x128xf32>
    %cst_348 = arith.constant dense<0.000000e+00> : vector<128xf32>
    %894 = vector.multi_reduction <add>, %893, %cst_348 [0] : vector<64x128xf32> to vector<128xf32>
    %895 = vector.shape_cast %894 : vector<128xf32> to vector<1x128xf32>
    %896 = vector.extract_strided_slice %892 {offsets = [64, 0], sizes = [32, 128], strides = [1, 1]} : vector<128x128xf32> to vector<32x128xf32>
    %cst_349 = arith.constant dense<0.000000e+00> : vector<128xf32>
    %897 = vector.multi_reduction <add>, %896, %cst_349 [0] : vector<32x128xf32> to vector<128xf32>
    %898 = vector.shape_cast %897 : vector<128xf32> to vector<1x128xf32>
    %899 = vector.extract_strided_slice %892 {offsets = [96, 0], sizes = [32, 128], strides = [1, 1]} : vector<128x128xf32> to vector<32x128xf32>
    %cst_350 = arith.constant dense<0.000000e+00> : vector<128xf32>
    %900 = vector.multi_reduction <add>, %899, %cst_350 [0] : vector<32x128xf32> to vector<128xf32>
    %901 = vector.shape_cast %900 : vector<128xf32> to vector<1x128xf32>
    %cst_351 = arith.constant 0.000000e+00 : f32
    %902 = vector.broadcast %cst_351 : f32 to vector<1x128xf32>
    %903 = arith.cmpf ogt, %895, %902 : vector<1x128xf32>
    %904 = math.rsqrt %895 : vector<1x128xf32>
    %cst_352 = arith.constant 0.000000e+00 : f32
    %905 = vector.broadcast %cst_352 : f32 to vector<1x128xf32>
    %906 = arith.select %903, %904, %905 : vector<1x128xi1>, vector<1x128xf32>
    %cst_353 = arith.constant 0.000000e+00 : f32
    %907 = vector.broadcast %cst_353 : f32 to vector<1x128xf32>
    %908 = arith.cmpf ogt, %898, %907 : vector<1x128xf32>
    %909 = math.rsqrt %898 : vector<1x128xf32>
    %cst_354 = arith.constant 0.000000e+00 : f32
    %910 = vector.broadcast %cst_354 : f32 to vector<1x128xf32>
    %911 = arith.select %908, %909, %910 : vector<1x128xi1>, vector<1x128xf32>
    %cst_355 = arith.constant 0.000000e+00 : f32
    %912 = vector.broadcast %cst_355 : f32 to vector<1x128xf32>
    %913 = arith.cmpf ogt, %901, %912 : vector<1x128xf32>
    %914 = math.rsqrt %901 : vector<1x128xf32>
    %cst_356 = arith.constant 0.000000e+00 : f32
    %915 = vector.broadcast %cst_356 : f32 to vector<1x128xf32>
    %916 = arith.select %913, %914, %915 : vector<1x128xi1>, vector<1x128xf32>
    %917 = vector.extract_strided_slice %891 {offsets = [0, 0], sizes = [64, 128], strides = [1, 1]} : vector<128x128xf32> to vector<64x128xf32>
    %918 = vector.broadcast %906 : vector<1x128xf32> to vector<64x128xf32>
    %919 = arith.mulf %917, %918 : vector<64x128xf32>
    %920 = vector.extract_strided_slice %891 {offsets = [64, 0], sizes = [32, 128], strides = [1, 1]} : vector<128x128xf32> to vector<32x128xf32>
    %921 = vector.broadcast %911 : vector<1x128xf32> to vector<32x128xf32>
    %922 = arith.mulf %920, %921 : vector<32x128xf32>
    %923 = vector.extract_strided_slice %891 {offsets = [96, 0], sizes = [32, 128], strides = [1, 1]} : vector<128x128xf32> to vector<32x128xf32>
    %924 = vector.broadcast %916 : vector<1x128xf32> to vector<32x128xf32>
    %925 = arith.mulf %923, %924 : vector<32x128xf32>
    %926 = tpu.concatenate %919, %922, %925 in 0 : vector<64x128xf32>, vector<32x128xf32>, vector<32x128xf32> -> vector<128x128xf32>
    %c128_357 = arith.constant 128 : index
    %c0_358 = arith.constant 0 : index
    %927 = vector.load %arg6[%c128_357, %c0_358] : memref<256x128xf32, #tpu.memory_space<vmem>>, vector<128x128xf32>
    tpu.vector_store %arg6[%c128_357, %c0_358], %926 {strides = array<i32>} : memref<256x128xf32, #tpu.memory_space<vmem>>, vector<128x128xf32>,
    %c6 = arith.constant 6 : index
    %c0_359 = arith.constant 0 : index
    %c0_360 = arith.constant 0 : index
    %928 = vector.load %arg1[%c6, %c0_359, %c0_360] : memref<8x8x128xf32, #tpu.memory_space<vmem>>, vector<1x8x128xf32>
    %929 = vector.shape_cast %928 : vector<1x8x128xf32> to vector<8x128xf32>
    %930 = vector.broadcast %23 : vector<1x128xf32> to vector<8x128xf32>
    %931 = arith.mulf %930, %833 : vector<8x128xf32>
    %932 = arith.subf %931, %791 : vector<8x128xf32>
    %cst_361 = arith.constant 5.000000e-03 : f32
    %933 = vector.broadcast %cst_361 : f32 to vector<8x128xf32>
    %934 = arith.mulf %932, %933 : vector<8x128xf32>
    %935 = arith.addf %791, %934 : vector<8x128xf32>
    %936 = tpu.concatenate %929, %833 in 1 : vector<8x128xf32>, vector<8x128xf32> -> vector<8x256xf32>
    %c0_362 = arith.constant 0 : index
    %c0_363 = arith.constant 0 : index
    %937 = vector.load %arg6[%c0_362, %c0_363] : memref<256x128xf32, #tpu.memory_space<vmem>>, vector<256x128xf32>
    %cst_364 = arith.constant dense<0.000000e+00> : vector<8x128xf32>
    %938 = tpu.matmul %936, %937, %cst_364 {dimension_numbers = #tpu.dot_dimension_numbers<[1], [0], [0], [1], [0, 0, 1, 1], [], []>} : vector<8x256xf32>, vector<256x128xf32>, vector<8x128xf32> -> vector<8x128xf32>
    %939 = arith.subf %938, %935 : vector<8x128xf32>
    %cst_365 = arith.constant 0.000000e+00 : f32
    %940 = vector.broadcast %cst_365 : f32 to vector<8x128xf32>
    %941 = arith.maximumf %939, %940 : vector<8x128xf32>
    %942 = arith.subf %941, %833 : vector<8x128xf32>
    %943 = vector.broadcast %31 : vector<1x128xf32> to vector<8x128xf32>
    %944 = arith.mulf %942, %943 : vector<8x128xf32>
    %945 = arith.addf %833, %944 : vector<8x128xf32>
    %946 = arith.subf %945, %833 : vector<8x128xf32>
    %947 = vector.broadcast %4 : vector<1x128xf32> to vector<8x128xf32>
    %948 = arith.mulf %947, %946 : vector<8x128xf32>
    %949 = arith.addf %833, %948 : vector<8x128xf32>
    %950 = vector.extract_strided_slice %946 {offsets = [0, 0], sizes = [8, 64], strides = [1, 1]} : vector<8x128xf32> to vector<8x64xf32>
    %c128_366 = arith.constant 128 : index
    %c0_367 = arith.constant 0 : index
    %951 = vector.load %arg6[%c128_366, %c0_367] : memref<256x128xf32, #tpu.memory_space<vmem>>, vector<64x128xf32>
    %cst_368 = arith.constant dense<0.000000e+00> : vector<8x128xf32>
    %952 = tpu.matmul %950, %951, %cst_368 {dimension_numbers = #tpu.dot_dimension_numbers<[1], [0], [0], [1], [0, 0, 1, 1], [], []>} : vector<8x64xf32>, vector<64x128xf32>, vector<8x128xf32> -> vector<8x128xf32>
    %953 = arith.addf %939, %952 : vector<8x128xf32>
    %cst_369 = arith.constant 0.000000e+00 : f32
    %954 = vector.broadcast %cst_369 : f32 to vector<8x128xf32>
    %955 = arith.maximumf %953, %954 : vector<8x128xf32>
    %956 = arith.subf %955, %949 : vector<8x128xf32>
    %957 = vector.broadcast %31 : vector<1x128xf32> to vector<8x128xf32>
    %958 = arith.mulf %956, %957 : vector<8x128xf32>
    %959 = arith.addf %949, %958 : vector<8x128xf32>
    %960 = arith.subf %959, %949 : vector<8x128xf32>
    %961 = vector.broadcast %11 : vector<1x128xf32> to vector<8x128xf32>
    %962 = arith.mulf %961, %960 : vector<8x128xf32>
    %963 = arith.addf %949, %962 : vector<8x128xf32>
    %964 = vector.extract_strided_slice %960 {offsets = [0, 64], sizes = [8, 32], strides = [1, 1]} : vector<8x128xf32> to vector<8x32xf32>
    %c192_370 = arith.constant 192 : index
    %c0_371 = arith.constant 0 : index
    %965 = vector.load %arg6[%c192_370, %c0_371] : memref<256x128xf32, #tpu.memory_space<vmem>>, vector<32x128xf32>
    %cst_372 = arith.constant dense<0.000000e+00> : vector<8x128xf32>
    %966 = tpu.matmul %964, %965, %cst_372 {dimension_numbers = #tpu.dot_dimension_numbers<[1], [0], [0], [1], [0, 0, 1, 1], [], []>} : vector<8x32xf32>, vector<32x128xf32>, vector<8x128xf32> -> vector<8x128xf32>
    %967 = arith.addf %953, %966 : vector<8x128xf32>
    %cst_373 = arith.constant 0.000000e+00 : f32
    %968 = vector.broadcast %cst_373 : f32 to vector<8x128xf32>
    %969 = arith.maximumf %967, %968 : vector<8x128xf32>
    %970 = arith.subf %969, %963 : vector<8x128xf32>
    %971 = vector.broadcast %31 : vector<1x128xf32> to vector<8x128xf32>
    %972 = arith.mulf %970, %971 : vector<8x128xf32>
    %973 = arith.addf %963, %972 : vector<8x128xf32>
    %974 = arith.subf %973, %963 : vector<8x128xf32>
    %975 = vector.broadcast %15 : vector<1x128xf32> to vector<8x128xf32>
    %976 = arith.mulf %975, %974 : vector<8x128xf32>
    %977 = arith.addf %963, %976 : vector<8x128xf32>
    %c6_374 = arith.constant 6 : index
    %c0_375 = arith.constant 0 : index
    %c0_376 = arith.constant 0 : index
    %978 = vector.load %arg3[%c6_374, %c0_375, %c0_376] : memref<8x8x128xf32, #tpu.memory_space<vmem>>, vector<1x8x128xf32>
    %979 = vector.shape_cast %978 : vector<1x8x128xf32> to vector<8x128xf32>
    %980 = vector.shape_cast %977 : vector<8x128xf32> to vector<1x8x128xf32>
    tpu.vector_store %arg3[%c6_374, %c0_375, %c0_376], %980 {strides = array<i32>} : memref<8x8x128xf32, #tpu.memory_space<vmem>>, vector<1x8x128xf32>,
    %981 = vector.extract_strided_slice %929 {offsets = [0, 0], sizes = [8, 64], strides = [1, 1]} : vector<8x128xf32> to vector<8x64xf32>
    %982 = vector.extract_strided_slice %977 {offsets = [0, 0], sizes = [8, 64], strides = [1, 1]} : vector<8x128xf32> to vector<8x64xf32>
    %983 = tpu.concatenate %981, %982 in 1 : vector<8x64xf32>, vector<8x64xf32> -> vector<8x128xf32>
    %cst_377 = arith.constant dense<0.000000e+00> : vector<128x128xf32>
    %984 = tpu.matmul %983, %977, %cst_377 {dimension_numbers = #tpu.dot_dimension_numbers<[0], [0], [1], [1], [0, 1, 1, 1], [], []>} : vector<8x128xf32>, vector<8x128xf32>, vector<128x128xf32> -> vector<128x128xf32>
    %cst_378 = arith.constant 5.000000e-01 : f32
    %985 = vector.broadcast %cst_378 : f32 to vector<128x128xf32>
    %986 = arith.mulf %984, %985 : vector<128x128xf32>
    %c0_379 = arith.constant 0 : index
    %c0_380 = arith.constant 0 : index
    %987 = vector.load %arg6[%c0_379, %c0_380] : memref<256x128xf32, #tpu.memory_space<vmem>>, vector<64x128xf32>
    %cst_381 = arith.constant 1.000000e-03 : f32
    %988 = vector.broadcast %cst_381 : f32 to vector<1x128xf32>
    %989 = arith.mulf %988, %4 : vector<1x128xf32>
    %990 = vector.extract_strided_slice %986 {offsets = [0, 0], sizes = [64, 128], strides = [1, 1]} : vector<128x128xf32> to vector<64x128xf32>
    %cst_382 = arith.constant 1.000000e-03 : f32
    %991 = vector.broadcast %cst_382 : f32 to vector<64x128xf32>
    %992 = arith.mulf %991, %987 : vector<64x128xf32>
    %993 = arith.subf %990, %992 : vector<64x128xf32>
    %994 = vector.broadcast %989 : vector<1x128xf32> to vector<64x128xf32>
    %995 = arith.mulf %994, %993 : vector<64x128xf32>
    %996 = arith.addf %987, %995 : vector<64x128xf32>
    %c0_383 = arith.constant 0 : index
    %c0_384 = arith.constant 0 : index
    %997 = vector.load %arg6[%c0_383, %c0_384] : memref<256x128xf32, #tpu.memory_space<vmem>>, vector<64x128xf32>
    tpu.vector_store %arg6[%c0_383, %c0_384], %996 {strides = array<i32>} : memref<256x128xf32, #tpu.memory_space<vmem>>, vector<64x128xf32>,
    %c64_385 = arith.constant 64 : index
    %c0_386 = arith.constant 0 : index
    %998 = vector.load %arg6[%c64_385, %c0_386] : memref<256x128xf32, #tpu.memory_space<vmem>>, vector<64x128xf32>
    %cst_387 = arith.constant 1.000000e-03 : f32
    %999 = vector.broadcast %cst_387 : f32 to vector<1x128xf32>
    %1000 = arith.mulf %999, %15 : vector<1x128xf32>
    %1001 = vector.extract_strided_slice %986 {offsets = [64, 0], sizes = [64, 128], strides = [1, 1]} : vector<128x128xf32> to vector<64x128xf32>
    %cst_388 = arith.constant 1.000000e-03 : f32
    %1002 = vector.broadcast %cst_388 : f32 to vector<64x128xf32>
    %1003 = arith.mulf %1002, %998 : vector<64x128xf32>
    %1004 = arith.subf %1001, %1003 : vector<64x128xf32>
    %1005 = vector.broadcast %1000 : vector<1x128xf32> to vector<64x128xf32>
    %1006 = arith.mulf %1005, %1004 : vector<64x128xf32>
    %1007 = arith.addf %998, %1006 : vector<64x128xf32>
    %cst_389 = arith.constant 0.000000e+00 : f32
    %1008 = vector.broadcast %cst_389 : f32 to vector<64x128xf32>
    %1009 = arith.maximumf %1007, %1008 : vector<64x128xf32>
    %1010 = arith.mulf %1009, %1009 : vector<64x128xf32>
    %cst_390 = arith.constant dense<0.000000e+00> : vector<128xf32>
    %1011 = vector.multi_reduction <add>, %1010, %cst_390 [0] : vector<64x128xf32> to vector<128xf32>
    %1012 = vector.shape_cast %1011 : vector<128xf32> to vector<1x128xf32>
    %cst_391 = arith.constant 0.000000e+00 : f32
    %1013 = vector.broadcast %cst_391 : f32 to vector<1x128xf32>
    %1014 = arith.cmpf ogt, %1012, %1013 : vector<1x128xf32>
    %1015 = math.rsqrt %1012 : vector<1x128xf32>
    %cst_392 = arith.constant 0.000000e+00 : f32
    %1016 = vector.broadcast %cst_392 : f32 to vector<1x128xf32>
    %1017 = arith.select %1014, %1015, %1016 : vector<1x128xi1>, vector<1x128xf32>
    %1018 = vector.broadcast %1017 : vector<1x128xf32> to vector<64x128xf32>
    %1019 = arith.mulf %1009, %1018 : vector<64x128xf32>
    %c64_393 = arith.constant 64 : index
    %c0_394 = arith.constant 0 : index
    %1020 = vector.load %arg6[%c64_393, %c0_394] : memref<256x128xf32, #tpu.memory_space<vmem>>, vector<64x128xf32>
    tpu.vector_store %arg6[%c64_393, %c0_394], %1019 {strides = array<i32>} : memref<256x128xf32, #tpu.memory_space<vmem>>, vector<64x128xf32>,
    %cst_395 = arith.constant dense<0.000000e+00> : vector<128x128xf32>
    %1021 = tpu.matmul %977, %977, %cst_395 {dimension_numbers = #tpu.dot_dimension_numbers<[0], [0], [1], [1], [0, 1, 1, 1], [], []>} : vector<8x128xf32>, vector<8x128xf32>, vector<128x128xf32> -> vector<128x128xf32>
    %cst_396 = arith.constant 5.000000e-01 : f32
    %1022 = vector.broadcast %cst_396 : f32 to vector<128x128xf32>
    %1023 = arith.mulf %1021, %1022 : vector<128x128xf32>
    %c128_397 = arith.constant 128 : index
    %c0_398 = arith.constant 0 : index
    %1024 = vector.load %arg6[%c128_397, %c0_398] : memref<256x128xf32, #tpu.memory_space<vmem>>, vector<128x128xf32>
    %cst_399 = arith.constant 1.000000e-03 : f32
    %1025 = vector.broadcast %cst_399 : f32 to vector<128x128xf32>
    %1026 = arith.mulf %1025, %1024 : vector<128x128xf32>
    %1027 = arith.subf %1023, %1026 : vector<128x128xf32>
    %cst_400 = arith.constant 1.000000e-03 : f32
    %1028 = vector.broadcast %cst_400 : f32 to vector<128x128xf32>
    %1029 = arith.mulf %1028, %1027 : vector<128x128xf32>
    %1030 = arith.addf %1024, %1029 : vector<128x128xf32>
    %c0_401 = arith.constant 0 : index
    %c0_402 = arith.constant 0 : index
    %1031 = vector.load %arg7[%c0_401, %c0_402] : memref<128x128xf32, #tpu.memory_space<vmem>>, vector<128x128xf32>
    %1032 = arith.mulf %1031, %1030 : vector<128x128xf32>
    %cst_403 = arith.constant 0.000000e+00 : f32
    %1033 = vector.broadcast %cst_403 : f32 to vector<128x128xf32>
    %1034 = arith.maximumf %1032, %1033 : vector<128x128xf32>
    %1035 = arith.mulf %1031, %1034 : vector<128x128xf32>
    %1036 = arith.mulf %1035, %1035 : vector<128x128xf32>
    %1037 = vector.extract_strided_slice %1036 {offsets = [0, 0], sizes = [64, 128], strides = [1, 1]} : vector<128x128xf32> to vector<64x128xf32>
    %cst_404 = arith.constant dense<0.000000e+00> : vector<128xf32>
    %1038 = vector.multi_reduction <add>, %1037, %cst_404 [0] : vector<64x128xf32> to vector<128xf32>
    %1039 = vector.shape_cast %1038 : vector<128xf32> to vector<1x128xf32>
    %1040 = vector.extract_strided_slice %1036 {offsets = [64, 0], sizes = [32, 128], strides = [1, 1]} : vector<128x128xf32> to vector<32x128xf32>
    %cst_405 = arith.constant dense<0.000000e+00> : vector<128xf32>
    %1041 = vector.multi_reduction <add>, %1040, %cst_405 [0] : vector<32x128xf32> to vector<128xf32>
    %1042 = vector.shape_cast %1041 : vector<128xf32> to vector<1x128xf32>
    %1043 = vector.extract_strided_slice %1036 {offsets = [96, 0], sizes = [32, 128], strides = [1, 1]} : vector<128x128xf32> to vector<32x128xf32>
    %cst_406 = arith.constant dense<0.000000e+00> : vector<128xf32>
    %1044 = vector.multi_reduction <add>, %1043, %cst_406 [0] : vector<32x128xf32> to vector<128xf32>
    %1045 = vector.shape_cast %1044 : vector<128xf32> to vector<1x128xf32>
    %cst_407 = arith.constant 0.000000e+00 : f32
    %1046 = vector.broadcast %cst_407 : f32 to vector<1x128xf32>
    %1047 = arith.cmpf ogt, %1039, %1046 : vector<1x128xf32>
    %1048 = math.rsqrt %1039 : vector<1x128xf32>
    %cst_408 = arith.constant 0.000000e+00 : f32
    %1049 = vector.broadcast %cst_408 : f32 to vector<1x128xf32>
    %1050 = arith.select %1047, %1048, %1049 : vector<1x128xi1>, vector<1x128xf32>
    %cst_409 = arith.constant 0.000000e+00 : f32
    %1051 = vector.broadcast %cst_409 : f32 to vector<1x128xf32>
    %1052 = arith.cmpf ogt, %1042, %1051 : vector<1x128xf32>
    %1053 = math.rsqrt %1042 : vector<1x128xf32>
    %cst_410 = arith.constant 0.000000e+00 : f32
    %1054 = vector.broadcast %cst_410 : f32 to vector<1x128xf32>
    %1055 = arith.select %1052, %1053, %1054 : vector<1x128xi1>, vector<1x128xf32>
    %cst_411 = arith.constant 0.000000e+00 : f32
    %1056 = vector.broadcast %cst_411 : f32 to vector<1x128xf32>
    %1057 = arith.cmpf ogt, %1045, %1056 : vector<1x128xf32>
    %1058 = math.rsqrt %1045 : vector<1x128xf32>
    %cst_412 = arith.constant 0.000000e+00 : f32
    %1059 = vector.broadcast %cst_412 : f32 to vector<1x128xf32>
    %1060 = arith.select %1057, %1058, %1059 : vector<1x128xi1>, vector<1x128xf32>
    %1061 = vector.extract_strided_slice %1035 {offsets = [0, 0], sizes = [64, 128], strides = [1, 1]} : vector<128x128xf32> to vector<64x128xf32>
    %1062 = vector.broadcast %1050 : vector<1x128xf32> to vector<64x128xf32>
    %1063 = arith.mulf %1061, %1062 : vector<64x128xf32>
    %1064 = vector.extract_strided_slice %1035 {offsets = [64, 0], sizes = [32, 128], strides = [1, 1]} : vector<128x128xf32> to vector<32x128xf32>
    %1065 = vector.broadcast %1055 : vector<1x128xf32> to vector<32x128xf32>
    %1066 = arith.mulf %1064, %1065 : vector<32x128xf32>
    %1067 = vector.extract_strided_slice %1035 {offsets = [96, 0], sizes = [32, 128], strides = [1, 1]} : vector<128x128xf32> to vector<32x128xf32>
    %1068 = vector.broadcast %1060 : vector<1x128xf32> to vector<32x128xf32>
    %1069 = arith.mulf %1067, %1068 : vector<32x128xf32>
    %1070 = tpu.concatenate %1063, %1066, %1069 in 0 : vector<64x128xf32>, vector<32x128xf32>, vector<32x128xf32> -> vector<128x128xf32>
    %c128_413 = arith.constant 128 : index
    %c0_414 = arith.constant 0 : index
    %1071 = vector.load %arg6[%c128_413, %c0_414] : memref<256x128xf32, #tpu.memory_space<vmem>>, vector<128x128xf32>
    tpu.vector_store %arg6[%c128_413, %c0_414], %1070 {strides = array<i32>} : memref<256x128xf32, #tpu.memory_space<vmem>>, vector<128x128xf32>,
    %c7 = arith.constant 7 : index
    %c0_415 = arith.constant 0 : index
    %c0_416 = arith.constant 0 : index
    %1072 = vector.load %arg1[%c7, %c0_415, %c0_416] : memref<8x8x128xf32, #tpu.memory_space<vmem>>, vector<1x8x128xf32>
    %1073 = vector.shape_cast %1072 : vector<1x8x128xf32> to vector<8x128xf32>
    %1074 = vector.broadcast %23 : vector<1x128xf32> to vector<8x128xf32>
    %1075 = arith.mulf %1074, %977 : vector<8x128xf32>
    %1076 = arith.subf %1075, %935 : vector<8x128xf32>
    %cst_417 = arith.constant 5.000000e-03 : f32
    %1077 = vector.broadcast %cst_417 : f32 to vector<8x128xf32>
    %1078 = arith.mulf %1076, %1077 : vector<8x128xf32>
    %1079 = arith.addf %935, %1078 : vector<8x128xf32>
    %1080 = tpu.concatenate %1073, %977 in 1 : vector<8x128xf32>, vector<8x128xf32> -> vector<8x256xf32>
    %c0_418 = arith.constant 0 : index
    %c0_419 = arith.constant 0 : index
    %1081 = vector.load %arg6[%c0_418, %c0_419] : memref<256x128xf32, #tpu.memory_space<vmem>>, vector<256x128xf32>
    %cst_420 = arith.constant dense<0.000000e+00> : vector<8x128xf32>
    %1082 = tpu.matmul %1080, %1081, %cst_420 {dimension_numbers = #tpu.dot_dimension_numbers<[1], [0], [0], [1], [0, 0, 1, 1], [], []>} : vector<8x256xf32>, vector<256x128xf32>, vector<8x128xf32> -> vector<8x128xf32>
    %1083 = arith.subf %1082, %1079 : vector<8x128xf32>
    %cst_421 = arith.constant 0.000000e+00 : f32
    %1084 = vector.broadcast %cst_421 : f32 to vector<8x128xf32>
    %1085 = arith.maximumf %1083, %1084 : vector<8x128xf32>
    %1086 = arith.subf %1085, %977 : vector<8x128xf32>
    %1087 = vector.broadcast %31 : vector<1x128xf32> to vector<8x128xf32>
    %1088 = arith.mulf %1086, %1087 : vector<8x128xf32>
    %1089 = arith.addf %977, %1088 : vector<8x128xf32>
    %1090 = arith.subf %1089, %977 : vector<8x128xf32>
    %1091 = vector.broadcast %4 : vector<1x128xf32> to vector<8x128xf32>
    %1092 = arith.mulf %1091, %1090 : vector<8x128xf32>
    %1093 = arith.addf %977, %1092 : vector<8x128xf32>
    %1094 = vector.extract_strided_slice %1090 {offsets = [0, 0], sizes = [8, 64], strides = [1, 1]} : vector<8x128xf32> to vector<8x64xf32>
    %c128_422 = arith.constant 128 : index
    %c0_423 = arith.constant 0 : index
    %1095 = vector.load %arg6[%c128_422, %c0_423] : memref<256x128xf32, #tpu.memory_space<vmem>>, vector<64x128xf32>
    %cst_424 = arith.constant dense<0.000000e+00> : vector<8x128xf32>
    %1096 = tpu.matmul %1094, %1095, %cst_424 {dimension_numbers = #tpu.dot_dimension_numbers<[1], [0], [0], [1], [0, 0, 1, 1], [], []>} : vector<8x64xf32>, vector<64x128xf32>, vector<8x128xf32> -> vector<8x128xf32>
    %1097 = arith.addf %1083, %1096 : vector<8x128xf32>
    %cst_425 = arith.constant 0.000000e+00 : f32
    %1098 = vector.broadcast %cst_425 : f32 to vector<8x128xf32>
    %1099 = arith.maximumf %1097, %1098 : vector<8x128xf32>
    %1100 = arith.subf %1099, %1093 : vector<8x128xf32>
    %1101 = vector.broadcast %31 : vector<1x128xf32> to vector<8x128xf32>
    %1102 = arith.mulf %1100, %1101 : vector<8x128xf32>
    %1103 = arith.addf %1093, %1102 : vector<8x128xf32>
    %1104 = arith.subf %1103, %1093 : vector<8x128xf32>
    %1105 = vector.broadcast %11 : vector<1x128xf32> to vector<8x128xf32>
    %1106 = arith.mulf %1105, %1104 : vector<8x128xf32>
    %1107 = arith.addf %1093, %1106 : vector<8x128xf32>
    %1108 = vector.extract_strided_slice %1104 {offsets = [0, 64], sizes = [8, 32], strides = [1, 1]} : vector<8x128xf32> to vector<8x32xf32>
    %c192_426 = arith.constant 192 : index
    %c0_427 = arith.constant 0 : index
    %1109 = vector.load %arg6[%c192_426, %c0_427] : memref<256x128xf32, #tpu.memory_space<vmem>>, vector<32x128xf32>
    %cst_428 = arith.constant dense<0.000000e+00> : vector<8x128xf32>
    %1110 = tpu.matmul %1108, %1109, %cst_428 {dimension_numbers = #tpu.dot_dimension_numbers<[1], [0], [0], [1], [0, 0, 1, 1], [], []>} : vector<8x32xf32>, vector<32x128xf32>, vector<8x128xf32> -> vector<8x128xf32>
    %1111 = arith.addf %1097, %1110 : vector<8x128xf32>
    %cst_429 = arith.constant 0.000000e+00 : f32
    %1112 = vector.broadcast %cst_429 : f32 to vector<8x128xf32>
    %1113 = arith.maximumf %1111, %1112 : vector<8x128xf32>
    %1114 = arith.subf %1113, %1107 : vector<8x128xf32>
    %1115 = vector.broadcast %31 : vector<1x128xf32> to vector<8x128xf32>
    %1116 = arith.mulf %1114, %1115 : vector<8x128xf32>
    %1117 = arith.addf %1107, %1116 : vector<8x128xf32>
    %1118 = arith.subf %1117, %1107 : vector<8x128xf32>
    %1119 = vector.broadcast %15 : vector<1x128xf32> to vector<8x128xf32>
    %1120 = arith.mulf %1119, %1118 : vector<8x128xf32>
    %1121 = arith.addf %1107, %1120 : vector<8x128xf32>
    %c7_430 = arith.constant 7 : index
    %c0_431 = arith.constant 0 : index
    %c0_432 = arith.constant 0 : index
    %1122 = vector.load %arg3[%c7_430, %c0_431, %c0_432] : memref<8x8x128xf32, #tpu.memory_space<vmem>>, vector<1x8x128xf32>
    %1123 = vector.shape_cast %1122 : vector<1x8x128xf32> to vector<8x128xf32>
    %1124 = vector.shape_cast %1121 : vector<8x128xf32> to vector<1x8x128xf32>
    tpu.vector_store %arg3[%c7_430, %c0_431, %c0_432], %1124 {strides = array<i32>} : memref<8x8x128xf32, #tpu.memory_space<vmem>>, vector<1x8x128xf32>,
    %1125 = vector.extract_strided_slice %1073 {offsets = [0, 0], sizes = [8, 64], strides = [1, 1]} : vector<8x128xf32> to vector<8x64xf32>
    %1126 = vector.extract_strided_slice %1121 {offsets = [0, 0], sizes = [8, 64], strides = [1, 1]} : vector<8x128xf32> to vector<8x64xf32>
    %1127 = tpu.concatenate %1125, %1126 in 1 : vector<8x64xf32>, vector<8x64xf32> -> vector<8x128xf32>
    %cst_433 = arith.constant dense<0.000000e+00> : vector<128x128xf32>
    %1128 = tpu.matmul %1127, %1121, %cst_433 {dimension_numbers = #tpu.dot_dimension_numbers<[0], [0], [1], [1], [0, 1, 1, 1], [], []>} : vector<8x128xf32>, vector<8x128xf32>, vector<128x128xf32> -> vector<128x128xf32>
    %cst_434 = arith.constant 5.000000e-01 : f32
    %1129 = vector.broadcast %cst_434 : f32 to vector<128x128xf32>
    %1130 = arith.mulf %1128, %1129 : vector<128x128xf32>
    %c0_435 = arith.constant 0 : index
    %c0_436 = arith.constant 0 : index
    %1131 = vector.load %arg6[%c0_435, %c0_436] : memref<256x128xf32, #tpu.memory_space<vmem>>, vector<64x128xf32>
    %cst_437 = arith.constant 1.000000e-03 : f32
    %1132 = vector.broadcast %cst_437 : f32 to vector<1x128xf32>
    %1133 = arith.mulf %1132, %4 : vector<1x128xf32>
    %1134 = vector.extract_strided_slice %1130 {offsets = [0, 0], sizes = [64, 128], strides = [1, 1]} : vector<128x128xf32> to vector<64x128xf32>
    %cst_438 = arith.constant 1.000000e-03 : f32
    %1135 = vector.broadcast %cst_438 : f32 to vector<64x128xf32>
    %1136 = arith.mulf %1135, %1131 : vector<64x128xf32>
    %1137 = arith.subf %1134, %1136 : vector<64x128xf32>
    %1138 = vector.broadcast %1133 : vector<1x128xf32> to vector<64x128xf32>
    %1139 = arith.mulf %1138, %1137 : vector<64x128xf32>
    %1140 = arith.addf %1131, %1139 : vector<64x128xf32>
    %c0_439 = arith.constant 0 : index
    %c0_440 = arith.constant 0 : index
    %1141 = vector.load %arg6[%c0_439, %c0_440] : memref<256x128xf32, #tpu.memory_space<vmem>>, vector<64x128xf32>
    tpu.vector_store %arg6[%c0_439, %c0_440], %1140 {strides = array<i32>} : memref<256x128xf32, #tpu.memory_space<vmem>>, vector<64x128xf32>,
    %c64_441 = arith.constant 64 : index
    %c0_442 = arith.constant 0 : index
    %1142 = vector.load %arg6[%c64_441, %c0_442] : memref<256x128xf32, #tpu.memory_space<vmem>>, vector<64x128xf32>
    %cst_443 = arith.constant 1.000000e-03 : f32
    %1143 = vector.broadcast %cst_443 : f32 to vector<1x128xf32>
    %1144 = arith.mulf %1143, %15 : vector<1x128xf32>
    %1145 = vector.extract_strided_slice %1130 {offsets = [64, 0], sizes = [64, 128], strides = [1, 1]} : vector<128x128xf32> to vector<64x128xf32>
    %cst_444 = arith.constant 1.000000e-03 : f32
    %1146 = vector.broadcast %cst_444 : f32 to vector<64x128xf32>
    %1147 = arith.mulf %1146, %1142 : vector<64x128xf32>
    %1148 = arith.subf %1145, %1147 : vector<64x128xf32>
    %1149 = vector.broadcast %1144 : vector<1x128xf32> to vector<64x128xf32>
    %1150 = arith.mulf %1149, %1148 : vector<64x128xf32>
    %1151 = arith.addf %1142, %1150 : vector<64x128xf32>
    %cst_445 = arith.constant 0.000000e+00 : f32
    %1152 = vector.broadcast %cst_445 : f32 to vector<64x128xf32>
    %1153 = arith.maximumf %1151, %1152 : vector<64x128xf32>
    %1154 = arith.mulf %1153, %1153 : vector<64x128xf32>
    %cst_446 = arith.constant dense<0.000000e+00> : vector<128xf32>
    %1155 = vector.multi_reduction <add>, %1154, %cst_446 [0] : vector<64x128xf32> to vector<128xf32>
    %1156 = vector.shape_cast %1155 : vector<128xf32> to vector<1x128xf32>
    %cst_447 = arith.constant 0.000000e+00 : f32
    %1157 = vector.broadcast %cst_447 : f32 to vector<1x128xf32>
    %1158 = arith.cmpf ogt, %1156, %1157 : vector<1x128xf32>
    %1159 = math.rsqrt %1156 : vector<1x128xf32>
    %cst_448 = arith.constant 0.000000e+00 : f32
    %1160 = vector.broadcast %cst_448 : f32 to vector<1x128xf32>
    %1161 = arith.select %1158, %1159, %1160 : vector<1x128xi1>, vector<1x128xf32>
    %1162 = vector.broadcast %1161 : vector<1x128xf32> to vector<64x128xf32>
    %1163 = arith.mulf %1153, %1162 : vector<64x128xf32>
    %c64_449 = arith.constant 64 : index
    %c0_450 = arith.constant 0 : index
    %1164 = vector.load %arg6[%c64_449, %c0_450] : memref<256x128xf32, #tpu.memory_space<vmem>>, vector<64x128xf32>
    tpu.vector_store %arg6[%c64_449, %c0_450], %1163 {strides = array<i32>} : memref<256x128xf32, #tpu.memory_space<vmem>>, vector<64x128xf32>,
    %cst_451 = arith.constant dense<0.000000e+00> : vector<128x128xf32>
    %1165 = tpu.matmul %1121, %1121, %cst_451 {dimension_numbers = #tpu.dot_dimension_numbers<[0], [0], [1], [1], [0, 1, 1, 1], [], []>} : vector<8x128xf32>, vector<8x128xf32>, vector<128x128xf32> -> vector<128x128xf32>
    %cst_452 = arith.constant 5.000000e-01 : f32
    %1166 = vector.broadcast %cst_452 : f32 to vector<128x128xf32>
    %1167 = arith.mulf %1165, %1166 : vector<128x128xf32>
    %c128_453 = arith.constant 128 : index
    %c0_454 = arith.constant 0 : index
    %1168 = vector.load %arg6[%c128_453, %c0_454] : memref<256x128xf32, #tpu.memory_space<vmem>>, vector<128x128xf32>
    %cst_455 = arith.constant 1.000000e-03 : f32
    %1169 = vector.broadcast %cst_455 : f32 to vector<128x128xf32>
    %1170 = arith.mulf %1169, %1168 : vector<128x128xf32>
    %1171 = arith.subf %1167, %1170 : vector<128x128xf32>
    %cst_456 = arith.constant 1.000000e-03 : f32
    %1172 = vector.broadcast %cst_456 : f32 to vector<128x128xf32>
    %1173 = arith.mulf %1172, %1171 : vector<128x128xf32>
    %1174 = arith.addf %1168, %1173 : vector<128x128xf32>
    %c0_457 = arith.constant 0 : index
    %c0_458 = arith.constant 0 : index
    %1175 = vector.load %arg7[%c0_457, %c0_458] : memref<128x128xf32, #tpu.memory_space<vmem>>, vector<128x128xf32>
    %1176 = arith.mulf %1175, %1174 : vector<128x128xf32>
    %cst_459 = arith.constant 0.000000e+00 : f32
    %1177 = vector.broadcast %cst_459 : f32 to vector<128x128xf32>
    %1178 = arith.maximumf %1176, %1177 : vector<128x128xf32>
    %1179 = arith.mulf %1175, %1178 : vector<128x128xf32>
    %1180 = arith.mulf %1179, %1179 : vector<128x128xf32>
    %1181 = vector.extract_strided_slice %1180 {offsets = [0, 0], sizes = [64, 128], strides = [1, 1]} : vector<128x128xf32> to vector<64x128xf32>
    %cst_460 = arith.constant dense<0.000000e+00> : vector<128xf32>
    %1182 = vector.multi_reduction <add>, %1181, %cst_460 [0] : vector<64x128xf32> to vector<128xf32>
    %1183 = vector.shape_cast %1182 : vector<128xf32> to vector<1x128xf32>
    %1184 = vector.extract_strided_slice %1180 {offsets = [64, 0], sizes = [32, 128], strides = [1, 1]} : vector<128x128xf32> to vector<32x128xf32>
    %cst_461 = arith.constant dense<0.000000e+00> : vector<128xf32>
    %1185 = vector.multi_reduction <add>, %1184, %cst_461 [0] : vector<32x128xf32> to vector<128xf32>
    %1186 = vector.shape_cast %1185 : vector<128xf32> to vector<1x128xf32>
    %1187 = vector.extract_strided_slice %1180 {offsets = [96, 0], sizes = [32, 128], strides = [1, 1]} : vector<128x128xf32> to vector<32x128xf32>
    %cst_462 = arith.constant dense<0.000000e+00> : vector<128xf32>
    %1188 = vector.multi_reduction <add>, %1187, %cst_462 [0] : vector<32x128xf32> to vector<128xf32>
    %1189 = vector.shape_cast %1188 : vector<128xf32> to vector<1x128xf32>
    %cst_463 = arith.constant 0.000000e+00 : f32
    %1190 = vector.broadcast %cst_463 : f32 to vector<1x128xf32>
    %1191 = arith.cmpf ogt, %1183, %1190 : vector<1x128xf32>
    %1192 = math.rsqrt %1183 : vector<1x128xf32>
    %cst_464 = arith.constant 0.000000e+00 : f32
    %1193 = vector.broadcast %cst_464 : f32 to vector<1x128xf32>
    %1194 = arith.select %1191, %1192, %1193 : vector<1x128xi1>, vector<1x128xf32>
    %cst_465 = arith.constant 0.000000e+00 : f32
    %1195 = vector.broadcast %cst_465 : f32 to vector<1x128xf32>
    %1196 = arith.cmpf ogt, %1186, %1195 : vector<1x128xf32>
    %1197 = math.rsqrt %1186 : vector<1x128xf32>
    %cst_466 = arith.constant 0.000000e+00 : f32
    %1198 = vector.broadcast %cst_466 : f32 to vector<1x128xf32>
    %1199 = arith.select %1196, %1197, %1198 : vector<1x128xi1>, vector<1x128xf32>
    %cst_467 = arith.constant 0.000000e+00 : f32
    %1200 = vector.broadcast %cst_467 : f32 to vector<1x128xf32>
    %1201 = arith.cmpf ogt, %1189, %1200 : vector<1x128xf32>
    %1202 = math.rsqrt %1189 : vector<1x128xf32>
    %cst_468 = arith.constant 0.000000e+00 : f32
    %1203 = vector.broadcast %cst_468 : f32 to vector<1x128xf32>
    %1204 = arith.select %1201, %1202, %1203 : vector<1x128xi1>, vector<1x128xf32>
    %1205 = vector.extract_strided_slice %1179 {offsets = [0, 0], sizes = [64, 128], strides = [1, 1]} : vector<128x128xf32> to vector<64x128xf32>
    %1206 = vector.broadcast %1194 : vector<1x128xf32> to vector<64x128xf32>
    %1207 = arith.mulf %1205, %1206 : vector<64x128xf32>
    %1208 = vector.extract_strided_slice %1179 {offsets = [64, 0], sizes = [32, 128], strides = [1, 1]} : vector<128x128xf32> to vector<32x128xf32>
    %1209 = vector.broadcast %1199 : vector<1x128xf32> to vector<32x128xf32>
    %1210 = arith.mulf %1208, %1209 : vector<32x128xf32>
    %1211 = vector.extract_strided_slice %1179 {offsets = [96, 0], sizes = [32, 128], strides = [1, 1]} : vector<128x128xf32> to vector<32x128xf32>
    %1212 = vector.broadcast %1204 : vector<1x128xf32> to vector<32x128xf32>
    %1213 = arith.mulf %1211, %1212 : vector<32x128xf32>
    %1214 = tpu.concatenate %1207, %1210, %1213 in 0 : vector<64x128xf32>, vector<32x128xf32>, vector<32x128xf32> -> vector<128x128xf32>
    %c128_469 = arith.constant 128 : index
    %c0_470 = arith.constant 0 : index
    %1215 = vector.load %arg6[%c128_469, %c0_470] : memref<256x128xf32, #tpu.memory_space<vmem>>, vector<128x128xf32>
    tpu.vector_store %arg6[%c128_469, %c0_470], %1214 {strides = array<i32>} : memref<256x128xf32, #tpu.memory_space<vmem>>, vector<128x128xf32>,
    %c0_471 = arith.constant 0 : index
    %c0_472 = arith.constant 0 : index
    %1216 = vector.load %arg4[%c0_471, %c0_472] : memref<8x128xf32, #tpu.memory_space<vmem>>, vector<8x128xf32>
    tpu.vector_store %arg4[%c0_471, %c0_472], %1121 {strides = array<i32>} : memref<8x128xf32, #tpu.memory_space<vmem>>, vector<8x128xf32>,
    %c0_473 = arith.constant 0 : index
    %c0_474 = arith.constant 0 : index
    %1217 = vector.load %arg5[%c0_473, %c0_474] : memref<8x128xf32, #tpu.memory_space<vmem>>, vector<8x128xf32>
    tpu.vector_store %arg5[%c0_473, %c0_474], %1079 {strides = array<i32>} : memref<8x128xf32, #tpu.memory_space<vmem>>, vector<8x128xf32>,
    return
  }
  func.func @transform_0(%arg0: i32) -> (i32, i32, i32) {
    %c0_i32 = arith.constant 0 : i32
    %c0_i32_0 = arith.constant 0 : i32
    %c0_i32_1 = arith.constant 0 : i32
    %c0_i32_2 = arith.constant 0 : i32
    return %c0_i32, %c0_i32_0, %c0_i32_1 : i32, i32, i32
  }
  func.func @transform_1(%arg0: i32) -> (i32, i32) {
    %c0_i32 = arith.constant 0 : i32
    %c0_i32_0 = arith.constant 0 : i32
    %c0_i32_1 = arith.constant 0 : i32
    return %c0_i32, %c0_i32_0 : i32, i32
  }
  func.func @transform_2(%arg0: i32) -> (i32, i32, i32) {
    %c0_i32 = arith.constant 0 : i32
    %c0_i32_0 = arith.constant 0 : i32
    %c0_i32_1 = arith.constant 0 : i32
    %c0_i32_2 = arith.constant 0 : i32
    return %c0_i32, %c0_i32_0, %c0_i32_1 : i32, i32, i32
  }
  func.func @transform_3(%arg0: i32) -> (i32, i32) {
    %c0_i32 = arith.constant 0 : i32
    %c0_i32_0 = arith.constant 0 : i32
    %c0_i32_1 = arith.constant 0 : i32
    return %c0_i32, %c0_i32_0 : i32, i32
  }
  func.func @transform_4(%arg0: i32) -> (i32, i32) {
    %c0_i32 = arith.constant 0 : i32
    %c0_i32_0 = arith.constant 0 : i32
    %c0_i32_1 = arith.constant 0 : i32
    return %c0_i32, %c0_i32_0 : i32, i32
  }
  func.func @transform_5(%arg0: i32) -> (i32, i32) {
    %c0_i32 = arith.constant 0 : i32
    %c0_i32_0 = arith.constant 0 : i32
    %c0_i32_1 = arith.constant 0 : i32
    return %c0_i32, %c0_i32_0 : i32, i32
  }
}

</mosaic_0001>

<bundles_post_ra>
// kernel: forward_sequence_pallas.1
= control target key start
LH: loop header
LB: loop body
LE: loop exit
PB: predicated region body
PF: predicated region fallthrough
CT: control target
= control target key end

     0   :  { %v15501_v3 = vmov 0.0   ;;  %v15503_v4 = vmov 0.0|0.0   ;;  %vm11607_vm0 = vmmov 0   ;;  %v15_v51 = vlaneseq  ;;  %s15495_s1 = inlined_call_operand.vmem [shape: f32[256,128], index: 1, kind: input, shape index: {}]   ;;  %s15496_s5 = inlined_call_operand.vmem [shape: f32[256,128], index: 5, kind: output, shape index: {3}]   ;;  %s15497_s0 = inlined_call_operand.vmem [shape: f32[8,8,128], index: 0, kind: input, shape index: {}]   ;;  %s15498_s2 = inlined_call_operand.vmem [shape: f32[8,8,128], index: 2, kind: output, shape index: {0}]   ;;  %s15499_s4 = inlined_call_operand.vmem [shape: f32[8,128], index: 4, kind: output, shape index: {2}]   ;;  %s15500_s3 = inlined_call_operand.vmem [shape: f32[8,128], index: 3, kind: output, shape index: {1}]  }
   0x1   :  { %v11643_v0 = vld [vmem:[%s15495_s1 + $0x80] sm:$0xff]  ;;  %v11648_v1 = vld [vmem:[%s15495_s1 + $0x88] sm:$0xff]  ;;  %409 = vmatprep.mubr.f32.mxu0 %v15501_v3  ;;  %11160 = vmatprep.subr.bf16.mxu1 %v15503_v4  ;;  %v11666_v7 = vld [vmem:[%s15495_s1 + $0x90] sm:$0xff]  ;;  %vm429_vm6 = vcmask 523264   ;;  %vm518_vm7 = vcmask 261120   ;;  %vm637_vm8 = vcmask 64512  }
   0x2   :  { %v245_v2 = vld [vmem:[%s15495_s1] sm:$0xff]  ;;  %v11128_v5 = vpack.c.bf16 %v11648_v1, %v11643_v0  ;;  %v246_v6 = vld [vmem:[%s15495_s1 + $0x8] sm:$0xff]  ;;  %v11671_v8 = vld [vmem:[%s15495_s1 + $0x98] sm:$0xff]  ;;  %10488 = vmatprep.mubr.msk.f32.mxu1 %vm11607_vm0, %v15501_v3  ;;  %v11847_v52 = vand.u32 127, %v15_v51  ;;  %vm11609_vm9 = vmmov 1  }
   0x3   :  { %277 = vst [vmem:[%s15496_s5] sm:$0xff] %v245_v2  ;;  %278 = vst [vmem:[%s15496_s5 + $0x8] sm:$0xff] %v246_v6  ;;  %v11130_v9 = vpack.c.bf16 %v246_v6, %v245_v2  ;;  %v11132_v10 = vpack.c.bf16 %v11671_v8, %v11666_v7  ;;  %v247_v11 = vld [vmem:[%s15495_s1 + $0x10] sm:$0xff]  ;;  %v248_v12 = vld [vmem:[%s15495_s1 + $0x18] sm:$0xff] }
   0x4   :  { %v11687_v13 = vld [vmem:[%s15495_s1 + $0xa0] sm:$0xff]  ;;  %11129 = vmatprep.subr.bf16.mxu0 %v11128_v5  ;;  %279 = vst [vmem:[%s15496_s5 + $0x10] sm:$0xff] %v247_v11  ;;  %280 = vst [vmem:[%s15496_s5 + $0x18] sm:$0xff] %v248_v12  ;;  %v11698_v14 = vld [vmem:[%s15495_s1 + $0xa8] sm:$0xff]  ;;  %11162 = vmatpush3.bf16.msra.mxu1 %v11128_v5  ;;  %v11134_v17 = vpack.c.bf16 %v248_v12, %v247_v11  ;;  %vm20_vm1 = vcmp.ge.s32.totalorder %v11847_v52, 64  ;;  %vm21_vm2 = vcmp.lt.s32.totalorder %v11847_v52, 96 }
   0x5   :  { %v249_v15 = vld [vmem:[%s15495_s1 + $0x20] sm:$0xff]  ;;  %v250_v16 = vld [vmem:[%s15495_s1 + $0x28] sm:$0xff]  ;;  %11131 = vmatpush3.bf16.msra.mxu0 %v11130_v9  ;;  %v251_v18 = vld [vmem:[%s15495_s1 + $0x30] sm:$0xff]  ;;  %11163 = vmatprep.subr.bf16.mxu1 %v15503_v4  ;;  %v11136_v19 = vpack.c.bf16 %v11698_v14, %v11687_v13  ;;  %vm17_vm3 = vcmp.lt.s32.totalorder %v11847_v52, 64  ;;  %vm25_vm5 = vcmp.ge.s32.totalorder %v11847_v52, 96 }
   0x6   :  { %281 = vst [vmem:[%s15496_s5 + $0x20] sm:$0xff] %v249_v15  ;;  %282 = vst [vmem:[%s15496_s5 + $0x28] sm:$0xff] %v250_v16  ;;  %11133 = vmatprep.subr.bf16.mxu0 %v11132_v10  ;;  %v11721_v20 = vld [vmem:[%s15495_s1 + $0xb0] sm:$0xff]  ;;  %v252_v21 = vld [vmem:[%s15495_s1 + $0x38] sm:$0xff]  ;;  %v11138_v27 = vpack.c.bf16 %v250_v16, %v249_v15  ;;  %v11858_v54 = vsel %vm17_vm3, 1.0, %v15501_v3  ;;  %v11868_v56 = vsel %vm25_vm5, 1.0, %v15501_v3 }
   0x7   :  { %283 = vst [vmem:[%s15496_s5 + $0x30] sm:$0xff] %v251_v18  ;;  %v11732_v22 = vld [vmem:[%s15495_s1 + $0xb8] sm:$0xff]  ;;  %284 = vst [vmem:[%s15496_s5 + $0x38] sm:$0xff] %v252_v21  ;;  %v253_v23 = vld [vmem:[%s15495_s1 + $0x40] sm:$0xff]  ;;  %v11142_v35 = vpack.c.bf16 %v252_v21, %v251_v18  ;;  %v29_v58 = vmul.f32 0.5, %v11868_v56 }
   0x8   :  { %v254_v24 = vld [vmem:[%s15495_s1 + $0x48] sm:$0xff]  ;;  %285 = vst [vmem:[%s15496_s5 + $0x40] sm:$0xff] %v253_v23  ;;  %v255_v25 = vld [vmem:[%s15495_s1 + $0x50] sm:$0xff]  ;;  %v256_v26 = vld [vmem:[%s15495_s1 + $0x58] sm:$0xff]  ;;  %11165 = vmatpush3.bf16.msra.mxu1 %v11132_v10  ;;  %v11140_v29 = vpack.c.bf16 %v11732_v22, %v11721_v20  ;;  %v31_v60 = vmul.f32 0.05, %v11858_v54 }
   0x9   :  { %286 = vst [vmem:[%s15496_s5 + $0x48] sm:$0xff] %v254_v24  ;;  %11135 = vmatpush3.bf16.msra.mxu0 %v11134_v17  ;;  %287 = vst [vmem:[%s15496_s5 + $0x50] sm:$0xff] %v255_v25  ;;  %v257_v28 = vld [vmem:[%s15495_s1 + $0x60] sm:$0xff]  ;;  %11166 = vmatprep.subr.bf16.mxu1 %v15503_v4  ;;  %v258_v31 = vld [vmem:[%s15495_s1 + $0x68] sm:$0xff]  ;;  %v11146_v39 = vpack.c.bf16 %v254_v24, %v253_v23  ;;  %v11150_v43 = vpack.c.bf16 %v256_v26, %v255_v25  ;;  %v34_v5 = vmul.f32 0.05, %v11868_v56 }
   0xa   :  { %288 = vst [vmem:[%s15496_s5 + $0x58] sm:$0xff] %v256_v26  ;;  %11137 = vmatprep.subr.bf16.mxu0 %v11136_v19  ;;  %v11770_v30 = vld [vmem:[%s15495_s1 + $0xc0] sm:$0xff]  ;;  %289 = vst [vmem:[%s15496_s5 + $0x60] sm:$0xff] %v257_v28  ;;  %v11781_v32 = vld [vmem:[%s15495_s1 + $0xc8] sm:$0xff]  ;;  %v11154_v47 = vpack.c.bf16 %v258_v31, %v257_v28 }
   0xb   :  { %290 = vst [vmem:[%s15496_s5 + $0x68] sm:$0xff] %v258_v31  ;;  %v259_v33 = vld [vmem:[%s15495_s1 + $0x70] sm:$0xff]  ;;  %v260_v34 = vld [vmem:[%s15495_s1 + $0x78] sm:$0xff]  ;;  %v11144_v36 = vpack.c.bf16 %v11781_v32, %v11770_v30  ;;  %v11817_v41 = vld [vmem:[%s15495_s1 + $0xe0] sm:$0xff] }
   0xc   :  { %291 = vst [vmem:[%s15496_s5 + $0x70] sm:$0xff] %v259_v33  ;;  %292 = vst [vmem:[%s15496_s5 + $0x78] sm:$0xff] %v260_v34  ;;  %11168 = vmatpush3.bf16.msra.mxu1 %v11136_v19  ;;  %v11804_v37 = vld [vmem:[%s15495_s1 + $0xd0] sm:$0xff]  ;;  %v11809_v38 = vld [vmem:[%s15495_s1 + $0xd8] sm:$0xff]  ;;  %v11158_v49 = vpack.c.bf16 %v260_v34, %v259_v33 }
   0xd   :  { %11139 = vmatpush3.bf16.msra.mxu0 %v11138_v27  ;;  %11169 = vmatprep.subr.bf16.mxu1 %v15503_v4  ;;  %v11148_v40 = vpack.c.bf16 %v11809_v38, %v11804_v37  ;;  %v11822_v42 = vld [vmem:[%s15495_s1 + $0xe8] sm:$0xff]  ;;  %v11829_v45 = vld [vmem:[%s15495_s1 + $0xf0] sm:$0xff]  ;;  %v11834_v46 = vld [vmem:[%s15495_s1 + $0xf8] sm:$0xff]  ;;  %s11608_s1 = smov 64  }
   0xe   :  { %11141 = vmatprep.subr.bf16.mxu0 %v11140_v29  ;;  %v11152_v44 = vpack.c.bf16 %v11822_v42, %v11817_v41  ;;  %v11156_v48 = vpack.c.bf16 %v11834_v46, %v11829_v45  ;;  %v11841_v50 = vld [vmem:[%s15497_s0] sm:$0xff]  ;;  %vm11852_vm4 = vmand %vm20_vm1, %vm21_vm2 }
   0xf   :  { %v11863_v55 = vsel %vm11852_vm4, 1.0, %v15501_v3  ;;  %vm11955_vm10 = vmxor %vm25_vm5, %vm11609_vm9 }
  0x10   :  { %11171 = vmatpush3.bf16.msra.mxu1 %v11140_v29  ;;  %v28_v57 = vadd.f32 %v11863_v55, %v11858_v54  ;;  %v32_v61 = vmul.f32 0.05, %v11863_v55 }
  0x11   :  { %11143 = vmatpush3.bf16.msra.mxu0 %v11142_v35  ;;  %11172 = vmatprep.subr.bf16.mxu1 %v15503_v4 }
  0x12   :  { %11145 = vmatprep.subr.bf16.mxu0 %v11144_v36  ;;  %v11873_v59 = vadd.f32 %v29_v58, %v28_v57  ;;  %v33_v2 = vadd.f32 %v32_v61, %v31_v60 }
  0x14   :  { %v310_v62 = vmul.f32 0.0, %v11873_v59  ;;  %v11881_v11 = vadd.f32 %v34_v5, %v33_v2 }
  0x15   :  { %11147 = vmatpush3.bf16.msra.mxu0 %v11146_v39 }
  0x16   :  { %11149 = vmatprep.subr.bf16.mxu0 %v11148_v40  ;;  %v11879_v6 = vmul.f32 0.005, %v310_v62 }
  0x19   :  { %11151 = vmatpush3.bf16.msra.mxu0 %v11150_v43 }
  0x1a   :  { %11153 = vmatprep.subr.bf16.mxu0 %v11152_v44 }
  0x1d   :  { %11155 = vmatpush3.bf16.msra.mxu0 %v11154_v47 }
  0x1e   :  { %11157 = vmatprep.subr.bf16.mxu0 %v11156_v48 }
  0x21   :  { %11159 = vmatpush3.bf16.msra.mxu0 %v11158_v49 }
  0x24   :  { %410 = vmatmul.mubr.f32.vlgmr.msra.gmra.mrb[0].mxu0 %v11841_v50 }
  0xf7   :  { %v9840_v63 = vpop.f32.mrb[0].mxu0 }
  0xf8   :  { %v9841_v9 = vpop.f32.mrb[1].mxu0 }
  0xf9   :  { %v9842_v10 = vadd.f32 %v9841_v9, %v9840_v63 }
  0xfb   :  { %v415_v12 = vsub.f32 %v9842_v10, %v11879_v6 }
  0xfd   :  { %v416_v15 = vmax.f32 %v415_v12, 0.0 }
  0xff   :  { %v417_v16 = vmul.f32 %v416_v15, %v11881_v11 }
 0x101   :  { %10489 = vmatmul.mubr.msk.f32.vlgmr.msra.gmra.mrb[0].mxu1 %vm429_vm6, %v417_v16  ;;  %v419_v21 = vmul.f32 %v11858_v54, %v417_v16 }
 0x102   :  { %11174 = vmatpush3.bf16.msra.mxu1 %v11144_v36  ;;  %10499 = vmatprep.mubr.msk.f32.mxu1 %vm11607_vm0, %v15501_v3 }
 0x103   :  { %11175 = vmatprep.subr.bf16.mxu1 %v15503_v4 }
 0x106   :  { %11177 = vmatpush3.bf16.msra.mxu1 %v11148_v40 }
 0x1d4   :  { %v499_v17 = vpop.f32.mrb[0].mxu1 }
 0x1d5   :  { %v503_v18 = vadd.f32 %v499_v17, %v415_v12  ;;  %v10490_v19 = vpop.f32.mrb[1].mxu1 }
 0x1d7   :  { %v504_v23 = vmax.f32 %v503_v18, 0.0 }
 0x1d9   :  { %v505_v24 = vsub.f32 %v504_v23, %v419_v21 }
 0x1db   :  { %v506_v25 = vmul.f32 %v505_v24, %v11881_v11 }
 0x1dd   :  { %v507_v26 = vadd.f32 %v506_v25, %v419_v21 }
 0x1df   :  { %v508_v27 = vsub.f32 %v507_v26, %v419_v21 }
 0x1e1   :  { %516 = vrot.lane.b32.xlu0 %v508_v27, %s11608_s1  ;;  %v509_v28 = vmul.f32 %v11863_v55, %v508_v27 }
 0x1e3   :  { %v510_v29 = vadd.f32 %v509_v28, %v419_v21 }
 0x253   :  { %v517_v31 = vpop.permute.xlu0 %516 }
 0x254   :  { %10500 = vmatmul.mubr.msk.f32.vlgmr.msra.gmra.mrb[2].mxu1 %vm518_vm7, %v517_v31 }
 0x327   :  { %v587_v33 = vpop.f32.mrb[2].mxu1 }
 0x328   :  { %v591_v34 = vadd.f32 %v587_v33, %v503_v18  ;;  %v10501_v35 = vpop.f32.mrb[3].mxu1 }
 0x32a   :  { %v592_v36 = vmax.f32 %v591_v34, 0.0 }
 0x32c   :  { %v593_v39 = vsub.f32 %v592_v36, %v510_v29 }
 0x32e   :  { %v594_v40 = vmul.f32 %v593_v39, %v11881_v11 }
 0x330   :  { %v595_v43 = vadd.f32 %v594_v40, %v510_v29 }
 0x332   :  { %v596_v44 = vsub.f32 %v595_v43, %v510_v29 }
 0x334   :  { %v597_v47 = vmul.f32 %v11868_v56, %v596_v44  ;;  %v11948_v44 = vshrl.u32 %v15_v51, 7 }
 0x336   :  { %v11896_v48 = vadd.f32 %v597_v47, %v510_v29  ;;  %v38_v47 = vadd.s32 8, %v11948_v44  ;;  %vm149_vm12 = vcmp.ne.s32.totalorder %v11948_v44, %v11847_v52 }
 0x337   :  { %vm165_vm14 = vmand %vm11955_vm10, %vm149_vm12 }
 0x338   :  { %985 = vxpose.xlu1.b32.start.end [1/1] (short) %v11896_v48, 128  ;;  %601 = vrot.lane.b32.xlu0 %v11896_v48, %s11608_s1  ;;  %599 = vst [vmem:[%s15498_s2] sm:$0xff] %v11896_v48  ;;  %vm150_vm11 = vcmp.ne.s32.totalorder %v38_v47, %v11847_v52 }
 0x339   :  { %10502 = vmatprep.subr.mxu1 %v11896_v48  ;;  %10528 = vmatprep.subr.mxu0 %v11896_v48  ;;  %vm166_vm13 = vmand %vm11955_vm10, %vm150_vm11 }
 0x33a   :  { %10503 = vmatpush3.msra.mxu1 %v11896_v48  ;;  %10529 = vmatpush3.msra.mxu0 %v11896_v48 }
 0x33b   :  { %11210 = vmatprep.subr.bf16.mxu0 %v15503_v4 }
 0x3aa   :  { %v602_v49 = vpop.permute.xlu0 %601 }
 0x3ab   :  { %v604_v57 = vsel %vm429_vm6, %v11841_v50, %v602_v49  ;;  %v1243_v49 = vmul.f32 0.001, %v11648_v1 }
 0x3ac   :  { %605 = vxpose.xlu1.b32.start.end [1/1] (short) %v604_v57, 128 }
 0x3b8   :  { %v1001_v58 = vpop.trf.xlu1 }
 0x3b9   :  { %10530 = vmatprep.mubr.msk.f32.mxu0 %vm637_vm8, %v1001_v58 }
 0x3bc   :  { %v1002_v60 = vpop.trf.xlu1 }
 0x3bd   :  { %10531 = vmatmul.mubr.msk.f32.vlgmr.msra.gmra.mrb[2].mxu0 %vm637_vm8, %v1002_v60 }
 0x3c0   :  { %v1003_v61 = vpop.trf.xlu1 }
 0x3c1   :  { %10533 = vmatprep.mubr.msk.f32.mxu0 %vm637_vm8, %v1003_v61 }
 0x3c4   :  { %v1004_v62 = vpop.trf.xlu1 }
 0x3c5   :  { %10534 = vmatmul.mubr.msk.f32.gmra.mrb[4].mxu0 %vm637_vm8, %v1004_v62 }
 0x3c8   :  { %v1005_v63 = vpop.trf.xlu1 }
 0x3c9   :  { %10536 = vmatprep.mubr.msk.f32.mxu0 %vm637_vm8, %v1005_v63 }
 0x3cc   :  { %v1006_v2 = vpop.trf.xlu1 }
 0x3cd   :  { %10537 = vmatmul.mubr.msk.f32.gmra.mrb[6].mxu0 %vm637_vm8, %v1006_v2  ;;  %v40_v2 = vadd.s32 24, %v11948_v44 }
 0x3cf   :  { %vm152_vm15 = vcmp.ne.s32.totalorder %v40_v2, %v11847_v52 }
 0x3d0   :  { %v1007_v50 = vpop.trf.xlu1  ;;  %vm168_vm2 = vmand %vm11955_vm10, %vm152_vm15 }
 0x3d1   :  { %10539 = vmatprep.mubr.msk.f32.mxu0 %vm637_vm8, %v1007_v50 }
 0x3d4   :  { %v1008_v5 = vpop.trf.xlu1 }
 0x3d5   :  { %10540 = vmatmul.mubr.msk.f32.gmra.mrb[8].mxu0 %vm637_vm8, %v1008_v5  ;;  %v39_v5 = vadd.s32 16, %v11948_v44 }
 0x3d7   :  { %vm151_vm1 = vcmp.ne.s32.totalorder %v39_v5, %v11847_v52 }
 0x3d8   :  { %v1009_v9 = vpop.trf.xlu1  ;;  %vm167_vm3 = vmand %vm11955_vm10, %vm151_vm1 }
 0x3d9   :  { %10542 = vmatprep.mubr.msk.f32.mxu0 %vm637_vm8, %v1009_v9  ;;  %v11970_v9 = vsel %vm166_vm13, 1.0, %v15501_v3  ;;  %v12002_v47 = vsel %vm167_vm3, 1.0, %v15501_v3 }
 0x3dc   :  { %v1010_v10 = vpop.trf.xlu1 }
 0x3dd   :  { %10543 = vmatmul.mubr.msk.f32.gmra.mrb[10].mxu0 %vm637_vm8, %v1010_v10 }
 0x3e0   :  { %v1011_v12 = vpop.trf.xlu1 }
 0x3e1   :  { %10545 = vmatprep.mubr.msk.f32.mxu0 %vm637_vm8, %v1011_v12 }
 0x3e4   :  { %v1012_v15 = vpop.trf.xlu1 }
 0x3e5   :  { %10546 = vmatmul.mubr.msk.f32.gmra.mrb[12].mxu0 %vm637_vm8, %v1012_v15  ;;  %v11974_v15 = vsel %vm165_vm14, 1.0, %v15501_v3 }
 0x3e8   :  { %v1013_v16 = vpop.trf.xlu1 }
 0x3e9   :  { %10548 = vmatprep.mubr.msk.f32.mxu0 %vm637_vm8, %v1013_v16  ;;  %v1245_v16 = vmul.f32 0.001, %v11671_v8 }
 0x3ec   :  { %v1014_v17 = vpop.trf.xlu1 }
 0x3ed   :  { %10549 = vmatmul.mubr.msk.f32.gmra.mrb[14].mxu0 %vm637_vm8, %v1014_v17 }
 0x3f0   :  { %v1015_v18 = vpop.trf.xlu1 }
 0x3f1   :  { %10551 = vmatprep.mubr.msk.f32.mxu0 %vm637_vm8, %v1015_v18 }
 0x3f4   :  { %v1016_v19 = vpop.trf.xlu1 }
 0x3f5   :  { %10552 = vmatmul.mubr.msk.f32.gmra.mrb[16].mxu0 %vm637_vm8, %v1016_v19  ;;  %v1244_v19 = vmul.f32 0.001, %v11666_v7 }
 0x3f6   :  { %10570 = vmatprep.mubr.msk.f32.mxu0 %vm11607_vm0, %v15501_v3 }
 0x42c   :  { %v621_v21 = vpop.trf.xlu1 }
 0x42d   :  { %10504 = vmatprep.mubr.msk.f32.mxu1 %vm637_vm8, %v621_v21 }
 0x430   :  { %v622_v23 = vpop.trf.xlu1 }
 0x431   :  { %10505 = vmatmul.mubr.msk.f32.vlgmr.msra.gmra.mrb[4].mxu1 %vm637_vm8, %v622_v23 }
 0x434   :  { %v623_v24 = vpop.trf.xlu1 }
 0x435   :  { %10507 = vmatprep.mubr.msk.f32.mxu1 %vm637_vm8, %v623_v24 }
 0x438   :  { %v624_v25 = vpop.trf.xlu1 }
 0x439   :  { %10508 = vmatmul.mubr.msk.f32.gmra.mrb[6].mxu1 %vm637_vm8, %v624_v25 }
 0x43c   :  { %v625_v26 = vpop.trf.xlu1 }
 0x43d   :  { %10510 = vmatprep.mubr.msk.f32.mxu1 %vm637_vm8, %v625_v26 }
 0x440   :  { %v626_v27 = vpop.trf.xlu1 }
 0x441   :  { %10511 = vmatmul.mubr.msk.f32.gmra.mrb[8].mxu1 %vm637_vm8, %v626_v27 }
 0x444   :  { %v627_v28 = vpop.trf.xlu1 }
 0x445   :  { %10513 = vmatprep.mubr.msk.f32.mxu1 %vm637_vm8, %v627_v28 }
 0x448   :  { %v628_v29 = vpop.trf.xlu1 }
 0x449   :  { %10514 = vmatmul.mubr.msk.f32.gmra.mrb[10].mxu1 %vm637_vm8, %v628_v29  ;;  %v42_v29 = vadd.s32 40, %v11948_v44 }
 0x44b   :  { %vm154_vm5 = vcmp.ne.s32.totalorder %v42_v29, %v11847_v52 }
 0x44c   :  { %v629_v31 = vpop.trf.xlu1  ;;  %vm170_vm12 = vmand %vm11955_vm10, %vm154_vm5 }
 0x44d   :  { %10516 = vmatprep.mubr.msk.f32.mxu1 %vm637_vm8, %v629_v31 }
 0x450   :  { %v630_v33 = vpop.trf.xlu1 }
 0x451   :  { %10517 = vmatmul.mubr.msk.f32.gmra.mrb[12].mxu1 %vm637_vm8, %v630_v33 }
 0x454   :  { %v631_v34 = vpop.trf.xlu1 }
 0x455   :  { %10519 = vmatprep.mubr.msk.f32.mxu1 %vm637_vm8, %v631_v34  ;;  %v41_v34 = vadd.s32 32, %v11948_v44 }
 0x457   :  { %vm153_vm11 = vcmp.ne.s32.totalorder %v41_v34, %v11847_v52 }
 0x458   :  { %v632_v35 = vpop.trf.xlu1  ;;  %vm169_vm13 = vmand %vm11955_vm10, %vm153_vm11 }
 0x459   :  { %10520 = vmatmul.mubr.msk.f32.gmra.mrb[14].mxu1 %vm637_vm8, %v632_v35 }
 0x45c   :  { %v633_v36 = vpop.trf.xlu1 }
 0x45d   :  { %10522 = vmatprep.mubr.msk.f32.mxu1 %vm637_vm8, %v633_v36  ;;  %v11996_v36 = vsel %vm168_vm2, 1.0, %v15501_v3 }
 0x460   :  { %v634_v39 = vpop.trf.xlu1 }
 0x461   :  { %10523 = vmatmul.mubr.msk.f32.gmra.mrb[16].mxu1 %vm637_vm8, %v634_v39 }
 0x464   :  { %v635_v40 = vpop.trf.xlu1 }
 0x465   :  { %10525 = vmatprep.mubr.msk.f32.mxu1 %vm637_vm8, %v635_v40 }
 0x468   :  { %v636_v43 = vpop.trf.xlu1 }
 0x469   :  { %10526 = vmatmul.mubr.msk.f32.gmra.mrb[18].mxu1 %vm637_vm8, %v636_v43 }
 0x46a   :  { %1560 = vmatprep.mubr.f32.mxu1 %v11896_v48  ;;  %v1242_v48 = vmul.f32 0.001, %v11643_v0 }
 0x490   :  { %v10532_v58 = vpop.f32.mrb[2].mxu0 }
 0x491   :  { %v1211_v60 = vmul.f32 0.5, %v10532_v58  ;;  %v1131_v51 = vpop.f32.mrb[3].mxu0 }
 0x492   :  { %v1210_v61 = vmul.f32 0.5, %v1131_v51  ;;  %v1246_v51 = vmul.f32 0.001, %v11687_v13 }
 0x493   :  { %v1259_v62 = vsub.f32 %v1211_v60, %v1243_v49  ;;  %v1247_v49 = vmul.f32 0.001, %v11698_v14 }
 0x494   :  { %v1258_v63 = vsub.f32 %v1210_v61, %v1242_v48 }
 0x495   :  { %v1275_v50 = vmul.f32 0.001, %v1259_v62 }
 0x496   :  { %v1274_v10 = vmul.f32 0.001, %v1258_v63 }
 0x497   :  { %v1291_v12 = vadd.f32 %v1275_v50, %v11648_v1 }
 0x498   :  { %v1290_v17 = vadd.f32 %v1274_v10, %v11643_v0  ;;  %v10535_v18 = vpop.f32.mrb[4].mxu0  ;;  %v43_v10 = vadd.s32 48, %v11948_v44 }
 0x499   :  { %v1323_v21 = vmul.f32 %v1291_v12, %v11970_v9  ;;  %v1213_v23 = vmul.f32 0.5, %v10535_v18  ;;  %v1141_v24 = vpop.f32.mrb[5].mxu0 }
 0x49a   :  { %v1322_v1 = vmul.f32 %v1290_v17, %v11974_v15  ;;  %v1212_v25 = vmul.f32 0.5, %v1141_v24  ;;  %v44_v17 = vadd.s32 56, %v11948_v44  ;;  %vm155_vm14 = vcmp.ne.s32.totalorder %v43_v10, %v11847_v52 }
 0x49b   :  { %v1339_v26 = vmax.f32 %v1323_v21, 0.0  ;;  %v1261_v27 = vsub.f32 %v1213_v23, %v1245_v16  ;;  %v12026_v23 = vsel %vm170_vm12, 1.0, %v15501_v3  ;;  %vm171_vm1 = vmand %vm11955_vm10, %vm155_vm14  ;;  %v1250_v10 = vmul.f32 0.001, %v11770_v30 }
 0x49c   :  { %v1338_v0 = vmax.f32 %v1322_v1, 0.0  ;;  %v1260_v28 = vsub.f32 %v1212_v25, %v1244_v19  ;;  %v1248_v1 = vmul.f32 0.001, %v11721_v20  ;;  %vm156_vm15 = vcmp.ne.s32.totalorder %v44_v17, %v11847_v52  ;;  %vm12121_vm12 = vmxor %vm11852_vm4, %vm11609_vm9 }
 0x49d   :  { %v11989_v31 = vmul.f32 %v1339_v26, %v11970_v9  ;;  %v1277_v33 = vmul.f32 0.001, %v1261_v27  ;;  %v12031_v26 = vsel %vm169_vm13, 1.0, %v15501_v3  ;;  %v1249_v27 = vmul.f32 0.001, %v11732_v22  ;;  %vm172_vm2 = vmand %vm11955_vm10, %vm156_vm15 }
 0x49e   :  { %v11993_v35 = vmul.f32 %v1338_v0, %v11974_v15  ;;  %v1276_v39 = vmul.f32 0.001, %v1260_v28 }
 0x49f   :  { %v1371_v40 = vmul.f32 %v11989_v31, %v11989_v31  ;;  %v1293_v43 = vadd.f32 %v1277_v33, %v11671_v8 }
 0x4a0   :  { %v1370_v58 = vmul.f32 %v11993_v35, %v11993_v35  ;;  %v1292_v48 = vadd.f32 %v1276_v39, %v11666_v7  ;;  %v10538_v60 = vpop.f32.mrb[6].mxu0 }
 0x4a1   :  { %v1325_v61 = vmul.f32 %v1293_v43, %v11996_v36  ;;  %v1215_v62 = vmul.f32 0.5, %v10538_v60  ;;  %v1151_v8 = vpop.f32.mrb[7].mxu0 }
 0x4a2   :  { %v1386_v63 = vadd.f32 %v1371_v40, %v1370_v58  ;;  %v1324_v2 = vmul.f32 %v1292_v48, %v12002_v47  ;;  %v1214_v50 = vmul.f32 0.5, %v1151_v8 }
 0x4a3   :  { %v1341_v5 = vmax.f32 %v1325_v61, 0.0  ;;  %v1263_v7 = vsub.f32 %v1215_v62, %v1247_v49 }
 0x4a4   :  { %v1340_v12 = vmax.f32 %v1324_v2, 0.0  ;;  %v1262_v16 = vsub.f32 %v1214_v50, %v1246_v51  ;;  %v12057_v2 = vsel %vm171_vm1, 1.0, %v15501_v3 }
 0x4a5   :  { %v12020_v18 = vmul.f32 %v1341_v5, %v11996_v36  ;;  %v1279_v19 = vmul.f32 0.001, %v1263_v7  ;;  %v46_v5 = vadd.s32 72, %v11948_v44  ;;  %v1251_v7 = vmul.f32 0.001, %v11781_v32 }
 0x4a6   :  { %v12023_v21 = vmul.f32 %v1340_v12, %v12002_v47  ;;  %v1278_v24 = vmul.f32 0.001, %v1262_v16 }
 0x4a7   :  { %v1295_v25 = vadd.f32 %v1279_v19, %v11698_v14  ;;  %v1373_v0 = vmul.f32 %v12020_v18, %v12020_v18  ;;  %vm158_vm10 = vcmp.ne.s32.totalorder %v46_v5, %v11847_v52 }
 0x4a8   :  { %v1372_v28 = vmul.f32 %v12023_v21, %v12023_v21  ;;  %v1294_v29 = vadd.f32 %v1278_v24, %v11687_v13  ;;  %v10541_v33 = vpop.f32.mrb[8].mxu0  ;;  %v45_v24 = vadd.s32 64, %v11948_v44 }
 0x4a9   :  { %v1327_v14 = vmul.f32 %v1295_v25, %v12026_v23  ;;  %v1217_v34 = vmul.f32 0.5, %v10541_v33  ;;  %v1161_v39 = vpop.f32.mrb[9].mxu0 }
 0x4aa   :  { %v1387_v40 = vadd.f32 %v1386_v63, %v1372_v28  ;;  %v1326_v43 = vmul.f32 %v1294_v29, %v12031_v26  ;;  %v1216_v49 = vmul.f32 0.5, %v1161_v39  ;;  %v12054_v63 = vsel %vm172_vm2, 1.0, %v15501_v3 }
 0x4ab   :  { %v1343_v58 = vmax.f32 %v1327_v14, 0.0  ;;  %v1265_v48 = vsub.f32 %v1217_v34, %v1249_v27  ;;  %vm157_vm3 = vcmp.ne.s32.totalorder %v45_v24, %v11847_v52 }
 0x4ac   :  { %v1342_v13 = vmax.f32 %v1326_v43, 0.0  ;;  %v1388_v60 = vadd.f32 %v1387_v40, %v1373_v0  ;;  %v1264_v51 = vsub.f32 %v1216_v49, %v1248_v1  ;;  %v12080_v49 = vsel %vm158_vm10, -1.0, %v15501_v3 }
 0x4ad   :  { %v12048_v61 = vmul.f32 %v1343_v58, %v12026_v23  ;;  %v1281_v62 = vmul.f32 0.001, %v1265_v48  ;;  %v47_v48 = vadd.s32 80, %v11948_v44 }
 0x4ae   :  { %v12051_v8 = vmul.f32 %v1342_v13, %v12031_v26  ;;  %v1280_v50 = vmul.f32 0.001, %v1264_v51  ;;  %v48_v51 = vadd.s32 88, %v11948_v44 }
 0x4af   :  { %v1297_v57 = vadd.f32 %v1281_v62, %v11732_v22  ;;  %v1375_v12 = vmul.f32 %v12048_v61, %v12048_v61  ;;  %v1253_v62 = vmul.f32 0.001, %v11809_v38  ;;  %vm159_vm5 = vcmp.ne.s32.totalorder %v47_v48, %v11847_v52 }
 0x4b0   :  { %v1374_v16 = vmul.f32 %v12051_v8, %v12051_v8  ;;  %v1296_v17 = vadd.f32 %v1280_v50, %v11721_v20  ;;  %v10544_v19 = vpop.f32.mrb[10].mxu0  ;;  %vm160_vm11 = vcmp.ne.s32.totalorder %v48_v51, %v11847_v52  ;;  %v1255_v51 = vmul.f32 0.001, %v11822_v42 }
 0x4b1   :  { %v1329_v1 = vmul.f32 %v1297_v57, %v12054_v63  ;;  %v1219_v22 = vmul.f32 0.5, %v10544_v19  ;;  %v1171_v25 = vpop.f32.mrb[11].mxu0 }
 0x4b2   :  { %v1389_v27 = vadd.f32 %v1388_v60, %v1374_v16  ;;  %v1328_v0 = vmul.f32 %v1296_v17, %v12057_v2  ;;  %v1218_v28 = vmul.f32 0.5, %v1171_v25  ;;  %v12085_v60 = vsel %vm157_vm3, -1.0, %v15501_v3 }
 0x4b3   :  { %v1345_v29 = vmax.f32 %v1329_v1, 0.0  ;;  %v1267_v33 = vsub.f32 %v1219_v22, %v1251_v7 }
 0x4b4   :  { %v1344_v14 = vmax.f32 %v1328_v0, 0.0  ;;  %v1390_v34 = vadd.f32 %v1389_v27, %v1375_v12  ;;  %v1266_v20 = vsub.f32 %v1218_v28, %v1250_v10  ;;  %v1252_v10 = vmul.f32 0.001, %v11804_v37 }
 0x4b5   :  { %v12074_v39 = vmul.f32 %v1345_v29, %v12054_v63  ;;  %v1283_v40 = vmul.f32 0.001, %v1267_v33  ;;  %v50_v0 = vadd.s32 104, %v11948_v44  ;;  %v12104_v33 = vsel %vm159_vm5, -1.0, %v15501_v3 }
 0x4b6   :  { %v12077_v43 = vmul.f32 %v1344_v14, %v12057_v2  ;;  %v1282_v58 = vmul.f32 0.001, %v1266_v20  ;;  %v49_v14 = vadd.s32 96, %v11948_v44 }
 0x4b7   :  { %v1299_v13 = vadd.f32 %v1283_v40, %v11781_v32  ;;  %v1377_v50 = vmul.f32 %v12074_v39, %v12074_v39  ;;  %v12111_v40 = vsel %vm160_vm11, -1.0, %v15501_v3  ;;  %vm162_vm13 = vcmp.ne.s32.totalorder %v50_v0, %v11847_v52 }
 0x4b8   :  { %v1376_v57 = vmul.f32 %v12077_v43, %v12077_v43  ;;  %v1298_v5 = vadd.f32 %v1282_v58, %v11770_v30  ;;  %v10547_v7 = vpop.f32.mrb[12].mxu0  ;;  %vm161_vm14 = vcmp.ne.s32.totalorder %v49_v14, %v11847_v52  ;;  %vm194_vm4 = vmand %vm12121_vm12, %vm162_vm13 }
 0x4b9   :  { %v1331_v32 = vmul.f32 %v1299_v13, %v12080_v49  ;;  %v1221_v12 = vmul.f32 0.5, %v10547_v7  ;;  %v1181_v16 = vpop.f32.mrb[13].mxu0  ;;  %vm193_vm9 = vmand %vm12121_vm12, %vm161_vm14 }
 0x4ba   :  { %v1391_v17 = vadd.f32 %v1390_v34, %v1376_v57  ;;  %v1330_v19 = vmul.f32 %v1298_v5, %v12085_v60  ;;  %v1220_v24 = vmul.f32 0.5, %v1181_v16 }
 0x4bb   :  { %v1347_v1 = vmax.f32 %v1331_v32, 0.0  ;;  %v1269_v22 = vsub.f32 %v1221_v12, %v1253_v62  ;;  %v1254_v62 = vmul.f32 0.001, %v11817_v41 }
 0x4bc   :  { %v1392_v25 = vadd.f32 %v1391_v17, %v1377_v50  ;;  %v1346_v27 = vmax.f32 %v1330_v19, 0.0  ;;  %v1268_v30 = vsub.f32 %v1220_v24, %v1252_v10 }
 0x4bd   :  { %v12101_v28 = vmul.f32 %v1347_v1, %v12080_v49  ;;  %v1285_v29 = vmul.f32 0.001, %v1269_v22 }
 0x4be   :  { %v1393_v34 = vrot.slane %v1392_v25, 4  ;;  %v12108_v20 = vmul.f32 %v1346_v27, %v12085_v60  ;;  %v1284_v58 = vmul.f32 0.001, %v1268_v30 }
 0x4bf   :  { %v1379_v48 = vmul.f32 %v12101_v28, %v12101_v28  ;;  %v1301_v13 = vadd.f32 %v1285_v29, %v11809_v38  ;;  %v51_v29 = vadd.s32 112, %v11948_v44 }
 0x4c0   :  { %v1394_v57 = vadd.f32 %v1393_v34, %v1392_v25  ;;  %v1378_v5 = vmul.f32 %v12108_v20, %v12108_v20  ;;  %v1300_v7 = vadd.f32 %v1284_v58, %v11804_v37  ;;  %v10550_v38 = vpop.f32.mrb[14].mxu0  ;;  %v52_v37 = vadd.s32 120, %v11948_v44 }
 0x4c1   :  { %v1333_v10 = vmul.f32 %v1301_v13, %v12111_v40  ;;  %v1223_v32 = vmul.f32 0.5, %v10550_v38  ;;  %v1191_v12 = vpop.f32.mrb[15].mxu0  ;;  %v12145_v58 = vsel %vm194_vm4, -1.0, %v15501_v3  ;;  %vm163_vm1 = vcmp.ne.s32.totalorder %v51_v29, %v11847_v52 }
 0x4c2   :  { %v1395_v53 = vrot.slane %v1394_v57, 2  ;;  %v1399_v16 = vadd.f32 %v1379_v48, %v1378_v5  ;;  %v1332_v17 = vmul.f32 %v1300_v7, %v12104_v33  ;;  %v1222_v19 = vmul.f32 0.5, %v1191_v12  ;;  %vm195_vm10 = vmand %vm12121_vm12, %vm163_vm1 }
 0x4c3   :  { %v1349_v24 = vmax.f32 %v1333_v10, 0.0  ;;  %v1271_v1 = vsub.f32 %v1223_v32, %v1255_v51  ;;  %v12149_v51 = vsel %vm193_vm9, -1.0, %v15501_v3  ;;  %vm164_vm15 = vcmp.ne.s32.totalorder %v52_v37, %v11847_v52 }
 0x4c4   :  { %v1396_v22 = vadd.f32 %v1395_v53, %v1394_v57  ;;  %v1348_v25 = vmax.f32 %v1332_v17, 0.0  ;;  %v1270_v27 = vsub.f32 %v1222_v19, %v1254_v62  ;;  %v1257_v62 = vmul.f32 0.001, %v11834_v46  ;;  %vm196_vm2 = vmand %vm12121_vm12, %vm164_vm15 }
 0x4c5   :  { %v12138_v30 = vmul.f32 %v1349_v24, %v12111_v40  ;;  %v1287_v0 = vmul.f32 0.001, %v1271_v1  ;;  %v1256_v12 = vmul.f32 0.001, %v11829_v45  ;;  %v12175_v52 = vsel %vm196_vm2, -1.0, %v15501_v3 }
 0x4c6   :  { %v1397_v14 = vrot.slane %v1396_v22, 1  ;;  %v12142_v34 = vmul.f32 %v1348_v25, %v12104_v33  ;;  %v1286_v48 = vmul.f32 0.001, %v1270_v27  ;;  %v12183_v50 = vsel %vm195_vm10, -1.0, %v15501_v3 }
 0x4c7   :  { %v1303_v13 = vadd.f32 %v1287_v0, %v11822_v42  ;;  %v1381_v44 = vmul.f32 %v12138_v30, %v12138_v30 }
 0x4c8   :  { %v1398_v57 = vadd.f32 %v1397_v14, %v1396_v22  ;;  %v1380_v5 = vmul.f32 %v12142_v34, %v12142_v34  ;;  %v1302_v7 = vadd.f32 %v1286_v48, %v11817_v41  ;;  %v10553_v38 = vpop.f32.mrb[16].mxu0 }
 0x4c9   :  { %v1335_v10 = vmul.f32 %v1303_v13, %v12145_v58  ;;  %v1225_v42 = vmul.f32 0.5, %v10553_v38  ;;  %v1201_v32 = vpop.f32.mrb[17].mxu0 }
 0x4ca   :  { %11533 = vrsqrt.f32 %v1398_v57  ;;  %v1400_v53 = vadd.f32 %v1399_v16, %v1380_v5  ;;  %v1334_v17 = vmul.f32 %v1302_v7, %v12149_v51  ;;  %v1224_v24 = vmul.f32 0.5, %v1201_v32 }
 0x4cb   :  { %v1351_v19 = vmax.f32 %v1335_v10, 0.0  ;;  %v1273_v41 = vsub.f32 %v1225_v42, %v1257_v62  ;;  %vm1417_vm3 = vcmp.gt.f32.partialorder %v1398_v57, 0.0 }
 0x4cc   :  { %v1401_v1 = vadd.f32 %v1400_v53, %v1381_v44  ;;  %v1350_v22 = vmax.f32 %v1334_v17, 0.0  ;;  %v1272_v16 = vsub.f32 %v1224_v24, %v1256_v12 }
 0x4cd   :  { %v12167_v25 = vmul.f32 %v1351_v19, %v12145_v58  ;;  %v1289_v27 = vmul.f32 0.001, %v1273_v41 }
 0x4ce   :  { %v1402_v0 = vrot.slane %v1401_v1, 4  ;;  %v12172_v29 = vmul.f32 %v1350_v22, %v12149_v51  ;;  %v1288_v48 = vmul.f32 0.001, %v1272_v16 }
 0x4cf   :  { %v1383_v37 = vmul.f32 %v12167_v25, %v12167_v25  ;;  %v1305_v14 = vadd.f32 %v1289_v27, %v11834_v46 }
 0x4d0   :  { %v1403_v13 = vadd.f32 %v1402_v0, %v1401_v1  ;;  %v1382_v62 = vmul.f32 %v12172_v29, %v12172_v29  ;;  %v1304_v5 = vadd.f32 %v1288_v48, %v11829_v45 }
 0x4d1   :  { %v1337_v44 = vmul.f32 %v1305_v14, %v12175_v52 }
 0x4d2   :  { %v1404_v7 = vrot.slane %v1403_v13, 2  ;;  %v1408_v38 = vadd.f32 %v1383_v37, %v1382_v62  ;;  %v1336_v42 = vmul.f32 %v1304_v5, %v12183_v50 }
 0x4d3   :  { %v1353_v10 = vmax.f32 %v1337_v44, 0.0 }
 0x4d4   :  { %v11534_v32 = vpop.eup %11533  ;;  %v1405_v46 = vadd.f32 %v1404_v7, %v1403_v13  ;;  %v1352_v17 = vmax.f32 %v1336_v42, 0.0 }
 0x4d5   :  { %v1419_v12 = vsel %vm1417_vm3, %v11534_v32, 0.0  ;;  %v12189_v53 = vmul.f32 %v1353_v10, %v12175_v52 }
 0x4d6   :  { %v1426_v19 = vmul.f32 %v1419_v12, %v11993_v35  ;;  %v1427_v41 = vmul.f32 %v1419_v12, %v11989_v31  ;;  %v1428_v24 = vmul.f32 %v1419_v12, %v12023_v21  ;;  %v1429_v45 = vmul.f32 %v1419_v12, %v12020_v18 }
 0x4d7   :  { %v1430_v57 = vmul.f32 %v1419_v12, %v12051_v8  ;;  %v1431_v1 = vmul.f32 %v1419_v12, %v12048_v61  ;;  %v1432_v22 = vmul.f32 %v1419_v12, %v12077_v43  ;;  %v1433_v27 = vmul.f32 %v1419_v12, %v12074_v39 }
 0x4d8   :  { %1442 = vst [vmem:[%s15496_s5 + $0x80] sm:$0xff] %v1426_v19  ;;  %1443 = vst [vmem:[%s15496_s5 + $0x88] sm:$0xff] %v1427_v41  ;;  %v1406_v31 = vrot.slane %v1405_v46, 1  ;;  %v1368_v35 = vmul.f32 %v1352_v17, %v12183_v50  ;;  %v11178_v18 = vpack.c.bf16 %v1427_v41, %v1426_v19  ;;  %v12224_v21 = vpack.c.bf16 %v1429_v45, %v1428_v24 }
 0x4d9   :  { %1444 = vst [vmem:[%s15496_s5 + $0x90] sm:$0xff] %v1428_v24  ;;  %1445 = vst [vmem:[%s15496_s5 + $0x98] sm:$0xff] %v1429_v45  ;;  %v12226_v61 = vpack.c.bf16 %v1431_v1, %v1430_v57  ;;  %v12228_v8 = vpack.c.bf16 %v1433_v27, %v1432_v22  ;;  %v1385_v43 = vmul.f32 %v12189_v53, %v12189_v53  ;;  %v847_v24 = vld [vmem:[%s15496_s5] sm:$0xff] }
 0x4da   :  { %1448 = vst [vmem:[%s15496_s5 + $0xb0] sm:$0xff] %v1432_v22  ;;  %1446 = vst [vmem:[%s15496_s5 + $0xa0] sm:$0xff] %v1430_v57  ;;  %v1407_v39 = vadd.f32 %v1406_v31, %v1405_v46  ;;  %v1384_v16 = vmul.f32 %v1368_v35, %v1368_v35  ;;  %11179 = vmatprep.subr.bf16.mxu1 %v11178_v18  ;;  %11212 = vmatpush3.bf16.msra.mxu0 %v11178_v18  ;;  %v12296_v22 = vmul.f32 0.001, %v11858_v54 }
 0x4db   :  { %1447 = vst [vmem:[%s15496_s5 + $0xa8] sm:$0xff] %v1431_v1  ;;  %1449 = vst [vmem:[%s15496_s5 + $0xb8] sm:$0xff] %v1433_v27  ;;  %11213 = vmatprep.subr.bf16.mxu0 %v15503_v4  ;;  %v856_v1 = vmul.f32 0.001, %v847_v24 }
 0x4dc   :  { %11535 = vrsqrt.f32 %v1407_v39  ;;  %v1409_v0 = vadd.f32 %v1408_v38, %v1384_v16  ;;  %vm1420_vm5 = vcmp.gt.f32.partialorder %v1407_v39, 0.0 }
 0x4de   :  { %v1410_v37 = vadd.f32 %v1409_v0, %v1385_v43  ;;  %11215 = vmatpush3.bf16.msra.mxu0 %v12224_v21  ;;  %v850_v43 = vld [vmem:[%s15496_s5 + $0x18] sm:$0xff]  ;;  %v849_v0 = vld [vmem:[%s15496_s5 + $0x10] sm:$0xff] }
 0x4df   :  { %11216 = vmatprep.subr.bf16.mxu0 %v15503_v4 }
 0x4e0   :  { %v1411_v14 = vrot.slane %v1410_v37, 4 }
 0x4e2   :  { %v1412_v48 = vadd.f32 %v1411_v14, %v1410_v37  ;;  %11218 = vmatpush3.bf16.msra.mxu0 %v12226_v61 }
 0x4e3   :  { %11219 = vmatprep.subr.bf16.mxu0 %v15503_v4 }
 0x4e4   :  { %v1413_v13 = vrot.slane %v1412_v48, 2 }
 0x4e6   :  { %v11536_v62 = vpop.eup %11535  ;;  %v1414_v44 = vadd.f32 %v1413_v13, %v1412_v48  ;;  %11221 = vmatpush3.bf16.msra.mxu0 %v12228_v8  ;;  %v859_v48 = vmul.f32 0.001, %v850_v43 }
 0x4e7   :  { %v1422_v5 = vsel %vm1420_vm5, %v11536_v62, 0.0 }
 0x4e8   :  { %v1434_v7 = vmul.f32 %v1422_v5, %v12108_v20  ;;  %v1435_v38 = vmul.f32 %v1422_v5, %v12101_v28  ;;  %v1436_v10 = vmul.f32 %v1422_v5, %v12142_v34  ;;  %v1437_v42 = vmul.f32 %v1422_v5, %v12138_v30 }
 0x4e9   :  { %v1415_v32 = vrot.slane %v1414_v44, 1 }
 0x4ea   :  { %1452 = vst [vmem:[%s15496_s5 + $0xd0] sm:$0xff] %v1436_v10  ;;  %1450 = vst [vmem:[%s15496_s5 + $0xc0] sm:$0xff] %v1434_v7  ;;  %v12254_v28 = vpack.c.bf16 %v1435_v38, %v1434_v7  ;;  %v12256_v20 = vpack.c.bf16 %v1437_v42, %v1436_v10 }
 0x4eb   :  { %1451 = vst [vmem:[%s15496_s5 + $0xc8] sm:$0xff] %v1435_v38  ;;  %1453 = vst [vmem:[%s15496_s5 + $0xd8] sm:$0xff] %v1437_v42  ;;  %v1416_v30 = vadd.f32 %v1415_v32, %v1414_v44  ;;  %v858_v44 = vmul.f32 0.001, %v849_v0 }
 0x4ed   :  { %11537 = vrsqrt.f32 %v1416_v30  ;;  %vm1423_vm11 = vcmp.gt.f32.partialorder %v1416_v30, 0.0  ;;  %v852_v30 = vld [vmem:[%s15496_s5 + $0x28] sm:$0xff] }
 0x4f7   :  { %v11538_v34 = vpop.eup %11537 }
 0x4f8   :  { %v1425_v46 = vsel %vm1423_vm11, %v11538_v34, 0.0 }
 0x4f9   :  { %v12259_v12 = vmul.f32 %v1425_v46, %v12172_v29  ;;  %v12262_v17 = vmul.f32 %v1425_v46, %v12167_v25  ;;  %v12264_v19 = vmul.f32 %v1425_v46, %v1368_v35  ;;  %v12267_v41 = vmul.f32 %v1425_v46, %v12189_v53  ;;  %v848_v53 = vld [vmem:[%s15496_s5 + $0x8] sm:$0xff]  ;;  %v851_v46 = vld [vmem:[%s15496_s5 + $0x20] sm:$0xff] }
 0x4fa   :  { %v857_v45 = vmul.f32 0.001, %v848_v53 }
 0x4fb   :  { %1454 = vst [vmem:[%s15496_s5 + $0xe0] sm:$0xff] %v12259_v12  ;;  %1455 = vst [vmem:[%s15496_s5 + $0xe8] sm:$0xff] %v12262_v17  ;;  %v11202_v25 = vpack.c.bf16 %v12262_v17, %v12259_v12  ;;  %v11206_v29 = vpack.c.bf16 %v12267_v41, %v12264_v19  ;;  %v11597_v12 = vld [vmem:[%s15498_s2] sm:$0xff] }
 0x4fc   :  { %1456 = vst [vmem:[%s15496_s5 + $0xf0] sm:$0xff] %v12264_v19  ;;  %1457 = vst [vmem:[%s15496_s5 + $0xf8] sm:$0xff] %v12267_v41  ;;  %v1460_v17 = vmul.f32 %v11597_v12, %v11873_v59 }
 0x4fe   :  { %v1461_v19 = vsub.f32 %v1460_v17, %v11879_v6 }
 0x500   :  { %v1462_v41 = vmul.f32 0.005, %v1461_v19 }
 0x504   :  { %v10506_v57 = vpop.f32.mrb[4].mxu1 }
 0x505   :  { %v832_v27 = vmul.f32 0.5, %v10506_v57  ;;  %v752_v31 = vpop.f32.mrb[5].mxu1 }
 0x506   :  { %v831_v35 = vmul.f32 0.5, %v752_v31 }
 0x507   :  { %v865_v18 = vsub.f32 %v832_v27, %v857_v45  ;;  %v861_v45 = vmul.f32 0.001, %v852_v30  ;;  %v860_v27 = vmul.f32 0.001, %v851_v46 }
 0x508   :  { %v864_v39 = vsub.f32 %v831_v35, %v856_v1 }
 0x509   :  { %v873_v16 = vmul.f32 %v865_v18, %v12296_v22 }
 0x50a   :  { %v872_v37 = vmul.f32 %v864_v39, %v12296_v22 }
 0x50b   :  { %v881_v14 = vadd.f32 %v873_v16, %v848_v53 }
 0x50c   :  { %v880_v13 = vadd.f32 %v872_v37, %v847_v24  ;;  %v10509_v62 = vpop.f32.mrb[6].mxu1  ;;  %v853_v37 = vld [vmem:[%s15496_s5 + $0x30] sm:$0xff] }
 0x50d   :  { %889 = vst [vmem:[%s15496_s5 + $0x8] sm:$0xff] %v881_v14  ;;  %v834_v5 = vmul.f32 0.5, %v10509_v62  ;;  %v762_v7 = vpop.f32.mrb[7].mxu1 }
 0x50e   :  { %888 = vst [vmem:[%s15496_s5] sm:$0xff] %v880_v13  ;;  %v833_v38 = vmul.f32 0.5, %v762_v7  ;;  %v11180_v10 = vpack.c.bf16 %v881_v14, %v880_v13 }
 0x50f   :  { %v867_v42 = vsub.f32 %v834_v5, %v859_v48  ;;  %v862_v5 = vmul.f32 0.001, %v853_v37 }
 0x510   :  { %v866_v32 = vsub.f32 %v833_v38, %v858_v44  ;;  %11181 = vmatpush3.bf16.msra.mxu1 %v11180_v10 }
 0x511   :  { %v875_v34 = vmul.f32 %v867_v42, %v12296_v22  ;;  %11183 = vmatprep.subr.bf16.mxu1 %v12224_v21 }
 0x512   :  { %v874_v53 = vmul.f32 %v866_v32, %v12296_v22 }
 0x513   :  { %v883_v24 = vadd.f32 %v875_v34, %v850_v43  ;;  %v854_v43 = vld [vmem:[%s15496_s5 + $0x38] sm:$0xff] }
 0x514   :  { %v882_v57 = vadd.f32 %v874_v53, %v849_v0  ;;  %v10512_v1 = vpop.f32.mrb[8].mxu1  ;;  %v863_v13 = vmul.f32 0.001, %v854_v43 }
 0x515   :  { %891 = vst [vmem:[%s15496_s5 + $0x18] sm:$0xff] %v883_v24  ;;  %v836_v31 = vmul.f32 0.5, %v10512_v1  ;;  %v772_v35 = vpop.f32.mrb[9].mxu1 }
 0x516   :  { %890 = vst [vmem:[%s15496_s5 + $0x10] sm:$0xff] %v882_v57  ;;  %v835_v18 = vmul.f32 0.5, %v772_v35  ;;  %v11184_v39 = vpack.c.bf16 %v883_v24, %v882_v57 }
 0x517   :  { %v869_v21 = vsub.f32 %v836_v31, %v861_v45  ;;  %v12352_v31 = vmul.f32 0.001, %v11868_v56 }
 0x518   :  { %v868_v16 = vsub.f32 %v835_v18, %v860_v27  ;;  %11185 = vmatpush3.bf16.msra.mxu1 %v11184_v39 }
 0x519   :  { %v877_v0 = vmul.f32 %v869_v21, %v12296_v22  ;;  %11187 = vmatprep.subr.bf16.mxu1 %v12226_v61 }
 0x51a   :  { %v876_v14 = vmul.f32 %v868_v16, %v12296_v22 }
 0x51b   :  { %v885_v48 = vadd.f32 %v877_v0, %v852_v30  ;;  %v897_v30 = vld [vmem:[%s15496_s5 + $0x48] sm:$0xff] }
 0x51c   :  { %v884_v62 = vadd.f32 %v876_v14, %v851_v46  ;;  %v10515_v44 = vpop.f32.mrb[10].mxu1  ;;  %v896_v46 = vld [vmem:[%s15496_s5 + $0x40] sm:$0xff]  ;;  %v906_v45 = vmul.f32 0.001, %v897_v30 }
 0x51d   :  { %893 = vst [vmem:[%s15496_s5 + $0x28] sm:$0xff] %v885_v48  ;;  %v838_v7 = vmul.f32 0.5, %v10515_v44  ;;  %v782_v38 = vpop.f32.mrb[11].mxu1  ;;  %v905_v27 = vmul.f32 0.001, %v896_v46 }
 0x51e   :  { %892 = vst [vmem:[%s15496_s5 + $0x20] sm:$0xff] %v884_v62  ;;  %v837_v10 = vmul.f32 0.5, %v782_v38  ;;  %v11188_v42 = vpack.c.bf16 %v885_v48, %v884_v62 }
 0x51f   :  { %v871_v61 = vsub.f32 %v838_v7, %v863_v13 }
 0x520   :  { %v870_v32 = vsub.f32 %v837_v10, %v862_v5  ;;  %11189 = vmatpush3.bf16.msra.mxu1 %v11188_v42 }
 0x521   :  { %v879_v34 = vmul.f32 %v871_v61, %v12296_v22  ;;  %11191 = vmatprep.subr.bf16.mxu1 %v12228_v8 }
 0x522   :  { %v878_v53 = vmul.f32 %v870_v32, %v12296_v22 }
 0x523   :  { %v887_v24 = vadd.f32 %v879_v34, %v854_v43  ;;  %v899_v43 = vld [vmem:[%s15496_s5 + $0x58] sm:$0xff] }
 0x524   :  { %v886_v57 = vadd.f32 %v878_v53, %v853_v37  ;;  %v10518_v1 = vpop.f32.mrb[12].mxu1  ;;  %v898_v37 = vld [vmem:[%s15496_s5 + $0x50] sm:$0xff]  ;;  %v908_v13 = vmul.f32 0.001, %v899_v43 }
 0x525   :  { %895 = vst [vmem:[%s15496_s5 + $0x38] sm:$0xff] %v887_v24  ;;  %v840_v35 = vmul.f32 0.5, %v10518_v1  ;;  %v792_v18 = vpop.f32.mrb[13].mxu1  ;;  %v907_v5 = vmul.f32 0.001, %v898_v37 }
 0x526   :  { %894 = vst [vmem:[%s15496_s5 + $0x30] sm:$0xff] %v886_v57  ;;  %v839_v8 = vmul.f32 0.5, %v792_v18  ;;  %v11192_v39 = vpack.c.bf16 %v887_v24, %v886_v57 }
 0x527   :  { %v914_v21 = vsub.f32 %v840_v35, %v906_v45  ;;  %v900_v45 = vld [vmem:[%s15496_s5 + $0x60] sm:$0xff] }
 0x528   :  { %v913_v16 = vsub.f32 %v839_v8, %v905_v27  ;;  %11193 = vmatpush3.bf16.msra.mxu1 %v11192_v39  ;;  %v909_v39 = vmul.f32 0.001, %v900_v45 }
 0x529   :  { %v922_v0 = vmul.f32 %v914_v21, %v12352_v31  ;;  %11195 = vmatprep.subr.bf16.mxu1 %v12254_v28 }
 0x52a   :  { %v921_v14 = vmul.f32 %v913_v16, %v12352_v31 }
 0x52b   :  { %v930_v48 = vadd.f32 %v922_v0, %v897_v30  ;;  %v901_v30 = vld [vmem:[%s15496_s5 + $0x68] sm:$0xff] }
 0x52c   :  { %v929_v62 = vadd.f32 %v921_v14, %v896_v46  ;;  %v10521_v44 = vpop.f32.mrb[14].mxu1  ;;  %v910_v35 = vmul.f32 0.001, %v901_v30 }
 0x52d   :  { %v12369_v7 = vmax.f32 %v930_v48, 0.0  ;;  %v842_v38 = vmul.f32 0.5, %v10521_v44  ;;  %v802_v10 = vpop.f32.mrb[15].mxu1 }
 0x52e   :  { %v12371_v42 = vmax.f32 %v929_v62, 0.0  ;;  %v841_v61 = vmul.f32 0.5, %v802_v10 }
 0x52f   :  { %v946_v32 = vmul.f32 %v12369_v7, %v12369_v7  ;;  %v916_v34 = vsub.f32 %v842_v38, %v908_v13 }
 0x530   :  { %v945_v53 = vmul.f32 %v12371_v42, %v12371_v42  ;;  %v915_v24 = vsub.f32 %v841_v61, %v907_v5  ;;  %v903_v5 = vld [vmem:[%s15496_s5 + $0x78] sm:$0xff] }
 0x531   :  { %v924_v46 = vmul.f32 %v916_v34, %v12352_v31  ;;  %v912_v34 = vmul.f32 0.001, %v903_v5 }
 0x532   :  { %v953_v57 = vadd.f32 %v946_v32, %v945_v53  ;;  %v923_v1 = vmul.f32 %v915_v24, %v12352_v31 }
 0x533   :  { %v932_v27 = vadd.f32 %v924_v46, %v899_v43  ;;  %v902_v43 = vld [vmem:[%s15496_s5 + $0x70] sm:$0xff] }
 0x534   :  { %v931_v18 = vadd.f32 %v923_v1, %v898_v37  ;;  %v10524_v8 = vpop.f32.mrb[16].mxu1  ;;  %v911_v1 = vmul.f32 0.001, %v902_v43 }
 0x535   :  { %v844_v21 = vmul.f32 0.5, %v10524_v8  ;;  %v812_v16 = vpop.f32.mrb[17].mxu1  ;;  %v940_v0 = vmax.f32 %v932_v27, 0.0 }
 0x536   :  { %v939_v14 = vmax.f32 %v931_v18, 0.0  ;;  %v843_v48 = vmul.f32 0.5, %v812_v16 }
 0x537   :  { %v918_v13 = vsub.f32 %v844_v21, %v910_v35  ;;  %v948_v37 = vmul.f32 %v940_v0, %v940_v0 }
 0x538   :  { %v947_v62 = vmul.f32 %v939_v14, %v939_v14  ;;  %v917_v44 = vsub.f32 %v843_v48, %v909_v39 }
 0x539   :  { %v926_v38 = vmul.f32 %v918_v13, %v12352_v31 }
 0x53a   :  { %v954_v10 = vadd.f32 %v953_v57, %v947_v62  ;;  %v925_v61 = vmul.f32 %v917_v44, %v12352_v31 }
 0x53b   :  { %v934_v32 = vadd.f32 %v926_v38, %v901_v30 }
 0x53c   :  { %v933_v53 = vadd.f32 %v925_v61, %v900_v45  ;;  %v955_v24 = vadd.f32 %v954_v10, %v948_v37  ;;  %v10527_v46 = vpop.f32.mrb[18].mxu1 }
 0x53d   :  { %v846_v27 = vmul.f32 0.5, %v10527_v46  ;;  %v822_v35 = vpop.f32.mrb[19].mxu1  ;;  %v942_v18 = vmax.f32 %v934_v32, 0.0 }
 0x53e   :  { %v941_v8 = vmax.f32 %v933_v53, 0.0  ;;  %v845_v39 = vmul.f32 0.5, %v822_v35 }
 0x53f   :  { %v920_v21 = vsub.f32 %v846_v27, %v912_v34  ;;  %v950_v3 = vmul.f32 %v942_v18, %v942_v18 }
 0x540   :  { %v949_v16 = vmul.f32 %v941_v8, %v941_v8  ;;  %v919_v48 = vsub.f32 %v845_v39, %v911_v1 }
 0x541   :  { %v928_v13 = vmul.f32 %v920_v21, %v12352_v31 }
 0x542   :  { %v956_v57 = vadd.f32 %v955_v24, %v949_v16  ;;  %v927_v62 = vmul.f32 %v919_v48, %v12352_v31 }
 0x543   :  { %v936_v30 = vadd.f32 %v928_v13, %v903_v5 }
 0x544   :  { %v935_v44 = vadd.f32 %v927_v62, %v902_v43  ;;  %v957_v45 = vadd.f32 %v956_v57, %v950_v3 }
 0x545   :  { %v944_v38 = vmax.f32 %v936_v30, 0.0 }
 0x546   :  { %v943_v37 = vmax.f32 %v935_v44, 0.0 }
 0x547   :  { %v952_v61 = vmul.f32 %v944_v38, %v944_v38 }
 0x548   :  { %v951_v10 = vmul.f32 %v943_v37, %v943_v37 }
 0x54a   :  { %v958_v46 = vadd.f32 %v957_v45, %v951_v10 }
 0x54c   :  { %v959_v32 = vadd.f32 %v958_v46, %v952_v61 }
 0x54e   :  { %v960_v53 = vrot.slane %v959_v32, 4 }
 0x550   :  { %v961_v35 = vadd.f32 %v960_v53, %v959_v32 }
 0x552   :  { %v962_v34 = vrot.slane %v961_v35, 2 }
 0x554   :  { %v963_v27 = vadd.f32 %v962_v34, %v961_v35 }
 0x556   :  { %v964_v1 = vrot.slane %v963_v27, 1 }
 0x558   :  { %v965_v39 = vadd.f32 %v964_v1, %v963_v27 }
 0x55a   :  { %11539 = vrsqrt.f32 %v965_v39  ;;  %vm966_vm12 = vcmp.gt.f32.partialorder %v965_v39, 0.0 }
 0x564   :  { %v11540_v21 = vpop.eup %11539 }
 0x565   :  { %v968_v24 = vsel %vm966_vm12, %v11540_v21, 0.0 }
 0x566   :  { %v969_v5 = vmul.f32 %v968_v24, %v12371_v42  ;;  %v970_v3 = vmul.f32 %v968_v24, %v12369_v7  ;;  %v971_v43 = vmul.f32 %v968_v24, %v939_v14  ;;  %v972_v16 = vmul.f32 %v968_v24, %v940_v0 }
 0x567   :  { %v973_v48 = vmul.f32 %v968_v24, %v941_v8  ;;  %v974_v13 = vmul.f32 %v968_v24, %v942_v18  ;;  %v975_v57 = vmul.f32 %v968_v24, %v943_v37  ;;  %v976_v62 = vmul.f32 %v968_v24, %v944_v38  ;;  %v9556_v18 = vld [vmem:[%s15497_s0 + $0x8] sm:$0xff] }
 0x568   :  { %977 = vst [vmem:[%s15496_s5 + $0x40] sm:$0xff] %v969_v5  ;;  %978 = vst [vmem:[%s15496_s5 + $0x48] sm:$0xff] %v970_v3  ;;  %v11196_v7 = vpack.c.bf16 %v970_v3, %v969_v5  ;;  %v11200_v42 = vpack.c.bf16 %v972_v16, %v971_v43  ;;  %v15511_v8 = vmov 0.0  }
 0x569   :  { %979 = vst [vmem:[%s15496_s5 + $0x50] sm:$0xff] %v971_v43  ;;  %980 = vst [vmem:[%s15496_s5 + $0x58] sm:$0xff] %v972_v16  ;;  %v11204_v0 = vpack.c.bf16 %v974_v13, %v973_v48  ;;  %v11208_v14 = vpack.c.bf16 %v976_v62, %v975_v57 }
 0x56a   :  { %983 = vst [vmem:[%s15496_s5 + $0x70] sm:$0xff] %v975_v57  ;;  %981 = vst [vmem:[%s15496_s5 + $0x60] sm:$0xff] %v973_v48  ;;  %11197 = vmatpush3.bf16.msra.mxu1 %v11196_v7 }
 0x56b   :  { %982 = vst [vmem:[%s15496_s5 + $0x68] sm:$0xff] %v974_v13  ;;  %984 = vst [vmem:[%s15496_s5 + $0x78] sm:$0xff] %v976_v62  ;;  %11199 = vmatprep.subr.bf16.mxu1 %v12256_v20 }
 0x56e   :  { %11201 = vmatpush3.bf16.msra.mxu1 %v11200_v42 }
 0x56f   :  { %11203 = vmatprep.subr.bf16.mxu1 %v11202_v25 }
 0x572   :  { %11205 = vmatpush3.bf16.msra.mxu1 %v11204_v0 }
 0x573   :  { %11207 = vmatprep.subr.bf16.mxu1 %v11206_v29 }
 0x576   :  { %11209 = vmatpush3.bf16.msra.mxu1 %v11208_v14 }
 0x577   :  { %11222 = vmatprep.subr.bf16.mxu1 %v15503_v4 }
 0x579   :  { %1561 = vmatmul.mubr.f32.vlgmr.msra.gmra.mrb[20].mxu1 %v9556_v18 }
 0x57a   :  { %11224 = vmatpush3.bf16.msra.mxu1 %v12254_v28  ;;  %10581 = vmatprep.mubr.msk.f32.mxu1 %vm11607_vm0, %v15511_v8  ;;  %v12443_v28 = vadd.f32 %v1462_v41, %v11879_v6 }
 0x57b   :  { %11225 = vmatprep.subr.bf16.mxu1 %v15503_v4 }
 0x57e   :  { %11227 = vmatpush3.bf16.msra.mxu1 %v12256_v20 }
 0x64c   :  { %v9923_v25 = vpop.f32.mrb[20].mxu1 }
 0x64d   :  { %v9924_v29 = vpop.f32.mrb[21].mxu1 }
 0x64e   :  { %v9925_v30 = vadd.f32 %v9924_v29, %v9923_v25 }
 0x650   :  { %v1566_v44 = vsub.f32 %v9925_v30, %v12443_v28 }
 0x652   :  { %v1567_v45 = vmax.f32 %v1566_v44, 0.0 }
 0x654   :  { %v1568_v38 = vsub.f32 %v1567_v45, %v11597_v12 }
 0x656   :  { %v1569_v20 = vmul.f32 %v1568_v38, %v11881_v11 }
 0x658   :  { %v1570_v37 = vadd.f32 %v11597_v12, %v1569_v20 }
 0x65a   :  { %v1571_v10 = vsub.f32 %v1570_v37, %v11597_v12 }
 0x65c   :  { %10571 = vmatmul.mubr.msk.f32.vlgmr.msra.gmra.mrb[18].mxu0 %vm429_vm6, %v1571_v10  ;;  %v1572_v61 = vmul.f32 %v11858_v54, %v1571_v10 }
 0x65e   :  { %v1573_v35 = vadd.f32 %v11597_v12, %v1572_v61 }
 0x72f   :  { %v1651_v46 = vpop.f32.mrb[18].mxu0 }
 0x730   :  { %v1655_v32 = vadd.f32 %v1651_v46, %v1566_v44  ;;  %v10572_v53 = vpop.f32.mrb[19].mxu0 }
 0x732   :  { %v1656_v34 = vmax.f32 %v1655_v32, 0.0 }
 0x734   :  { %v1657_v6 = vsub.f32 %v1656_v34, %v1573_v35 }
 0x736   :  { %v1658_v27 = vmul.f32 %v1657_v6, %v11881_v11 }
 0x738   :  { %v1659_v1 = vadd.f32 %v1658_v27, %v1573_v35 }
 0x73a   :  { %v1660_v39 = vsub.f32 %v1659_v1, %v1573_v35 }
 0x73c   :  { %1668 = vrot.lane.b32.xlu0 %v1660_v39, %s11608_s1  ;;  %v1661_v21 = vmul.f32 %v11863_v55, %v1660_v39 }
 0x73e   :  { %v1662_v24 = vadd.f32 %v1661_v21, %v1573_v35 }
 0x7ae   :  { %v1669_v5 = vpop.permute.xlu0 %1668 }
 0x7af   :  { %10582 = vmatmul.mubr.msk.f32.vlgmr.msra.gmra.mrb[22].mxu1 %vm518_vm7, %v1669_v5 }
 0x882   :  { %v1738_v3 = vpop.f32.mrb[22].mxu1 }
 0x883   :  { %v1742_v43 = vadd.f32 %v1738_v3, %v1655_v32  ;;  %v10583_v16 = vpop.f32.mrb[23].mxu1 }
 0x885   :  { %v1743_v48 = vmax.f32 %v1742_v43, 0.0 }
 0x887   :  { %v1744_v13 = vsub.f32 %v1743_v48, %v1662_v24 }
 0x889   :  { %v1745_v57 = vmul.f32 %v1744_v13, %v11881_v11 }
 0x88b   :  { %v1746_v62 = vadd.f32 %v1745_v57, %v1662_v24 }
 0x88d   :  { %v1747_v7 = vsub.f32 %v1746_v62, %v1662_v24  ;;  %v2376_v62 = vld [vmem:[%s15496_s5 + $0x88] sm:$0xff] }
 0x88f   :  { %v1748_v42 = vmul.f32 %v11868_v56, %v1747_v7  ;;  %v2375_v7 = vld [vmem:[%s15496_s5 + $0x80] sm:$0xff] }
 0x891   :  { %v12455_v0 = vadd.f32 %v1748_v42, %v1662_v24 }
 0x893   :  { %1753 = vrot.lane.b32.xlu0 %v12455_v0, %s11608_s1  ;;  %10584 = vmatprep.subr.mxu0 %v12455_v0  ;;  %9559 = vst [vmem:[%s15498_s2 + $0x8] sm:$0xff] %v12455_v0 }
 0x894   :  { %10610 = vmatprep.subr.mxu1 %v12455_v0  ;;  %10585 = vmatpush3.msra.mxu0 %v12455_v0 }
 0x895   :  { %10611 = vmatpush3.msra.mxu1 %v12455_v0 }
 0x896   :  { %11260 = vmatprep.subr.bf16.mxu1 %v15503_v4 }
 0x8b1   :  { %2134 = vxpose.xlu0.b32.start.end [1/1] (short) %v12455_v0, 128 }
 0x905   :  { %v1754_v14 = vpop.permute.xlu0 %1753 }
 0x906   :  { %v1756_v12 = vsel %vm429_vm6, %v9556_v18, %v1754_v14 }
 0x907   :  { %1757 = vxpose.xlu0.b32.start.end [1/1] (short) %v1756_v12, 128  ;;  %v2392_v12 = vmul.f32 0.001, %v2376_v62 }
 0x931   :  { %v2150_v17 = vpop.trf.xlu0 }
 0x932   :  { %10612 = vmatprep.mubr.msk.f32.mxu1 %vm637_vm8, %v2150_v17 }
 0x935   :  { %v2151_v19 = vpop.trf.xlu0 }
 0x936   :  { %10613 = vmatmul.mubr.msk.f32.vlgmr.msra.gmra.mrb[24].mxu1 %vm637_vm8, %v2151_v19 }
 0x939   :  { %v2152_v41 = vpop.trf.xlu0 }
 0x93a   :  { %10615 = vmatprep.mubr.msk.f32.mxu1 %vm637_vm8, %v2152_v41  ;;  %v2391_v41 = vmul.f32 0.001, %v2375_v7 }
 0x93d   :  { %v2153_v25 = vpop.trf.xlu0 }
 0x93e   :  { %10616 = vmatmul.mubr.msk.f32.gmra.mrb[26].mxu1 %vm637_vm8, %v2153_v25 }
 0x941   :  { %v2154_v29 = vpop.trf.xlu0 }
 0x942   :  { %10618 = vmatprep.mubr.msk.f32.mxu1 %vm637_vm8, %v2154_v29 }
 0x945   :  { %v2155_v30 = vpop.trf.xlu0 }
 0x946   :  { %10619 = vmatmul.mubr.msk.f32.gmra.mrb[28].mxu1 %vm637_vm8, %v2155_v30 }
 0x949   :  { %v2156_v18 = vpop.trf.xlu0 }
 0x94a   :  { %10621 = vmatprep.mubr.msk.f32.mxu1 %vm637_vm8, %v2156_v18 }
 0x94d   :  { %v2157_v44 = vpop.trf.xlu0 }
 0x94e   :  { %10622 = vmatmul.mubr.msk.f32.gmra.mrb[30].mxu1 %vm637_vm8, %v2157_v44 }
 0x951   :  { %v2158_v45 = vpop.trf.xlu0 }
 0x952   :  { %10624 = vmatprep.mubr.msk.f32.mxu1 %vm637_vm8, %v2158_v45  ;;  %v2377_v45 = vld [vmem:[%s15496_s5 + $0x90] sm:$0xff] }
 0x955   :  { %v2159_v38 = vpop.trf.xlu0 }
 0x956   :  { %10625 = vmatmul.mubr.msk.f32.gmra.mrb[32].mxu1 %vm637_vm8, %v2159_v38 }
 0x959   :  { %v2160_v20 = vpop.trf.xlu0 }
 0x95a   :  { %10627 = vmatprep.mubr.msk.f32.mxu1 %vm637_vm8, %v2160_v20 }
 0x95d   :  { %v2161_v37 = vpop.trf.xlu0 }
 0x95e   :  { %10628 = vmatmul.mubr.msk.f32.gmra.mrb[34].mxu1 %vm637_vm8, %v2161_v37 }
 0x961   :  { %v2162_v10 = vpop.trf.xlu0 }
 0x962   :  { %10630 = vmatprep.mubr.msk.f32.mxu1 %vm637_vm8, %v2162_v10 }
 0x965   :  { %v2163_v61 = vpop.trf.xlu0 }
 0x966   :  { %10631 = vmatmul.mubr.msk.f32.gmra.mrb[36].mxu1 %vm637_vm8, %v2163_v61 }
 0x969   :  { %v2164_v46 = vpop.trf.xlu0 }
 0x96a   :  { %10633 = vmatprep.mubr.msk.f32.mxu1 %vm637_vm8, %v2164_v46 }
 0x96d   :  { %v2165_v32 = vpop.trf.xlu0 }
 0x96e   :  { %10634 = vmatmul.mubr.msk.f32.gmra.mrb[38].mxu1 %vm637_vm8, %v2165_v32 }
 0x96f   :  { %10652 = vmatprep.mubr.msk.f32.mxu1 %vm11607_vm0, %v15511_v8 }
 0x987   :  { %v1773_v53 = vpop.trf.xlu0 }
 0x988   :  { %10586 = vmatprep.mubr.msk.f32.mxu0 %vm637_vm8, %v1773_v53 }
 0x98b   :  { %v1774_v35 = vpop.trf.xlu0 }
 0x98c   :  { %10587 = vmatmul.mubr.msk.f32.vlgmr.msra.gmra.mrb[20].mxu0 %vm637_vm8, %v1774_v35  ;;  %v2393_v35 = vmul.f32 0.001, %v2377_v45 }
 0x98f   :  { %v1775_v34 = vpop.trf.xlu0 }
 0x990   :  { %10589 = vmatprep.mubr.msk.f32.mxu0 %vm637_vm8, %v1775_v34 }
 0x993   :  { %v1776_v6 = vpop.trf.xlu0 }
 0x994   :  { %10590 = vmatmul.mubr.msk.f32.gmra.mrb[22].mxu0 %vm637_vm8, %v1776_v6 }
 0x997   :  { %v1777_v27 = vpop.trf.xlu0 }
 0x998   :  { %10592 = vmatprep.mubr.msk.f32.mxu0 %vm637_vm8, %v1777_v27 }
 0x99b   :  { %v1778_v1 = vpop.trf.xlu0 }
 0x99c   :  { %10593 = vmatmul.mubr.msk.f32.gmra.mrb[24].mxu0 %vm637_vm8, %v1778_v1 }
 0x99f   :  { %v1779_v39 = vpop.trf.xlu0 }
 0x9a0   :  { %10595 = vmatprep.mubr.msk.f32.mxu0 %vm637_vm8, %v1779_v39 }
 0x9a3   :  { %v1780_v21 = vpop.trf.xlu0 }
 0x9a4   :  { %10596 = vmatmul.mubr.msk.f32.gmra.mrb[26].mxu0 %vm637_vm8, %v1780_v21 }
 0x9a7   :  { %v1781_v24 = vpop.trf.xlu0 }
 0x9a8   :  { %10598 = vmatprep.mubr.msk.f32.mxu0 %vm637_vm8, %v1781_v24 }
 0x9ab   :  { %v1782_v5 = vpop.trf.xlu0 }
 0x9ac   :  { %10599 = vmatmul.mubr.msk.f32.gmra.mrb[28].mxu0 %vm637_vm8, %v1782_v5 }
 0x9af   :  { %v1783_v3 = vpop.trf.xlu0 }
 0x9b0   :  { %10601 = vmatprep.mubr.msk.f32.mxu0 %vm637_vm8, %v1783_v3  ;;  %v2380_v3 = vld [vmem:[%s15496_s5 + $0xa8] sm:$0xff] }
 0x9b3   :  { %v1784_v43 = vpop.trf.xlu0 }
 0x9b4   :  { %10602 = vmatmul.mubr.msk.f32.gmra.mrb[30].mxu0 %vm637_vm8, %v1784_v43 }
 0x9b7   :  { %v1785_v16 = vpop.trf.xlu0 }
 0x9b8   :  { %10604 = vmatprep.mubr.msk.f32.mxu0 %vm637_vm8, %v1785_v16 }
 0x9bb   :  { %v1786_v48 = vpop.trf.xlu0 }
 0x9bc   :  { %10605 = vmatmul.mubr.msk.f32.gmra.mrb[32].mxu0 %vm637_vm8, %v1786_v48  ;;  %v2379_v48 = vld [vmem:[%s15496_s5 + $0xa0] sm:$0xff] }
 0x9bf   :  { %v1787_v13 = vpop.trf.xlu0 }
 0x9c0   :  { %10607 = vmatprep.mubr.msk.f32.mxu0 %vm637_vm8, %v1787_v13 }
 0x9c3   :  { %v1788_v57 = vpop.trf.xlu0 }
 0x9c4   :  { %10608 = vmatmul.mubr.msk.f32.gmra.mrb[34].mxu0 %vm637_vm8, %v1788_v57 }
 0x9c5   :  { %2709 = vmatprep.mubr.f32.mxu0 %v12455_v0  ;;  %v2378_v0 = vld [vmem:[%s15496_s5 + $0x98] sm:$0xff] }
 0x9c6   :  { %v2394_v61 = vmul.f32 0.001, %v2378_v0 }
 0xa09   :  { %v10614_v42 = vpop.f32.mrb[24].mxu1 }
 0xa0a   :  { %v2360_v14 = vmul.f32 0.5, %v10614_v42  ;;  %v2280_v17 = vpop.f32.mrb[25].mxu1 }
 0xa0b   :  { %v2359_v19 = vmul.f32 0.5, %v2280_v17 }
 0xa0c   :  { %v2408_v25 = vsub.f32 %v2360_v14, %v2392_v12  ;;  %v2396_v14 = vmul.f32 0.001, %v2380_v3 }
 0xa0d   :  { %v2407_v29 = vsub.f32 %v2359_v19, %v2391_v41 }
 0xa0e   :  { %v2424_v30 = vmul.f32 0.001, %v2408_v25  ;;  %v2395_v25 = vmul.f32 0.001, %v2379_v48 }
 0xa0f   :  { %v2423_v18 = vmul.f32 0.001, %v2407_v29 }
 0xa10   :  { %v2440_v44 = vadd.f32 %v2424_v30, %v2376_v62 }
 0xa11   :  { %v2439_v38 = vadd.f32 %v2423_v18, %v2375_v7  ;;  %v10617_v20 = vpop.f32.mrb[26].mxu1 }
 0xa12   :  { %v2472_v37 = vmul.f32 %v2440_v44, %v11970_v9  ;;  %v2362_v10 = vmul.f32 0.5, %v10617_v20  ;;  %v2290_v46 = vpop.f32.mrb[27].mxu1 }
 0xa13   :  { %v2471_v32 = vmul.f32 %v2439_v38, %v11974_v15  ;;  %v2361_v53 = vmul.f32 0.5, %v2290_v46 }
 0xa14   :  { %v2488_v34 = vmax.f32 %v2472_v37, 0.0  ;;  %v2410_v6 = vsub.f32 %v2362_v10, %v2394_v61  ;;  %v2382_v37 = vld [vmem:[%s15496_s5 + $0xb8] sm:$0xff]  ;;  %v2381_v10 = vld [vmem:[%s15496_s5 + $0xb0] sm:$0xff] }
 0xa15   :  { %v2487_v27 = vmax.f32 %v2471_v32, 0.0  ;;  %v2409_v1 = vsub.f32 %v2361_v53, %v2393_v35 }
 0xa16   :  { %v12520_v39 = vmul.f32 %v2488_v34, %v11970_v9  ;;  %v2426_v21 = vmul.f32 0.001, %v2410_v6  ;;  %v2398_v6 = vmul.f32 0.001, %v2382_v37 }
 0xa17   :  { %v12523_v24 = vmul.f32 %v2487_v27, %v11974_v15  ;;  %v2425_v5 = vmul.f32 0.001, %v2409_v1  ;;  %v2397_v1 = vmul.f32 0.001, %v2381_v10 }
 0xa18   :  { %v2520_v43 = vmul.f32 %v12520_v39, %v12520_v39  ;;  %v2442_v16 = vadd.f32 %v2426_v21, %v2378_v0 }
 0xa19   :  { %v2519_v13 = vmul.f32 %v12523_v24, %v12523_v24  ;;  %v2441_v57 = vadd.f32 %v2425_v5, %v2377_v45  ;;  %v10620_v62 = vpop.f32.mrb[28].mxu1 }
 0xa1a   :  { %v2474_v7 = vmul.f32 %v2442_v16, %v11996_v36  ;;  %v2364_v42 = vmul.f32 0.5, %v10620_v62  ;;  %v2300_v12 = vpop.f32.mrb[29].mxu1 }
 0xa1b   :  { %v2535_v17 = vadd.f32 %v2520_v43, %v2519_v13  ;;  %v2473_v19 = vmul.f32 %v2441_v57, %v12002_v47  ;;  %v2363_v41 = vmul.f32 0.5, %v2300_v12 }
 0xa1c   :  { %v2490_v29 = vmax.f32 %v2474_v7, 0.0  ;;  %v2412_v30 = vsub.f32 %v2364_v42, %v2396_v14 }
 0xa1d   :  { %v2489_v18 = vmax.f32 %v2473_v19, 0.0  ;;  %v2411_v0 = vsub.f32 %v2363_v41, %v2395_v25  ;;  %v2383_v19 = vld [vmem:[%s15496_s5 + $0xc0] sm:$0xff] }
 0xa1e   :  { %v2428_v44 = vmul.f32 0.001, %v2412_v30  ;;  %v12538_v38 = vmul.f32 %v2490_v29, %v11996_v36 }
 0xa1f   :  { %v12541_v45 = vmul.f32 %v2489_v18, %v12002_v47  ;;  %v2427_v20 = vmul.f32 0.001, %v2411_v0 }
 0xa20   :  { %v2444_v61 = vadd.f32 %v2428_v44, %v2380_v3  ;;  %v2522_v21 = vmul.f32 %v12538_v38, %v12538_v38 }
 0xa21   :  { %v2521_v46 = vmul.f32 %v12541_v45, %v12541_v45  ;;  %v2443_v32 = vadd.f32 %v2427_v20, %v2379_v48  ;;  %v10623_v53 = vpop.f32.mrb[30].mxu1 }
 0xa22   :  { %v2476_v35 = vmul.f32 %v2444_v61, %v12026_v23  ;;  %v2366_v34 = vmul.f32 0.5, %v10623_v53  ;;  %v2310_v27 = vpop.f32.mrb[31].mxu1  ;;  %v2399_v61 = vmul.f32 0.001, %v2383_v19 }
 0xa23   :  { %v2536_v5 = vadd.f32 %v2535_v17, %v2521_v46  ;;  %v2475_v43 = vmul.f32 %v2443_v32, %v12031_v26  ;;  %v2365_v16 = vmul.f32 0.5, %v2310_v27  ;;  %v2384_v17 = vld [vmem:[%s15496_s5 + $0xc8] sm:$0xff] }
 0xa24   :  { %v2492_v13 = vmax.f32 %v2476_v35, 0.0  ;;  %v2414_v3 = vsub.f32 %v2366_v34, %v2398_v6  ;;  %v2400_v44 = vmul.f32 0.001, %v2384_v17 }
 0xa25   :  { %v2491_v57 = vmax.f32 %v2475_v43, 0.0  ;;  %v2537_v62 = vadd.f32 %v2536_v5, %v2522_v21  ;;  %v2413_v7 = vsub.f32 %v2365_v16, %v2397_v1  ;;  %v2386_v16 = vld [vmem:[%s15496_s5 + $0xd8] sm:$0xff] }
 0xa26   :  { %v2430_v48 = vmul.f32 0.001, %v2414_v3  ;;  %v12556_v42 = vmul.f32 %v2492_v13, %v12026_v23  ;;  %v2385_v13 = vld [vmem:[%s15496_s5 + $0xd0] sm:$0xff] }
 0xa27   :  { %v12559_v14 = vmul.f32 %v2491_v57, %v12031_v26  ;;  %v2429_v12 = vmul.f32 0.001, %v2413_v7 }
 0xa28   :  { %v2446_v41 = vadd.f32 %v2430_v48, %v2382_v37  ;;  %v2524_v46 = vmul.f32 %v12556_v42, %v12556_v42 }
 0xa29   :  { %v2523_v25 = vmul.f32 %v12559_v14, %v12559_v14  ;;  %v2445_v29 = vadd.f32 %v2429_v12, %v2381_v10  ;;  %v10626_v30 = vpop.f32.mrb[32].mxu1 }
 0xa2a   :  { %v2478_v18 = vmul.f32 %v2446_v41, %v12054_v63  ;;  %v2368_v0 = vmul.f32 0.5, %v10626_v30  ;;  %v2320_v20 = vpop.f32.mrb[33].mxu1  ;;  %v2402_v41 = vmul.f32 0.001, %v2386_v16 }
 0xa2b   :  { %v2538_v32 = vadd.f32 %v2537_v62, %v2523_v25  ;;  %v2477_v53 = vmul.f32 %v2445_v29, %v12057_v2  ;;  %v2367_v35 = vmul.f32 0.5, %v2320_v20  ;;  %v2401_v29 = vmul.f32 0.001, %v2385_v13 }
 0xa2c   :  { %v2494_v34 = vmax.f32 %v2478_v18, 0.0  ;;  %v2416_v37 = vsub.f32 %v2368_v0, %v2400_v44 }
 0xa2d   :  { %v2493_v6 = vmax.f32 %v2477_v53, 0.0  ;;  %v2539_v27 = vadd.f32 %v2538_v32, %v2524_v46  ;;  %v2415_v1 = vsub.f32 %v2367_v35, %v2399_v61 }
 0xa2e   :  { %v2432_v10 = vmul.f32 0.001, %v2416_v37  ;;  %v12574_v21 = vmul.f32 %v2494_v34, %v12054_v63 }
 0xa2f   :  { %v12577_v5 = vmul.f32 %v2493_v6, %v12057_v2  ;;  %v2431_v43 = vmul.f32 0.001, %v2415_v1  ;;  %v2388_v6 = vld [vmem:[%s15496_s5 + $0xe8] sm:$0xff] }
 0xa30   :  { %v2448_v3 = vadd.f32 %v2432_v10, %v2384_v17  ;;  %v2526_v30 = vmul.f32 %v12574_v21, %v12574_v21 }
 0xa31   :  { %v2525_v57 = vmul.f32 %v12577_v5, %v12577_v5  ;;  %v2447_v62 = vadd.f32 %v2431_v43, %v2383_v19  ;;  %v10629_v7 = vpop.f32.mrb[34].mxu1 }
 0xa32   :  { %v2480_v48 = vmul.f32 %v2448_v3, %v12080_v49  ;;  %v2370_v12 = vmul.f32 0.5, %v10629_v7  ;;  %v2330_v25 = vpop.f32.mrb[35].mxu1 }
 0xa33   :  { %v2540_v18 = vadd.f32 %v2539_v27, %v2525_v57  ;;  %v2479_v0 = vmul.f32 %v2447_v62, %v12085_v60  ;;  %v2369_v44 = vmul.f32 0.5, %v2330_v25  ;;  %v2387_v27 = vld [vmem:[%s15496_s5 + $0xe0] sm:$0xff] }
 0xa34   :  { %v2496_v20 = vmax.f32 %v2480_v48, 0.0  ;;  %v2418_v17 = vsub.f32 %v2370_v12, %v2402_v41  ;;  %v2404_v12 = vmul.f32 0.001, %v2388_v6  ;;  %v2403_v25 = vmul.f32 0.001, %v2387_v27 }
 0xa35   :  { %v2541_v61 = vadd.f32 %v2540_v18, %v2526_v30  ;;  %v2495_v46 = vmax.f32 %v2479_v0, 0.0  ;;  %v2417_v32 = vsub.f32 %v2369_v44, %v2401_v29 }
 0xa36   :  { %v12592_v19 = vmul.f32 %v2496_v20, %v12080_v49  ;;  %v2434_v53 = vmul.f32 0.001, %v2418_v17 }
 0xa37   :  { %v2542_v35 = vrot.slane %v2541_v61, 4  ;;  %v12595_v34 = vmul.f32 %v2495_v46, %v12085_v60  ;;  %v2433_v37 = vmul.f32 0.001, %v2417_v32 }
 0xa38   :  { %v2528_v1 = vmul.f32 %v12592_v19, %v12592_v19  ;;  %v2450_v10 = vadd.f32 %v2434_v53, %v2386_v16 }
 0xa39   :  { %v2543_v43 = vadd.f32 %v2542_v35, %v2541_v61  ;;  %v2527_v3 = vmul.f32 %v12595_v34, %v12595_v34  ;;  %v2449_v57 = vadd.f32 %v2433_v37, %v2385_v13  ;;  %v10632_v62 = vpop.f32.mrb[36].mxu1  ;;  %v2390_v37 = vld [vmem:[%s15496_s5 + $0xf8] sm:$0xff] }
 0xa3a   :  { %v2482_v7 = vmul.f32 %v2450_v10, %v12111_v40  ;;  %v2372_v48 = vmul.f32 0.5, %v10632_v62  ;;  %v2340_v41 = vpop.f32.mrb[37].mxu1  ;;  %v2389_v62 = vld [vmem:[%s15496_s5 + $0xf0] sm:$0xff] }
 0xa3b   :  { %v2544_v29 = vrot.slane %v2543_v43, 2  ;;  %v2548_v30 = vadd.f32 %v2528_v1, %v2527_v3  ;;  %v2481_v18 = vmul.f32 %v2449_v57, %v12104_v33  ;;  %v2371_v0 = vmul.f32 0.5, %v2340_v41 }
 0xa3c   :  { %v2498_v44 = vmax.f32 %v2482_v7, 0.0  ;;  %v2420_v20 = vsub.f32 %v2372_v48, %v2404_v12  ;;  %v2406_v12 = vmul.f32 0.001, %v2390_v37 }
 0xa3d   :  { %v2545_v16 = vadd.f32 %v2544_v29, %v2543_v43  ;;  %v2497_v17 = vmax.f32 %v2481_v18, 0.0  ;;  %v2419_v61 = vsub.f32 %v2371_v0, %v2403_v25 }
 0xa3e   :  { %v2436_v46 = vmul.f32 0.001, %v2420_v20  ;;  %v12610_v13 = vmul.f32 %v2498_v44, %v12111_v40  ;;  %v2405_v44 = vmul.f32 0.001, %v2389_v62 }
 0xa3f   :  { %v2546_v32 = vrot.slane %v2545_v16, 1  ;;  %v12613_v53 = vmul.f32 %v2497_v17, %v12104_v33  ;;  %v2435_v35 = vmul.f32 0.001, %v2419_v61 }
 0xa40   :  { %v2452_v1 = vadd.f32 %v2436_v46, %v2388_v6  ;;  %v2530_v25 = vmul.f32 %v12610_v13, %v12610_v13 }
 0xa41   :  { %v2547_v10 = vadd.f32 %v2546_v32, %v2545_v16  ;;  %v2529_v43 = vmul.f32 %v12613_v53, %v12613_v53  ;;  %v2451_v3 = vadd.f32 %v2435_v35, %v2387_v27  ;;  %v10635_v57 = vpop.f32.mrb[38].mxu1 }
 0xa42   :  { %v2484_v7 = vmul.f32 %v2452_v1, %v12145_v58  ;;  %v2374_v48 = vmul.f32 0.5, %v10635_v57  ;;  %v2350_v41 = vpop.f32.mrb[39].mxu1 }
 0xa43   :  { %11541 = vrsqrt.f32 %v2547_v10  ;;  %v2549_v6 = vadd.f32 %v2548_v30, %v2529_v43  ;;  %v2483_v29 = vmul.f32 %v2451_v3, %v12149_v51  ;;  %v2373_v27 = vmul.f32 0.5, %v2350_v41 }
 0xa44   :  { %v2500_v18 = vmax.f32 %v2484_v7, 0.0  ;;  %v2422_v0 = vsub.f32 %v2374_v48, %v2406_v12  ;;  %vm2566_vm13 = vcmp.gt.f32.partialorder %v2547_v10, 0.0 }
 0xa45   :  { %v2550_v20 = vadd.f32 %v2549_v6, %v2530_v25  ;;  %v2499_v16 = vmax.f32 %v2483_v29, 0.0  ;;  %v2421_v46 = vsub.f32 %v2373_v27, %v2405_v44 }
 0xa46   :  { %v12628_v17 = vmul.f32 %v2500_v18, %v12145_v58  ;;  %v2438_v61 = vmul.f32 0.001, %v2422_v0 }
 0xa47   :  { %v2551_v32 = vrot.slane %v2550_v20, 4  ;;  %v12631_v35 = vmul.f32 %v2499_v16, %v12149_v51  ;;  %v2437_v43 = vmul.f32 0.001, %v2421_v46 }
 0xa48   :  { %v2532_v30 = vmul.f32 %v12628_v17, %v12628_v17  ;;  %v2454_v1 = vadd.f32 %v2438_v61, %v2390_v37 }
 0xa49   :  { %v2552_v3 = vadd.f32 %v2551_v32, %v2550_v20  ;;  %v2531_v57 = vmul.f32 %v12631_v35, %v12631_v35  ;;  %v2453_v48 = vadd.f32 %v2437_v43, %v2389_v62 }
 0xa4a   :  { %v2486_v7 = vmul.f32 %v2454_v1, %v12175_v52 }
 0xa4b   :  { %v2553_v12 = vrot.slane %v2552_v3, 2  ;;  %v2557_v41 = vadd.f32 %v2532_v30, %v2531_v57  ;;  %v2485_v25 = vmul.f32 %v2453_v48, %v12183_v50  ;;  %v1999_v48 = vld [vmem:[%s15496_s5 + $0x8] sm:$0xff] }
 0xa4c   :  { %v2502_v18 = vmax.f32 %v2486_v7, 0.0 }
 0xa4d   :  { %v11542_v6 = vpop.eup %11541  ;;  %v2554_v29 = vadd.f32 %v2553_v12, %v2552_v3  ;;  %v2501_v27 = vmax.f32 %v2485_v25, 0.0 }
 0xa4e   :  { %v2568_v0 = vsel %vm2566_vm13, %v11542_v6, 0.0  ;;  %v1998_v6 = vld [vmem:[%s15496_s5] sm:$0xff] }
 0xa4f   :  { %v2575_v37 = vmul.f32 %v2568_v0, %v12523_v24  ;;  %v2576_v44 = vmul.f32 %v2568_v0, %v12520_v39  ;;  %v2577_v20 = vmul.f32 %v2568_v0, %v12541_v45  ;;  %v2578_v16 = vmul.f32 %v2568_v0, %v12538_v38 }
 0xa50   :  { %v2579_v62 = vmul.f32 %v2568_v0, %v12559_v14  ;;  %v2580_v61 = vmul.f32 %v2568_v0, %v12556_v42  ;;  %v2581_v46 = vmul.f32 %v2568_v0, %v12577_v5  ;;  %v2582_v10 = vmul.f32 %v2568_v0, %v12574_v21 }
 0xa51   :  { %2591 = vst [vmem:[%s15496_s5 + $0x80] sm:$0xff] %v2575_v37  ;;  %2592 = vst [vmem:[%s15496_s5 + $0x88] sm:$0xff] %v2576_v44  ;;  %v2555_v39 = vrot.slane %v2554_v29, 1  ;;  %v12660_v24 = vmul.f32 %v2502_v18, %v12175_v52  ;;  %v12663_v38 = vmul.f32 %v2501_v27, %v12183_v50  ;;  %v11228_v45 = vpack.c.bf16 %v2576_v44, %v2575_v37 }
 0xa52   :  { %2593 = vst [vmem:[%s15496_s5 + $0x90] sm:$0xff] %v2577_v20  ;;  %2594 = vst [vmem:[%s15496_s5 + $0x98] sm:$0xff] %v2578_v16  ;;  %v12677_v42 = vpack.c.bf16 %v2578_v16, %v2577_v20  ;;  %v12679_v14 = vpack.c.bf16 %v2580_v61, %v2579_v62  ;;  %v12681_v21 = vpack.c.bf16 %v2582_v10, %v2581_v46  ;;  %v2007_v0 = vmul.f32 0.001, %v1999_v48 }
 0xa53   :  { %2597 = vst [vmem:[%s15496_s5 + $0xb0] sm:$0xff] %v2581_v46  ;;  %2595 = vst [vmem:[%s15496_s5 + $0xa0] sm:$0xff] %v2579_v62  ;;  %v2556_v5 = vadd.f32 %v2555_v39, %v2554_v29  ;;  %v2533_v32 = vmul.f32 %v12663_v38, %v12663_v38  ;;  %11229 = vmatprep.subr.bf16.mxu0 %v11228_v45  ;;  %11262 = vmatpush3.bf16.msra.mxu1 %v11228_v45  ;;  %v2001_v45 = vld [vmem:[%s15496_s5 + $0x18] sm:$0xff] }
 0xa54   :  { %2596 = vst [vmem:[%s15496_s5 + $0xa8] sm:$0xff] %v2580_v61  ;;  %2598 = vst [vmem:[%s15496_s5 + $0xb8] sm:$0xff] %v2582_v10  ;;  %11263 = vmatprep.subr.bf16.mxu1 %v15503_v4  ;;  %v2534_v30 = vmul.f32 %v12660_v24, %v12660_v24  ;;  %v2006_v10 = vmul.f32 0.001, %v1998_v6 }
 0xa55   :  { %11543 = vrsqrt.f32 %v2556_v5  ;;  %v2558_v1 = vadd.f32 %v2557_v41, %v2533_v32  ;;  %vm2569_vm14 = vcmp.gt.f32.partialorder %v2556_v5, 0.0 }
 0xa57   :  { %v2559_v43 = vadd.f32 %v2558_v1, %v2534_v30  ;;  %11265 = vmatpush3.bf16.msra.mxu1 %v12677_v42  ;;  %v2000_v30 = vld [vmem:[%s15496_s5 + $0x10] sm:$0xff] }
 0xa58   :  { %11266 = vmatprep.subr.bf16.mxu1 %v15503_v4 }
 0xa59   :  { %v2560_v3 = vrot.slane %v2559_v43, 4 }
 0xa5b   :  { %v2561_v57 = vadd.f32 %v2560_v3, %v2559_v43  ;;  %11268 = vmatpush3.bf16.msra.mxu1 %v12679_v14 }
 0xa5c   :  { %11269 = vmatprep.subr.bf16.mxu1 %v15503_v4 }
 0xa5d   :  { %v2562_v7 = vrot.slane %v2561_v57, 2 }
 0xa5f   :  { %v11544_v12 = vpop.eup %11543  ;;  %v2563_v25 = vadd.f32 %v2562_v7, %v2561_v57  ;;  %v10588_v41 = vpop.f32.mrb[20].mxu0  ;;  %11271 = vmatpush3.bf16.msra.mxu1 %v12681_v21  ;;  %v2009_v57 = vmul.f32 0.001, %v2001_v45 }
 0xa60   :  { %v2571_v29 = vsel %vm2569_vm14, %v11544_v12, 0.0  ;;  %v1983_v18 = vmul.f32 0.5, %v10588_v41  ;;  %v1903_v27 = vpop.f32.mrb[21].mxu0 }
 0xa61   :  { %v2583_v37 = vmul.f32 %v2571_v29, %v12595_v34  ;;  %v2584_v44 = vmul.f32 %v2571_v29, %v12592_v19  ;;  %v2585_v20 = vmul.f32 %v2571_v29, %v12613_v53  ;;  %v2586_v16 = vmul.f32 %v2571_v29, %v12610_v13 }
 0xa62   :  { %v2564_v62 = vrot.slane %v2563_v25, 1  ;;  %v2015_v61 = vsub.f32 %v1983_v18, %v2007_v0  ;;  %v1982_v46 = vmul.f32 0.5, %v1903_v27 }
 0xa63   :  { %2601 = vst [vmem:[%s15496_s5 + $0xd0] sm:$0xff] %v2585_v20  ;;  %2599 = vst [vmem:[%s15496_s5 + $0xc0] sm:$0xff] %v2583_v37  ;;  %v12715_v19 = vpack.c.bf16 %v2584_v44, %v2583_v37  ;;  %v12717_v34 = vpack.c.bf16 %v2586_v16, %v2585_v20  ;;  %v2002_v37 = vld [vmem:[%s15496_s5 + $0x20] sm:$0xff] }
 0xa64   :  { %2600 = vst [vmem:[%s15496_s5 + $0xc8] sm:$0xff] %v2584_v44  ;;  %2602 = vst [vmem:[%s15496_s5 + $0xd8] sm:$0xff] %v2586_v16  ;;  %v2565_v13 = vadd.f32 %v2564_v62, %v2563_v25  ;;  %v2023_v53 = vmul.f32 %v2015_v61, %v12296_v22  ;;  %v2014_v39 = vsub.f32 %v1982_v46, %v2006_v10  ;;  %v2008_v25 = vmul.f32 0.001, %v2000_v30 }
 0xa66   :  { %11545 = vrsqrt.f32 %v2565_v13  ;;  %v2031_v5 = vadd.f32 %v2023_v53, %v1999_v48  ;;  %v2022_v32 = vmul.f32 %v2014_v39, %v12296_v22  ;;  %vm2572_vm4 = vcmp.gt.f32.partialorder %v2565_v13, 0.0 }
 0xa67   :  { %v10591_v1 = vpop.f32.mrb[22].mxu0  ;;  %v2010_v53 = vmul.f32 0.001, %v2002_v37 }
 0xa68   :  { %2039 = vst [vmem:[%s15496_s5 + $0x8] sm:$0xff] %v2031_v5  ;;  %v2030_v43 = vadd.f32 %v2022_v32, %v1998_v6  ;;  %v1985_v3 = vmul.f32 0.5, %v10591_v1  ;;  %v1913_v7 = vpop.f32.mrb[23].mxu0  ;;  %v2003_v6 = vld [vmem:[%s15496_s5 + $0x28] sm:$0xff] }
 0xa69   :  { %v1984_v12 = vmul.f32 0.5, %v1913_v7  ;;  %v2011_v61 = vmul.f32 0.001, %v2003_v6 }
 0xa6a   :  { %2038 = vst [vmem:[%s15496_s5] sm:$0xff] %v2030_v43  ;;  %v2017_v48 = vsub.f32 %v1985_v3, %v2009_v57  ;;  %v11230_v41 = vpack.c.bf16 %v2031_v5, %v2030_v43  ;;  %v2005_v43 = vld [vmem:[%s15496_s5 + $0x38] sm:$0xff]  ;;  %v2004_v3 = vld [vmem:[%s15496_s5 + $0x30] sm:$0xff] }
 0xa6b   :  { %v2016_v29 = vsub.f32 %v1984_v12, %v2008_v25  ;;  %v2013_v25 = vmul.f32 0.001, %v2005_v43 }
 0xa6c   :  { %v2025_v18 = vmul.f32 %v2017_v48, %v12296_v22  ;;  %11231 = vmatpush3.bf16.msra.mxu0 %v11230_v41 }
 0xa6d   :  { %v2024_v0 = vmul.f32 %v2016_v29, %v12296_v22  ;;  %11233 = vmatprep.subr.bf16.mxu0 %v12677_v42  ;;  %v2012_v29 = vmul.f32 0.001, %v2004_v3 }
 0xa6e   :  { %v2033_v27 = vadd.f32 %v2025_v18, %v2001_v45 }
 0xa6f   :  { %v2032_v44 = vadd.f32 %v2024_v0, %v2000_v30  ;;  %v10594_v20 = vpop.f32.mrb[24].mxu0 }
 0xa70   :  { %v11546_v16 = vpop.eup %11545  ;;  %2041 = vst [vmem:[%s15496_s5 + $0x18] sm:$0xff] %v2033_v27  ;;  %v1987_v62 = vmul.f32 0.5, %v10594_v20  ;;  %v1923_v46 = vpop.f32.mrb[25].mxu0 }
 0xa71   :  { %v2574_v10 = vsel %vm2572_vm4, %v11546_v16, 0.0  ;;  %2040 = vst [vmem:[%s15496_s5 + $0x10] sm:$0xff] %v2032_v44  ;;  %v1986_v42 = vmul.f32 0.5, %v1923_v46  ;;  %v11234_v39 = vpack.c.bf16 %v2033_v27, %v2032_v44  ;;  %v2047_v44 = vld [vmem:[%s15496_s5 + $0x48] sm:$0xff]  ;;  %v2046_v16 = vld [vmem:[%s15496_s5 + $0x40] sm:$0xff] }
 0xa72   :  { %v12749_v45 = vmul.f32 %v2574_v10, %v12631_v35  ;;  %v12752_v13 = vmul.f32 %v2574_v10, %v12628_v17  ;;  %v12755_v5 = vmul.f32 %v2574_v10, %v12663_v38  ;;  %v12758_v32 = vmul.f32 %v2574_v10, %v12660_v24 }
 0xa73   :  { %v2019_v30 = vsub.f32 %v1987_v62, %v2011_v61  ;;  %v2018_v1 = vsub.f32 %v1986_v42, %v2010_v53  ;;  %11235 = vmatpush3.bf16.msra.mxu0 %v11234_v39  ;;  %v2055_v10 = vmul.f32 0.001, %v2047_v44  ;;  %v2054_v53 = vmul.f32 0.001, %v2046_v16 }
 0xa74   :  { %2603 = vst [vmem:[%s15496_s5 + $0xe0] sm:$0xff] %v12749_v45  ;;  %2604 = vst [vmem:[%s15496_s5 + $0xe8] sm:$0xff] %v12752_v13  ;;  %11237 = vmatprep.subr.bf16.mxu0 %v12679_v14  ;;  %v11252_v17 = vpack.c.bf16 %v12752_v13, %v12749_v45  ;;  %v11256_v35 = vpack.c.bf16 %v12758_v32, %v12755_v5  ;;  %v11598_v45 = vld [vmem:[%s15498_s2 + $0x8] sm:$0xff] }
 0xa75   :  { %2605 = vst [vmem:[%s15496_s5 + $0xf0] sm:$0xff] %v12755_v5  ;;  %2606 = vst [vmem:[%s15496_s5 + $0xf8] sm:$0xff] %v12758_v32  ;;  %v2027_v24 = vmul.f32 %v2019_v30, %v12296_v22  ;;  %v2026_v38 = vmul.f32 %v2018_v1, %v12296_v22  ;;  %v2609_v13 = vmul.f32 %v11598_v45, %v11873_v59 }
 0xa77   :  { %v2035_v57 = vadd.f32 %v2027_v24, %v2003_v6  ;;  %v2034_v14 = vadd.f32 %v2026_v38, %v2002_v37  ;;  %v10597_v7 = vpop.f32.mrb[26].mxu0  ;;  %v2610_v5 = vsub.f32 %v2609_v13, %v12443_v28 }
 0xa78   :  { %v1989_v12 = vmul.f32 0.5, %v10597_v7  ;;  %v1933_v48 = vpop.f32.mrb[27].mxu0 }
 0xa79   :  { %2043 = vst [vmem:[%s15496_s5 + $0x28] sm:$0xff] %v2035_v57  ;;  %2042 = vst [vmem:[%s15496_s5 + $0x20] sm:$0xff] %v2034_v14  ;;  %v1988_v41 = vmul.f32 0.5, %v1933_v48  ;;  %v11238_v18 = vpack.c.bf16 %v2035_v57, %v2034_v14  ;;  %v2048_v57 = vld [vmem:[%s15496_s5 + $0x50] sm:$0xff]  ;;  %v2611_v32 = vmul.f32 0.005, %v2610_v5 }
 0xa7a   :  { %v2021_v0 = vsub.f32 %v1989_v12, %v2013_v25 }
 0xa7b   :  { %v2020_v27 = vsub.f32 %v1988_v41, %v2012_v29  ;;  %11239 = vmatpush3.bf16.msra.mxu0 %v11238_v18 }
 0xa7c   :  { %v2029_v6 = vmul.f32 %v2021_v0, %v12296_v22  ;;  %11241 = vmatprep.subr.bf16.mxu0 %v12681_v21  ;;  %v2056_v0 = vmul.f32 0.001, %v2048_v57 }
 0xa7d   :  { %v2028_v37 = vmul.f32 %v2020_v27, %v12296_v22 }
 0xa7e   :  { %v2037_v20 = vadd.f32 %v2029_v6, %v2005_v43  ;;  %v2049_v43 = vld [vmem:[%s15496_s5 + $0x58] sm:$0xff] }
 0xa7f   :  { %v2036_v62 = vadd.f32 %v2028_v37, %v2004_v3  ;;  %v10600_v61 = vpop.f32.mrb[28].mxu0  ;;  %v2057_v48 = vmul.f32 0.001, %v2049_v43 }
 0xa80   :  { %2045 = vst [vmem:[%s15496_s5 + $0x38] sm:$0xff] %v2037_v20  ;;  %v1991_v46 = vmul.f32 0.5, %v10600_v61  ;;  %v1943_v21 = vpop.f32.mrb[29].mxu0  ;;  %v2051_v61 = vld [vmem:[%s15496_s5 + $0x68] sm:$0xff] }
 0xa81   :  { %2044 = vst [vmem:[%s15496_s5 + $0x30] sm:$0xff] %v2036_v62  ;;  %v1990_v42 = vmul.f32 0.5, %v1943_v21  ;;  %v11242_v39 = vpack.c.bf16 %v2037_v20, %v2036_v62 }
 0xa82   :  { %v2063_v30 = vsub.f32 %v1991_v46, %v2055_v10  ;;  %v2050_v10 = vld [vmem:[%s15496_s5 + $0x60] sm:$0xff] }
 0xa83   :  { %v2062_v1 = vsub.f32 %v1990_v42, %v2054_v53  ;;  %11243 = vmatpush3.bf16.msra.mxu0 %v11242_v39  ;;  %v2059_v39 = vmul.f32 0.001, %v2051_v61 }
 0xa84   :  { %v2071_v24 = vmul.f32 %v2063_v30, %v12352_v31  ;;  %11245 = vmatprep.subr.bf16.mxu0 %v12715_v19 }
 0xa85   :  { %v2070_v38 = vmul.f32 %v2062_v1, %v12352_v31 }
 0xa86   :  { %v2079_v3 = vadd.f32 %v2071_v24, %v2047_v44 }
 0xa87   :  { %v2078_v14 = vadd.f32 %v2070_v38, %v2046_v16  ;;  %v10603_v7 = vpop.f32.mrb[30].mxu0 }
 0xa88   :  { %v12819_v12 = vmax.f32 %v2079_v3, 0.0  ;;  %v1993_v25 = vmul.f32 0.5, %v10603_v7  ;;  %v1953_v41 = vpop.f32.mrb[31].mxu0  ;;  %v2058_v3 = vmul.f32 0.001, %v2050_v10 }
 0xa89   :  { %v12821_v29 = vmax.f32 %v2078_v14, 0.0  ;;  %v1992_v18 = vmul.f32 0.5, %v1953_v41 }
 0xa8a   :  { %v2095_v27 = vmul.f32 %v12819_v12, %v12819_v12  ;;  %v2065_v6 = vsub.f32 %v1993_v25, %v2057_v48 }
 0xa8b   :  { %v2094_v37 = vmul.f32 %v12821_v29, %v12821_v29  ;;  %v2064_v44 = vsub.f32 %v1992_v18, %v2056_v0 }
 0xa8c   :  { %v2073_v20 = vmul.f32 %v2065_v6, %v12352_v31 }
 0xa8d   :  { %v2102_v16 = vadd.f32 %v2095_v27, %v2094_v37  ;;  %v2072_v62 = vmul.f32 %v2064_v44, %v12352_v31  ;;  %v2052_v27 = vld [vmem:[%s15496_s5 + $0x70] sm:$0xff] }
 0xa8e   :  { %v2081_v46 = vadd.f32 %v2073_v20, %v2049_v43 }
 0xa8f   :  { %v2080_v21 = vadd.f32 %v2072_v62, %v2048_v57  ;;  %v10606_v42 = vpop.f32.mrb[32].mxu0  ;;  %v2053_v57 = vld [vmem:[%s15496_s5 + $0x78] sm:$0xff] }
 0xa90   :  { %v1995_v53 = vmul.f32 0.5, %v10606_v42  ;;  %v1963_v30 = vpop.f32.mrb[33].mxu0  ;;  %v2089_v1 = vmax.f32 %v2081_v46, 0.0  ;;  %v2061_v62 = vmul.f32 0.001, %v2053_v57 }
 0xa91   :  { %v2088_v24 = vmax.f32 %v2080_v21, 0.0  ;;  %v1994_v38 = vmul.f32 0.5, %v1963_v30 }
 0xa92   :  { %v2067_v14 = vsub.f32 %v1995_v53, %v2059_v39  ;;  %v2097_v41 = vmul.f32 %v2089_v1, %v2089_v1  ;;  %v2060_v53 = vmul.f32 0.001, %v2052_v27 }
 0xa93   :  { %v2096_v7 = vmul.f32 %v2088_v24, %v2088_v24  ;;  %v2066_v25 = vsub.f32 %v1994_v38, %v2058_v3 }
 0xa94   :  { %v2075_v48 = vmul.f32 %v2067_v14, %v12352_v31 }
 0xa95   :  { %v2103_v43 = vadd.f32 %v2102_v16, %v2096_v7  ;;  %v2074_v18 = vmul.f32 %v2066_v25, %v12352_v31 }
 0xa96   :  { %v2083_v0 = vadd.f32 %v2075_v48, %v2051_v61 }
 0xa97   :  { %v2082_v6 = vadd.f32 %v2074_v18, %v2050_v10  ;;  %v2104_v37 = vadd.f32 %v2103_v43, %v2097_v41  ;;  %v10609_v44 = vpop.f32.mrb[34].mxu0 }
 0xa98   :  { %v1997_v20 = vmul.f32 0.5, %v10609_v44  ;;  %v1973_v46 = vpop.f32.mrb[35].mxu0  ;;  %v2091_v21 = vmax.f32 %v2083_v0, 0.0 }
 0xa99   :  { %v2090_v42 = vmax.f32 %v2082_v6, 0.0  ;;  %v1996_v16 = vmul.f32 0.5, %v1973_v46 }
 0xa9a   :  { %v2069_v39 = vsub.f32 %v1997_v20, %v2061_v62  ;;  %v2099_v61 = vmul.f32 %v2091_v21, %v2091_v21 }
 0xa9b   :  { %v2098_v30 = vmul.f32 %v2090_v42, %v2090_v42  ;;  %v2068_v38 = vsub.f32 %v1996_v16, %v2060_v53 }
 0xa9c   :  { %v2077_v3 = vmul.f32 %v2069_v39, %v12352_v31 }
 0xa9d   :  { %v2105_v14 = vadd.f32 %v2104_v37, %v2098_v30  ;;  %v2076_v7 = vmul.f32 %v2068_v38, %v12352_v31 }
 0xa9e   :  { %v2085_v25 = vadd.f32 %v2077_v3, %v2053_v57 }
 0xa9f   :  { %v2084_v10 = vadd.f32 %v2076_v7, %v2052_v27  ;;  %v2106_v48 = vadd.f32 %v2105_v14, %v2099_v61 }
 0xaa0   :  { %v2093_v41 = vmax.f32 %v2085_v25, 0.0 }
 0xaa1   :  { %v2092_v43 = vmax.f32 %v2084_v10, 0.0 }
 0xaa2   :  { %v2101_v44 = vmul.f32 %v2093_v41, %v2093_v41 }
 0xaa3   :  { %v2100_v18 = vmul.f32 %v2092_v43, %v2092_v43 }
 0xaa5   :  { %v2107_v0 = vadd.f32 %v2106_v48, %v2100_v18 }
 0xaa7   :  { %v2108_v6 = vadd.f32 %v2107_v0, %v2101_v44 }
 0xaa9   :  { %v2109_v46 = vrot.slane %v2108_v6, 4 }
 0xaab   :  { %v2110_v4 = vadd.f32 %v2109_v46, %v2108_v6 }
 0xaad   :  { %v2111_v20 = vrot.slane %v2110_v4, 2 }
 0xaaf   :  { %v2112_v62 = vadd.f32 %v2111_v20, %v2110_v4 }
 0xab1   :  { %v2113_v16 = vrot.slane %v2112_v62, 1 }
 0xab3   :  { %v2114_v53 = vadd.f32 %v2113_v16, %v2112_v62 }
 0xab5   :  { %11547 = vrsqrt.f32 %v2114_v53  ;;  %vm2115_vm9 = vcmp.gt.f32.partialorder %v2114_v53, 0.0 }
 0xabf   :  { %v11548_v39 = vpop.eup %11547 }
 0xac0   :  { %v2117_v37 = vsel %vm2115_vm9, %v11548_v39, 0.0 }
 0xac1   :  { %v2118_v57 = vmul.f32 %v2117_v37, %v12821_v29  ;;  %v2119_v27 = vmul.f32 %v2117_v37, %v12819_v12  ;;  %v2120_v30 = vmul.f32 %v2117_v37, %v2088_v24  ;;  %v2121_v38 = vmul.f32 %v2117_v37, %v2089_v1  ;;  %v9592_v24 = vld [vmem:[%s15497_s0 + $0x10] sm:$0xff] }
 0xac2   :  { %v2122_v3 = vmul.f32 %v2117_v37, %v2090_v42  ;;  %v2123_v61 = vmul.f32 %v2117_v37, %v2091_v21  ;;  %v2124_v14 = vmul.f32 %v2117_v37, %v2092_v43  ;;  %v2125_v7 = vmul.f32 %v2117_v37, %v2093_v41 }
 0xac3   :  { %2126 = vst [vmem:[%s15496_s5 + $0x40] sm:$0xff] %v2118_v57  ;;  %2127 = vst [vmem:[%s15496_s5 + $0x48] sm:$0xff] %v2119_v27  ;;  %v11246_v4 = vpack.c.bf16 %v2119_v27, %v2118_v57  ;;  %v11250_v12 = vpack.c.bf16 %v2121_v38, %v2120_v30  ;;  %v15512_v21 = vmov 0.0|0.0  }
 0xac4   :  { %2128 = vst [vmem:[%s15496_s5 + $0x50] sm:$0xff] %v2120_v30  ;;  %2129 = vst [vmem:[%s15496_s5 + $0x58] sm:$0xff] %v2121_v38  ;;  %v11254_v29 = vpack.c.bf16 %v2123_v61, %v2122_v3  ;;  %v11258_v1 = vpack.c.bf16 %v2125_v7, %v2124_v14 }
 0xac5   :  { %2132 = vst [vmem:[%s15496_s5 + $0x70] sm:$0xff] %v2124_v14  ;;  %2130 = vst [vmem:[%s15496_s5 + $0x60] sm:$0xff] %v2122_v3  ;;  %11247 = vmatpush3.bf16.msra.mxu0 %v11246_v4 }
 0xac6   :  { %2131 = vst [vmem:[%s15496_s5 + $0x68] sm:$0xff] %v2123_v61  ;;  %2133 = vst [vmem:[%s15496_s5 + $0x78] sm:$0xff] %v2125_v7  ;;  %11249 = vmatprep.subr.bf16.mxu0 %v12717_v34 }
 0xac9   :  { %11251 = vmatpush3.bf16.msra.mxu0 %v11250_v12 }
 0xaca   :  { %11253 = vmatprep.subr.bf16.mxu0 %v11252_v17 }
 0xacd   :  { %11255 = vmatpush3.bf16.msra.mxu0 %v11254_v29 }
 0xace   :  { %11257 = vmatprep.subr.bf16.mxu0 %v11256_v35 }
 0xad1   :  { %11259 = vmatpush3.bf16.msra.mxu0 %v11258_v1 }
 0xad2   :  { %11272 = vmatprep.subr.bf16.mxu0 %v15512_v21 }
 0xad4   :  { %2710 = vmatmul.mubr.f32.vlgmr.msra.gmra.mrb[36].mxu0 %v9592_v24 }
 0xad5   :  { %11274 = vmatpush3.bf16.msra.mxu0 %v12715_v19  ;;  %10663 = vmatprep.mubr.msk.f32.mxu0 %vm11607_vm0, %v15511_v8  ;;  %v12893_v19 = vadd.f32 %v2611_v32, %v12443_v28 }
 0xad6   :  { %11275 = vmatprep.subr.bf16.mxu0 %v15512_v21 }
 0xad9   :  { %11277 = vmatpush3.bf16.msra.mxu0 %v12717_v34 }
 0xba7   :  { %v10006_v17 = vpop.f32.mrb[36].mxu0 }
 0xba8   :  { %v10007_v35 = vpop.f32.mrb[37].mxu0 }
 0xba9   :  { %v10008_v42 = vadd.f32 %v10007_v35, %v10006_v17 }
 0xbab   :  { %v2715_v25 = vsub.f32 %v10008_v42, %v12893_v19 }
 0xbad   :  { %v2716_v10 = vmax.f32 %v2715_v25, 0.0 }
 0xbaf   :  { %v2717_v48 = vsub.f32 %v2716_v10, %v11598_v45 }
 0xbb1   :  { %v2718_v34 = vmul.f32 %v2717_v48, %v11881_v11 }
 0xbb3   :  { %v2719_v41 = vadd.f32 %v11598_v45, %v2718_v34 }
 0xbb5   :  { %v2720_v43 = vsub.f32 %v2719_v41, %v11598_v45 }
 0xbb7   :  { %10653 = vmatmul.mubr.msk.f32.vlgmr.msra.gmra.mrb[40].mxu1 %vm429_vm6, %v2720_v43  ;;  %v2721_v18 = vmul.f32 %v11858_v54, %v2720_v43 }
 0xbb9   :  { %v2722_v46 = vadd.f32 %v11598_v45, %v2721_v18 }
 0xc8a   :  { %v2800_v44 = vpop.f32.mrb[40].mxu1 }
 0xc8b   :  { %v2804_v0 = vadd.f32 %v2800_v44, %v2715_v25  ;;  %v10654_v6 = vpop.f32.mrb[41].mxu1 }
 0xc8d   :  { %v2805_v20 = vmax.f32 %v2804_v0, 0.0 }
 0xc8f   :  { %v2806_v28 = vsub.f32 %v2805_v20, %v2722_v46 }
 0xc91   :  { %v2807_v62 = vmul.f32 %v2806_v28, %v11881_v11 }
 0xc93   :  { %v2808_v16 = vadd.f32 %v2807_v62, %v2722_v46 }
 0xc95   :  { %v2809_v53 = vsub.f32 %v2808_v16, %v2722_v46 }
 0xc97   :  { %2817 = vrot.lane.b32.xlu1 %v2809_v53, %s11608_s1  ;;  %v2810_v39 = vmul.f32 %v11863_v55, %v2809_v53 }
 0xc99   :  { %v2811_v37 = vadd.f32 %v2810_v39, %v2722_v46 }
 0xd09   :  { %v2818_v57 = vpop.permute.xlu1 %2817 }
 0xd0a   :  { %10664 = vmatmul.mubr.msk.f32.vlgmr.msra.gmra.mrb[38].mxu0 %vm518_vm7, %v2818_v57 }
 0xddd   :  { %v2887_v27 = vpop.f32.mrb[38].mxu0 }
 0xdde   :  { %v2891_v30 = vadd.f32 %v2887_v27, %v2804_v0  ;;  %v10665_v38 = vpop.f32.mrb[39].mxu0 }
 0xde0   :  { %v2892_v3 = vmax.f32 %v2891_v30, 0.0 }
 0xde2   :  { %v2893_v61 = vsub.f32 %v2892_v3, %v2811_v37 }
 0xde4   :  { %v2894_v14 = vmul.f32 %v2893_v61, %v11881_v11 }
 0xde6   :  { %v2895_v7 = vadd.f32 %v2894_v14, %v2811_v37 }
 0xde8   :  { %v2896_v4 = vsub.f32 %v2895_v7, %v2811_v37  ;;  %v3525_v7 = vld [vmem:[%s15496_s5 + $0x88] sm:$0xff] }
 0xdea   :  { %v2897_v12 = vmul.f32 %v11868_v56, %v2896_v4  ;;  %v3524_v4 = vld [vmem:[%s15496_s5 + $0x80] sm:$0xff] }
 0xdec   :  { %v12905_v29 = vadd.f32 %v2897_v12, %v2811_v37 }
 0xdee   :  { %3283 = vxpose.xlu1.b32.start.end [1/1] (short) %v12905_v29, 128  ;;  %2902 = vrot.lane.b32.xlu0 %v12905_v29, %s11608_s1  ;;  %9595 = vst [vmem:[%s15498_s2 + $0x10] sm:$0xff] %v12905_v29 }
 0xdef   :  { %10666 = vmatprep.subr.mxu1 %v12905_v29  ;;  %10692 = vmatprep.subr.mxu0 %v12905_v29 }
 0xdf0   :  { %10667 = vmatpush3.msra.mxu1 %v12905_v29  ;;  %10693 = vmatpush3.msra.mxu0 %v12905_v29 }
 0xdf1   :  { %11310 = vmatprep.subr.bf16.mxu0 %v15512_v21 }
 0xe60   :  { %v2903_v1 = vpop.permute.xlu0 %2902 }
 0xe61   :  { %v2905_v45 = vsel %vm429_vm6, %v9592_v24, %v2903_v1 }
 0xe62   :  { %2906 = vxpose.xlu1.b32.start.end [1/1] (short) %v2905_v45, 128  ;;  %v3541_v45 = vmul.f32 0.001, %v3525_v7 }
 0xe6e   :  { %v3299_v13 = vpop.trf.xlu1 }
 0xe6f   :  { %10694 = vmatprep.mubr.msk.f32.mxu0 %vm637_vm8, %v3299_v13 }
 0xe72   :  { %v3300_v5 = vpop.trf.xlu1 }
 0xe73   :  { %10695 = vmatmul.mubr.msk.f32.vlgmr.msra.gmra.mrb[40].mxu0 %vm637_vm8, %v3300_v5 }
 0xe76   :  { %v3301_v32 = vpop.trf.xlu1 }
 0xe77   :  { %10697 = vmatprep.mubr.msk.f32.mxu0 %vm637_vm8, %v3301_v32  ;;  %v3540_v32 = vmul.f32 0.001, %v3524_v4 }
 0xe7a   :  { %v3302_v17 = vpop.trf.xlu1 }
 0xe7b   :  { %10698 = vmatmul.mubr.msk.f32.gmra.mrb[42].mxu0 %vm637_vm8, %v3302_v17 }
 0xe7e   :  { %v3303_v35 = vpop.trf.xlu1 }
 0xe7f   :  { %10700 = vmatprep.mubr.msk.f32.mxu0 %vm637_vm8, %v3303_v35 }
 0xe82   :  { %v3304_v42 = vpop.trf.xlu1 }
 0xe83   :  { %10701 = vmatmul.mubr.msk.f32.gmra.mrb[44].mxu0 %vm637_vm8, %v3304_v42 }
 0xe86   :  { %v3305_v24 = vpop.trf.xlu1 }
 0xe87   :  { %10703 = vmatprep.mubr.msk.f32.mxu0 %vm637_vm8, %v3305_v24 }
 0xe8a   :  { %v3306_v25 = vpop.trf.xlu1 }
 0xe8b   :  { %10704 = vmatmul.mubr.msk.f32.gmra.mrb[46].mxu0 %vm637_vm8, %v3306_v25 }
 0xe8e   :  { %v3307_v10 = vpop.trf.xlu1 }
 0xe8f   :  { %10706 = vmatprep.mubr.msk.f32.mxu0 %vm637_vm8, %v3307_v10  ;;  %v3526_v10 = vld [vmem:[%s15496_s5 + $0x90] sm:$0xff] }
 0xe92   :  { %v3308_v48 = vpop.trf.xlu1 }
 0xe93   :  { %10707 = vmatmul.mubr.msk.f32.gmra.mrb[48].mxu0 %vm637_vm8, %v3308_v48 }
 0xe96   :  { %v3309_v34 = vpop.trf.xlu1 }
 0xe97   :  { %10709 = vmatprep.mubr.msk.f32.mxu0 %vm637_vm8, %v3309_v34 }
 0xe9a   :  { %v3310_v41 = vpop.trf.xlu1 }
 0xe9b   :  { %10710 = vmatmul.mubr.msk.f32.gmra.mrb[50].mxu0 %vm637_vm8, %v3310_v41 }
 0xe9e   :  { %v3311_v43 = vpop.trf.xlu1 }
 0xe9f   :  { %10712 = vmatprep.mubr.msk.f32.mxu0 %vm637_vm8, %v3311_v43 }
 0xea2   :  { %v3312_v18 = vpop.trf.xlu1 }
 0xea3   :  { %10713 = vmatmul.mubr.msk.f32.gmra.mrb[52].mxu0 %vm637_vm8, %v3312_v18 }
 0xea6   :  { %v3313_v44 = vpop.trf.xlu1 }
 0xea7   :  { %10715 = vmatprep.mubr.msk.f32.mxu0 %vm637_vm8, %v3313_v44 }
 0xeaa   :  { %v3314_v0 = vpop.trf.xlu1 }
 0xeab   :  { %10716 = vmatmul.mubr.msk.f32.gmra.mrb[54].mxu0 %vm637_vm8, %v3314_v0 }
 0xeac   :  { %10734 = vmatprep.mubr.msk.f32.mxu0 %vm11607_vm0, %v15511_v8 }
 0xee2   :  { %v2922_v6 = vpop.trf.xlu1 }
 0xee3   :  { %10668 = vmatprep.mubr.msk.f32.mxu1 %vm637_vm8, %v2922_v6 }
 0xee6   :  { %v2923_v46 = vpop.trf.xlu1 }
 0xee7   :  { %10669 = vmatmul.mubr.msk.f32.vlgmr.msra.gmra.mrb[42].mxu1 %vm637_vm8, %v2923_v46  ;;  %v3542_v46 = vmul.f32 0.001, %v3526_v10 }
 0xeea   :  { %v2924_v20 = vpop.trf.xlu1 }
 0xeeb   :  { %10671 = vmatprep.mubr.msk.f32.mxu1 %vm637_vm8, %v2924_v20 }
 0xeee   :  { %v2925_v28 = vpop.trf.xlu1 }
 0xeef   :  { %10672 = vmatmul.mubr.msk.f32.gmra.mrb[44].mxu1 %vm637_vm8, %v2925_v28 }
 0xef2   :  { %v2926_v62 = vpop.trf.xlu1 }
 0xef3   :  { %10674 = vmatprep.mubr.msk.f32.mxu1 %vm637_vm8, %v2926_v62 }
 0xef6   :  { %v2927_v16 = vpop.trf.xlu1 }
 0xef7   :  { %10675 = vmatmul.mubr.msk.f32.gmra.mrb[46].mxu1 %vm637_vm8, %v2927_v16 }
 0xefa   :  { %v2928_v53 = vpop.trf.xlu1 }
 0xefb   :  { %10677 = vmatprep.mubr.msk.f32.mxu1 %vm637_vm8, %v2928_v53 }
 0xefe   :  { %v2929_v39 = vpop.trf.xlu1 }
 0xeff   :  { %10678 = vmatmul.mubr.msk.f32.gmra.mrb[48].mxu1 %vm637_vm8, %v2929_v39 }
 0xf02   :  { %v2930_v37 = vpop.trf.xlu1 }
 0xf03   :  { %10680 = vmatprep.mubr.msk.f32.mxu1 %vm637_vm8, %v2930_v37 }
 0xf06   :  { %v2931_v57 = vpop.trf.xlu1 }
 0xf07   :  { %10681 = vmatmul.mubr.msk.f32.gmra.mrb[50].mxu1 %vm637_vm8, %v2931_v57 }
 0xf0a   :  { %v2932_v27 = vpop.trf.xlu1 }
 0xf0b   :  { %10683 = vmatprep.mubr.msk.f32.mxu1 %vm637_vm8, %v2932_v27  ;;  %v3529_v27 = vld [vmem:[%s15496_s5 + $0xa8] sm:$0xff] }
 0xf0e   :  { %v2933_v30 = vpop.trf.xlu1 }
 0xf0f   :  { %10684 = vmatmul.mubr.msk.f32.gmra.mrb[52].mxu1 %vm637_vm8, %v2933_v30 }
 0xf12   :  { %v2934_v38 = vpop.trf.xlu1 }
 0xf13   :  { %10686 = vmatprep.mubr.msk.f32.mxu1 %vm637_vm8, %v2934_v38 }
 0xf16   :  { %v2935_v3 = vpop.trf.xlu1 }
 0xf17   :  { %10687 = vmatmul.mubr.msk.f32.gmra.mrb[54].mxu1 %vm637_vm8, %v2935_v3  ;;  %v3528_v3 = vld [vmem:[%s15496_s5 + $0xa0] sm:$0xff] }
 0xf1a   :  { %v2936_v61 = vpop.trf.xlu1 }
 0xf1b   :  { %10689 = vmatprep.mubr.msk.f32.mxu1 %vm637_vm8, %v2936_v61 }
 0xf1e   :  { %v2937_v14 = vpop.trf.xlu1 }
 0xf1f   :  { %10690 = vmatmul.mubr.msk.f32.gmra.mrb[56].mxu1 %vm637_vm8, %v2937_v14 }
 0xf20   :  { %3858 = vmatprep.mubr.f32.mxu1 %v12905_v29  ;;  %v3527_v29 = vld [vmem:[%s15496_s5 + $0x98] sm:$0xff] }
 0xf21   :  { %v3543_v18 = vmul.f32 0.001, %v3527_v29 }
 0xf46   :  { %v10696_v12 = vpop.f32.mrb[40].mxu0 }
 0xf47   :  { %v3509_v1 = vmul.f32 0.5, %v10696_v12  ;;  %v3429_v13 = vpop.f32.mrb[41].mxu0 }
 0xf48   :  { %v3508_v5 = vmul.f32 0.5, %v3429_v13 }
 0xf49   :  { %v3557_v17 = vsub.f32 %v3509_v1, %v3541_v45  ;;  %v3545_v1 = vmul.f32 0.001, %v3529_v27 }
 0xf4a   :  { %v3556_v35 = vsub.f32 %v3508_v5, %v3540_v32 }
 0xf4b   :  { %v3573_v42 = vmul.f32 0.001, %v3557_v17  ;;  %v3544_v17 = vmul.f32 0.001, %v3528_v3 }
 0xf4c   :  { %v3572_v24 = vmul.f32 0.001, %v3556_v35 }
 0xf4d   :  { %v3589_v25 = vadd.f32 %v3573_v42, %v3525_v7 }
 0xf4e   :  { %v3588_v48 = vadd.f32 %v3572_v24, %v3524_v4  ;;  %v10699_v34 = vpop.f32.mrb[42].mxu0 }
 0xf4f   :  { %v3621_v41 = vmul.f32 %v3589_v25, %v11970_v9  ;;  %v3511_v43 = vmul.f32 0.5, %v10699_v34  ;;  %v3439_v44 = vpop.f32.mrb[43].mxu0 }
 0xf50   :  { %v3620_v0 = vmul.f32 %v3588_v48, %v11974_v15  ;;  %v3510_v6 = vmul.f32 0.5, %v3439_v44 }
 0xf51   :  { %v3637_v20 = vmax.f32 %v3621_v41, 0.0  ;;  %v3559_v28 = vsub.f32 %v3511_v43, %v3543_v18  ;;  %v3531_v41 = vld [vmem:[%s15496_s5 + $0xb8] sm:$0xff]  ;;  %v3530_v43 = vld [vmem:[%s15496_s5 + $0xb0] sm:$0xff] }
 0xf52   :  { %v3636_v62 = vmax.f32 %v3620_v0, 0.0  ;;  %v3558_v16 = vsub.f32 %v3510_v6, %v3542_v46 }
 0xf53   :  { %v12970_v53 = vmul.f32 %v3637_v20, %v11970_v9  ;;  %v3575_v39 = vmul.f32 0.001, %v3559_v28  ;;  %v3547_v28 = vmul.f32 0.001, %v3531_v41 }
 0xf54   :  { %v12973_v37 = vmul.f32 %v3636_v62, %v11974_v15  ;;  %v3574_v57 = vmul.f32 0.001, %v3558_v16  ;;  %v3546_v16 = vmul.f32 0.001, %v3530_v43 }
 0xf55   :  { %v3669_v30 = vmul.f32 %v12970_v53, %v12970_v53  ;;  %v3591_v38 = vadd.f32 %v3575_v39, %v3527_v29 }
 0xf56   :  { %v3668_v61 = vmul.f32 %v12973_v37, %v12973_v37  ;;  %v3590_v14 = vadd.f32 %v3574_v57, %v3526_v10  ;;  %v10702_v7 = vpop.f32.mrb[44].mxu0 }
 0xf57   :  { %v3623_v4 = vmul.f32 %v3591_v38, %v11996_v36  ;;  %v3513_v12 = vmul.f32 0.5, %v10702_v7  ;;  %v3449_v45 = vpop.f32.mrb[45].mxu0 }
 0xf58   :  { %v3684_v13 = vadd.f32 %v3669_v30, %v3668_v61  ;;  %v3622_v5 = vmul.f32 %v3590_v14, %v12002_v47  ;;  %v3512_v32 = vmul.f32 0.5, %v3449_v45 }
 0xf59   :  { %v3639_v35 = vmax.f32 %v3623_v4, 0.0  ;;  %v3561_v42 = vsub.f32 %v3513_v12, %v3545_v1 }
 0xf5a   :  { %v3638_v24 = vmax.f32 %v3622_v5, 0.0  ;;  %v3560_v29 = vsub.f32 %v3512_v32, %v3544_v17  ;;  %v3532_v5 = vld [vmem:[%s15496_s5 + $0xc0] sm:$0xff] }
 0xf5b   :  { %v3577_v25 = vmul.f32 0.001, %v3561_v42  ;;  %v12988_v48 = vmul.f32 %v3639_v35, %v11996_v36 }
 0xf5c   :  { %v12991_v10 = vmul.f32 %v3638_v24, %v12002_v47  ;;  %v3576_v34 = vmul.f32 0.001, %v3560_v29 }
 0xf5d   :  { %v3593_v18 = vadd.f32 %v3577_v25, %v3529_v27  ;;  %v3671_v39 = vmul.f32 %v12988_v48, %v12988_v48 }
 0xf5e   :  { %v3670_v44 = vmul.f32 %v12991_v10, %v12991_v10  ;;  %v3592_v0 = vadd.f32 %v3576_v34, %v3528_v3  ;;  %v10705_v6 = vpop.f32.mrb[46].mxu0 }
 0xf5f   :  { %v3625_v46 = vmul.f32 %v3593_v18, %v12026_v23  ;;  %v3515_v20 = vmul.f32 0.5, %v10705_v6  ;;  %v3459_v62 = vpop.f32.mrb[47].mxu0  ;;  %v3548_v18 = vmul.f32 0.001, %v3532_v5 }
 0xf60   :  { %v3685_v57 = vadd.f32 %v3684_v13, %v3670_v44  ;;  %v3624_v30 = vmul.f32 %v3592_v0, %v12031_v26  ;;  %v3514_v38 = vmul.f32 0.5, %v3459_v62  ;;  %v3533_v13 = vld [vmem:[%s15496_s5 + $0xc8] sm:$0xff] }
 0xf61   :  { %v3641_v61 = vmax.f32 %v3625_v46, 0.0  ;;  %v3563_v27 = vsub.f32 %v3515_v20, %v3547_v28  ;;  %v3549_v25 = vmul.f32 0.001, %v3533_v13 }
 0xf62   :  { %v3640_v14 = vmax.f32 %v3624_v30, 0.0  ;;  %v3686_v7 = vadd.f32 %v3685_v57, %v3671_v39  ;;  %v3562_v4 = vsub.f32 %v3514_v38, %v3546_v16  ;;  %v3535_v38 = vld [vmem:[%s15496_s5 + $0xd8] sm:$0xff] }
 0xf63   :  { %v3579_v3 = vmul.f32 0.001, %v3563_v27  ;;  %v13006_v12 = vmul.f32 %v3641_v61, %v12026_v23  ;;  %v3534_v61 = vld [vmem:[%s15496_s5 + $0xd0] sm:$0xff] }
 0xf64   :  { %v13009_v1 = vmul.f32 %v3640_v14, %v12031_v26  ;;  %v3578_v45 = vmul.f32 0.001, %v3562_v4 }
 0xf65   :  { %v3595_v32 = vadd.f32 %v3579_v3, %v3531_v41  ;;  %v3673_v44 = vmul.f32 %v13006_v12, %v13006_v12 }
 0xf66   :  { %v3672_v17 = vmul.f32 %v13009_v1, %v13009_v1  ;;  %v3594_v35 = vadd.f32 %v3578_v45, %v3530_v43  ;;  %v10708_v42 = vpop.f32.mrb[48].mxu0 }
 0xf67   :  { %v3627_v24 = vmul.f32 %v3595_v32, %v12054_v63  ;;  %v3517_v29 = vmul.f32 0.5, %v10708_v42  ;;  %v3469_v34 = vpop.f32.mrb[49].mxu0  ;;  %v3551_v32 = vmul.f32 0.001, %v3535_v38 }
 0xf68   :  { %v3687_v0 = vadd.f32 %v3686_v7, %v3672_v17  ;;  %v3626_v6 = vmul.f32 %v3594_v35, %v12057_v2  ;;  %v3516_v46 = vmul.f32 0.5, %v3469_v34  ;;  %v3550_v35 = vmul.f32 0.001, %v3534_v61 }
 0xf69   :  { %v3643_v20 = vmax.f32 %v3627_v24, 0.0  ;;  %v3565_v41 = vsub.f32 %v3517_v29, %v3549_v25 }
 0xf6a   :  { %v3642_v28 = vmax.f32 %v3626_v6, 0.0  ;;  %v3688_v62 = vadd.f32 %v3687_v0, %v3673_v44  ;;  %v3564_v16 = vsub.f32 %v3516_v46, %v3548_v18 }
 0xf6b   :  { %v3581_v43 = vmul.f32 0.001, %v3565_v41  ;;  %v13024_v39 = vmul.f32 %v3643_v20, %v12054_v63 }
 0xf6c   :  { %v13027_v57 = vmul.f32 %v3642_v28, %v12057_v2  ;;  %v3580_v30 = vmul.f32 0.001, %v3564_v16  ;;  %v3537_v28 = vld [vmem:[%s15496_s5 + $0xe8] sm:$0xff] }
 0xf6d   :  { %v3597_v27 = vadd.f32 %v3581_v43, %v3533_v13  ;;  %v3675_v42 = vmul.f32 %v13024_v39, %v13024_v39 }
 0xf6e   :  { %v3674_v14 = vmul.f32 %v13027_v57, %v13027_v57  ;;  %v3596_v7 = vadd.f32 %v3580_v30, %v3532_v5  ;;  %v10711_v4 = vpop.f32.mrb[50].mxu0 }
 0xf6f   :  { %v3629_v3 = vmul.f32 %v3597_v27, %v12080_v49  ;;  %v3519_v45 = vmul.f32 0.5, %v10711_v4  ;;  %v3479_v17 = vpop.f32.mrb[51].mxu0 }
 0xf70   :  { %v3689_v24 = vadd.f32 %v3688_v62, %v3674_v14  ;;  %v3628_v29 = vmul.f32 %v3596_v7, %v12085_v60  ;;  %v3518_v25 = vmul.f32 0.5, %v3479_v17  ;;  %v3536_v62 = vld [vmem:[%s15496_s5 + $0xe0] sm:$0xff] }
 0xf71   :  { %v3645_v34 = vmax.f32 %v3629_v3, 0.0  ;;  %v3567_v13 = vsub.f32 %v3519_v45, %v3551_v32  ;;  %v3553_v45 = vmul.f32 0.001, %v3537_v28  ;;  %v3552_v17 = vmul.f32 0.001, %v3536_v62 }
 0xf72   :  { %v3690_v18 = vadd.f32 %v3689_v24, %v3675_v42  ;;  %v3644_v44 = vmax.f32 %v3628_v29, 0.0  ;;  %v3566_v0 = vsub.f32 %v3518_v25, %v3550_v35 }
 0xf73   :  { %v13042_v5 = vmul.f32 %v3645_v34, %v12080_v49  ;;  %v3583_v6 = vmul.f32 0.001, %v3567_v13 }
 0xf74   :  { %v3691_v46 = vrot.slane %v3690_v18, 4  ;;  %v13045_v20 = vmul.f32 %v3644_v44, %v12085_v60  ;;  %v3582_v41 = vmul.f32 0.001, %v3566_v0 }
 0xf75   :  { %v3677_v16 = vmul.f32 %v13042_v5, %v13042_v5  ;;  %v3599_v43 = vadd.f32 %v3583_v6, %v3535_v38 }
 0xf76   :  { %v3692_v30 = vadd.f32 %v3691_v46, %v3690_v18  ;;  %v3676_v27 = vmul.f32 %v13045_v20, %v13045_v20  ;;  %v3598_v14 = vadd.f32 %v3582_v41, %v3534_v61  ;;  %v10714_v7 = vpop.f32.mrb[52].mxu0  ;;  %v3539_v41 = vld [vmem:[%s15496_s5 + $0xf8] sm:$0xff] }
 0xf77   :  { %v3631_v4 = vmul.f32 %v3599_v43, %v12111_v40  ;;  %v3521_v3 = vmul.f32 0.5, %v10714_v7  ;;  %v3489_v32 = vpop.f32.mrb[53].mxu0  ;;  %v3538_v7 = vld [vmem:[%s15496_s5 + $0xf0] sm:$0xff] }
 0xf78   :  { %v3693_v35 = vrot.slane %v3692_v30, 2  ;;  %v3697_v42 = vadd.f32 %v3677_v16, %v3676_v27  ;;  %v3630_v24 = vmul.f32 %v3598_v14, %v12104_v33  ;;  %v3520_v29 = vmul.f32 0.5, %v3489_v32 }
 0xf79   :  { %v3647_v25 = vmax.f32 %v3631_v4, 0.0  ;;  %v3569_v34 = vsub.f32 %v3521_v3, %v3553_v45  ;;  %v3555_v45 = vmul.f32 0.001, %v3539_v41 }
 0xf7a   :  { %v3694_v38 = vadd.f32 %v3693_v35, %v3692_v30  ;;  %v3646_v13 = vmax.f32 %v3630_v24, 0.0  ;;  %v3568_v18 = vsub.f32 %v3520_v29, %v3552_v17 }
 0xf7b   :  { %v3585_v44 = vmul.f32 0.001, %v3569_v34  ;;  %v13060_v61 = vmul.f32 %v3647_v25, %v12111_v40  ;;  %v3554_v25 = vmul.f32 0.001, %v3538_v7 }
 0xf7c   :  { %v3695_v0 = vrot.slane %v3694_v38, 1  ;;  %v13063_v6 = vmul.f32 %v3646_v13, %v12104_v33  ;;  %v3584_v46 = vmul.f32 0.001, %v3568_v18 }
 0xf7d   :  { %v3601_v16 = vadd.f32 %v3585_v44, %v3537_v28  ;;  %v3679_v17 = vmul.f32 %v13060_v61, %v13060_v61 }
 0xf7e   :  { %v3696_v43 = vadd.f32 %v3695_v0, %v3694_v38  ;;  %v3678_v30 = vmul.f32 %v13063_v6, %v13063_v6  ;;  %v3600_v27 = vadd.f32 %v3584_v46, %v3536_v62  ;;  %v10717_v14 = vpop.f32.mrb[54].mxu0 }
 0xf7f   :  { %v3633_v4 = vmul.f32 %v3601_v16, %v12145_v58  ;;  %v3523_v3 = vmul.f32 0.5, %v10717_v14  ;;  %v3499_v32 = vpop.f32.mrb[55].mxu0 }
 0xf80   :  { %11549 = vrsqrt.f32 %v3696_v43  ;;  %v3698_v28 = vadd.f32 %v3697_v42, %v3678_v30  ;;  %v3632_v35 = vmul.f32 %v3600_v27, %v12149_v51  ;;  %v3522_v62 = vmul.f32 0.5, %v3499_v32 }
 0xf81   :  { %v3649_v24 = vmax.f32 %v3633_v4, 0.0  ;;  %v3571_v29 = vsub.f32 %v3523_v3, %v3555_v45  ;;  %vm3715_vm15 = vcmp.gt.f32.partialorder %v3696_v43, 0.0 }
 0xf82   :  { %v3699_v34 = vadd.f32 %v3698_v28, %v3679_v17  ;;  %v3648_v38 = vmax.f32 %v3632_v35, 0.0  ;;  %v3570_v44 = vsub.f32 %v3522_v62, %v3554_v25 }
 0xf83   :  { %v13078_v13 = vmul.f32 %v3649_v24, %v12145_v58  ;;  %v3587_v18 = vmul.f32 0.001, %v3571_v29 }
 0xf84   :  { %v3700_v0 = vrot.slane %v3699_v34, 4  ;;  %v13081_v46 = vmul.f32 %v3648_v38, %v12149_v51  ;;  %v3586_v30 = vmul.f32 0.001, %v3570_v44 }
 0xf85   :  { %v3681_v42 = vmul.f32 %v13078_v13, %v13078_v13  ;;  %v3603_v16 = vadd.f32 %v3587_v18, %v3539_v41 }
 0xf86   :  { %v3701_v27 = vadd.f32 %v3700_v0, %v3699_v34  ;;  %v3680_v14 = vmul.f32 %v13081_v46, %v13081_v46  ;;  %v3602_v3 = vadd.f32 %v3586_v30, %v3538_v7 }
 0xf87   :  { %v3635_v4 = vmul.f32 %v3603_v16, %v12175_v52 }
 0xf88   :  { %v3702_v45 = vrot.slane %v3701_v27, 2  ;;  %v3706_v32 = vadd.f32 %v3681_v42, %v3680_v14  ;;  %v3634_v17 = vmul.f32 %v3602_v3, %v12183_v50 }
 0xf89   :  { %v3651_v24 = vmax.f32 %v3635_v4, 0.0 }
 0xf8a   :  { %v11550_v28 = vpop.eup %11549  ;;  %v3703_v35 = vadd.f32 %v3702_v45, %v3701_v27  ;;  %v3650_v62 = vmax.f32 %v3634_v17, 0.0 }
 0xf8b   :  { %v3717_v29 = vsel %vm3715_vm15, %v11550_v28, 0.0 }
 0xf8c   :  { %v3724_v41 = vmul.f32 %v3717_v29, %v12973_v37  ;;  %v3725_v25 = vmul.f32 %v3717_v29, %v12970_v53  ;;  %v3726_v34 = vmul.f32 %v3717_v29, %v12991_v10  ;;  %v3727_v38 = vmul.f32 %v3717_v29, %v12988_v48 }
 0xf8d   :  { %v3728_v7 = vmul.f32 %v3717_v29, %v13009_v1  ;;  %v3729_v18 = vmul.f32 %v3717_v29, %v13006_v12  ;;  %v3730_v44 = vmul.f32 %v3717_v29, %v13027_v57  ;;  %v3731_v43 = vmul.f32 %v3717_v29, %v13024_v39 }
 0xf8e   :  { %3740 = vst [vmem:[%s15496_s5 + $0x80] sm:$0xff] %v3724_v41  ;;  %3741 = vst [vmem:[%s15496_s5 + $0x88] sm:$0xff] %v3725_v25  ;;  %v3704_v53 = vrot.slane %v3703_v35, 1  ;;  %v3667_v37 = vmul.f32 %v3651_v24, %v12175_v52  ;;  %v3666_v48 = vmul.f32 %v3650_v62, %v12183_v50  ;;  %v11278_v10 = vpack.c.bf16 %v3725_v25, %v3724_v41 }
 0xf8f   :  { %3742 = vst [vmem:[%s15496_s5 + $0x90] sm:$0xff] %v3726_v34  ;;  %3743 = vst [vmem:[%s15496_s5 + $0x98] sm:$0xff] %v3727_v38  ;;  %v13123_v12 = vpack.c.bf16 %v3727_v38, %v3726_v34  ;;  %v13125_v1 = vpack.c.bf16 %v3729_v18, %v3728_v7  ;;  %v13127_v39 = vpack.c.bf16 %v3731_v43, %v3730_v44 }
 0xf90   :  { %3746 = vst [vmem:[%s15496_s5 + $0xb0] sm:$0xff] %v3730_v44  ;;  %3744 = vst [vmem:[%s15496_s5 + $0xa0] sm:$0xff] %v3728_v7  ;;  %v3705_v57 = vadd.f32 %v3704_v53, %v3703_v35  ;;  %v3682_v0 = vmul.f32 %v3666_v48, %v3666_v48  ;;  %11279 = vmatprep.subr.bf16.mxu1 %v11278_v10  ;;  %11312 = vmatpush3.bf16.msra.mxu0 %v11278_v10  ;;  %v3148_v7 = vld [vmem:[%s15496_s5 + $0x8] sm:$0xff] }
 0xf91   :  { %3745 = vst [vmem:[%s15496_s5 + $0xa8] sm:$0xff] %v3729_v18  ;;  %3747 = vst [vmem:[%s15496_s5 + $0xb8] sm:$0xff] %v3731_v43  ;;  %11313 = vmatprep.subr.bf16.mxu0 %v15512_v21  ;;  %v3683_v42 = vmul.f32 %v3667_v37, %v3667_v37  ;;  %v3147_v18 = vld [vmem:[%s15496_s5] sm:$0xff]  ;;  %v3156_v53 = vmul.f32 0.001, %v3148_v7 }
 0xf92   :  { %11551 = vrsqrt.f32 %v3705_v57  ;;  %v3707_v16 = vadd.f32 %v3706_v32, %v3682_v0  ;;  %vm3718_vm1 = vcmp.gt.f32.partialorder %v3705_v57, 0.0  ;;  %v3155_v10 = vmul.f32 0.001, %v3147_v18 }
 0xf94   :  { %v3708_v30 = vadd.f32 %v3707_v16, %v3683_v42  ;;  %11315 = vmatpush3.bf16.msra.mxu0 %v13123_v12 }
 0xf95   :  { %11316 = vmatprep.subr.bf16.mxu0 %v15512_v21 }
 0xf96   :  { %v3709_v27 = vrot.slane %v3708_v30, 4 }
 0xf98   :  { %v3710_v14 = vadd.f32 %v3709_v27, %v3708_v30  ;;  %11318 = vmatpush3.bf16.msra.mxu0 %v13125_v1  ;;  %v3150_v30 = vld [vmem:[%s15496_s5 + $0x18] sm:$0xff] }
 0xf99   :  { %11319 = vmatprep.subr.bf16.mxu0 %v15512_v21 }
 0xf9a   :  { %v3711_v4 = vrot.slane %v3710_v14, 2 }
 0xf9c   :  { %v11552_v3 = vpop.eup %11551  ;;  %v3712_v45 = vadd.f32 %v3711_v4, %v3710_v14  ;;  %11321 = vmatpush3.bf16.msra.mxu0 %v13127_v39  ;;  %v3149_v14 = vld [vmem:[%s15496_s5 + $0x10] sm:$0xff] }
 0xf9d   :  { %v3720_v17 = vsel %vm3718_vm1, %v11552_v3, 0.0 }
 0xf9e   :  { %v3732_v32 = vmul.f32 %v3720_v17, %v13045_v20  ;;  %v3733_v28 = vmul.f32 %v3720_v17, %v13042_v5  ;;  %v3734_v35 = vmul.f32 %v3720_v17, %v13063_v6  ;;  %v3735_v24 = vmul.f32 %v3720_v17, %v13060_v61 }
 0xf9f   :  { %v3713_v29 = vrot.slane %v3712_v45, 1  ;;  %v3158_v17 = vmul.f32 0.001, %v3150_v30 }
 0xfa0   :  { %3750 = vst [vmem:[%s15496_s5 + $0xd0] sm:$0xff] %v3734_v35  ;;  %3748 = vst [vmem:[%s15496_s5 + $0xc0] sm:$0xff] %v3732_v32  ;;  %v13151_v5 = vpack.c.bf16 %v3733_v28, %v3732_v32  ;;  %v13153_v20 = vpack.c.bf16 %v3735_v24, %v3734_v35  ;;  %v3157_v35 = vmul.f32 0.001, %v3149_v14 }
 0xfa1   :  { %3749 = vst [vmem:[%s15496_s5 + $0xc8] sm:$0xff] %v3733_v28  ;;  %3751 = vst [vmem:[%s15496_s5 + $0xd8] sm:$0xff] %v3735_v24  ;;  %v3714_v61 = vadd.f32 %v3713_v29, %v3712_v45 }
 0xfa3   :  { %11553 = vrsqrt.f32 %v3714_v61  ;;  %vm3721_vm2 = vcmp.gt.f32.partialorder %v3714_v61, 0.0 }
 0xfad   :  { %v11554_v6 = vpop.eup %11553 }
 0xfae   :  { %v3723_v62 = vsel %vm3721_vm2, %v11554_v6, 0.0 }
 0xfaf   :  { %v13156_v41 = vmul.f32 %v3723_v62, %v13081_v46  ;;  %v13159_v25 = vmul.f32 %v3723_v62, %v13078_v13  ;;  %v13161_v34 = vmul.f32 %v3723_v62, %v3666_v48  ;;  %v13163_v38 = vmul.f32 %v3723_v62, %v3667_v37 }
 0xfb1   :  { %3752 = vst [vmem:[%s15496_s5 + $0xe0] sm:$0xff] %v13156_v41  ;;  %3753 = vst [vmem:[%s15496_s5 + $0xe8] sm:$0xff] %v13159_v25  ;;  %v11302_v13 = vpack.c.bf16 %v13159_v25, %v13156_v41  ;;  %v11599_v41 = vld [vmem:[%s15498_s2 + $0x10] sm:$0xff] }
 0xfb2   :  { %3754 = vst [vmem:[%s15496_s5 + $0xf0] sm:$0xff] %v13161_v34  ;;  %3755 = vst [vmem:[%s15496_s5 + $0xf8] sm:$0xff] %v13163_v38  ;;  %v3758_v25 = vmul.f32 %v11599_v41, %v11873_v59 }
 0xfba   :  { %v10670_v44 = vpop.f32.mrb[42].mxu1 }
 0xfbb   :  { %v3132_v43 = vmul.f32 0.5, %v10670_v44  ;;  %v3052_v37 = vpop.f32.mrb[43].mxu1  ;;  %v3151_v44 = vld [vmem:[%s15496_s5 + $0x20] sm:$0xff] }
 0xfbc   :  { %v3131_v48 = vmul.f32 0.5, %v3052_v37 }
 0xfbd   :  { %v3164_v57 = vsub.f32 %v3132_v43, %v3156_v53 }
 0xfbe   :  { %v3163_v0 = vsub.f32 %v3131_v48, %v3155_v10 }
 0xfbf   :  { %v3172_v42 = vmul.f32 %v3164_v57, %v12296_v22  ;;  %v3159_v57 = vmul.f32 0.001, %v3151_v44 }
 0xfc0   :  { %v3171_v16 = vmul.f32 %v3163_v0, %v12296_v22 }
 0xfc1   :  { %v3180_v27 = vadd.f32 %v3172_v42, %v3148_v7  ;;  %v3152_v7 = vld [vmem:[%s15496_s5 + $0x28] sm:$0xff] }
 0xfc2   :  { %v3179_v4 = vadd.f32 %v3171_v16, %v3147_v18  ;;  %v10673_v3 = vpop.f32.mrb[44].mxu1  ;;  %v3160_v48 = vmul.f32 0.001, %v3152_v7 }
 0xfc3   :  { %3188 = vst [vmem:[%s15496_s5 + $0x8] sm:$0xff] %v3180_v27  ;;  %v3134_v45 = vmul.f32 0.5, %v10673_v3  ;;  %v3062_v32 = vpop.f32.mrb[45].mxu1  ;;  %v3153_v3 = vld [vmem:[%s15496_s5 + $0x30] sm:$0xff] }
 0xfc4   :  { %3187 = vst [vmem:[%s15496_s5] sm:$0xff] %v3179_v4  ;;  %v3133_v28 = vmul.f32 0.5, %v3062_v32  ;;  %v11280_v24 = vpack.c.bf16 %v3180_v27, %v3179_v4 }
 0xfc5   :  { %v3166_v29 = vsub.f32 %v3134_v45, %v3158_v17 }
 0xfc6   :  { %v3165_v61 = vsub.f32 %v3133_v28, %v3157_v35  ;;  %11281 = vmatpush3.bf16.msra.mxu1 %v11280_v24  ;;  %v3161_v24 = vmul.f32 0.001, %v3153_v3 }
 0xfc7   :  { %v3174_v6 = vmul.f32 %v3166_v29, %v12296_v22  ;;  %11283 = vmatprep.subr.bf16.mxu1 %v13123_v12 }
 0xfc8   :  { %v3173_v62 = vmul.f32 %v3165_v61, %v12296_v22 }
 0xfc9   :  { %v3182_v18 = vadd.f32 %v3174_v6, %v3150_v30 }
 0xfca   :  { %v3181_v43 = vadd.f32 %v3173_v62, %v3149_v14  ;;  %v10676_v53 = vpop.f32.mrb[46].mxu1  ;;  %v3154_v14 = vld [vmem:[%s15496_s5 + $0x38] sm:$0xff] }
 0xfcb   :  { %3190 = vst [vmem:[%s15496_s5 + $0x18] sm:$0xff] %v3182_v18  ;;  %v3136_v37 = vmul.f32 0.5, %v10676_v53  ;;  %v3072_v12 = vpop.f32.mrb[47].mxu1  ;;  %v3162_v28 = vmul.f32 0.001, %v3154_v14 }
 0xfcc   :  { %3189 = vst [vmem:[%s15496_s5 + $0x10] sm:$0xff] %v3181_v43  ;;  %v3135_v10 = vmul.f32 0.5, %v3072_v12  ;;  %v11284_v0 = vpack.c.bf16 %v3182_v18, %v3181_v43  ;;  %v3196_v18 = vld [vmem:[%s15496_s5 + $0x48] sm:$0xff]  ;;  %v3195_v43 = vld [vmem:[%s15496_s5 + $0x40] sm:$0xff] }
 0xfcd   :  { %v3168_v42 = vsub.f32 %v3136_v37, %v3160_v48  ;;  %v3204_v12 = vmul.f32 0.001, %v3196_v18 }
 0xfce   :  { %v3167_v16 = vsub.f32 %v3135_v10, %v3159_v57  ;;  %11285 = vmatpush3.bf16.msra.mxu1 %v11284_v0  ;;  %v3203_v57 = vmul.f32 0.001, %v3195_v43 }
 0xfcf   :  { %v3176_v30 = vmul.f32 %v3168_v42, %v12296_v22  ;;  %11287 = vmatprep.subr.bf16.mxu1 %v13125_v1 }
 0xfd0   :  { %v3175_v27 = vmul.f32 %v3167_v16, %v12296_v22 }
 0xfd1   :  { %v3184_v4 = vadd.f32 %v3176_v30, %v3152_v7 }
 0xfd2   :  { %v3183_v45 = vadd.f32 %v3175_v27, %v3151_v44  ;;  %v10679_v17 = vpop.f32.mrb[48].mxu1 }
 0xfd3   :  { %3192 = vst [vmem:[%s15496_s5 + $0x28] sm:$0xff] %v3184_v4  ;;  %v3138_v32 = vmul.f32 0.5, %v10679_v17  ;;  %v3082_v1 = vpop.f32.mrb[49].mxu1 }
 0xfd4   :  { %3191 = vst [vmem:[%s15496_s5 + $0x20] sm:$0xff] %v3183_v45  ;;  %v3137_v35 = vmul.f32 0.5, %v3082_v1  ;;  %v11288_v29 = vpack.c.bf16 %v3184_v4, %v3183_v45 }
 0xfd5   :  { %v3170_v61 = vsub.f32 %v3138_v32, %v3162_v28 }
 0xfd6   :  { %v3169_v6 = vsub.f32 %v3137_v35, %v3161_v24  ;;  %11289 = vmatpush3.bf16.msra.mxu1 %v11288_v29 }
 0xfd7   :  { %v3178_v62 = vmul.f32 %v3170_v61, %v12296_v22  ;;  %11291 = vmatprep.subr.bf16.mxu1 %v13127_v39 }
 0xfd8   :  { %v3177_v7 = vmul.f32 %v3169_v6, %v12296_v22 }
 0xfd9   :  { %v3186_v44 = vadd.f32 %v3178_v62, %v3154_v14  ;;  %v3198_v14 = vld [vmem:[%s15496_s5 + $0x58] sm:$0xff] }
 0xfda   :  { %v3185_v53 = vadd.f32 %v3177_v7, %v3153_v3  ;;  %v10682_v37 = vpop.f32.mrb[50].mxu1  ;;  %v3197_v3 = vld [vmem:[%s15496_s5 + $0x50] sm:$0xff]  ;;  %v3206_v1 = vmul.f32 0.001, %v3198_v14 }
 0xfdb   :  { %3194 = vst [vmem:[%s15496_s5 + $0x38] sm:$0xff] %v3186_v44  ;;  %v3140_v48 = vmul.f32 0.5, %v10682_v37  ;;  %v3092_v39 = vpop.f32.mrb[51].mxu1  ;;  %v3205_v61 = vmul.f32 0.001, %v3197_v3  ;;  %v3200_v37 = vld [vmem:[%s15496_s5 + $0x68] sm:$0xff] }
 0xfdc   :  { %3193 = vst [vmem:[%s15496_s5 + $0x30] sm:$0xff] %v3185_v53  ;;  %v3139_v10 = vmul.f32 0.5, %v3092_v39  ;;  %v11292_v0 = vpack.c.bf16 %v3186_v44, %v3185_v53 }
 0xfdd   :  { %v3212_v42 = vsub.f32 %v3140_v48, %v3204_v12  ;;  %v3199_v12 = vld [vmem:[%s15496_s5 + $0x60] sm:$0xff] }
 0xfde   :  { %v3211_v16 = vsub.f32 %v3139_v10, %v3203_v57  ;;  %11293 = vmatpush3.bf16.msra.mxu1 %v11292_v0  ;;  %v3208_v0 = vmul.f32 0.001, %v3200_v37 }
 0xfdf   :  { %v3220_v30 = vmul.f32 %v3212_v42, %v12352_v31  ;;  %11295 = vmatprep.subr.bf16.mxu1 %v13151_v5 }
 0xfe0   :  { %v3219_v27 = vmul.f32 %v3211_v16, %v12352_v31 }
 0xfe1   :  { %v3228_v4 = vadd.f32 %v3220_v30, %v3196_v18 }
 0xfe2   :  { %v3227_v45 = vadd.f32 %v3219_v27, %v3195_v43  ;;  %v10685_v17 = vpop.f32.mrb[52].mxu1 }
 0xfe3   :  { %v13259_v32 = vmax.f32 %v3228_v4, 0.0  ;;  %v3142_v28 = vmul.f32 0.5, %v10685_v17  ;;  %v3102_v35 = vpop.f32.mrb[53].mxu1  ;;  %v3207_v4 = vmul.f32 0.001, %v3199_v12 }
 0xfe4   :  { %v13261_v24 = vmax.f32 %v3227_v45, 0.0  ;;  %v3141_v29 = vmul.f32 0.5, %v3102_v35 }
 0xfe5   :  { %v3244_v6 = vmul.f32 %v13259_v32, %v13259_v32  ;;  %v3214_v62 = vsub.f32 %v3142_v28, %v3206_v1 }
 0xfe6   :  { %v3243_v7 = vmul.f32 %v13261_v24, %v13261_v24  ;;  %v3213_v18 = vsub.f32 %v3141_v29, %v3205_v61 }
 0xfe7   :  { %v3222_v44 = vmul.f32 %v3214_v62, %v12352_v31 }
 0xfe8   :  { %v3251_v43 = vadd.f32 %v3244_v6, %v3243_v7  ;;  %v3221_v53 = vmul.f32 %v3213_v18, %v12352_v31  ;;  %v3201_v6 = vld [vmem:[%s15496_s5 + $0x70] sm:$0xff] }
 0xfe9   :  { %v3230_v48 = vadd.f32 %v3222_v44, %v3198_v14 }
 0xfea   :  { %v3229_v39 = vadd.f32 %v3221_v53, %v3197_v3  ;;  %v10688_v10 = vpop.f32.mrb[54].mxu1  ;;  %v3202_v3 = vld [vmem:[%s15496_s5 + $0x78] sm:$0xff] }
 0xfeb   :  { %v3144_v57 = vmul.f32 0.5, %v10688_v10  ;;  %v3112_v42 = vpop.f32.mrb[55].mxu1  ;;  %v3238_v16 = vmax.f32 %v3230_v48, 0.0  ;;  %v3210_v53 = vmul.f32 0.001, %v3202_v3 }
 0xfec   :  { %v3237_v30 = vmax.f32 %v3229_v39, 0.0  ;;  %v3143_v27 = vmul.f32 0.5, %v3112_v42 }
 0xfed   :  { %v3216_v45 = vsub.f32 %v3144_v57, %v3208_v0  ;;  %v3246_v35 = vmul.f32 %v3238_v16, %v3238_v16  ;;  %v3209_v57 = vmul.f32 0.001, %v3201_v6 }
 0xfee   :  { %v3245_v17 = vmul.f32 %v3237_v30, %v3237_v30  ;;  %v3215_v28 = vsub.f32 %v3143_v27, %v3207_v4 }
 0xfef   :  { %v3224_v1 = vmul.f32 %v3216_v45, %v12352_v31 }
 0xff0   :  { %v3252_v14 = vadd.f32 %v3251_v43, %v3245_v17  ;;  %v3223_v29 = vmul.f32 %v3215_v28, %v12352_v31 }
 0xff1   :  { %v3232_v61 = vadd.f32 %v3224_v1, %v3200_v37 }
 0xff2   :  { %v3231_v62 = vadd.f32 %v3223_v29, %v3199_v12  ;;  %v3253_v7 = vadd.f32 %v3252_v14, %v3246_v35  ;;  %v10691_v18 = vpop.f32.mrb[56].mxu1 }
 0xff3   :  { %v3146_v44 = vmul.f32 0.5, %v10691_v18  ;;  %v3122_v48 = vpop.f32.mrb[57].mxu1  ;;  %v3240_v39 = vmax.f32 %v3232_v61, 0.0 }
 0xff4   :  { %v3239_v10 = vmax.f32 %v3231_v62, 0.0  ;;  %v3145_v43 = vmul.f32 0.5, %v3122_v48 }
 0xff5   :  { %v3218_v0 = vsub.f32 %v3146_v44, %v3210_v53  ;;  %v3248_v37 = vmul.f32 %v3240_v39, %v3240_v39 }
 0xff6   :  { %v3247_v42 = vmul.f32 %v3239_v10, %v3239_v10  ;;  %v3217_v27 = vsub.f32 %v3145_v43, %v3209_v57 }
 0xff7   :  { %v3226_v4 = vmul.f32 %v3218_v0, %v12352_v31 }
 0xff8   :  { %v3254_v45 = vadd.f32 %v3253_v7, %v3247_v42  ;;  %v3225_v17 = vmul.f32 %v3217_v27, %v12352_v31 }
 0xff9   :  { %v3234_v28 = vadd.f32 %v3226_v4, %v3202_v3 }
 0xffa   :  { %v3233_v12 = vadd.f32 %v3225_v17, %v3201_v6  ;;  %v3255_v1 = vadd.f32 %v3254_v45, %v3248_v37 }
 0xffb   :  { %v3242_v35 = vmax.f32 %v3234_v28, 0.0 }
 0xffc   :  { %v3241_v14 = vmax.f32 %v3233_v12, 0.0 }
 0xffd   :  { %v3250_v18 = vmul.f32 %v3242_v35, %v3242_v35 }
 0xffe   :  { %v3249_v29 = vmul.f32 %v3241_v14, %v3241_v14 }
0x1000   :  { %v3256_v61 = vadd.f32 %v3255_v1, %v3249_v29 }
0x1002   :  { %v3257_v62 = vadd.f32 %v3256_v61, %v3250_v18 }
0x1004   :  { %v3258_v48 = vrot.slane %v3257_v62, 4 }
0x1006   :  { %v3259_v46 = vadd.f32 %v3258_v48, %v3257_v62 }
0x1008   :  { %v3260_v44 = vrot.slane %v3259_v46, 2 }
0x100a   :  { %v3261_v53 = vadd.f32 %v3260_v44, %v3259_v46 }
0x100c   :  { %v3262_v43 = vrot.slane %v3261_v53, 1 }
0x100e   :  { %v3263_v57 = vadd.f32 %v3262_v43, %v3261_v53 }
0x1010   :  { %11555 = vrsqrt.f32 %v3263_v57  ;;  %vm3264_vm10 = vcmp.gt.f32.partialorder %v3263_v57, 0.0 }
0x101a   :  { %v11556_v0 = vpop.eup %11555 }
0x101b   :  { %v3266_v7 = vsel %vm3264_vm10, %v11556_v0, 0.0 }
0x101c   :  { %v3267_v3 = vmul.f32 %v3266_v7, %v13261_v24  ;;  %v3268_v6 = vmul.f32 %v3266_v7, %v13259_v32  ;;  %v3269_v42 = vmul.f32 %v3266_v7, %v3237_v30  ;;  %v3270_v27 = vmul.f32 %v3266_v7, %v3238_v16 }
0x101d   :  { %v3271_v4 = vmul.f32 %v3266_v7, %v3239_v10  ;;  %v3272_v37 = vmul.f32 %v3266_v7, %v3240_v39  ;;  %v3273_v45 = vmul.f32 %v3266_v7, %v3241_v14  ;;  %v3274_v17 = vmul.f32 %v3266_v7, %v3242_v35  ;;  %v9628_v39 = vld [vmem:[%s15497_s0 + $0x18] sm:$0xff] }
0x101e   :  { %3275 = vst [vmem:[%s15496_s5 + $0x40] sm:$0xff] %v3267_v3  ;;  %3276 = vst [vmem:[%s15496_s5 + $0x48] sm:$0xff] %v3268_v6  ;;  %v11296_v46 = vpack.c.bf16 %v3268_v6, %v3267_v3  ;;  %v11300_v32 = vpack.c.bf16 %v3270_v27, %v3269_v42  ;;  %v15513_v30 = vpack.c.bf16 %v13163_v38, %v13161_v34 }
0x101f   :  { %3277 = vst [vmem:[%s15496_s5 + $0x50] sm:$0xff] %v3269_v42  ;;  %3278 = vst [vmem:[%s15496_s5 + $0x58] sm:$0xff] %v3270_v27  ;;  %v11304_v24 = vpack.c.bf16 %v3272_v37, %v3271_v4  ;;  %v11308_v16 = vpack.c.bf16 %v3274_v17, %v3273_v45  ;;  %v3759_v34 = vsub.f32 %v3758_v25, %v12893_v19 }
0x1020   :  { %3281 = vst [vmem:[%s15496_s5 + $0x70] sm:$0xff] %v3273_v45  ;;  %3279 = vst [vmem:[%s15496_s5 + $0x60] sm:$0xff] %v3271_v4  ;;  %11297 = vmatpush3.bf16.msra.mxu1 %v11296_v46 }
0x1021   :  { %3280 = vst [vmem:[%s15496_s5 + $0x68] sm:$0xff] %v3272_v37  ;;  %3282 = vst [vmem:[%s15496_s5 + $0x78] sm:$0xff] %v3274_v17  ;;  %11299 = vmatprep.subr.bf16.mxu1 %v13153_v20  ;;  %v3760_v38 = vmul.f32 0.005, %v3759_v34 }
0x1024   :  { %11301 = vmatpush3.bf16.msra.mxu1 %v11300_v32 }
0x1025   :  { %11303 = vmatprep.subr.bf16.mxu1 %v11302_v13 }
0x1028   :  { %11305 = vmatpush3.bf16.msra.mxu1 %v11304_v24 }
0x1029   :  { %11307 = vmatprep.subr.bf16.mxu1 %v15513_v30 }
0x102c   :  { %11309 = vmatpush3.bf16.msra.mxu1 %v11308_v16 }
0x102d   :  { %11322 = vmatprep.subr.bf16.mxu1 %v15512_v21 }
0x102f   :  { %3859 = vmatmul.mubr.f32.vlgmr.msra.gmra.mrb[58].mxu1 %v9628_v39 }
0x1030   :  { %11324 = vmatpush3.bf16.msra.mxu1 %v13151_v5  ;;  %10745 = vmatprep.mubr.msk.f32.mxu1 %vm11607_vm0, %v15511_v8  ;;  %v13333_v5 = vadd.f32 %v3760_v38, %v12893_v19 }
0x1031   :  { %11325 = vmatprep.subr.bf16.mxu1 %v15512_v21 }
0x1034   :  { %11327 = vmatpush3.bf16.msra.mxu1 %v13153_v20 }
0x1102   :  { %v10089_v13 = vpop.f32.mrb[58].mxu1 }
0x1103   :  { %v10090_v10 = vpop.f32.mrb[59].mxu1 }
0x1104   :  { %v10091_v28 = vadd.f32 %v10090_v10, %v10089_v13 }
0x1106   :  { %v3864_v12 = vsub.f32 %v10091_v28, %v13333_v5 }
0x1108   :  { %v3865_v1 = vmax.f32 %v3864_v12, 0.0 }
0x110a   :  { %v3866_v35 = vsub.f32 %v3865_v1, %v11599_v41 }
0x110c   :  { %v3867_v20 = vmul.f32 %v3866_v35, %v11881_v11 }
0x110e   :  { %v3868_v14 = vadd.f32 %v11599_v41, %v3867_v20 }
0x1110   :  { %v3869_v29 = vsub.f32 %v3868_v14, %v11599_v41 }
0x1112   :  { %10735 = vmatmul.mubr.msk.f32.vlgmr.msra.gmra.mrb[56].mxu0 %vm429_vm6, %v3869_v29  ;;  %v3870_v18 = vmul.f32 %v11858_v54, %v3869_v29 }
0x1114   :  { %v3871_v44 = vadd.f32 %v11599_v41, %v3870_v18 }
0x11e5   :  { %v3949_v61 = vpop.f32.mrb[56].mxu0 }
0x11e6   :  { %v3953_v62 = vadd.f32 %v3949_v61, %v3864_v12  ;;  %v10736_v48 = vpop.f32.mrb[57].mxu0 }
0x11e8   :  { %v3954_v53 = vmax.f32 %v3953_v62, 0.0 }
0x11ea   :  { %v3955_v19 = vsub.f32 %v3954_v53, %v3871_v44 }
0x11ec   :  { %v3956_v43 = vmul.f32 %v3955_v19, %v11881_v11 }
0x11ee   :  { %v3957_v57 = vadd.f32 %v3956_v43, %v3871_v44 }
0x11f0   :  { %v3958_v0 = vsub.f32 %v3957_v57, %v3871_v44 }
0x11f2   :  { %3966 = vrot.lane.b32.xlu0 %v3958_v0, %s11608_s1  ;;  %v3959_v7 = vmul.f32 %v11863_v55, %v3958_v0 }
0x11f4   :  { %v3960_v3 = vadd.f32 %v3959_v7, %v3871_v44 }
0x1264   :  { %v3967_v6 = vpop.permute.xlu0 %3966 }
0x1265   :  { %10746 = vmatmul.mubr.msk.f32.vlgmr.msra.gmra.mrb[60].mxu1 %vm518_vm7, %v3967_v6 }
0x1338   :  { %v4036_v42 = vpop.f32.mrb[60].mxu1 }
0x1339   :  { %v4040_v27 = vadd.f32 %v4036_v42, %v3953_v62  ;;  %v10747_v4 = vpop.f32.mrb[61].mxu1 }
0x133b   :  { %v4041_v37 = vmax.f32 %v4040_v27, 0.0 }
0x133d   :  { %v4042_v45 = vsub.f32 %v4041_v37, %v3960_v3 }
0x133f   :  { %v4043_v17 = vmul.f32 %v4042_v45, %v11881_v11 }
0x1341   :  { %v4044_v46 = vadd.f32 %v4043_v17, %v3960_v3 }
0x1343   :  { %v4045_v32 = vsub.f32 %v4044_v46, %v3960_v3  ;;  %v4674_v46 = vld [vmem:[%s15496_s5 + $0x88] sm:$0xff] }
0x1345   :  { %v4046_v24 = vmul.f32 %v11868_v56, %v4045_v32  ;;  %v4673_v32 = vld [vmem:[%s15496_s5 + $0x80] sm:$0xff] }
0x1347   :  { %v13345_v16 = vadd.f32 %v4046_v24, %v3960_v3 }
0x1349   :  { %4051 = vrot.lane.b32.xlu0 %v13345_v16, %s11608_s1  ;;  %10748 = vmatprep.subr.mxu0 %v13345_v16  ;;  %9631 = vst [vmem:[%s15498_s2 + $0x18] sm:$0xff] %v13345_v16 }
0x134a   :  { %10774 = vmatprep.subr.mxu1 %v13345_v16  ;;  %10749 = vmatpush3.msra.mxu0 %v13345_v16 }
0x134b   :  { %10775 = vmatpush3.msra.mxu1 %v13345_v16 }
0x134c   :  { %11360 = vmatprep.subr.bf16.mxu1 %v15512_v21 }
0x1367   :  { %4432 = vxpose.xlu0.b32.start.end [1/1] (short) %v13345_v16, 128 }
0x13bb   :  { %v4052_v30 = vpop.permute.xlu0 %4051 }
0x13bc   :  { %v4054_v41 = vsel %vm429_vm6, %v9628_v39, %v4052_v30 }
0x13bd   :  { %4055 = vxpose.xlu0.b32.start.end [1/1] (short) %v4054_v41, 128  ;;  %v4690_v41 = vmul.f32 0.001, %v4674_v46 }
0x13e7   :  { %v4448_v25 = vpop.trf.xlu0 }
0x13e8   :  { %10776 = vmatprep.mubr.msk.f32.mxu1 %vm637_vm8, %v4448_v25 }
0x13eb   :  { %v4449_v34 = vpop.trf.xlu0 }
0x13ec   :  { %10777 = vmatmul.mubr.msk.f32.vlgmr.msra.gmra.mrb[62].mxu1 %vm637_vm8, %v4449_v34 }
0x13ef   :  { %v4450_v38 = vpop.trf.xlu0 }
0x13f0   :  { %10779 = vmatprep.mubr.msk.f32.mxu1 %vm637_vm8, %v4450_v38  ;;  %v4689_v38 = vmul.f32 0.001, %v4673_v32 }
0x13f3   :  { %v4451_v13 = vpop.trf.xlu0 }
0x13f4   :  { %10780 = vmatmul.mubr.msk.f32.gmra.mrb[64].mxu1 %vm637_vm8, %v4451_v13 }
0x13f7   :  { %v4452_v10 = vpop.trf.xlu0 }
0x13f8   :  { %10782 = vmatprep.mubr.msk.f32.mxu1 %vm637_vm8, %v4452_v10 }
0x13fb   :  { %v4453_v28 = vpop.trf.xlu0 }
0x13fc   :  { %10783 = vmatmul.mubr.msk.f32.gmra.mrb[66].mxu1 %vm637_vm8, %v4453_v28 }
0x13ff   :  { %v4454_v39 = vpop.trf.xlu0 }
0x1400   :  { %10785 = vmatprep.mubr.msk.f32.mxu1 %vm637_vm8, %v4454_v39 }
0x1403   :  { %v4455_v12 = vpop.trf.xlu0 }
0x1404   :  { %10786 = vmatmul.mubr.msk.f32.gmra.mrb[68].mxu1 %vm637_vm8, %v4455_v12 }
0x1407   :  { %v4456_v1 = vpop.trf.xlu0 }
0x1408   :  { %10788 = vmatprep.mubr.msk.f32.mxu1 %vm637_vm8, %v4456_v1  ;;  %v4675_v1 = vld [vmem:[%s15496_s5 + $0x90] sm:$0xff] }
0x140b   :  { %v4457_v35 = vpop.trf.xlu0 }
0x140c   :  { %10789 = vmatmul.mubr.msk.f32.gmra.mrb[70].mxu1 %vm637_vm8, %v4457_v35 }
0x140f   :  { %v4458_v20 = vpop.trf.xlu0 }
0x1410   :  { %10791 = vmatprep.mubr.msk.f32.mxu1 %vm637_vm8, %v4458_v20 }
0x1413   :  { %v4459_v14 = vpop.trf.xlu0 }
0x1414   :  { %10792 = vmatmul.mubr.msk.f32.gmra.mrb[72].mxu1 %vm637_vm8, %v4459_v14 }
0x1417   :  { %v4460_v29 = vpop.trf.xlu0 }
0x1418   :  { %10794 = vmatprep.mubr.msk.f32.mxu1 %vm637_vm8, %v4460_v29 }
0x141b   :  { %v4461_v18 = vpop.trf.xlu0 }
0x141c   :  { %10795 = vmatmul.mubr.msk.f32.gmra.mrb[74].mxu1 %vm637_vm8, %v4461_v18 }
0x141f   :  { %v4462_v61 = vpop.trf.xlu0 }
0x1420   :  { %10797 = vmatprep.mubr.msk.f32.mxu1 %vm637_vm8, %v4462_v61 }
0x1423   :  { %v4463_v62 = vpop.trf.xlu0 }
0x1424   :  { %10798 = vmatmul.mubr.msk.f32.gmra.mrb[76].mxu1 %vm637_vm8, %v4463_v62 }
0x1425   :  { %10816 = vmatprep.mubr.msk.f32.mxu1 %vm11607_vm0, %v15511_v8 }
0x143d   :  { %v4071_v48 = vpop.trf.xlu0 }
0x143e   :  { %10750 = vmatprep.mubr.msk.f32.mxu0 %vm637_vm8, %v4071_v48 }
0x1441   :  { %v4072_v44 = vpop.trf.xlu0 }
0x1442   :  { %10751 = vmatmul.mubr.msk.f32.vlgmr.msra.gmra.mrb[58].mxu0 %vm637_vm8, %v4072_v44  ;;  %v4691_v44 = vmul.f32 0.001, %v4675_v1 }
0x1445   :  { %v4073_v53 = vpop.trf.xlu0 }
0x1446   :  { %10753 = vmatprep.mubr.msk.f32.mxu0 %vm637_vm8, %v4073_v53 }
0x1449   :  { %v4074_v19 = vpop.trf.xlu0 }
0x144a   :  { %10754 = vmatmul.mubr.msk.f32.gmra.mrb[60].mxu0 %vm637_vm8, %v4074_v19 }
0x144d   :  { %v4075_v43 = vpop.trf.xlu0 }
0x144e   :  { %10756 = vmatprep.mubr.msk.f32.mxu0 %vm637_vm8, %v4075_v43 }
0x1451   :  { %v4076_v57 = vpop.trf.xlu0 }
0x1452   :  { %10757 = vmatmul.mubr.msk.f32.gmra.mrb[62].mxu0 %vm637_vm8, %v4076_v57 }
0x1455   :  { %v4077_v0 = vpop.trf.xlu0 }
0x1456   :  { %10759 = vmatprep.mubr.msk.f32.mxu0 %vm637_vm8, %v4077_v0 }
0x1459   :  { %v4078_v7 = vpop.trf.xlu0 }
0x145a   :  { %10760 = vmatmul.mubr.msk.f32.gmra.mrb[64].mxu0 %vm637_vm8, %v4078_v7 }
0x145d   :  { %v4079_v3 = vpop.trf.xlu0 }
0x145e   :  { %10762 = vmatprep.mubr.msk.f32.mxu0 %vm637_vm8, %v4079_v3 }
0x1461   :  { %v4080_v6 = vpop.trf.xlu0 }
0x1462   :  { %10763 = vmatmul.mubr.msk.f32.gmra.mrb[66].mxu0 %vm637_vm8, %v4080_v6 }
0x1465   :  { %v4081_v42 = vpop.trf.xlu0 }
0x1466   :  { %10765 = vmatprep.mubr.msk.f32.mxu0 %vm637_vm8, %v4081_v42  ;;  %v4678_v42 = vld [vmem:[%s15496_s5 + $0xa8] sm:$0xff] }
0x1469   :  { %v4082_v27 = vpop.trf.xlu0 }
0x146a   :  { %10766 = vmatmul.mubr.msk.f32.gmra.mrb[68].mxu0 %vm637_vm8, %v4082_v27 }
0x146d   :  { %v4083_v4 = vpop.trf.xlu0 }
0x146e   :  { %10768 = vmatprep.mubr.msk.f32.mxu0 %vm637_vm8, %v4083_v4 }
0x1471   :  { %v4084_v37 = vpop.trf.xlu0 }
0x1472   :  { %10769 = vmatmul.mubr.msk.f32.gmra.mrb[70].mxu0 %vm637_vm8, %v4084_v37  ;;  %v4677_v37 = vld [vmem:[%s15496_s5 + $0xa0] sm:$0xff] }
0x1475   :  { %v4085_v45 = vpop.trf.xlu0 }
0x1476   :  { %10771 = vmatprep.mubr.msk.f32.mxu0 %vm637_vm8, %v4085_v45 }
0x1479   :  { %v4086_v17 = vpop.trf.xlu0 }
0x147a   :  { %10772 = vmatmul.mubr.msk.f32.gmra.mrb[72].mxu0 %vm637_vm8, %v4086_v17 }
0x147b   :  { %5007 = vmatprep.mubr.f32.mxu0 %v13345_v16  ;;  %v4676_v16 = vld [vmem:[%s15496_s5 + $0x98] sm:$0xff] }
0x147c   :  { %v4692_v18 = vmul.f32 0.001, %v4676_v16 }
0x14bf   :  { %v10778_v24 = vpop.f32.mrb[62].mxu1 }
0x14c0   :  { %v4658_v30 = vmul.f32 0.5, %v10778_v24  ;;  %v4578_v25 = vpop.f32.mrb[63].mxu1 }
0x14c1   :  { %v4657_v34 = vmul.f32 0.5, %v4578_v25 }
0x14c2   :  { %v4706_v13 = vsub.f32 %v4658_v30, %v4690_v41  ;;  %v4694_v30 = vmul.f32 0.001, %v4678_v42 }
0x14c3   :  { %v4705_v10 = vsub.f32 %v4657_v34, %v4689_v38 }
0x14c4   :  { %v4722_v28 = vmul.f32 0.001, %v4706_v13  ;;  %v4693_v13 = vmul.f32 0.001, %v4677_v37 }
0x14c5   :  { %v4721_v39 = vmul.f32 0.001, %v4705_v10 }
0x14c6   :  { %v4738_v12 = vadd.f32 %v4722_v28, %v4674_v46 }
0x14c7   :  { %v4737_v35 = vadd.f32 %v4721_v39, %v4673_v32  ;;  %v10781_v20 = vpop.f32.mrb[64].mxu1 }
0x14c8   :  { %v4770_v14 = vmul.f32 %v4738_v12, %v11970_v9  ;;  %v4660_v29 = vmul.f32 0.5, %v10781_v20  ;;  %v4588_v61 = vpop.f32.mrb[65].mxu1 }
0x14c9   :  { %v4769_v62 = vmul.f32 %v4737_v35, %v11974_v15  ;;  %v4659_v48 = vmul.f32 0.5, %v4588_v61 }
0x14ca   :  { %v4786_v53 = vmax.f32 %v4770_v14, 0.0  ;;  %v4708_v19 = vsub.f32 %v4660_v29, %v4692_v18  ;;  %v4680_v14 = vld [vmem:[%s15496_s5 + $0xb8] sm:$0xff]  ;;  %v4679_v29 = vld [vmem:[%s15496_s5 + $0xb0] sm:$0xff] }
0x14cb   :  { %v4785_v43 = vmax.f32 %v4769_v62, 0.0  ;;  %v4707_v57 = vsub.f32 %v4659_v48, %v4691_v44 }
0x14cc   :  { %v13410_v0 = vmul.f32 %v4786_v53, %v11970_v9  ;;  %v4724_v7 = vmul.f32 0.001, %v4708_v19  ;;  %v4696_v19 = vmul.f32 0.001, %v4680_v14 }
0x14cd   :  { %v13413_v3 = vmul.f32 %v4785_v43, %v11974_v15  ;;  %v4723_v6 = vmul.f32 0.001, %v4707_v57  ;;  %v4695_v57 = vmul.f32 0.001, %v4679_v29 }
0x14ce   :  { %v4818_v27 = vmul.f32 %v13410_v0, %v13410_v0  ;;  %v4740_v4 = vadd.f32 %v4724_v7, %v4676_v16 }
0x14cf   :  { %v4817_v45 = vmul.f32 %v13413_v3, %v13413_v3  ;;  %v4739_v17 = vadd.f32 %v4723_v6, %v4675_v1  ;;  %v10784_v46 = vpop.f32.mrb[66].mxu1 }
0x14d0   :  { %v4772_v32 = vmul.f32 %v4740_v4, %v11996_v36  ;;  %v4662_v24 = vmul.f32 0.5, %v10784_v46  ;;  %v4598_v41 = vpop.f32.mrb[67].mxu1 }
0x14d1   :  { %v4833_v25 = vadd.f32 %v4818_v27, %v4817_v45  ;;  %v4771_v34 = vmul.f32 %v4739_v17, %v12002_v47  ;;  %v4661_v38 = vmul.f32 0.5, %v4598_v41 }
0x14d2   :  { %v4788_v10 = vmax.f32 %v4772_v32, 0.0  ;;  %v4710_v28 = vsub.f32 %v4662_v24, %v4694_v30 }
0x14d3   :  { %v4787_v39 = vmax.f32 %v4771_v34, 0.0  ;;  %v4709_v16 = vsub.f32 %v4661_v38, %v4693_v13  ;;  %v4681_v34 = vld [vmem:[%s15496_s5 + $0xc0] sm:$0xff] }
0x14d4   :  { %v4726_v12 = vmul.f32 0.001, %v4710_v28  ;;  %v13428_v35 = vmul.f32 %v4788_v10, %v11996_v36 }
0x14d5   :  { %v13431_v1 = vmul.f32 %v4787_v39, %v12002_v47  ;;  %v4725_v20 = vmul.f32 0.001, %v4709_v16 }
0x14d6   :  { %v4742_v18 = vadd.f32 %v4726_v12, %v4678_v42  ;;  %v4820_v7 = vmul.f32 %v13428_v35, %v13428_v35 }
0x14d7   :  { %v4819_v61 = vmul.f32 %v13431_v1, %v13431_v1  ;;  %v4741_v62 = vadd.f32 %v4725_v20, %v4677_v37  ;;  %v10787_v48 = vpop.f32.mrb[68].mxu1 }
0x14d8   :  { %v4774_v44 = vmul.f32 %v4742_v18, %v12026_v23  ;;  %v4664_v53 = vmul.f32 0.5, %v10787_v48  ;;  %v4608_v43 = vpop.f32.mrb[69].mxu1  ;;  %v4697_v18 = vmul.f32 0.001, %v4681_v34 }
0x14d9   :  { %v4834_v6 = vadd.f32 %v4833_v25, %v4819_v61  ;;  %v4773_v27 = vmul.f32 %v4741_v62, %v12031_v26  ;;  %v4663_v4 = vmul.f32 0.5, %v4608_v43  ;;  %v4682_v25 = vld [vmem:[%s15496_s5 + $0xc8] sm:$0xff] }
0x14da   :  { %v4790_v45 = vmax.f32 %v4774_v44, 0.0  ;;  %v4712_v42 = vsub.f32 %v4664_v53, %v4696_v19  ;;  %v4698_v12 = vmul.f32 0.001, %v4682_v25 }
0x14db   :  { %v4789_v17 = vmax.f32 %v4773_v27, 0.0  ;;  %v4835_v46 = vadd.f32 %v4834_v6, %v4820_v7  ;;  %v4711_v32 = vsub.f32 %v4663_v4, %v4695_v57  ;;  %v4684_v4 = vld [vmem:[%s15496_s5 + $0xd8] sm:$0xff] }
0x14dc   :  { %v4728_v37 = vmul.f32 0.001, %v4712_v42  ;;  %v13446_v24 = vmul.f32 %v4790_v45, %v12026_v23  ;;  %v4683_v45 = vld [vmem:[%s15496_s5 + $0xd0] sm:$0xff] }
0x14dd   :  { %v13449_v30 = vmul.f32 %v4789_v17, %v12031_v26  ;;  %v4727_v41 = vmul.f32 0.001, %v4711_v32 }
0x14de   :  { %v4744_v38 = vadd.f32 %v4728_v37, %v4680_v14  ;;  %v4822_v61 = vmul.f32 %v13446_v24, %v13446_v24 }
0x14df   :  { %v4821_v13 = vmul.f32 %v13449_v30, %v13449_v30  ;;  %v4743_v10 = vadd.f32 %v4727_v41, %v4679_v29  ;;  %v10790_v28 = vpop.f32.mrb[70].mxu1 }
0x14e0   :  { %v4776_v39 = vmul.f32 %v4744_v38, %v12054_v63  ;;  %v4666_v16 = vmul.f32 0.5, %v10790_v28  ;;  %v4618_v20 = vpop.f32.mrb[71].mxu1  ;;  %v4700_v38 = vmul.f32 0.001, %v4684_v4 }
0x14e1   :  { %v4836_v62 = vadd.f32 %v4835_v46, %v4821_v13  ;;  %v4775_v48 = vmul.f32 %v4743_v10, %v12057_v2  ;;  %v4665_v44 = vmul.f32 0.5, %v4618_v20  ;;  %v4699_v10 = vmul.f32 0.001, %v4683_v45 }
0x14e2   :  { %v4792_v53 = vmax.f32 %v4776_v39, 0.0  ;;  %v4714_v14 = vsub.f32 %v4666_v16, %v4698_v12 }
0x14e3   :  { %v4791_v19 = vmax.f32 %v4775_v48, 0.0  ;;  %v4837_v43 = vadd.f32 %v4836_v62, %v4822_v61  ;;  %v4713_v57 = vsub.f32 %v4665_v44, %v4697_v18 }
0x14e4   :  { %v4730_v29 = vmul.f32 0.001, %v4714_v14  ;;  %v13464_v7 = vmul.f32 %v4792_v53, %v12054_v63 }
0x14e5   :  { %v13467_v6 = vmul.f32 %v4791_v19, %v12057_v2  ;;  %v4729_v27 = vmul.f32 0.001, %v4713_v57  ;;  %v4686_v19 = vld [vmem:[%s15496_s5 + $0xe8] sm:$0xff] }
0x14e6   :  { %v4746_v42 = vadd.f32 %v4730_v29, %v4682_v25  ;;  %v4824_v28 = vmul.f32 %v13464_v7, %v13464_v7 }
0x14e7   :  { %v4823_v17 = vmul.f32 %v13467_v6, %v13467_v6  ;;  %v4745_v46 = vadd.f32 %v4729_v27, %v4681_v34  ;;  %v10793_v32 = vpop.f32.mrb[72].mxu1 }
0x14e8   :  { %v4778_v37 = vmul.f32 %v4746_v42, %v12080_v49  ;;  %v4668_v41 = vmul.f32 0.5, %v10793_v32  ;;  %v4628_v13 = vpop.f32.mrb[73].mxu1 }
0x14e9   :  { %v4838_v39 = vadd.f32 %v4837_v43, %v4823_v17  ;;  %v4777_v16 = vmul.f32 %v4745_v46, %v12085_v60  ;;  %v4667_v12 = vmul.f32 0.5, %v4628_v13  ;;  %v4685_v43 = vld [vmem:[%s15496_s5 + $0xe0] sm:$0xff] }
0x14ea   :  { %v4794_v20 = vmax.f32 %v4778_v37, 0.0  ;;  %v4716_v25 = vsub.f32 %v4668_v41, %v4700_v38  ;;  %v4702_v41 = vmul.f32 0.001, %v4686_v19  ;;  %v4701_v13 = vmul.f32 0.001, %v4685_v43 }
0x14eb   :  { %v4839_v18 = vadd.f32 %v4838_v39, %v4824_v28  ;;  %v4793_v61 = vmax.f32 %v4777_v16, 0.0  ;;  %v4715_v62 = vsub.f32 %v4667_v12, %v4699_v10 }
0x14ec   :  { %v13482_v34 = vmul.f32 %v4794_v20, %v12080_v49  ;;  %v4732_v48 = vmul.f32 0.001, %v4716_v25 }
0x14ed   :  { %v4840_v44 = vrot.slane %v4839_v18, 4  ;;  %v13485_v53 = vmul.f32 %v4793_v61, %v12085_v60  ;;  %v4731_v14 = vmul.f32 0.001, %v4715_v62 }
0x14ee   :  { %v4826_v57 = vmul.f32 %v13482_v34, %v13482_v34  ;;  %v4748_v29 = vadd.f32 %v4732_v48, %v4684_v4 }
0x14ef   :  { %v4841_v27 = vadd.f32 %v4840_v44, %v4839_v18  ;;  %v4825_v42 = vmul.f32 %v13485_v53, %v13485_v53  ;;  %v4747_v17 = vadd.f32 %v4731_v14, %v4683_v45  ;;  %v10796_v46 = vpop.f32.mrb[74].mxu1  ;;  %v4688_v14 = vld [vmem:[%s15496_s5 + $0xf8] sm:$0xff] }
0x14f0   :  { %v4780_v32 = vmul.f32 %v4748_v29, %v12111_v40  ;;  %v4670_v37 = vmul.f32 0.5, %v10796_v46  ;;  %v4638_v38 = vpop.f32.mrb[75].mxu1  ;;  %v4687_v46 = vld [vmem:[%s15496_s5 + $0xf0] sm:$0xff] }
0x14f1   :  { %v4842_v10 = vrot.slane %v4841_v27, 2  ;;  %v4846_v28 = vadd.f32 %v4826_v57, %v4825_v42  ;;  %v4779_v39 = vmul.f32 %v4747_v17, %v12104_v33  ;;  %v4669_v16 = vmul.f32 0.5, %v4638_v38 }
0x14f2   :  { %v4796_v12 = vmax.f32 %v4780_v32, 0.0  ;;  %v4718_v20 = vsub.f32 %v4670_v37, %v4702_v41  ;;  %v4704_v41 = vmul.f32 0.001, %v4688_v14 }
0x14f3   :  { %v4843_v4 = vadd.f32 %v4842_v10, %v4841_v27  ;;  %v4795_v25 = vmax.f32 %v4779_v39, 0.0  ;;  %v4717_v18 = vsub.f32 %v4669_v16, %v4701_v13 }
0x14f4   :  { %v4734_v61 = vmul.f32 0.001, %v4718_v20  ;;  %v13500_v45 = vmul.f32 %v4796_v12, %v12111_v40  ;;  %v4703_v12 = vmul.f32 0.001, %v4687_v46 }
0x14f5   :  { %v4844_v62 = vrot.slane %v4843_v4, 1  ;;  %v13503_v48 = vmul.f32 %v4795_v25, %v12104_v33  ;;  %v4733_v44 = vmul.f32 0.001, %v4717_v18 }
0x14f6   :  { %v4750_v57 = vadd.f32 %v4734_v61, %v4686_v19  ;;  %v4828_v13 = vmul.f32 %v13500_v45, %v13500_v45 }
0x14f7   :  { %v4845_v29 = vadd.f32 %v4844_v62, %v4843_v4  ;;  %v4827_v27 = vmul.f32 %v13503_v48, %v13503_v48  ;;  %v4749_v42 = vadd.f32 %v4733_v44, %v4685_v43  ;;  %v10799_v17 = vpop.f32.mrb[76].mxu1 }
0x14f8   :  { %v4782_v32 = vmul.f32 %v4750_v57, %v12145_v58  ;;  %v4672_v37 = vmul.f32 0.5, %v10799_v17  ;;  %v4648_v38 = vpop.f32.mrb[77].mxu1 }
0x14f9   :  { %11557 = vrsqrt.f32 %v4845_v29  ;;  %v4847_v19 = vadd.f32 %v4846_v28, %v4827_v27  ;;  %v4781_v10 = vmul.f32 %v4749_v42, %v12149_v51  ;;  %v4671_v43 = vmul.f32 0.5, %v4648_v38 }
0x14fa   :  { %v4798_v39 = vmax.f32 %v4782_v32, 0.0  ;;  %v4720_v16 = vsub.f32 %v4672_v37, %v4704_v41  ;;  %vm4864_vm3 = vcmp.gt.f32.partialorder %v4845_v29, 0.0 }
0x14fb   :  { %v4848_v20 = vadd.f32 %v4847_v19, %v4828_v13  ;;  %v4797_v4 = vmax.f32 %v4781_v10, 0.0  ;;  %v4719_v61 = vsub.f32 %v4671_v43, %v4703_v12 }
0x14fc   :  { %v13518_v25 = vmul.f32 %v4798_v39, %v12145_v58  ;;  %v4736_v18 = vmul.f32 0.001, %v4720_v16 }
0x14fd   :  { %v4849_v62 = vrot.slane %v4848_v20, 4  ;;  %v13521_v44 = vmul.f32 %v4797_v4, %v12149_v51  ;;  %v4735_v27 = vmul.f32 0.001, %v4719_v61 }
0x14fe   :  { %v4830_v28 = vmul.f32 %v13518_v25, %v13518_v25  ;;  %v4752_v57 = vadd.f32 %v4736_v18, %v4688_v14 }
0x14ff   :  { %v4850_v42 = vadd.f32 %v4849_v62, %v4848_v20  ;;  %v4829_v17 = vmul.f32 %v13521_v44, %v13521_v44  ;;  %v4751_v37 = vadd.f32 %v4735_v27, %v4687_v46 }
0x1500   :  { %v4784_v32 = vmul.f32 %v4752_v57, %v12175_v52 }
0x1501   :  { %v4851_v41 = vrot.slane %v4850_v42, 2  ;;  %v4855_v38 = vadd.f32 %v4830_v28, %v4829_v17  ;;  %v4783_v13 = vmul.f32 %v4751_v37, %v12183_v50  ;;  %v4297_v37 = vld [vmem:[%s15496_s5 + $0x8] sm:$0xff] }
0x1502   :  { %v4800_v39 = vmax.f32 %v4784_v32, 0.0 }
0x1503   :  { %v11558_v19 = vpop.eup %11557  ;;  %v4852_v10 = vadd.f32 %v4851_v41, %v4850_v42  ;;  %v4799_v43 = vmax.f32 %v4783_v13, 0.0 }
0x1504   :  { %v4866_v16 = vsel %vm4864_vm3, %v11558_v19, 0.0  ;;  %v4296_v19 = vld [vmem:[%s15496_s5] sm:$0xff] }
0x1505   :  { %v4873_v14 = vmul.f32 %v4866_v16, %v13413_v3  ;;  %v4874_v12 = vmul.f32 %v4866_v16, %v13410_v0  ;;  %v4875_v20 = vmul.f32 %v4866_v16, %v13431_v1  ;;  %v4876_v4 = vmul.f32 %v4866_v16, %v13428_v35 }
0x1506   :  { %v4877_v46 = vmul.f32 %v4866_v16, %v13449_v30  ;;  %v4878_v18 = vmul.f32 %v4866_v16, %v13446_v24  ;;  %v4879_v61 = vmul.f32 %v4866_v16, %v13467_v6  ;;  %v4880_v29 = vmul.f32 %v4866_v16, %v13464_v7 }
0x1507   :  { %4889 = vst [vmem:[%s15496_s5 + $0x80] sm:$0xff] %v4873_v14  ;;  %4890 = vst [vmem:[%s15496_s5 + $0x88] sm:$0xff] %v4874_v12  ;;  %v4853_v0 = vrot.slane %v4852_v10, 1  ;;  %v13550_v3 = vmul.f32 %v4800_v39, %v12175_v52  ;;  %v13553_v35 = vmul.f32 %v4799_v43, %v12183_v50  ;;  %v11328_v1 = vpack.c.bf16 %v4874_v12, %v4873_v14 }
0x1508   :  { %4891 = vst [vmem:[%s15496_s5 + $0x90] sm:$0xff] %v4875_v20  ;;  %4892 = vst [vmem:[%s15496_s5 + $0x98] sm:$0xff] %v4876_v4  ;;  %v13567_v24 = vpack.c.bf16 %v4876_v4, %v4875_v20  ;;  %v13569_v30 = vpack.c.bf16 %v4878_v18, %v4877_v46  ;;  %v13571_v7 = vpack.c.bf16 %v4880_v29, %v4879_v61  ;;  %v4305_v16 = vmul.f32 0.001, %v4297_v37 }
0x1509   :  { %4895 = vst [vmem:[%s15496_s5 + $0xb0] sm:$0xff] %v4879_v61  ;;  %4893 = vst [vmem:[%s15496_s5 + $0xa0] sm:$0xff] %v4877_v46  ;;  %v4854_v6 = vadd.f32 %v4853_v0, %v4852_v10  ;;  %v4831_v62 = vmul.f32 %v13553_v35, %v13553_v35  ;;  %11329 = vmatprep.subr.bf16.mxu0 %v11328_v1  ;;  %11362 = vmatpush3.bf16.msra.mxu1 %v11328_v1  ;;  %v4299_v1 = vld [vmem:[%s15496_s5 + $0x18] sm:$0xff] }
0x150a   :  { %4894 = vst [vmem:[%s15496_s5 + $0xa8] sm:$0xff] %v4878_v18  ;;  %4896 = vst [vmem:[%s15496_s5 + $0xb8] sm:$0xff] %v4880_v29  ;;  %11363 = vmatprep.subr.bf16.mxu1 %v15512_v21  ;;  %v4832_v28 = vmul.f32 %v13550_v3, %v13550_v3  ;;  %v4304_v29 = vmul.f32 0.001, %v4296_v19 }
0x150b   :  { %11559 = vrsqrt.f32 %v4854_v6  ;;  %v4856_v57 = vadd.f32 %v4855_v38, %v4831_v62  ;;  %vm4867_vm5 = vcmp.gt.f32.partialorder %v4854_v6, 0.0 }
0x150d   :  { %v4857_v27 = vadd.f32 %v4856_v57, %v4832_v28  ;;  %11365 = vmatpush3.bf16.msra.mxu1 %v13567_v24  ;;  %v4298_v28 = vld [vmem:[%s15496_s5 + $0x10] sm:$0xff] }
0x150e   :  { %11366 = vmatprep.subr.bf16.mxu1 %v15512_v21 }
0x150f   :  { %v4858_v42 = vrot.slane %v4857_v27, 4 }
0x1511   :  { %v4859_v17 = vadd.f32 %v4858_v42, %v4857_v27  ;;  %11368 = vmatpush3.bf16.msra.mxu1 %v13569_v30 }
0x1512   :  { %11369 = vmatprep.subr.bf16.mxu1 %v15512_v21 }
0x1513   :  { %v4860_v32 = vrot.slane %v4859_v17, 2 }
0x1515   :  { %v11560_v41 = vpop.eup %11559  ;;  %v4861_v13 = vadd.f32 %v4860_v32, %v4859_v17  ;;  %v10752_v38 = vpop.f32.mrb[58].mxu0  ;;  %11371 = vmatpush3.bf16.msra.mxu1 %v13571_v7  ;;  %v4307_v17 = vmul.f32 0.001, %v4299_v1 }
0x1516   :  { %v4869_v10 = vsel %vm4867_vm5, %v11560_v41, 0.0  ;;  %v4281_v39 = vmul.f32 0.5, %v10752_v38  ;;  %v4201_v43 = vpop.f32.mrb[59].mxu0 }
0x1517   :  { %v4881_v14 = vmul.f32 %v4869_v10, %v13485_v53  ;;  %v4882_v12 = vmul.f32 %v4869_v10, %v13482_v34  ;;  %v4883_v20 = vmul.f32 %v4869_v10, %v13503_v48  ;;  %v4884_v4 = vmul.f32 %v4869_v10, %v13500_v45 }
0x1518   :  { %v4862_v46 = vrot.slane %v4861_v13, 1  ;;  %v4313_v18 = vsub.f32 %v4281_v39, %v4305_v16  ;;  %v4280_v61 = vmul.f32 0.5, %v4201_v43 }
0x1519   :  { %4899 = vst [vmem:[%s15496_s5 + $0xd0] sm:$0xff] %v4883_v20  ;;  %4897 = vst [vmem:[%s15496_s5 + $0xc0] sm:$0xff] %v4881_v14  ;;  %v13605_v34 = vpack.c.bf16 %v4882_v12, %v4881_v14  ;;  %v13607_v53 = vpack.c.bf16 %v4884_v4, %v4883_v20  ;;  %v4300_v14 = vld [vmem:[%s15496_s5 + $0x20] sm:$0xff] }
0x151a   :  { %4898 = vst [vmem:[%s15496_s5 + $0xc8] sm:$0xff] %v4882_v12  ;;  %4900 = vst [vmem:[%s15496_s5 + $0xd8] sm:$0xff] %v4884_v4  ;;  %v4863_v45 = vadd.f32 %v4862_v46, %v4861_v13  ;;  %v4321_v48 = vmul.f32 %v4313_v18, %v12296_v22  ;;  %v4312_v0 = vsub.f32 %v4280_v61, %v4304_v29  ;;  %v4306_v13 = vmul.f32 0.001, %v4298_v28 }
0x151c   :  { %11561 = vrsqrt.f32 %v4863_v45  ;;  %v4329_v6 = vadd.f32 %v4321_v48, %v4297_v37  ;;  %v4320_v62 = vmul.f32 %v4312_v0, %v12296_v22  ;;  %vm4870_vm11 = vcmp.gt.f32.partialorder %v4863_v45, 0.0 }
0x151d   :  { %v10755_v57 = vpop.f32.mrb[60].mxu0  ;;  %v4308_v48 = vmul.f32 0.001, %v4300_v14 }
0x151e   :  { %4337 = vst [vmem:[%s15496_s5 + $0x8] sm:$0xff] %v4329_v6  ;;  %v4328_v27 = vadd.f32 %v4320_v62, %v4296_v19  ;;  %v4283_v42 = vmul.f32 0.5, %v10755_v57  ;;  %v4211_v32 = vpop.f32.mrb[61].mxu0  ;;  %v4301_v19 = vld [vmem:[%s15496_s5 + $0x28] sm:$0xff] }
0x151f   :  { %v4282_v41 = vmul.f32 0.5, %v4211_v32  ;;  %v4309_v18 = vmul.f32 0.001, %v4301_v19 }
0x1520   :  { %4336 = vst [vmem:[%s15496_s5] sm:$0xff] %v4328_v27  ;;  %v4315_v37 = vsub.f32 %v4283_v42, %v4307_v17  ;;  %v11330_v38 = vpack.c.bf16 %v4329_v6, %v4328_v27  ;;  %v4303_v27 = vld [vmem:[%s15496_s5 + $0x38] sm:$0xff]  ;;  %v4302_v42 = vld [vmem:[%s15496_s5 + $0x30] sm:$0xff] }
0x1521   :  { %v4314_v10 = vsub.f32 %v4282_v41, %v4306_v13  ;;  %v4311_v13 = vmul.f32 0.001, %v4303_v27 }
0x1522   :  { %v4323_v39 = vmul.f32 %v4315_v37, %v12296_v22  ;;  %11331 = vmatpush3.bf16.msra.mxu0 %v11330_v38 }
0x1523   :  { %v4322_v16 = vmul.f32 %v4314_v10, %v12296_v22  ;;  %11333 = vmatprep.subr.bf16.mxu0 %v13567_v24  ;;  %v4310_v10 = vmul.f32 0.001, %v4302_v42 }
0x1524   :  { %v4331_v43 = vadd.f32 %v4323_v39, %v4299_v1 }
0x1525   :  { %v4330_v12 = vadd.f32 %v4322_v16, %v4298_v28  ;;  %v10758_v20 = vpop.f32.mrb[62].mxu0 }
0x1526   :  { %v11562_v4 = vpop.eup %11561  ;;  %4339 = vst [vmem:[%s15496_s5 + $0x18] sm:$0xff] %v4331_v43  ;;  %v4285_v46 = vmul.f32 0.5, %v10758_v20  ;;  %v4221_v61 = vpop.f32.mrb[63].mxu0 }
0x1527   :  { %v4872_v29 = vsel %vm4870_vm11, %v11562_v4, 0.0  ;;  %4338 = vst [vmem:[%s15496_s5 + $0x10] sm:$0xff] %v4330_v12  ;;  %v4284_v24 = vmul.f32 0.5, %v4221_v61  ;;  %v11334_v0 = vpack.c.bf16 %v4331_v43, %v4330_v12  ;;  %v4345_v12 = vld [vmem:[%s15496_s5 + $0x48] sm:$0xff]  ;;  %v4344_v4 = vld [vmem:[%s15496_s5 + $0x40] sm:$0xff] }
0x1528   :  { %v13639_v1 = vmul.f32 %v4872_v29, %v13521_v44  ;;  %v13642_v45 = vmul.f32 %v4872_v29, %v13518_v25  ;;  %v13645_v6 = vmul.f32 %v4872_v29, %v13553_v35  ;;  %v13648_v62 = vmul.f32 %v4872_v29, %v13550_v3 }
0x1529   :  { %v4317_v28 = vsub.f32 %v4285_v46, %v4309_v18  ;;  %v4316_v57 = vsub.f32 %v4284_v24, %v4308_v48  ;;  %11335 = vmatpush3.bf16.msra.mxu0 %v11334_v0  ;;  %v4353_v29 = vmul.f32 0.001, %v4345_v12  ;;  %v4352_v48 = vmul.f32 0.001, %v4344_v4 }
0x152a   :  { %4901 = vst [vmem:[%s15496_s5 + $0xe0] sm:$0xff] %v13639_v1  ;;  %4902 = vst [vmem:[%s15496_s5 + $0xe8] sm:$0xff] %v13642_v45  ;;  %11337 = vmatprep.subr.bf16.mxu0 %v13569_v30  ;;  %v11352_v25 = vpack.c.bf16 %v13642_v45, %v13639_v1  ;;  %v11600_v1 = vld [vmem:[%s15498_s2 + $0x18] sm:$0xff] }
0x152b   :  { %4903 = vst [vmem:[%s15496_s5 + $0xf0] sm:$0xff] %v13645_v6  ;;  %4904 = vst [vmem:[%s15496_s5 + $0xf8] sm:$0xff] %v13648_v62  ;;  %v4325_v3 = vmul.f32 %v4317_v28, %v12296_v22  ;;  %v4324_v35 = vmul.f32 %v4316_v57, %v12296_v22  ;;  %v4907_v45 = vmul.f32 %v11600_v1, %v11873_v59 }
0x152d   :  { %v4333_v17 = vadd.f32 %v4325_v3, %v4301_v19  ;;  %v4332_v30 = vadd.f32 %v4324_v35, %v4300_v14  ;;  %v10761_v32 = vpop.f32.mrb[64].mxu0 }
0x152e   :  { %v4287_v41 = vmul.f32 0.5, %v10761_v32  ;;  %v4231_v37 = vpop.f32.mrb[65].mxu0 }
0x152f   :  { %4341 = vst [vmem:[%s15496_s5 + $0x28] sm:$0xff] %v4333_v17  ;;  %4340 = vst [vmem:[%s15496_s5 + $0x20] sm:$0xff] %v4332_v30  ;;  %v4286_v38 = vmul.f32 0.5, %v4231_v37  ;;  %v11338_v39 = vpack.c.bf16 %v4333_v17, %v4332_v30  ;;  %v4346_v17 = vld [vmem:[%s15496_s5 + $0x50] sm:$0xff] }
0x1530   :  { %v4319_v16 = vsub.f32 %v4287_v41, %v4311_v13 }
0x1531   :  { %v4318_v43 = vsub.f32 %v4286_v38, %v4310_v10  ;;  %11339 = vmatpush3.bf16.msra.mxu0 %v11338_v39 }
0x1532   :  { %v4327_v19 = vmul.f32 %v4319_v16, %v12296_v22  ;;  %11341 = vmatprep.subr.bf16.mxu0 %v13571_v7  ;;  %v4354_v16 = vmul.f32 0.001, %v4346_v17 }
0x1533   :  { %v4326_v14 = vmul.f32 %v4318_v43, %v12296_v22 }
0x1534   :  { %v4335_v20 = vadd.f32 %v4327_v19, %v4303_v27  ;;  %v4347_v27 = vld [vmem:[%s15496_s5 + $0x58] sm:$0xff] }
0x1535   :  { %v4334_v46 = vadd.f32 %v4326_v14, %v4302_v42  ;;  %v10764_v18 = vpop.f32.mrb[66].mxu0  ;;  %v4355_v37 = vmul.f32 0.001, %v4347_v27 }
0x1536   :  { %4343 = vst [vmem:[%s15496_s5 + $0x38] sm:$0xff] %v4335_v20  ;;  %v4289_v61 = vmul.f32 0.5, %v10764_v18  ;;  %v4241_v7 = vpop.f32.mrb[67].mxu0  ;;  %v4349_v18 = vld [vmem:[%s15496_s5 + $0x68] sm:$0xff] }
0x1537   :  { %4342 = vst [vmem:[%s15496_s5 + $0x30] sm:$0xff] %v4334_v46  ;;  %v4288_v24 = vmul.f32 0.5, %v4241_v7  ;;  %v11342_v0 = vpack.c.bf16 %v4335_v20, %v4334_v46 }
0x1538   :  { %v4361_v28 = vsub.f32 %v4289_v61, %v4353_v29  ;;  %v4348_v29 = vld [vmem:[%s15496_s5 + $0x60] sm:$0xff] }
0x1539   :  { %v4360_v57 = vsub.f32 %v4288_v24, %v4352_v48  ;;  %11343 = vmatpush3.bf16.msra.mxu0 %v11342_v0  ;;  %v4357_v0 = vmul.f32 0.001, %v4349_v18 }
0x153a   :  { %v4369_v3 = vmul.f32 %v4361_v28, %v12352_v31  ;;  %11345 = vmatprep.subr.bf16.mxu0 %v13605_v34 }
0x153b   :  { %v4368_v35 = vmul.f32 %v4360_v57, %v12352_v31 }
0x153c   :  { %v4377_v42 = vadd.f32 %v4369_v3, %v4345_v12 }
0x153d   :  { %v4376_v30 = vadd.f32 %v4368_v35, %v4344_v4  ;;  %v10767_v32 = vpop.f32.mrb[68].mxu0 }
0x153e   :  { %v13709_v41 = vmax.f32 %v4377_v42, 0.0  ;;  %v4291_v13 = vmul.f32 0.5, %v10767_v32  ;;  %v4251_v38 = vpop.f32.mrb[69].mxu0  ;;  %v4356_v42 = vmul.f32 0.001, %v4348_v29 }
0x153f   :  { %v13711_v10 = vmax.f32 %v4376_v30, 0.0  ;;  %v4290_v39 = vmul.f32 0.5, %v4251_v38 }
0x1540   :  { %v4393_v43 = vmul.f32 %v13709_v41, %v13709_v41  ;;  %v4363_v19 = vsub.f32 %v4291_v13, %v4355_v37 }
0x1541   :  { %v4392_v14 = vmul.f32 %v13711_v10, %v13711_v10  ;;  %v4362_v12 = vsub.f32 %v4290_v39, %v4354_v16 }
0x1542   :  { %v4371_v20 = vmul.f32 %v4363_v19, %v12352_v31 }
0x1543   :  { %v4400_v4 = vadd.f32 %v4393_v43, %v4392_v14  ;;  %v4370_v46 = vmul.f32 %v4362_v12, %v12352_v31  ;;  %v4350_v43 = vld [vmem:[%s15496_s5 + $0x70] sm:$0xff] }
0x1544   :  { %v4379_v61 = vadd.f32 %v4371_v20, %v4347_v27 }
0x1545   :  { %v4378_v7 = vadd.f32 %v4370_v46, %v4346_v17  ;;  %v10770_v24 = vpop.f32.mrb[70].mxu0  ;;  %v4351_v17 = vld [vmem:[%s15496_s5 + $0x78] sm:$0xff] }
0x1546   :  { %v4293_v48 = vmul.f32 0.5, %v10770_v24  ;;  %v4261_v28 = vpop.f32.mrb[71].mxu0  ;;  %v4387_v57 = vmax.f32 %v4379_v61, 0.0  ;;  %v4359_v46 = vmul.f32 0.001, %v4351_v17 }
0x1547   :  { %v4386_v3 = vmax.f32 %v4378_v7, 0.0  ;;  %v4292_v35 = vmul.f32 0.5, %v4261_v28 }
0x1548   :  { %v4365_v30 = vsub.f32 %v4293_v48, %v4357_v0  ;;  %v4395_v38 = vmul.f32 %v4387_v57, %v4387_v57  ;;  %v4358_v48 = vmul.f32 0.001, %v4350_v43 }
0x1549   :  { %v4394_v32 = vmul.f32 %v4386_v3, %v4386_v3  ;;  %v4364_v13 = vsub.f32 %v4292_v35, %v4356_v42 }
0x154a   :  { %v4373_v37 = vmul.f32 %v4365_v30, %v12352_v31 }
0x154b   :  { %v4401_v27 = vadd.f32 %v4400_v4, %v4394_v32  ;;  %v4372_v39 = vmul.f32 %v4364_v13, %v12352_v31 }
0x154c   :  { %v4381_v16 = vadd.f32 %v4373_v37, %v4349_v18 }
0x154d   :  { %v4380_v19 = vadd.f32 %v4372_v39, %v4348_v29  ;;  %v4402_v14 = vadd.f32 %v4401_v27, %v4395_v38  ;;  %v10773_v12 = vpop.f32.mrb[72].mxu0 }
0x154e   :  { %v4295_v20 = vmul.f32 0.5, %v10773_v12  ;;  %v4271_v61 = vpop.f32.mrb[73].mxu0  ;;  %v4389_v7 = vmax.f32 %v4381_v16, 0.0 }
0x154f   :  { %v4388_v24 = vmax.f32 %v4380_v19, 0.0  ;;  %v4294_v4 = vmul.f32 0.5, %v4271_v61 }
0x1550   :  { %v4367_v0 = vsub.f32 %v4295_v20, %v4359_v46  ;;  %v4397_v18 = vmul.f32 %v4389_v7, %v4389_v7 }
0x1551   :  { %v4396_v28 = vmul.f32 %v4388_v24, %v4388_v24  ;;  %v4366_v35 = vsub.f32 %v4294_v4, %v4358_v48 }
0x1552   :  { %v4375_v42 = vmul.f32 %v4367_v0, %v12352_v31 }
0x1553   :  { %v4403_v30 = vadd.f32 %v4402_v14, %v4396_v28  ;;  %v4374_v32 = vmul.f32 %v4366_v35, %v12352_v31 }
0x1554   :  { %v4383_v13 = vadd.f32 %v4375_v42, %v4351_v17 }
0x1555   :  { %v4382_v29 = vadd.f32 %v4374_v32, %v4350_v43  ;;  %v4404_v37 = vadd.f32 %v4403_v30, %v4397_v18 }
0x1556   :  { %v4391_v38 = vmax.f32 %v4383_v13, 0.0 }
0x1557   :  { %v4390_v27 = vmax.f32 %v4382_v29, 0.0 }
0x1558   :  { %v4399_v12 = vmul.f32 %v4391_v38, %v4391_v38 }
0x1559   :  { %v4398_v39 = vmul.f32 %v4390_v27, %v4390_v27 }
0x155b   :  { %v4405_v16 = vadd.f32 %v4404_v37, %v4398_v39 }
0x155d   :  { %v4406_v19 = vadd.f32 %v4405_v16, %v4399_v12 }
0x155f   :  { %v4407_v61 = vrot.slane %v4406_v19, 4 }
0x1561   :  { %v4408_v44 = vadd.f32 %v4407_v61, %v4406_v19 }
0x1563   :  { %v4409_v20 = vrot.slane %v4408_v44, 2 }
0x1565   :  { %v4410_v46 = vadd.f32 %v4409_v20, %v4408_v44 }
0x1567   :  { %v4411_v4 = vrot.slane %v4410_v46, 1 }
0x1569   :  { %v4412_v48 = vadd.f32 %v4411_v4, %v4410_v46 }
0x156b   :  { %11563 = vrsqrt.f32 %v4412_v48  ;;  %vm4413_vm12 = vcmp.gt.f32.partialorder %v4412_v48, 0.0 }
0x1575   :  { %v11564_v0 = vpop.eup %11563 }
0x1576   :  { %v4415_v14 = vsel %vm4413_vm12, %v11564_v0, 0.0 }
0x1577   :  { %v4416_v17 = vmul.f32 %v4415_v14, %v13711_v10  ;;  %v4417_v43 = vmul.f32 %v4415_v14, %v13709_v41  ;;  %v4418_v28 = vmul.f32 %v4415_v14, %v4386_v3  ;;  %v4419_v35 = vmul.f32 %v4415_v14, %v4387_v57 }
0x1578   :  { %v4420_v42 = vmul.f32 %v4415_v14, %v4388_v24  ;;  %v4421_v18 = vmul.f32 %v4415_v14, %v4389_v7  ;;  %v4422_v30 = vmul.f32 %v4415_v14, %v4390_v27  ;;  %v4423_v32 = vmul.f32 %v4415_v14, %v4391_v38  ;;  %v9664_v7 = vld [vmem:[%s15497_s0 + $0x20] sm:$0xff] }
0x1579   :  { %4424 = vst [vmem:[%s15496_s5 + $0x40] sm:$0xff] %v4416_v17  ;;  %4425 = vst [vmem:[%s15496_s5 + $0x48] sm:$0xff] %v4417_v43  ;;  %v11346_v44 = vpack.c.bf16 %v4417_v43, %v4416_v17  ;;  %v11350_v41 = vpack.c.bf16 %v4419_v35, %v4418_v28  ;;  %v15514_v3 = vpack.c.bf16 %v13648_v62, %v13645_v6 }
0x157a   :  { %4426 = vst [vmem:[%s15496_s5 + $0x50] sm:$0xff] %v4418_v28  ;;  %4427 = vst [vmem:[%s15496_s5 + $0x58] sm:$0xff] %v4419_v35  ;;  %v11354_v10 = vpack.c.bf16 %v4421_v18, %v4420_v42  ;;  %v11358_v57 = vpack.c.bf16 %v4423_v32, %v4422_v30  ;;  %v4908_v6 = vsub.f32 %v4907_v45, %v13333_v5 }
0x157b   :  { %4430 = vst [vmem:[%s15496_s5 + $0x70] sm:$0xff] %v4422_v30  ;;  %4428 = vst [vmem:[%s15496_s5 + $0x60] sm:$0xff] %v4420_v42  ;;  %11347 = vmatpush3.bf16.msra.mxu0 %v11346_v44 }
0x157c   :  { %4429 = vst [vmem:[%s15496_s5 + $0x68] sm:$0xff] %v4421_v18  ;;  %4431 = vst [vmem:[%s15496_s5 + $0x78] sm:$0xff] %v4423_v32  ;;  %11349 = vmatprep.subr.bf16.mxu0 %v13607_v53  ;;  %v4909_v62 = vmul.f32 0.005, %v4908_v6 }
0x157f   :  { %11351 = vmatpush3.bf16.msra.mxu0 %v11350_v41 }
0x1580   :  { %11353 = vmatprep.subr.bf16.mxu0 %v11352_v25 }
0x1583   :  { %11355 = vmatpush3.bf16.msra.mxu0 %v11354_v10 }
0x1584   :  { %11357 = vmatprep.subr.bf16.mxu0 %v15514_v3 }
0x1587   :  { %11359 = vmatpush3.bf16.msra.mxu0 %v11358_v57 }
0x1588   :  { %11372 = vmatprep.subr.bf16.mxu0 %v15512_v21 }
0x158a   :  { %5008 = vmatmul.mubr.f32.vlgmr.msra.gmra.mrb[74].mxu0 %v9664_v7 }
0x158b   :  { %11374 = vmatpush3.bf16.msra.mxu0 %v13605_v34  ;;  %10827 = vmatprep.mubr.msk.f32.mxu0 %vm11607_vm0, %v15511_v8  ;;  %v13783_v34 = vadd.f32 %v4909_v62, %v13333_v5 }
0x158c   :  { %11375 = vmatprep.subr.bf16.mxu0 %v15512_v21 }
0x158f   :  { %11377 = vmatpush3.bf16.msra.mxu0 %v13607_v53 }
0x165d   :  { %v10172_v25 = vpop.f32.mrb[74].mxu0 }
0x165e   :  { %v10173_v24 = vpop.f32.mrb[75].mxu0 }
0x165f   :  { %v10174_v13 = vadd.f32 %v10173_v24, %v10172_v25 }
0x1661   :  { %v5013_v29 = vsub.f32 %v10174_v13, %v13783_v34 }
0x1663   :  { %v5014_v37 = vmax.f32 %v5013_v29, 0.0 }
0x1665   :  { %v5015_v38 = vsub.f32 %v5014_v37, %v11600_v1 }
0x1667   :  { %v5016_v53 = vmul.f32 %v5015_v38, %v11881_v11 }
0x1669   :  { %v5017_v27 = vadd.f32 %v11600_v1, %v5016_v53 }
0x166b   :  { %v5018_v39 = vsub.f32 %v5017_v27, %v11600_v1 }
0x166d   :  { %10817 = vmatmul.mubr.msk.f32.vlgmr.msra.gmra.mrb[78].mxu1 %vm429_vm6, %v5018_v39  ;;  %v5019_v12 = vmul.f32 %v11858_v54, %v5018_v39 }
0x166f   :  { %v5020_v20 = vadd.f32 %v11600_v1, %v5019_v12 }
0x1740   :  { %v5098_v16 = vpop.f32.mrb[78].mxu1 }
0x1741   :  { %v5102_v19 = vadd.f32 %v5098_v16, %v5013_v29  ;;  %v10818_v61 = vpop.f32.mrb[79].mxu1 }
0x1743   :  { %v5103_v46 = vmax.f32 %v5102_v19, 0.0 }
0x1745   :  { %v5104_v5 = vsub.f32 %v5103_v46, %v5020_v20 }
0x1747   :  { %v5105_v4 = vmul.f32 %v5104_v5, %v11881_v11 }
0x1749   :  { %v5106_v48 = vadd.f32 %v5105_v4, %v5020_v20 }
0x174b   :  { %v5107_v0 = vsub.f32 %v5106_v48, %v5020_v20 }
0x174d   :  { %5115 = vrot.lane.b32.xlu1 %v5107_v0, %s11608_s1  ;;  %v5108_v14 = vmul.f32 %v11863_v55, %v5107_v0 }
0x174f   :  { %v5109_v17 = vadd.f32 %v5108_v14, %v5020_v20 }
0x17bf   :  { %v5116_v43 = vpop.permute.xlu1 %5115 }
0x17c0   :  { %10828 = vmatmul.mubr.msk.f32.vlgmr.msra.gmra.mrb[76].mxu0 %vm518_vm7, %v5116_v43 }
0x1893   :  { %v5185_v28 = vpop.f32.mrb[76].mxu0 }
0x1894   :  { %v5189_v35 = vadd.f32 %v5185_v28, %v5102_v19  ;;  %v10829_v42 = vpop.f32.mrb[77].mxu0 }
0x1896   :  { %v5190_v18 = vmax.f32 %v5189_v35, 0.0 }
0x1898   :  { %v5191_v30 = vsub.f32 %v5190_v18, %v5109_v17 }
0x189a   :  { %v5192_v32 = vmul.f32 %v5191_v30, %v11881_v11 }
0x189c   :  { %v5193_v44 = vadd.f32 %v5192_v32, %v5109_v17 }
0x189e   :  { %v5194_v41 = vsub.f32 %v5193_v44, %v5109_v17  ;;  %v5823_v44 = vld [vmem:[%s15496_s5 + $0x88] sm:$0xff] }
0x18a0   :  { %v5195_v10 = vmul.f32 %v11868_v56, %v5194_v41  ;;  %v5822_v41 = vld [vmem:[%s15496_s5 + $0x80] sm:$0xff] }
0x18a2   :  { %v13795_v57 = vadd.f32 %v5195_v10, %v5109_v17 }
0x18a4   :  { %5581 = vxpose.xlu1.b32.start.end [1/1] (short) %v13795_v57, 128  ;;  %5200 = vrot.lane.b32.xlu0 %v13795_v57, %s11608_s1  ;;  %9667 = vst [vmem:[%s15498_s2 + $0x20] sm:$0xff] %v13795_v57 }
0x18a5   :  { %10830 = vmatprep.subr.mxu1 %v13795_v57  ;;  %10856 = vmatprep.subr.mxu0 %v13795_v57 }
0x18a6   :  { %10831 = vmatpush3.msra.mxu1 %v13795_v57  ;;  %10857 = vmatpush3.msra.mxu0 %v13795_v57 }
0x18a7   :  { %11410 = vmatprep.subr.bf16.mxu0 %v15512_v21 }
0x1916   :  { %v5201_v3 = vpop.permute.xlu0 %5200 }
0x1917   :  { %v5203_v1 = vsel %vm429_vm6, %v9664_v7, %v5201_v3 }
0x1918   :  { %5204 = vxpose.xlu1.b32.start.end [1/1] (short) %v5203_v1, 128  ;;  %v5839_v1 = vmul.f32 0.001, %v5823_v44 }
0x1924   :  { %v5597_v45 = vpop.trf.xlu1 }
0x1925   :  { %10858 = vmatprep.mubr.msk.f32.mxu0 %vm637_vm8, %v5597_v45 }
0x1928   :  { %v5598_v6 = vpop.trf.xlu1 }
0x1929   :  { %10859 = vmatmul.mubr.msk.f32.vlgmr.msra.gmra.mrb[78].mxu0 %vm637_vm8, %v5598_v6 }
0x192c   :  { %v5599_v62 = vpop.trf.xlu1 }
0x192d   :  { %10861 = vmatprep.mubr.msk.f32.mxu0 %vm637_vm8, %v5599_v62  ;;  %v5838_v62 = vmul.f32 0.001, %v5822_v41 }
0x1930   :  { %v5600_v25 = vpop.trf.xlu1 }
0x1931   :  { %10862 = vmatmul.mubr.msk.f32.gmra.mrb[80].mxu0 %vm637_vm8, %v5600_v25 }
0x1934   :  { %v5601_v24 = vpop.trf.xlu1 }
0x1935   :  { %10864 = vmatprep.mubr.msk.f32.mxu0 %vm637_vm8, %v5601_v24 }
0x1938   :  { %v5602_v13 = vpop.trf.xlu1 }
0x1939   :  { %10865 = vmatmul.mubr.msk.f32.gmra.mrb[82].mxu0 %vm637_vm8, %v5602_v13 }
0x193c   :  { %v5603_v7 = vpop.trf.xlu1 }
0x193d   :  { %10867 = vmatprep.mubr.msk.f32.mxu0 %vm637_vm8, %v5603_v7 }
0x1940   :  { %v5604_v29 = vpop.trf.xlu1 }
0x1941   :  { %10868 = vmatmul.mubr.msk.f32.gmra.mrb[84].mxu0 %vm637_vm8, %v5604_v29 }
0x1944   :  { %v5605_v37 = vpop.trf.xlu1 }
0x1945   :  { %10870 = vmatprep.mubr.msk.f32.mxu0 %vm637_vm8, %v5605_v37  ;;  %v5824_v37 = vld [vmem:[%s15496_s5 + $0x90] sm:$0xff] }
0x1948   :  { %v5606_v38 = vpop.trf.xlu1 }
0x1949   :  { %10871 = vmatmul.mubr.msk.f32.gmra.mrb[86].mxu0 %vm637_vm8, %v5606_v38 }
0x194c   :  { %v5607_v53 = vpop.trf.xlu1 }
0x194d   :  { %10873 = vmatprep.mubr.msk.f32.mxu0 %vm637_vm8, %v5607_v53 }
0x1950   :  { %v5608_v27 = vpop.trf.xlu1 }
0x1951   :  { %10874 = vmatmul.mubr.msk.f32.gmra.mrb[88].mxu0 %vm637_vm8, %v5608_v27 }
0x1954   :  { %v5609_v39 = vpop.trf.xlu1 }
0x1955   :  { %10876 = vmatprep.mubr.msk.f32.mxu0 %vm637_vm8, %v5609_v39 }
0x1958   :  { %v5610_v12 = vpop.trf.xlu1 }
0x1959   :  { %10877 = vmatmul.mubr.msk.f32.gmra.mrb[90].mxu0 %vm637_vm8, %v5610_v12 }
0x195c   :  { %v5611_v16 = vpop.trf.xlu1 }
0x195d   :  { %10879 = vmatprep.mubr.msk.f32.mxu0 %vm637_vm8, %v5611_v16 }
0x1960   :  { %v5612_v19 = vpop.trf.xlu1 }
0x1961   :  { %10880 = vmatmul.mubr.msk.f32.gmra.mrb[92].mxu0 %vm637_vm8, %v5612_v19 }
0x1962   :  { %10898 = vmatprep.mubr.msk.f32.mxu0 %vm11607_vm0, %v15511_v8 }
0x1998   :  { %v5220_v61 = vpop.trf.xlu1 }
0x1999   :  { %10832 = vmatprep.mubr.msk.f32.mxu1 %vm637_vm8, %v5220_v61 }
0x199c   :  { %v5221_v20 = vpop.trf.xlu1 }
0x199d   :  { %10833 = vmatmul.mubr.msk.f32.vlgmr.msra.gmra.mrb[80].mxu1 %vm637_vm8, %v5221_v20  ;;  %v5840_v20 = vmul.f32 0.001, %v5824_v37 }
0x19a0   :  { %v5222_v46 = vpop.trf.xlu1 }
0x19a1   :  { %10835 = vmatprep.mubr.msk.f32.mxu1 %vm637_vm8, %v5222_v46 }
0x19a4   :  { %v5223_v5 = vpop.trf.xlu1 }
0x19a5   :  { %10836 = vmatmul.mubr.msk.f32.gmra.mrb[82].mxu1 %vm637_vm8, %v5223_v5 }
0x19a8   :  { %v5224_v4 = vpop.trf.xlu1 }
0x19a9   :  { %10838 = vmatprep.mubr.msk.f32.mxu1 %vm637_vm8, %v5224_v4 }
0x19ac   :  { %v5225_v48 = vpop.trf.xlu1 }
0x19ad   :  { %10839 = vmatmul.mubr.msk.f32.gmra.mrb[84].mxu1 %vm637_vm8, %v5225_v48 }
0x19b0   :  { %v5226_v0 = vpop.trf.xlu1 }
0x19b1   :  { %10841 = vmatprep.mubr.msk.f32.mxu1 %vm637_vm8, %v5226_v0 }
0x19b4   :  { %v5227_v14 = vpop.trf.xlu1 }
0x19b5   :  { %10842 = vmatmul.mubr.msk.f32.gmra.mrb[86].mxu1 %vm637_vm8, %v5227_v14 }
0x19b8   :  { %v5228_v17 = vpop.trf.xlu1 }
0x19b9   :  { %10844 = vmatprep.mubr.msk.f32.mxu1 %vm637_vm8, %v5228_v17 }
0x19bc   :  { %v5229_v43 = vpop.trf.xlu1 }
0x19bd   :  { %10845 = vmatmul.mubr.msk.f32.gmra.mrb[88].mxu1 %vm637_vm8, %v5229_v43 }
0x19c0   :  { %v5230_v28 = vpop.trf.xlu1 }
0x19c1   :  { %10847 = vmatprep.mubr.msk.f32.mxu1 %vm637_vm8, %v5230_v28  ;;  %v5827_v28 = vld [vmem:[%s15496_s5 + $0xa8] sm:$0xff] }
0x19c4   :  { %v5231_v35 = vpop.trf.xlu1 }
0x19c5   :  { %10848 = vmatmul.mubr.msk.f32.gmra.mrb[90].mxu1 %vm637_vm8, %v5231_v35 }
0x19c8   :  { %v5232_v42 = vpop.trf.xlu1 }
0x19c9   :  { %10850 = vmatprep.mubr.msk.f32.mxu1 %vm637_vm8, %v5232_v42 }
0x19cc   :  { %v5233_v18 = vpop.trf.xlu1 }
0x19cd   :  { %10851 = vmatmul.mubr.msk.f32.gmra.mrb[92].mxu1 %vm637_vm8, %v5233_v18  ;;  %v5826_v18 = vld [vmem:[%s15496_s5 + $0xa0] sm:$0xff] }
0x19d0   :  { %v5234_v30 = vpop.trf.xlu1 }
0x19d1   :  { %10853 = vmatprep.mubr.msk.f32.mxu1 %vm637_vm8, %v5234_v30 }
0x19d4   :  { %v5235_v32 = vpop.trf.xlu1 }
0x19d5   :  { %10854 = vmatmul.mubr.msk.f32.gmra.mrb[94].mxu1 %vm637_vm8, %v5235_v32 }
0x19d6   :  { %6156 = vmatprep.mubr.f32.mxu1 %v13795_v57  ;;  %v5825_v57 = vld [vmem:[%s15496_s5 + $0x98] sm:$0xff] }
0x19d7   :  { %v5841_v12 = vmul.f32 0.001, %v5825_v57 }
0x19fc   :  { %v10860_v10 = vpop.f32.mrb[78].mxu0 }
0x19fd   :  { %v5807_v3 = vmul.f32 0.5, %v10860_v10  ;;  %v5727_v45 = vpop.f32.mrb[79].mxu0 }
0x19fe   :  { %v5806_v6 = vmul.f32 0.5, %v5727_v45 }
0x19ff   :  { %v5855_v25 = vsub.f32 %v5807_v3, %v5839_v1  ;;  %v5843_v3 = vmul.f32 0.001, %v5827_v28 }
0x1a00   :  { %v5854_v24 = vsub.f32 %v5806_v6, %v5838_v62 }
0x1a01   :  { %v5871_v13 = vmul.f32 0.001, %v5855_v25  ;;  %v5842_v25 = vmul.f32 0.001, %v5826_v18 }
0x1a02   :  { %v5870_v7 = vmul.f32 0.001, %v5854_v24 }
0x1a03   :  { %v5887_v29 = vadd.f32 %v5871_v13, %v5823_v44 }
0x1a04   :  { %v5886_v38 = vadd.f32 %v5870_v7, %v5822_v41  ;;  %v10863_v53 = vpop.f32.mrb[80].mxu0 }
0x1a05   :  { %v5919_v27 = vmul.f32 %v5887_v29, %v11970_v9  ;;  %v5809_v39 = vmul.f32 0.5, %v10863_v53  ;;  %v5737_v16 = vpop.f32.mrb[81].mxu0 }
0x1a06   :  { %v5918_v19 = vmul.f32 %v5886_v38, %v11974_v15  ;;  %v5808_v61 = vmul.f32 0.5, %v5737_v16 }
0x1a07   :  { %v5935_v46 = vmax.f32 %v5919_v27, 0.0  ;;  %v5857_v5 = vsub.f32 %v5809_v39, %v5841_v12  ;;  %v5829_v27 = vld [vmem:[%s15496_s5 + $0xb8] sm:$0xff]  ;;  %v5828_v39 = vld [vmem:[%s15496_s5 + $0xb0] sm:$0xff] }
0x1a08   :  { %v5934_v4 = vmax.f32 %v5918_v19, 0.0  ;;  %v5856_v48 = vsub.f32 %v5808_v61, %v5840_v20 }
0x1a09   :  { %v13860_v0 = vmul.f32 %v5935_v46, %v11970_v9  ;;  %v5873_v14 = vmul.f32 0.001, %v5857_v5  ;;  %v5845_v5 = vmul.f32 0.001, %v5829_v27 }
0x1a0a   :  { %v13863_v17 = vmul.f32 %v5934_v4, %v11974_v15  ;;  %v5872_v43 = vmul.f32 0.001, %v5856_v48  ;;  %v5844_v48 = vmul.f32 0.001, %v5828_v39 }
0x1a0b   :  { %v5967_v35 = vmul.f32 %v13860_v0, %v13860_v0  ;;  %v5889_v42 = vadd.f32 %v5873_v14, %v5825_v57 }
0x1a0c   :  { %v5966_v30 = vmul.f32 %v13863_v17, %v13863_v17  ;;  %v5888_v32 = vadd.f32 %v5872_v43, %v5824_v37  ;;  %v10866_v44 = vpop.f32.mrb[82].mxu0 }
0x1a0d   :  { %v5921_v41 = vmul.f32 %v5889_v42, %v11996_v36  ;;  %v5811_v10 = vmul.f32 0.5, %v10866_v44  ;;  %v5747_v1 = vpop.f32.mrb[83].mxu0 }
0x1a0e   :  { %v5982_v45 = vadd.f32 %v5967_v35, %v5966_v30  ;;  %v5920_v6 = vmul.f32 %v5888_v32, %v12002_v47  ;;  %v5810_v62 = vmul.f32 0.5, %v5747_v1 }
0x1a0f   :  { %v5937_v24 = vmax.f32 %v5921_v41, 0.0  ;;  %v5859_v13 = vsub.f32 %v5811_v10, %v5843_v3 }
0x1a10   :  { %v5936_v7 = vmax.f32 %v5920_v6, 0.0  ;;  %v5858_v57 = vsub.f32 %v5810_v62, %v5842_v25  ;;  %v5830_v6 = vld [vmem:[%s15496_s5 + $0xc0] sm:$0xff] }
0x1a11   :  { %v5875_v29 = vmul.f32 0.001, %v5859_v13  ;;  %v13878_v38 = vmul.f32 %v5937_v24, %v11996_v36 }
0x1a12   :  { %v13881_v37 = vmul.f32 %v5936_v7, %v12002_v47  ;;  %v5874_v53 = vmul.f32 0.001, %v5858_v57 }
0x1a13   :  { %v5891_v12 = vadd.f32 %v5875_v29, %v5827_v28  ;;  %v5969_v14 = vmul.f32 %v13878_v38, %v13878_v38 }
0x1a14   :  { %v5968_v16 = vmul.f32 %v13881_v37, %v13881_v37  ;;  %v5890_v19 = vadd.f32 %v5874_v53, %v5826_v18  ;;  %v10869_v61 = vpop.f32.mrb[84].mxu0 }
0x1a15   :  { %v5923_v20 = vmul.f32 %v5891_v12, %v12026_v23  ;;  %v5813_v46 = vmul.f32 0.5, %v10869_v61  ;;  %v5757_v4 = vpop.f32.mrb[85].mxu0  ;;  %v5846_v12 = vmul.f32 0.001, %v5830_v6 }
0x1a16   :  { %v5983_v43 = vadd.f32 %v5982_v45, %v5968_v16  ;;  %v5922_v35 = vmul.f32 %v5890_v19, %v12031_v26  ;;  %v5812_v42 = vmul.f32 0.5, %v5757_v4  ;;  %v5831_v45 = vld [vmem:[%s15496_s5 + $0xc8] sm:$0xff] }
0x1a17   :  { %v5939_v30 = vmax.f32 %v5923_v20, 0.0  ;;  %v5861_v28 = vsub.f32 %v5813_v46, %v5845_v5  ;;  %v5847_v29 = vmul.f32 0.001, %v5831_v45 }
0x1a18   :  { %v5938_v32 = vmax.f32 %v5922_v35, 0.0  ;;  %v5984_v44 = vadd.f32 %v5983_v43, %v5969_v14  ;;  %v5860_v41 = vsub.f32 %v5812_v42, %v5844_v48  ;;  %v5833_v42 = vld [vmem:[%s15496_s5 + $0xd8] sm:$0xff] }
0x1a19   :  { %v5877_v18 = vmul.f32 0.001, %v5861_v28  ;;  %v13896_v10 = vmul.f32 %v5939_v30, %v12026_v23  ;;  %v5832_v30 = vld [vmem:[%s15496_s5 + $0xd0] sm:$0xff] }
0x1a1a   :  { %v13899_v3 = vmul.f32 %v5938_v32, %v12031_v26  ;;  %v5876_v1 = vmul.f32 0.001, %v5860_v41 }
0x1a1b   :  { %v5893_v62 = vadd.f32 %v5877_v18, %v5829_v27  ;;  %v5971_v16 = vmul.f32 %v13896_v10, %v13896_v10 }
0x1a1c   :  { %v5970_v25 = vmul.f32 %v13899_v3, %v13899_v3  ;;  %v5892_v24 = vadd.f32 %v5876_v1, %v5828_v39  ;;  %v10872_v13 = vpop.f32.mrb[86].mxu0 }
0x1a1d   :  { %v5925_v7 = vmul.f32 %v5893_v62, %v12054_v63  ;;  %v5815_v57 = vmul.f32 0.5, %v10872_v13  ;;  %v5767_v53 = vpop.f32.mrb[87].mxu0  ;;  %v5849_v62 = vmul.f32 0.001, %v5833_v42 }
0x1a1e   :  { %v5985_v19 = vadd.f32 %v5984_v44, %v5970_v25  ;;  %v5924_v61 = vmul.f32 %v5892_v24, %v12057_v2  ;;  %v5814_v20 = vmul.f32 0.5, %v5767_v53  ;;  %v5848_v24 = vmul.f32 0.001, %v5832_v30 }
0x1a1f   :  { %v5941_v46 = vmax.f32 %v5925_v7, 0.0  ;;  %v5863_v27 = vsub.f32 %v5815_v57, %v5847_v29 }
0x1a20   :  { %v5940_v5 = vmax.f32 %v5924_v61, 0.0  ;;  %v5986_v4 = vadd.f32 %v5985_v19, %v5971_v16  ;;  %v5862_v48 = vsub.f32 %v5814_v20, %v5846_v12 }
0x1a21   :  { %v5879_v39 = vmul.f32 0.001, %v5863_v27  ;;  %v13914_v14 = vmul.f32 %v5941_v46, %v12054_v63 }
0x1a22   :  { %v13917_v43 = vmul.f32 %v5940_v5, %v12057_v2  ;;  %v5878_v35 = vmul.f32 0.001, %v5862_v48  ;;  %v5835_v5 = vld [vmem:[%s15496_s5 + $0xe8] sm:$0xff] }
0x1a23   :  { %v5895_v28 = vadd.f32 %v5879_v39, %v5831_v45  ;;  %v5973_v13 = vmul.f32 %v13914_v14, %v13914_v14 }
0x1a24   :  { %v5972_v32 = vmul.f32 %v13917_v43, %v13917_v43  ;;  %v5894_v44 = vadd.f32 %v5878_v35, %v5830_v6  ;;  %v10875_v41 = vpop.f32.mrb[88].mxu0 }
0x1a25   :  { %v5927_v18 = vmul.f32 %v5895_v28, %v12080_v49  ;;  %v5817_v1 = vmul.f32 0.5, %v10875_v41  ;;  %v5777_v25 = vpop.f32.mrb[89].mxu0 }
0x1a26   :  { %v5987_v7 = vadd.f32 %v5986_v4, %v5972_v32  ;;  %v5926_v57 = vmul.f32 %v5894_v44, %v12085_v60  ;;  %v5816_v29 = vmul.f32 0.5, %v5777_v25  ;;  %v5834_v4 = vld [vmem:[%s15496_s5 + $0xe0] sm:$0xff] }
0x1a27   :  { %v5943_v53 = vmax.f32 %v5927_v18, 0.0  ;;  %v5865_v45 = vsub.f32 %v5817_v1, %v5849_v62  ;;  %v5851_v1 = vmul.f32 0.001, %v5835_v5  ;;  %v5850_v25 = vmul.f32 0.001, %v5834_v4 }
0x1a28   :  { %v5988_v12 = vadd.f32 %v5987_v7, %v5973_v13  ;;  %v5942_v16 = vmax.f32 %v5926_v57, 0.0  ;;  %v5864_v19 = vsub.f32 %v5816_v29, %v5848_v24 }
0x1a29   :  { %v13932_v6 = vmul.f32 %v5943_v53, %v12080_v49  ;;  %v5881_v61 = vmul.f32 0.001, %v5865_v45 }
0x1a2a   :  { %v5989_v20 = vrot.slane %v5988_v12, 4  ;;  %v13935_v46 = vmul.f32 %v5942_v16, %v12085_v60  ;;  %v5880_v27 = vmul.f32 0.001, %v5864_v19 }
0x1a2b   :  { %v5975_v48 = vmul.f32 %v13932_v6, %v13932_v6  ;;  %v5897_v39 = vadd.f32 %v5881_v61, %v5833_v42 }
0x1a2c   :  { %v5990_v35 = vadd.f32 %v5989_v20, %v5988_v12  ;;  %v5974_v28 = vmul.f32 %v13935_v46, %v13935_v46  ;;  %v5896_v32 = vadd.f32 %v5880_v27, %v5832_v30  ;;  %v10878_v44 = vpop.f32.mrb[90].mxu0  ;;  %v5837_v27 = vld [vmem:[%s15496_s5 + $0xf8] sm:$0xff] }
0x1a2d   :  { %v5929_v41 = vmul.f32 %v5897_v39, %v12111_v40  ;;  %v5819_v18 = vmul.f32 0.5, %v10878_v44  ;;  %v5787_v62 = vpop.f32.mrb[91].mxu0  ;;  %v5836_v44 = vld [vmem:[%s15496_s5 + $0xf0] sm:$0xff] }
0x1a2e   :  { %v5991_v24 = vrot.slane %v5990_v35, 2  ;;  %v5995_v13 = vadd.f32 %v5975_v48, %v5974_v28  ;;  %v5928_v7 = vmul.f32 %v5896_v32, %v12104_v33  ;;  %v5818_v57 = vmul.f32 0.5, %v5787_v62 }
0x1a2f   :  { %v5945_v29 = vmax.f32 %v5929_v41, 0.0  ;;  %v5867_v53 = vsub.f32 %v5819_v18, %v5851_v1  ;;  %v5853_v1 = vmul.f32 0.001, %v5837_v27 }
0x1a30   :  { %v5992_v42 = vadd.f32 %v5991_v24, %v5990_v35  ;;  %v5944_v45 = vmax.f32 %v5928_v7, 0.0  ;;  %v5866_v12 = vsub.f32 %v5818_v57, %v5850_v25 }
0x1a31   :  { %v5883_v16 = vmul.f32 0.001, %v5867_v53  ;;  %v13950_v30 = vmul.f32 %v5945_v29, %v12111_v40  ;;  %v5852_v29 = vmul.f32 0.001, %v5836_v44 }
0x1a32   :  { %v5993_v19 = vrot.slane %v5992_v42, 1  ;;  %v13953_v61 = vmul.f32 %v5944_v45, %v12104_v33  ;;  %v5882_v20 = vmul.f32 0.001, %v5866_v12 }
0x1a33   :  { %v5899_v48 = vadd.f32 %v5883_v16, %v5835_v5  ;;  %v5977_v25 = vmul.f32 %v13950_v30, %v13950_v30 }
0x1a34   :  { %v5994_v39 = vadd.f32 %v5993_v19, %v5992_v42  ;;  %v5976_v35 = vmul.f32 %v13953_v61, %v13953_v61  ;;  %v5898_v28 = vadd.f32 %v5882_v20, %v5834_v4  ;;  %v10881_v32 = vpop.f32.mrb[92].mxu0 }
0x1a35   :  { %v5931_v41 = vmul.f32 %v5899_v48, %v12145_v58  ;;  %v5821_v18 = vmul.f32 0.5, %v10881_v32  ;;  %v5797_v62 = vpop.f32.mrb[93].mxu0 }
0x1a36   :  { %11565 = vrsqrt.f32 %v5994_v39  ;;  %v5996_v5 = vadd.f32 %v5995_v13, %v5976_v35  ;;  %v5930_v24 = vmul.f32 %v5898_v28, %v12149_v51  ;;  %v5820_v4 = vmul.f32 0.5, %v5797_v62 }
0x1a37   :  { %v5947_v7 = vmax.f32 %v5931_v41, 0.0  ;;  %v5869_v57 = vsub.f32 %v5821_v18, %v5853_v1  ;;  %vm6013_vm13 = vcmp.gt.f32.partialorder %v5994_v39, 0.0 }
0x1a38   :  { %v5997_v53 = vadd.f32 %v5996_v5, %v5977_v25  ;;  %v5946_v42 = vmax.f32 %v5930_v24, 0.0  ;;  %v5868_v16 = vsub.f32 %v5820_v4, %v5852_v29 }
0x1a39   :  { %v13968_v45 = vmul.f32 %v5947_v7, %v12145_v58  ;;  %v5885_v12 = vmul.f32 0.001, %v5869_v57 }
0x1a3a   :  { %v5998_v19 = vrot.slane %v5997_v53, 4  ;;  %v13971_v20 = vmul.f32 %v5946_v42, %v12149_v51  ;;  %v5884_v35 = vmul.f32 0.001, %v5868_v16 }
0x1a3b   :  { %v5979_v13 = vmul.f32 %v13968_v45, %v13968_v45  ;;  %v5901_v48 = vadd.f32 %v5885_v12, %v5837_v27 }
0x1a3c   :  { %v5999_v28 = vadd.f32 %v5998_v19, %v5997_v53  ;;  %v5978_v32 = vmul.f32 %v13971_v20, %v13971_v20  ;;  %v5900_v18 = vadd.f32 %v5884_v35, %v5836_v44 }
0x1a3d   :  { %v5933_v41 = vmul.f32 %v5901_v48, %v12175_v52 }
0x1a3e   :  { %v6000_v1 = vrot.slane %v5999_v28, 2  ;;  %v6004_v62 = vadd.f32 %v5979_v13, %v5978_v32  ;;  %v5932_v25 = vmul.f32 %v5900_v18, %v12183_v50 }
0x1a3f   :  { %v5949_v7 = vmax.f32 %v5933_v41, 0.0 }
0x1a40   :  { %v11566_v5 = vpop.eup %11565  ;;  %v6001_v24 = vadd.f32 %v6000_v1, %v5999_v28  ;;  %v5948_v4 = vmax.f32 %v5932_v25, 0.0 }
0x1a41   :  { %v6015_v57 = vsel %vm6013_vm13, %v11566_v5, 0.0 }
0x1a42   :  { %v6022_v27 = vmul.f32 %v6015_v57, %v13863_v17  ;;  %v6023_v29 = vmul.f32 %v6015_v57, %v13860_v0  ;;  %v6024_v53 = vmul.f32 %v6015_v57, %v13881_v37  ;;  %v6025_v42 = vmul.f32 %v6015_v57, %v13878_v38 }
0x1a43   :  { %v6026_v44 = vmul.f32 %v6015_v57, %v13899_v3  ;;  %v6027_v12 = vmul.f32 %v6015_v57, %v13896_v10  ;;  %v6028_v16 = vmul.f32 %v6015_v57, %v13917_v43  ;;  %v6029_v39 = vmul.f32 %v6015_v57, %v13914_v14 }
0x1a44   :  { %6038 = vst [vmem:[%s15496_s5 + $0x80] sm:$0xff] %v6022_v27  ;;  %6039 = vst [vmem:[%s15496_s5 + $0x88] sm:$0xff] %v6023_v29  ;;  %v6002_v0 = vrot.slane %v6001_v24, 1  ;;  %v5965_v17 = vmul.f32 %v5949_v7, %v12175_v52  ;;  %v5964_v38 = vmul.f32 %v5948_v4, %v12183_v50  ;;  %v11378_v37 = vpack.c.bf16 %v6023_v29, %v6022_v27 }
0x1a45   :  { %6040 = vst [vmem:[%s15496_s5 + $0x90] sm:$0xff] %v6024_v53  ;;  %6041 = vst [vmem:[%s15496_s5 + $0x98] sm:$0xff] %v6025_v42  ;;  %v14013_v10 = vpack.c.bf16 %v6025_v42, %v6024_v53  ;;  %v14015_v3 = vpack.c.bf16 %v6027_v12, %v6026_v44  ;;  %v14017_v14 = vpack.c.bf16 %v6029_v39, %v6028_v16 }
0x1a46   :  { %6044 = vst [vmem:[%s15496_s5 + $0xb0] sm:$0xff] %v6028_v16  ;;  %6042 = vst [vmem:[%s15496_s5 + $0xa0] sm:$0xff] %v6026_v44  ;;  %v6003_v43 = vadd.f32 %v6002_v0, %v6001_v24  ;;  %v5980_v19 = vmul.f32 %v5964_v38, %v5964_v38  ;;  %11379 = vmatprep.subr.bf16.mxu1 %v11378_v37  ;;  %11412 = vmatpush3.bf16.msra.mxu0 %v11378_v37  ;;  %v5446_v44 = vld [vmem:[%s15496_s5 + $0x8] sm:$0xff] }
0x1a47   :  { %6043 = vst [vmem:[%s15496_s5 + $0xa8] sm:$0xff] %v6027_v12  ;;  %6045 = vst [vmem:[%s15496_s5 + $0xb8] sm:$0xff] %v6029_v39  ;;  %11413 = vmatprep.subr.bf16.mxu0 %v15512_v21  ;;  %v5981_v13 = vmul.f32 %v5965_v17, %v5965_v17  ;;  %v5445_v12 = vld [vmem:[%s15496_s5] sm:$0xff]  ;;  %v5454_v0 = vmul.f32 0.001, %v5446_v44 }
0x1a48   :  { %11567 = vrsqrt.f32 %v6003_v43  ;;  %v6005_v48 = vadd.f32 %v6004_v62, %v5980_v19  ;;  %vm6016_vm14 = vcmp.gt.f32.partialorder %v6003_v43, 0.0  ;;  %v5453_v37 = vmul.f32 0.001, %v5445_v12 }
0x1a4a   :  { %v6006_v35 = vadd.f32 %v6005_v48, %v5981_v13  ;;  %11415 = vmatpush3.bf16.msra.mxu0 %v14013_v10 }
0x1a4b   :  { %11416 = vmatprep.subr.bf16.mxu0 %v15512_v21 }
0x1a4c   :  { %v6007_v28 = vrot.slane %v6006_v35, 4 }
0x1a4e   :  { %v6008_v32 = vadd.f32 %v6007_v28, %v6006_v35  ;;  %11418 = vmatpush3.bf16.msra.mxu0 %v14015_v3  ;;  %v5448_v35 = vld [vmem:[%s15496_s5 + $0x18] sm:$0xff] }
0x1a4f   :  { %11419 = vmatprep.subr.bf16.mxu0 %v15512_v21 }
0x1a50   :  { %v6009_v41 = vrot.slane %v6008_v32, 2 }
0x1a52   :  { %v11568_v18 = vpop.eup %11567  ;;  %v6010_v1 = vadd.f32 %v6009_v41, %v6008_v32  ;;  %11421 = vmatpush3.bf16.msra.mxu0 %v14017_v14  ;;  %v5447_v32 = vld [vmem:[%s15496_s5 + $0x10] sm:$0xff] }
0x1a53   :  { %v6018_v25 = vsel %vm6016_vm14, %v11568_v18, 0.0 }
0x1a54   :  { %v6030_v62 = vmul.f32 %v6018_v25, %v13935_v46  ;;  %v6031_v5 = vmul.f32 %v6018_v25, %v13932_v6  ;;  %v6032_v24 = vmul.f32 %v6018_v25, %v13953_v61  ;;  %v6033_v7 = vmul.f32 %v6018_v25, %v13950_v30 }
0x1a55   :  { %v6011_v57 = vrot.slane %v6010_v1, 1  ;;  %v5456_v25 = vmul.f32 0.001, %v5448_v35 }
0x1a56   :  { %6048 = vst [vmem:[%s15496_s5 + $0xd0] sm:$0xff] %v6032_v24  ;;  %6046 = vst [vmem:[%s15496_s5 + $0xc0] sm:$0xff] %v6030_v62  ;;  %v14041_v6 = vpack.c.bf16 %v6031_v5, %v6030_v62  ;;  %v14043_v46 = vpack.c.bf16 %v6033_v7, %v6032_v24  ;;  %v5455_v24 = vmul.f32 0.001, %v5447_v32 }
0x1a57   :  { %6047 = vst [vmem:[%s15496_s5 + $0xc8] sm:$0xff] %v6031_v5  ;;  %6049 = vst [vmem:[%s15496_s5 + $0xd8] sm:$0xff] %v6033_v7  ;;  %v6012_v30 = vadd.f32 %v6011_v57, %v6010_v1 }
0x1a59   :  { %11569 = vrsqrt.f32 %v6012_v30  ;;  %vm6019_vm4 = vcmp.gt.f32.partialorder %v6012_v30, 0.0 }
0x1a63   :  { %v11570_v61 = vpop.eup %11569 }
0x1a64   :  { %v6021_v4 = vsel %vm6019_vm4, %v11570_v61, 0.0 }
0x1a65   :  { %v14046_v27 = vmul.f32 %v6021_v4, %v13971_v20  ;;  %v14049_v29 = vmul.f32 %v6021_v4, %v13968_v45  ;;  %v14051_v53 = vmul.f32 %v6021_v4, %v5964_v38  ;;  %v14053_v42 = vmul.f32 %v6021_v4, %v5965_v17 }
0x1a67   :  { %6050 = vst [vmem:[%s15496_s5 + $0xe0] sm:$0xff] %v14046_v27  ;;  %6051 = vst [vmem:[%s15496_s5 + $0xe8] sm:$0xff] %v14049_v29  ;;  %v11402_v45 = vpack.c.bf16 %v14049_v29, %v14046_v27  ;;  %v11601_v27 = vld [vmem:[%s15498_s2 + $0x20] sm:$0xff] }
0x1a68   :  { %6052 = vst [vmem:[%s15496_s5 + $0xf0] sm:$0xff] %v14051_v53  ;;  %6053 = vst [vmem:[%s15496_s5 + $0xf8] sm:$0xff] %v14053_v42  ;;  %v6056_v29 = vmul.f32 %v11601_v27, %v11873_v59 }
0x1a70   :  { %v10834_v16 = vpop.f32.mrb[80].mxu1 }
0x1a71   :  { %v5430_v39 = vmul.f32 0.5, %v10834_v16  ;;  %v5350_v17 = vpop.f32.mrb[81].mxu1  ;;  %v5449_v16 = vld [vmem:[%s15496_s5 + $0x20] sm:$0xff] }
0x1a72   :  { %v5429_v38 = vmul.f32 0.5, %v5350_v17 }
0x1a73   :  { %v5462_v43 = vsub.f32 %v5430_v39, %v5454_v0 }
0x1a74   :  { %v5461_v19 = vsub.f32 %v5429_v38, %v5453_v37 }
0x1a75   :  { %v5470_v13 = vmul.f32 %v5462_v43, %v12296_v22  ;;  %v5457_v43 = vmul.f32 0.001, %v5449_v16 }
0x1a76   :  { %v5469_v48 = vmul.f32 %v5461_v19, %v12296_v22 }
0x1a77   :  { %v5478_v28 = vadd.f32 %v5470_v13, %v5446_v44  ;;  %v5450_v44 = vld [vmem:[%s15496_s5 + $0x28] sm:$0xff] }
0x1a78   :  { %v5477_v41 = vadd.f32 %v5469_v48, %v5445_v12  ;;  %v10837_v18 = vpop.f32.mrb[82].mxu1  ;;  %v5458_v38 = vmul.f32 0.001, %v5450_v44 }
0x1a79   :  { %5486 = vst [vmem:[%s15496_s5 + $0x8] sm:$0xff] %v5478_v28  ;;  %v5432_v1 = vmul.f32 0.5, %v10837_v18  ;;  %v5360_v62 = vpop.f32.mrb[83].mxu1  ;;  %v5451_v18 = vld [vmem:[%s15496_s5 + $0x30] sm:$0xff] }
0x1a7a   :  { %5485 = vst [vmem:[%s15496_s5] sm:$0xff] %v5477_v41  ;;  %v5431_v5 = vmul.f32 0.5, %v5360_v62  ;;  %v11380_v7 = vpack.c.bf16 %v5478_v28, %v5477_v41 }
0x1a7b   :  { %v5464_v57 = vsub.f32 %v5432_v1, %v5456_v25 }
0x1a7c   :  { %v5463_v30 = vsub.f32 %v5431_v5, %v5455_v24  ;;  %11381 = vmatpush3.bf16.msra.mxu1 %v11380_v7  ;;  %v5459_v7 = vmul.f32 0.001, %v5451_v18 }
0x1a7d   :  { %v5472_v61 = vmul.f32 %v5464_v57, %v12296_v22  ;;  %11383 = vmatprep.subr.bf16.mxu1 %v14013_v10 }
0x1a7e   :  { %v5471_v4 = vmul.f32 %v5463_v30, %v12296_v22 }
0x1a7f   :  { %v5480_v12 = vadd.f32 %v5472_v61, %v5448_v35 }
0x1a80   :  { %v5479_v39 = vadd.f32 %v5471_v4, %v5447_v32  ;;  %v10840_v0 = vpop.f32.mrb[84].mxu1  ;;  %v5452_v32 = vld [vmem:[%s15496_s5 + $0x38] sm:$0xff] }
0x1a81   :  { %5488 = vst [vmem:[%s15496_s5 + $0x18] sm:$0xff] %v5480_v12  ;;  %v5434_v17 = vmul.f32 0.5, %v10840_v0  ;;  %v5370_v10 = vpop.f32.mrb[85].mxu1  ;;  %v5460_v5 = vmul.f32 0.001, %v5452_v32 }
0x1a82   :  { %5487 = vst [vmem:[%s15496_s5 + $0x10] sm:$0xff] %v5479_v39  ;;  %v5433_v37 = vmul.f32 0.5, %v5370_v10  ;;  %v11384_v19 = vpack.c.bf16 %v5480_v12, %v5479_v39  ;;  %v5494_v12 = vld [vmem:[%s15496_s5 + $0x48] sm:$0xff]  ;;  %v5493_v39 = vld [vmem:[%s15496_s5 + $0x40] sm:$0xff] }
0x1a83   :  { %v5466_v13 = vsub.f32 %v5434_v17, %v5458_v38  ;;  %v5502_v10 = vmul.f32 0.001, %v5494_v12 }
0x1a84   :  { %v5465_v48 = vsub.f32 %v5433_v37, %v5457_v43  ;;  %11385 = vmatpush3.bf16.msra.mxu1 %v11384_v19  ;;  %v5501_v43 = vmul.f32 0.001, %v5493_v39 }
0x1a85   :  { %v5474_v35 = vmul.f32 %v5466_v13, %v12296_v22  ;;  %11387 = vmatprep.subr.bf16.mxu1 %v14015_v3 }
0x1a86   :  { %v5473_v28 = vmul.f32 %v5465_v48, %v12296_v22 }
0x1a87   :  { %v5482_v41 = vadd.f32 %v5474_v35, %v5450_v44 }
0x1a88   :  { %v5481_v1 = vadd.f32 %v5473_v28, %v5449_v16  ;;  %v10843_v25 = vpop.f32.mrb[86].mxu1 }
0x1a89   :  { %5490 = vst [vmem:[%s15496_s5 + $0x28] sm:$0xff] %v5482_v41  ;;  %v5436_v62 = vmul.f32 0.5, %v10843_v25  ;;  %v5380_v3 = vpop.f32.mrb[87].mxu1 }
0x1a8a   :  { %5489 = vst [vmem:[%s15496_s5 + $0x20] sm:$0xff] %v5481_v1  ;;  %v5435_v24 = vmul.f32 0.5, %v5380_v3  ;;  %v11388_v57 = vpack.c.bf16 %v5482_v41, %v5481_v1 }
0x1a8b   :  { %v5468_v30 = vsub.f32 %v5436_v62, %v5460_v5 }
0x1a8c   :  { %v5467_v61 = vsub.f32 %v5435_v24, %v5459_v7  ;;  %11389 = vmatpush3.bf16.msra.mxu1 %v11388_v57 }
0x1a8d   :  { %v5476_v4 = vmul.f32 %v5468_v30, %v12296_v22  ;;  %11391 = vmatprep.subr.bf16.mxu1 %v14017_v14 }
0x1a8e   :  { %v5475_v44 = vmul.f32 %v5467_v61, %v12296_v22 }
0x1a8f   :  { %v5484_v16 = vadd.f32 %v5476_v4, %v5452_v32  ;;  %v5496_v32 = vld [vmem:[%s15496_s5 + $0x58] sm:$0xff] }
0x1a90   :  { %v5483_v0 = vadd.f32 %v5475_v44, %v5451_v18  ;;  %v10846_v17 = vpop.f32.mrb[88].mxu1  ;;  %v5495_v18 = vld [vmem:[%s15496_s5 + $0x50] sm:$0xff]  ;;  %v5504_v3 = vmul.f32 0.001, %v5496_v32 }
0x1a91   :  { %5492 = vst [vmem:[%s15496_s5 + $0x38] sm:$0xff] %v5484_v16  ;;  %v5438_v38 = vmul.f32 0.5, %v10846_v17  ;;  %v5390_v14 = vpop.f32.mrb[89].mxu1  ;;  %v5503_v30 = vmul.f32 0.001, %v5495_v18  ;;  %v5498_v17 = vld [vmem:[%s15496_s5 + $0x68] sm:$0xff] }
0x1a92   :  { %5491 = vst [vmem:[%s15496_s5 + $0x30] sm:$0xff] %v5483_v0  ;;  %v5437_v37 = vmul.f32 0.5, %v5390_v14  ;;  %v11392_v19 = vpack.c.bf16 %v5484_v16, %v5483_v0 }
0x1a93   :  { %v5510_v13 = vsub.f32 %v5438_v38, %v5502_v10  ;;  %v5497_v10 = vld [vmem:[%s15496_s5 + $0x60] sm:$0xff] }
0x1a94   :  { %v5509_v48 = vsub.f32 %v5437_v37, %v5501_v43  ;;  %11393 = vmatpush3.bf16.msra.mxu1 %v11392_v19  ;;  %v5506_v19 = vmul.f32 0.001, %v5498_v17 }
0x1a95   :  { %v5518_v35 = vmul.f32 %v5510_v13, %v12352_v31  ;;  %11395 = vmatprep.subr.bf16.mxu1 %v14041_v6 }
0x1a96   :  { %v5517_v28 = vmul.f32 %v5509_v48, %v12352_v31 }
0x1a97   :  { %v5526_v41 = vadd.f32 %v5518_v35, %v5494_v12 }
0x1a98   :  { %v5525_v1 = vadd.f32 %v5517_v28, %v5493_v39  ;;  %v10849_v25 = vpop.f32.mrb[90].mxu1 }
0x1a99   :  { %v14149_v62 = vmax.f32 %v5526_v41, 0.0  ;;  %v5440_v5 = vmul.f32 0.5, %v10849_v25  ;;  %v5400_v24 = vpop.f32.mrb[91].mxu1  ;;  %v5505_v41 = vmul.f32 0.001, %v5497_v10 }
0x1a9a   :  { %v14151_v7 = vmax.f32 %v5525_v1, 0.0  ;;  %v5439_v57 = vmul.f32 0.5, %v5400_v24 }
0x1a9b   :  { %v5542_v61 = vmul.f32 %v14149_v62, %v14149_v62  ;;  %v5512_v4 = vsub.f32 %v5440_v5, %v5504_v3 }
0x1a9c   :  { %v5541_v44 = vmul.f32 %v14151_v7, %v14151_v7  ;;  %v5511_v12 = vsub.f32 %v5439_v57, %v5503_v30 }
0x1a9d   :  { %v5520_v16 = vmul.f32 %v5512_v4, %v12352_v31 }
0x1a9e   :  { %v5549_v39 = vadd.f32 %v5542_v61, %v5541_v44  ;;  %v5519_v0 = vmul.f32 %v5511_v12, %v12352_v31  ;;  %v5499_v61 = vld [vmem:[%s15496_s5 + $0x70] sm:$0xff] }
0x1a9f   :  { %v5528_v38 = vadd.f32 %v5520_v16, %v5496_v32 }
0x1aa0   :  { %v5527_v14 = vadd.f32 %v5519_v0, %v5495_v18  ;;  %v10852_v37 = vpop.f32.mrb[92].mxu1  ;;  %v5500_v18 = vld [vmem:[%s15496_s5 + $0x78] sm:$0xff] }
0x1aa1   :  { %v5442_v43 = vmul.f32 0.5, %v10852_v37  ;;  %v5410_v13 = vpop.f32.mrb[93].mxu1  ;;  %v5536_v48 = vmax.f32 %v5528_v38, 0.0  ;;  %v5508_v0 = vmul.f32 0.001, %v5500_v18 }
0x1aa2   :  { %v5535_v35 = vmax.f32 %v5527_v14, 0.0  ;;  %v5441_v28 = vmul.f32 0.5, %v5410_v13 }
0x1aa3   :  { %v5514_v1 = vsub.f32 %v5442_v43, %v5506_v19  ;;  %v5544_v24 = vmul.f32 %v5536_v48, %v5536_v48  ;;  %v5507_v43 = vmul.f32 0.001, %v5499_v61 }
0x1aa4   :  { %v5543_v25 = vmul.f32 %v5535_v35, %v5535_v35  ;;  %v5513_v5 = vsub.f32 %v5441_v28, %v5505_v41 }
0x1aa5   :  { %v5522_v3 = vmul.f32 %v5514_v1, %v12352_v31 }
0x1aa6   :  { %v5550_v32 = vadd.f32 %v5549_v39, %v5543_v25  ;;  %v5521_v57 = vmul.f32 %v5513_v5, %v12352_v31 }
0x1aa7   :  { %v5530_v30 = vadd.f32 %v5522_v3, %v5498_v17 }
0x1aa8   :  { %v5529_v4 = vadd.f32 %v5521_v57, %v5497_v10  ;;  %v5551_v44 = vadd.f32 %v5550_v32, %v5544_v24  ;;  %v10855_v12 = vpop.f32.mrb[94].mxu1 }
0x1aa9   :  { %v5444_v16 = vmul.f32 0.5, %v10855_v12  ;;  %v5420_v38 = vpop.f32.mrb[95].mxu1  ;;  %v5538_v14 = vmax.f32 %v5530_v30, 0.0 }
0x1aaa   :  { %v5537_v37 = vmax.f32 %v5529_v4, 0.0  ;;  %v5443_v39 = vmul.f32 0.5, %v5420_v38 }
0x1aab   :  { %v5516_v19 = vsub.f32 %v5444_v16, %v5508_v0  ;;  %v5546_v17 = vmul.f32 %v5538_v14, %v5538_v14 }
0x1aac   :  { %v5545_v13 = vmul.f32 %v5537_v37, %v5537_v37  ;;  %v5515_v28 = vsub.f32 %v5443_v39, %v5507_v43 }
0x1aad   :  { %v5524_v41 = vmul.f32 %v5516_v19, %v12352_v31 }
0x1aae   :  { %v5552_v1 = vadd.f32 %v5551_v44, %v5545_v13  ;;  %v5523_v25 = vmul.f32 %v5515_v28, %v12352_v31 }
0x1aaf   :  { %v5532_v5 = vadd.f32 %v5524_v41, %v5500_v18 }
0x1ab0   :  { %v5531_v10 = vadd.f32 %v5523_v25, %v5499_v61  ;;  %v5553_v3 = vadd.f32 %v5552_v1, %v5546_v17 }
0x1ab1   :  { %v5540_v24 = vmax.f32 %v5532_v5, 0.0 }
0x1ab2   :  { %v5539_v32 = vmax.f32 %v5531_v10, 0.0 }
0x1ab3   :  { %v5548_v12 = vmul.f32 %v5540_v24, %v5540_v24 }
0x1ab4   :  { %v5547_v57 = vmul.f32 %v5539_v32, %v5539_v32 }
0x1ab6   :  { %v5554_v30 = vadd.f32 %v5553_v3, %v5547_v57 }
0x1ab8   :  { %v5555_v4 = vadd.f32 %v5554_v30, %v5548_v12 }
0x1aba   :  { %v5556_v38 = vrot.slane %v5555_v4, 4 }
0x1abc   :  { %v5557_v20 = vadd.f32 %v5556_v38, %v5555_v4 }
0x1abe   :  { %v5558_v16 = vrot.slane %v5557_v20, 2 }
0x1ac0   :  { %v5559_v0 = vadd.f32 %v5558_v16, %v5557_v20 }
0x1ac2   :  { %v5560_v39 = vrot.slane %v5559_v0, 1 }
0x1ac4   :  { %v5561_v43 = vadd.f32 %v5560_v39, %v5559_v0 }
0x1ac6   :  { %11571 = vrsqrt.f32 %v5561_v43  ;;  %vm5562_vm9 = vcmp.gt.f32.partialorder %v5561_v43, 0.0 }
0x1ad0   :  { %v11572_v19 = vpop.eup %11571 }
0x1ad1   :  { %v5564_v44 = vsel %vm5562_vm9, %v11572_v19, 0.0 }
0x1ad2   :  { %v5565_v18 = vmul.f32 %v5564_v44, %v14151_v7  ;;  %v5566_v61 = vmul.f32 %v5564_v44, %v14149_v62  ;;  %v5567_v13 = vmul.f32 %v5564_v44, %v5535_v35  ;;  %v5568_v28 = vmul.f32 %v5564_v44, %v5536_v48 }
0x1ad3   :  { %v5569_v41 = vmul.f32 %v5564_v44, %v5537_v37  ;;  %v5570_v17 = vmul.f32 %v5564_v44, %v5538_v14  ;;  %v5571_v1 = vmul.f32 %v5564_v44, %v5539_v32  ;;  %v5572_v25 = vmul.f32 %v5564_v44, %v5540_v24  ;;  %v9700_v14 = vld [vmem:[%s15497_s0 + $0x28] sm:$0xff] }
0x1ad4   :  { %5573 = vst [vmem:[%s15496_s5 + $0x40] sm:$0xff] %v5565_v18  ;;  %5574 = vst [vmem:[%s15496_s5 + $0x48] sm:$0xff] %v5566_v61  ;;  %v11396_v20 = vpack.c.bf16 %v5566_v61, %v5565_v18  ;;  %v11400_v62 = vpack.c.bf16 %v5568_v28, %v5567_v13  ;;  %v15515_v35 = vpack.c.bf16 %v14053_v42, %v14051_v53 }
0x1ad5   :  { %5575 = vst [vmem:[%s15496_s5 + $0x50] sm:$0xff] %v5567_v13  ;;  %5576 = vst [vmem:[%s15496_s5 + $0x58] sm:$0xff] %v5568_v28  ;;  %v11404_v7 = vpack.c.bf16 %v5570_v17, %v5569_v41  ;;  %v11408_v48 = vpack.c.bf16 %v5572_v25, %v5571_v1  ;;  %v6057_v53 = vsub.f32 %v6056_v29, %v13783_v34 }
0x1ad6   :  { %5579 = vst [vmem:[%s15496_s5 + $0x70] sm:$0xff] %v5571_v1  ;;  %5577 = vst [vmem:[%s15496_s5 + $0x60] sm:$0xff] %v5569_v41  ;;  %11397 = vmatpush3.bf16.msra.mxu1 %v11396_v20 }
0x1ad7   :  { %5578 = vst [vmem:[%s15496_s5 + $0x68] sm:$0xff] %v5570_v17  ;;  %5580 = vst [vmem:[%s15496_s5 + $0x78] sm:$0xff] %v5572_v25  ;;  %11399 = vmatprep.subr.bf16.mxu1 %v14043_v46  ;;  %v6058_v42 = vmul.f32 0.005, %v6057_v53 }
0x1ada   :  { %11401 = vmatpush3.bf16.msra.mxu1 %v11400_v62 }
0x1adb   :  { %11403 = vmatprep.subr.bf16.mxu1 %v11402_v45 }
0x1ade   :  { %11405 = vmatpush3.bf16.msra.mxu1 %v11404_v7 }
0x1adf   :  { %11407 = vmatprep.subr.bf16.mxu1 %v15515_v35 }
0x1ae2   :  { %11409 = vmatpush3.bf16.msra.mxu1 %v11408_v48 }
0x1ae3   :  { %11422 = vmatprep.subr.bf16.mxu1 %v15512_v21 }
0x1ae5   :  { %6157 = vmatmul.mubr.f32.vlgmr.msra.gmra.mrb[96].mxu1 %v9700_v14 }
0x1ae6   :  { %11424 = vmatpush3.bf16.msra.mxu1 %v14041_v6  ;;  %10909 = vmatprep.mubr.msk.f32.mxu1 %vm11607_vm0, %v15511_v8  ;;  %v14223_v6 = vadd.f32 %v6058_v42, %v13783_v34 }
0x1ae7   :  { %11425 = vmatprep.subr.bf16.mxu1 %v15512_v21 }
0x1aea   :  { %11427 = vmatpush3.bf16.msra.mxu1 %v14043_v46 }
0x1bb8   :  { %v10255_v45 = vpop.f32.mrb[96].mxu1 }
0x1bb9   :  { %v10256_v37 = vpop.f32.mrb[97].mxu1 }
0x1bba   :  { %v10257_v5 = vadd.f32 %v10256_v37, %v10255_v45 }
0x1bbc   :  { %v6162_v10 = vsub.f32 %v10257_v5, %v14223_v6 }
0x1bbe   :  { %v6163_v3 = vmax.f32 %v6162_v10, 0.0 }
0x1bc0   :  { %v6164_v24 = vsub.f32 %v6163_v3, %v11601_v27 }
0x1bc2   :  { %v6165_v46 = vmul.f32 %v6164_v24, %v11881_v11 }
0x1bc4   :  { %v6166_v32 = vadd.f32 %v11601_v27, %v6165_v46 }
0x1bc6   :  { %v6167_v57 = vsub.f32 %v6166_v32, %v11601_v27 }
0x1bc8   :  { %10899 = vmatmul.mubr.msk.f32.vlgmr.msra.gmra.mrb[94].mxu0 %vm429_vm6, %v6167_v57  ;;  %v6168_v12 = vmul.f32 %v11858_v54, %v6167_v57 }
0x1bca   :  { %v6169_v16 = vadd.f32 %v11601_v27, %v6168_v12 }
0x1c9b   :  { %v6247_v30 = vpop.f32.mrb[94].mxu0 }
0x1c9c   :  { %v6251_v4 = vadd.f32 %v6247_v30, %v6162_v10  ;;  %v10900_v38 = vpop.f32.mrb[95].mxu0 }
0x1c9e   :  { %v6252_v0 = vmax.f32 %v6251_v4, 0.0 }
0x1ca0   :  { %v6253_v34 = vsub.f32 %v6252_v0, %v6169_v16 }
0x1ca2   :  { %v6254_v39 = vmul.f32 %v6253_v34, %v11881_v11 }
0x1ca4   :  { %v6255_v43 = vadd.f32 %v6254_v39, %v6169_v16 }
0x1ca6   :  { %v6256_v19 = vsub.f32 %v6255_v43, %v6169_v16 }
0x1ca8   :  { %6264 = vrot.lane.b32.xlu0 %v6256_v19, %s11608_s1  ;;  %v6257_v44 = vmul.f32 %v11863_v55, %v6256_v19 }
0x1caa   :  { %v6258_v18 = vadd.f32 %v6257_v44, %v6169_v16 }
0x1d1a   :  { %v6265_v61 = vpop.permute.xlu0 %6264 }
0x1d1b   :  { %10910 = vmatmul.mubr.msk.f32.vlgmr.msra.gmra.mrb[98].mxu1 %vm518_vm7, %v6265_v61 }
0x1dee   :  { %v6334_v13 = vpop.f32.mrb[98].mxu1 }
0x1def   :  { %v6338_v28 = vadd.f32 %v6334_v13, %v6251_v4  ;;  %v10911_v41 = vpop.f32.mrb[99].mxu1 }
0x1df1   :  { %v6339_v17 = vmax.f32 %v6338_v28, 0.0 }
0x1df3   :  { %v6340_v1 = vsub.f32 %v6339_v17, %v6258_v18 }
0x1df5   :  { %v6341_v25 = vmul.f32 %v6340_v1, %v11881_v11 }
0x1df7   :  { %v6342_v20 = vadd.f32 %v6341_v25, %v6258_v18 }
0x1df9   :  { %v6343_v62 = vsub.f32 %v6342_v20, %v6258_v18  ;;  %v6972_v20 = vld [vmem:[%s15496_s5 + $0x88] sm:$0xff] }
0x1dfb   :  { %v6344_v7 = vmul.f32 %v11868_v56, %v6343_v62  ;;  %v6971_v62 = vld [vmem:[%s15496_s5 + $0x80] sm:$0xff] }
0x1dfd   :  { %v14235_v48 = vadd.f32 %v6344_v7, %v6258_v18 }
0x1dff   :  { %6349 = vrot.lane.b32.xlu0 %v14235_v48, %s11608_s1  ;;  %10912 = vmatprep.subr.mxu0 %v14235_v48  ;;  %9703 = vst [vmem:[%s15498_s2 + $0x28] sm:$0xff] %v14235_v48 }
0x1e00   :  { %10938 = vmatprep.subr.mxu1 %v14235_v48  ;;  %10913 = vmatpush3.msra.mxu0 %v14235_v48 }
0x1e01   :  { %10939 = vmatpush3.msra.mxu1 %v14235_v48 }
0x1e02   :  { %11460 = vmatprep.subr.bf16.mxu1 %v15512_v21 }
0x1e1d   :  { %6730 = vxpose.xlu0.b32.start.end [1/1] (short) %v14235_v48, 128 }
0x1e71   :  { %v6350_v35 = vpop.permute.xlu0 %6349 }
0x1e72   :  { %v6352_v27 = vsel %vm429_vm6, %v9700_v14, %v6350_v35 }
0x1e73   :  { %6353 = vxpose.xlu0.b32.start.end [1/1] (short) %v6352_v27, 128  ;;  %v6988_v27 = vmul.f32 0.001, %v6972_v20 }
0x1e9d   :  { %v6746_v29 = vpop.trf.xlu0 }
0x1e9e   :  { %10940 = vmatprep.mubr.msk.f32.mxu1 %vm637_vm8, %v6746_v29 }
0x1ea1   :  { %v6747_v53 = vpop.trf.xlu0 }
0x1ea2   :  { %10941 = vmatmul.mubr.msk.f32.vlgmr.msra.gmra.mrb[100].mxu1 %vm637_vm8, %v6747_v53 }
0x1ea5   :  { %v6748_v42 = vpop.trf.xlu0 }
0x1ea6   :  { %10943 = vmatprep.mubr.msk.f32.mxu1 %vm637_vm8, %v6748_v42  ;;  %v6987_v42 = vmul.f32 0.001, %v6971_v62 }
0x1ea9   :  { %v6749_v45 = vpop.trf.xlu0 }
0x1eaa   :  { %10944 = vmatmul.mubr.msk.f32.gmra.mrb[102].mxu1 %vm637_vm8, %v6749_v45 }
0x1ead   :  { %v6750_v37 = vpop.trf.xlu0 }
0x1eae   :  { %10946 = vmatprep.mubr.msk.f32.mxu1 %vm637_vm8, %v6750_v37 }
0x1eb1   :  { %v6751_v5 = vpop.trf.xlu0 }
0x1eb2   :  { %10947 = vmatmul.mubr.msk.f32.gmra.mrb[104].mxu1 %vm637_vm8, %v6751_v5 }
0x1eb5   :  { %v6752_v14 = vpop.trf.xlu0 }
0x1eb6   :  { %10949 = vmatprep.mubr.msk.f32.mxu1 %vm637_vm8, %v6752_v14 }
0x1eb9   :  { %v6753_v10 = vpop.trf.xlu0 }
0x1eba   :  { %10950 = vmatmul.mubr.msk.f32.gmra.mrb[106].mxu1 %vm637_vm8, %v6753_v10 }
0x1ebd   :  { %v6754_v3 = vpop.trf.xlu0 }
0x1ebe   :  { %10952 = vmatprep.mubr.msk.f32.mxu1 %vm637_vm8, %v6754_v3  ;;  %v6973_v3 = vld [vmem:[%s15496_s5 + $0x90] sm:$0xff] }
0x1ec1   :  { %v6755_v24 = vpop.trf.xlu0 }
0x1ec2   :  { %10953 = vmatmul.mubr.msk.f32.gmra.mrb[108].mxu1 %vm637_vm8, %v6755_v24 }
0x1ec5   :  { %v6756_v46 = vpop.trf.xlu0 }
0x1ec6   :  { %10955 = vmatprep.mubr.msk.f32.mxu1 %vm637_vm8, %v6756_v46 }
0x1ec9   :  { %v6757_v32 = vpop.trf.xlu0 }
0x1eca   :  { %10956 = vmatmul.mubr.msk.f32.gmra.mrb[110].mxu1 %vm637_vm8, %v6757_v32 }
0x1ecd   :  { %v6758_v57 = vpop.trf.xlu0 }
0x1ece   :  { %10958 = vmatprep.mubr.msk.f32.mxu1 %vm637_vm8, %v6758_v57 }
0x1ed1   :  { %v6759_v12 = vpop.trf.xlu0 }
0x1ed2   :  { %10959 = vmatmul.mubr.msk.f32.gmra.mrb[112].mxu1 %vm637_vm8, %v6759_v12 }
0x1ed5   :  { %v6760_v30 = vpop.trf.xlu0 }
0x1ed6   :  { %10961 = vmatprep.mubr.msk.f32.mxu1 %vm637_vm8, %v6760_v30 }
0x1ed9   :  { %v6761_v4 = vpop.trf.xlu0 }
0x1eda   :  { %10962 = vmatmul.mubr.msk.f32.gmra.mrb[114].mxu1 %vm637_vm8, %v6761_v4 }
0x1edb   :  { %10980 = vmatprep.mubr.msk.f32.mxu1 %vm11607_vm0, %v15511_v8 }
0x1ef3   :  { %v6369_v38 = vpop.trf.xlu0 }
0x1ef4   :  { %10914 = vmatprep.mubr.msk.f32.mxu0 %vm637_vm8, %v6369_v38 }
0x1ef7   :  { %v6370_v16 = vpop.trf.xlu0 }
0x1ef8   :  { %10915 = vmatmul.mubr.msk.f32.vlgmr.msra.gmra.mrb[96].mxu0 %vm637_vm8, %v6370_v16  ;;  %v6989_v16 = vmul.f32 0.001, %v6973_v3 }
0x1efb   :  { %v6371_v0 = vpop.trf.xlu0 }
0x1efc   :  { %10917 = vmatprep.mubr.msk.f32.mxu0 %vm637_vm8, %v6371_v0 }
0x1eff   :  { %v6372_v34 = vpop.trf.xlu0 }
0x1f00   :  { %10918 = vmatmul.mubr.msk.f32.gmra.mrb[98].mxu0 %vm637_vm8, %v6372_v34 }
0x1f03   :  { %v6373_v39 = vpop.trf.xlu0 }
0x1f04   :  { %10920 = vmatprep.mubr.msk.f32.mxu0 %vm637_vm8, %v6373_v39 }
0x1f07   :  { %v6374_v43 = vpop.trf.xlu0 }
0x1f08   :  { %10921 = vmatmul.mubr.msk.f32.gmra.mrb[100].mxu0 %vm637_vm8, %v6374_v43 }
0x1f0b   :  { %v6375_v19 = vpop.trf.xlu0 }
0x1f0c   :  { %10923 = vmatprep.mubr.msk.f32.mxu0 %vm637_vm8, %v6375_v19 }
0x1f0f   :  { %v6376_v44 = vpop.trf.xlu0 }
0x1f10   :  { %10924 = vmatmul.mubr.msk.f32.gmra.mrb[102].mxu0 %vm637_vm8, %v6376_v44 }
0x1f13   :  { %v6377_v18 = vpop.trf.xlu0 }
0x1f14   :  { %10926 = vmatprep.mubr.msk.f32.mxu0 %vm637_vm8, %v6377_v18 }
0x1f17   :  { %v6378_v61 = vpop.trf.xlu0 }
0x1f18   :  { %10927 = vmatmul.mubr.msk.f32.gmra.mrb[104].mxu0 %vm637_vm8, %v6378_v61 }
0x1f1b   :  { %v6379_v13 = vpop.trf.xlu0 }
0x1f1c   :  { %10929 = vmatprep.mubr.msk.f32.mxu0 %vm637_vm8, %v6379_v13  ;;  %v6976_v13 = vld [vmem:[%s15496_s5 + $0xa8] sm:$0xff] }
0x1f1f   :  { %v6380_v28 = vpop.trf.xlu0 }
0x1f20   :  { %10930 = vmatmul.mubr.msk.f32.gmra.mrb[106].mxu0 %vm637_vm8, %v6380_v28 }
0x1f23   :  { %v6381_v41 = vpop.trf.xlu0 }
0x1f24   :  { %10932 = vmatprep.mubr.msk.f32.mxu0 %vm637_vm8, %v6381_v41 }
0x1f27   :  { %v6382_v17 = vpop.trf.xlu0 }
0x1f28   :  { %10933 = vmatmul.mubr.msk.f32.gmra.mrb[108].mxu0 %vm637_vm8, %v6382_v17  ;;  %v6975_v17 = vld [vmem:[%s15496_s5 + $0xa0] sm:$0xff] }
0x1f2b   :  { %v6383_v1 = vpop.trf.xlu0 }
0x1f2c   :  { %10935 = vmatprep.mubr.msk.f32.mxu0 %vm637_vm8, %v6383_v1 }
0x1f2f   :  { %v6384_v25 = vpop.trf.xlu0 }
0x1f30   :  { %10936 = vmatmul.mubr.msk.f32.gmra.mrb[110].mxu0 %vm637_vm8, %v6384_v25 }
0x1f31   :  { %7305 = vmatprep.mubr.f32.mxu0 %v14235_v48  ;;  %v6974_v48 = vld [vmem:[%s15496_s5 + $0x98] sm:$0xff] }
0x1f32   :  { %v6990_v12 = vmul.f32 0.001, %v6974_v48 }
0x1f75   :  { %v10942_v7 = vpop.f32.mrb[100].mxu1 }
0x1f76   :  { %v6956_v35 = vmul.f32 0.5, %v10942_v7  ;;  %v6876_v29 = vpop.f32.mrb[101].mxu1 }
0x1f77   :  { %v6955_v53 = vmul.f32 0.5, %v6876_v29 }
0x1f78   :  { %v7004_v45 = vsub.f32 %v6956_v35, %v6988_v27  ;;  %v6992_v35 = vmul.f32 0.001, %v6976_v13 }
0x1f79   :  { %v7003_v37 = vsub.f32 %v6955_v53, %v6987_v42 }
0x1f7a   :  { %v7020_v5 = vmul.f32 0.001, %v7004_v45  ;;  %v6991_v45 = vmul.f32 0.001, %v6975_v17 }
0x1f7b   :  { %v7019_v14 = vmul.f32 0.001, %v7003_v37 }
0x1f7c   :  { %v7036_v10 = vadd.f32 %v7020_v5, %v6972_v20 }
0x1f7d   :  { %v7035_v24 = vadd.f32 %v7019_v14, %v6971_v62  ;;  %v10945_v46 = vpop.f32.mrb[102].mxu1 }
0x1f7e   :  { %v7068_v32 = vmul.f32 %v7036_v10, %v11970_v9  ;;  %v6958_v57 = vmul.f32 0.5, %v10945_v46  ;;  %v6886_v30 = vpop.f32.mrb[103].mxu1 }
0x1f7f   :  { %v7067_v4 = vmul.f32 %v7035_v24, %v11974_v15  ;;  %v6957_v38 = vmul.f32 0.5, %v6886_v30 }
0x1f80   :  { %v7084_v0 = vmax.f32 %v7068_v32, 0.0  ;;  %v7006_v34 = vsub.f32 %v6958_v57, %v6990_v12  ;;  %v6978_v32 = vld [vmem:[%s15496_s5 + $0xb8] sm:$0xff]  ;;  %v6977_v57 = vld [vmem:[%s15496_s5 + $0xb0] sm:$0xff] }
0x1f81   :  { %v7083_v39 = vmax.f32 %v7067_v4, 0.0  ;;  %v7005_v43 = vsub.f32 %v6957_v38, %v6989_v16 }
0x1f82   :  { %v14300_v19 = vmul.f32 %v7084_v0, %v11970_v9  ;;  %v7022_v44 = vmul.f32 0.001, %v7006_v34  ;;  %v6994_v34 = vmul.f32 0.001, %v6978_v32 }
0x1f83   :  { %v14303_v18 = vmul.f32 %v7083_v39, %v11974_v15  ;;  %v7021_v61 = vmul.f32 0.001, %v7005_v43  ;;  %v6993_v43 = vmul.f32 0.001, %v6977_v57 }
0x1f84   :  { %v7116_v28 = vmul.f32 %v14300_v19, %v14300_v19  ;;  %v7038_v41 = vadd.f32 %v7022_v44, %v6974_v48 }
0x1f85   :  { %v7115_v1 = vmul.f32 %v14303_v18, %v14303_v18  ;;  %v7037_v25 = vadd.f32 %v7021_v61, %v6973_v3  ;;  %v10948_v20 = vpop.f32.mrb[104].mxu1 }
0x1f86   :  { %v7070_v62 = vmul.f32 %v7038_v41, %v11996_v36  ;;  %v6960_v7 = vmul.f32 0.5, %v10948_v20  ;;  %v6896_v27 = vpop.f32.mrb[105].mxu1 }
0x1f87   :  { %v7131_v29 = vadd.f32 %v7116_v28, %v7115_v1  ;;  %v7069_v53 = vmul.f32 %v7037_v25, %v12002_v47  ;;  %v6959_v42 = vmul.f32 0.5, %v6896_v27 }
0x1f88   :  { %v7086_v37 = vmax.f32 %v7070_v62, 0.0  ;;  %v7008_v5 = vsub.f32 %v6960_v7, %v6992_v35 }
0x1f89   :  { %v7085_v14 = vmax.f32 %v7069_v53, 0.0  ;;  %v7007_v48 = vsub.f32 %v6959_v42, %v6991_v45  ;;  %v6979_v53 = vld [vmem:[%s15496_s5 + $0xc0] sm:$0xff] }
0x1f8a   :  { %v7024_v10 = vmul.f32 0.001, %v7008_v5  ;;  %v14318_v24 = vmul.f32 %v7086_v37, %v11996_v36 }
0x1f8b   :  { %v14321_v3 = vmul.f32 %v7085_v14, %v12002_v47  ;;  %v7023_v46 = vmul.f32 0.001, %v7007_v48 }
0x1f8c   :  { %v7040_v12 = vadd.f32 %v7024_v10, %v6976_v13  ;;  %v7118_v44 = vmul.f32 %v14318_v24, %v14318_v24 }
0x1f8d   :  { %v7117_v30 = vmul.f32 %v14321_v3, %v14321_v3  ;;  %v7039_v4 = vadd.f32 %v7023_v46, %v6975_v17  ;;  %v10951_v38 = vpop.f32.mrb[106].mxu1 }
0x1f8e   :  { %v7072_v16 = vmul.f32 %v7040_v12, %v12026_v23  ;;  %v6962_v0 = vmul.f32 0.5, %v10951_v38  ;;  %v6906_v39 = vpop.f32.mrb[107].mxu1  ;;  %v6995_v12 = vmul.f32 0.001, %v6979_v53 }
0x1f8f   :  { %v7132_v61 = vadd.f32 %v7131_v29, %v7117_v30  ;;  %v7071_v28 = vmul.f32 %v7039_v4, %v12031_v26  ;;  %v6961_v41 = vmul.f32 0.5, %v6906_v39  ;;  %v6980_v29 = vld [vmem:[%s15496_s5 + $0xc8] sm:$0xff] }
0x1f90   :  { %v7088_v1 = vmax.f32 %v7072_v16, 0.0  ;;  %v7010_v13 = vsub.f32 %v6962_v0, %v6994_v34  ;;  %v6996_v10 = vmul.f32 0.001, %v6980_v29 }
0x1f91   :  { %v7087_v25 = vmax.f32 %v7071_v28, 0.0  ;;  %v7133_v20 = vadd.f32 %v7132_v61, %v7118_v44  ;;  %v7009_v62 = vsub.f32 %v6961_v41, %v6993_v43  ;;  %v6982_v41 = vld [vmem:[%s15496_s5 + $0xd8] sm:$0xff] }
0x1f92   :  { %v7026_v17 = vmul.f32 0.001, %v7010_v13  ;;  %v14336_v7 = vmul.f32 %v7088_v1, %v12026_v23  ;;  %v6981_v1 = vld [vmem:[%s15496_s5 + $0xd0] sm:$0xff] }
0x1f93   :  { %v14339_v35 = vmul.f32 %v7087_v25, %v12031_v26  ;;  %v7025_v27 = vmul.f32 0.001, %v7009_v62 }
0x1f94   :  { %v7042_v42 = vadd.f32 %v7026_v17, %v6978_v32  ;;  %v7120_v30 = vmul.f32 %v14336_v7, %v14336_v7 }
0x1f95   :  { %v7119_v45 = vmul.f32 %v14339_v35, %v14339_v35  ;;  %v7041_v37 = vadd.f32 %v7025_v27, %v6977_v57  ;;  %v10954_v5 = vpop.f32.mrb[108].mxu1 }
0x1f96   :  { %v7074_v14 = vmul.f32 %v7042_v42, %v12054_v63  ;;  %v6964_v48 = vmul.f32 0.5, %v10954_v5  ;;  %v6916_v46 = vpop.f32.mrb[109].mxu1  ;;  %v6998_v42 = vmul.f32 0.001, %v6982_v41 }
0x1f97   :  { %v7134_v4 = vadd.f32 %v7133_v20, %v7119_v45  ;;  %v7073_v38 = vmul.f32 %v7041_v37, %v12057_v2  ;;  %v6963_v16 = vmul.f32 0.5, %v6916_v46  ;;  %v6997_v37 = vmul.f32 0.001, %v6981_v1 }
0x1f98   :  { %v7090_v0 = vmax.f32 %v7074_v14, 0.0  ;;  %v7012_v32 = vsub.f32 %v6964_v48, %v6996_v10 }
0x1f99   :  { %v7089_v34 = vmax.f32 %v7073_v38, 0.0  ;;  %v7135_v39 = vadd.f32 %v7134_v4, %v7120_v30  ;;  %v7011_v43 = vsub.f32 %v6963_v16, %v6995_v12 }
0x1f9a   :  { %v7028_v57 = vmul.f32 0.001, %v7012_v32  ;;  %v14354_v44 = vmul.f32 %v7090_v0, %v12054_v63 }
0x1f9b   :  { %v14357_v61 = vmul.f32 %v7089_v34, %v12057_v2  ;;  %v7027_v28 = vmul.f32 0.001, %v7011_v43  ;;  %v6984_v34 = vld [vmem:[%s15496_s5 + $0xe8] sm:$0xff] }
0x1f9c   :  { %v7044_v13 = vadd.f32 %v7028_v57, %v6980_v29  ;;  %v7122_v5 = vmul.f32 %v14354_v44, %v14354_v44 }
0x1f9d   :  { %v7121_v25 = vmul.f32 %v14357_v61, %v14357_v61  ;;  %v7043_v20 = vadd.f32 %v7027_v28, %v6979_v53  ;;  %v10957_v62 = vpop.f32.mrb[110].mxu1 }
0x1f9e   :  { %v7076_v17 = vmul.f32 %v7044_v13, %v12080_v49  ;;  %v6966_v27 = vmul.f32 0.5, %v10957_v62  ;;  %v6926_v45 = vpop.f32.mrb[111].mxu1 }
0x1f9f   :  { %v7136_v14 = vadd.f32 %v7135_v39, %v7121_v25  ;;  %v7075_v48 = vmul.f32 %v7043_v20, %v12085_v60  ;;  %v6965_v10 = vmul.f32 0.5, %v6926_v45  ;;  %v6983_v39 = vld [vmem:[%s15496_s5 + $0xe0] sm:$0xff] }
0x1fa0   :  { %v7092_v46 = vmax.f32 %v7076_v17, 0.0  ;;  %v7014_v29 = vsub.f32 %v6966_v27, %v6998_v42  ;;  %v7000_v27 = vmul.f32 0.001, %v6984_v34  ;;  %v6999_v45 = vmul.f32 0.001, %v6983_v39 }
0x1fa1   :  { %v7137_v12 = vadd.f32 %v7136_v14, %v7122_v5  ;;  %v7091_v30 = vmax.f32 %v7075_v48, 0.0  ;;  %v7013_v4 = vsub.f32 %v6965_v10, %v6997_v37 }
0x1fa2   :  { %v14372_v53 = vmul.f32 %v7092_v46, %v12080_v49  ;;  %v7030_v38 = vmul.f32 0.001, %v7014_v29 }
0x1fa3   :  { %v7138_v16 = vrot.slane %v7137_v12, 4  ;;  %v14375_v0 = vmul.f32 %v7091_v30, %v12085_v60  ;;  %v7029_v32 = vmul.f32 0.001, %v7013_v4 }
0x1fa4   :  { %v7124_v43 = vmul.f32 %v14372_v53, %v14372_v53  ;;  %v7046_v57 = vadd.f32 %v7030_v38, %v6982_v41 }
0x1fa5   :  { %v7139_v28 = vadd.f32 %v7138_v16, %v7137_v12  ;;  %v7123_v13 = vmul.f32 %v14375_v0, %v14375_v0  ;;  %v7045_v25 = vadd.f32 %v7029_v32, %v6981_v1  ;;  %v10960_v20 = vpop.f32.mrb[112].mxu1  ;;  %v6986_v32 = vld [vmem:[%s15496_s5 + $0xf8] sm:$0xff] }
0x1fa6   :  { %v7078_v62 = vmul.f32 %v7046_v57, %v12111_v40  ;;  %v6968_v17 = vmul.f32 0.5, %v10960_v20  ;;  %v6936_v42 = vpop.f32.mrb[113].mxu1  ;;  %v6985_v20 = vld [vmem:[%s15496_s5 + $0xf0] sm:$0xff] }
0x1fa7   :  { %v7140_v37 = vrot.slane %v7139_v28, 2  ;;  %v7144_v5 = vadd.f32 %v7124_v43, %v7123_v13  ;;  %v7077_v14 = vmul.f32 %v7045_v25, %v12104_v33  ;;  %v6967_v48 = vmul.f32 0.5, %v6936_v42 }
0x1fa8   :  { %v7094_v10 = vmax.f32 %v7078_v62, 0.0  ;;  %v7016_v46 = vsub.f32 %v6968_v17, %v7000_v27  ;;  %v7002_v27 = vmul.f32 0.001, %v6986_v32 }
0x1fa9   :  { %v7141_v41 = vadd.f32 %v7140_v37, %v7139_v28  ;;  %v7093_v29 = vmax.f32 %v7077_v14, 0.0  ;;  %v7015_v12 = vsub.f32 %v6967_v48, %v6999_v45 }
0x1faa   :  { %v7032_v30 = vmul.f32 0.001, %v7016_v46  ;;  %v14390_v1 = vmul.f32 %v7094_v10, %v12111_v40  ;;  %v7001_v10 = vmul.f32 0.001, %v6985_v20 }
0x1fab   :  { %v7142_v4 = vrot.slane %v7141_v41, 1  ;;  %v14393_v38 = vmul.f32 %v7093_v29, %v12104_v33  ;;  %v7031_v16 = vmul.f32 0.001, %v7015_v12 }
0x1fac   :  { %v7048_v43 = vadd.f32 %v7032_v30, %v6984_v34  ;;  %v7126_v45 = vmul.f32 %v14390_v1, %v14390_v1 }
0x1fad   :  { %v7143_v57 = vadd.f32 %v7142_v4, %v7141_v41  ;;  %v7125_v28 = vmul.f32 %v14393_v38, %v14393_v38  ;;  %v7047_v13 = vadd.f32 %v7031_v16, %v6983_v39  ;;  %v10963_v25 = vpop.f32.mrb[114].mxu1 }
0x1fae   :  { %v7080_v62 = vmul.f32 %v7048_v43, %v12145_v58  ;;  %v6970_v17 = vmul.f32 0.5, %v10963_v25  ;;  %v6946_v42 = vpop.f32.mrb[115].mxu1 }
0x1faf   :  { %11573 = vrsqrt.f32 %v7143_v57  ;;  %v7145_v34 = vadd.f32 %v7144_v5, %v7125_v28  ;;  %v7079_v37 = vmul.f32 %v7047_v13, %v12149_v51  ;;  %v6969_v39 = vmul.f32 0.5, %v6946_v42 }
0x1fb0   :  { %v7096_v14 = vmax.f32 %v7080_v62, 0.0  ;;  %v7018_v48 = vsub.f32 %v6970_v17, %v7002_v27  ;;  %vm7162_vm15 = vcmp.gt.f32.partialorder %v7143_v57, 0.0 }
0x1fb1   :  { %v7146_v46 = vadd.f32 %v7145_v34, %v7126_v45  ;;  %v7095_v41 = vmax.f32 %v7079_v37, 0.0  ;;  %v7017_v30 = vsub.f32 %v6969_v39, %v7001_v10 }
0x1fb2   :  { %v14408_v29 = vmul.f32 %v7096_v14, %v12145_v58  ;;  %v7034_v12 = vmul.f32 0.001, %v7018_v48 }
0x1fb3   :  { %v7147_v4 = vrot.slane %v7146_v46, 4  ;;  %v14411_v16 = vmul.f32 %v7095_v41, %v12149_v51  ;;  %v7033_v28 = vmul.f32 0.001, %v7017_v30 }
0x1fb4   :  { %v7128_v5 = vmul.f32 %v14408_v29, %v14408_v29  ;;  %v7050_v43 = vadd.f32 %v7034_v12, %v6986_v32 }
0x1fb5   :  { %v7148_v13 = vadd.f32 %v7147_v4, %v7146_v46  ;;  %v7127_v25 = vmul.f32 %v14411_v16, %v14411_v16  ;;  %v7049_v17 = vadd.f32 %v7033_v28, %v6985_v20 }
0x1fb6   :  { %v7082_v62 = vmul.f32 %v7050_v43, %v12175_v52 }
0x1fb7   :  { %v7149_v27 = vrot.slane %v7148_v13, 2  ;;  %v7153_v42 = vadd.f32 %v7128_v5, %v7127_v25  ;;  %v7081_v45 = vmul.f32 %v7049_v17, %v12183_v50  ;;  %v6595_v17 = vld [vmem:[%s15496_s5 + $0x8] sm:$0xff] }
0x1fb8   :  { %v7098_v14 = vmax.f32 %v7082_v62, 0.0 }
0x1fb9   :  { %v11574_v34 = vpop.eup %11573  ;;  %v7150_v37 = vadd.f32 %v7149_v27, %v7148_v13  ;;  %v7097_v39 = vmax.f32 %v7081_v45, 0.0 }
0x1fba   :  { %v7164_v48 = vsel %vm7162_vm15, %v11574_v34, 0.0  ;;  %v6594_v34 = vld [vmem:[%s15496_s5] sm:$0xff] }
0x1fbb   :  { %v7171_v32 = vmul.f32 %v7164_v48, %v14303_v18  ;;  %v7172_v10 = vmul.f32 %v7164_v48, %v14300_v19  ;;  %v7173_v46 = vmul.f32 %v7164_v48, %v14321_v3  ;;  %v7174_v41 = vmul.f32 %v7164_v48, %v14318_v24 }
0x1fbc   :  { %v7175_v20 = vmul.f32 %v7164_v48, %v14339_v35  ;;  %v7176_v12 = vmul.f32 %v7164_v48, %v14336_v7  ;;  %v7177_v30 = vmul.f32 %v7164_v48, %v14357_v61  ;;  %v7178_v57 = vmul.f32 %v7164_v48, %v14354_v44 }
0x1fbd   :  { %7187 = vst [vmem:[%s15496_s5 + $0x80] sm:$0xff] %v7171_v32  ;;  %7188 = vst [vmem:[%s15496_s5 + $0x88] sm:$0xff] %v7172_v10  ;;  %v7151_v19 = vrot.slane %v7150_v37, 1  ;;  %v14440_v18 = vmul.f32 %v7098_v14, %v12175_v52  ;;  %v14443_v24 = vmul.f32 %v7097_v39, %v12183_v50  ;;  %v11428_v3 = vpack.c.bf16 %v7172_v10, %v7171_v32 }
0x1fbe   :  { %7189 = vst [vmem:[%s15496_s5 + $0x90] sm:$0xff] %v7173_v46  ;;  %7190 = vst [vmem:[%s15496_s5 + $0x98] sm:$0xff] %v7174_v41  ;;  %v14457_v7 = vpack.c.bf16 %v7174_v41, %v7173_v46  ;;  %v14459_v35 = vpack.c.bf16 %v7176_v12, %v7175_v20  ;;  %v14461_v44 = vpack.c.bf16 %v7178_v57, %v7177_v30  ;;  %v6603_v48 = vmul.f32 0.001, %v6595_v17 }
0x1fbf   :  { %7193 = vst [vmem:[%s15496_s5 + $0xb0] sm:$0xff] %v7177_v30  ;;  %7191 = vst [vmem:[%s15496_s5 + $0xa0] sm:$0xff] %v7175_v20  ;;  %v7152_v61 = vadd.f32 %v7151_v19, %v7150_v37  ;;  %v7129_v4 = vmul.f32 %v14443_v24, %v14443_v24  ;;  %11429 = vmatprep.subr.bf16.mxu0 %v11428_v3  ;;  %11462 = vmatpush3.bf16.msra.mxu1 %v11428_v3  ;;  %v6597_v3 = vld [vmem:[%s15496_s5 + $0x18] sm:$0xff] }
0x1fc0   :  { %7192 = vst [vmem:[%s15496_s5 + $0xa8] sm:$0xff] %v7176_v12  ;;  %7194 = vst [vmem:[%s15496_s5 + $0xb8] sm:$0xff] %v7178_v57  ;;  %11463 = vmatprep.subr.bf16.mxu1 %v15512_v21  ;;  %v7130_v5 = vmul.f32 %v14440_v18, %v14440_v18  ;;  %v6602_v57 = vmul.f32 0.001, %v6594_v34 }
0x1fc1   :  { %11575 = vrsqrt.f32 %v7152_v61  ;;  %v7154_v43 = vadd.f32 %v7153_v42, %v7129_v4  ;;  %vm7165_vm1 = vcmp.gt.f32.partialorder %v7152_v61, 0.0 }
0x1fc3   :  { %v7155_v28 = vadd.f32 %v7154_v43, %v7130_v5  ;;  %11465 = vmatpush3.bf16.msra.mxu1 %v14457_v7  ;;  %v6596_v5 = vld [vmem:[%s15496_s5 + $0x10] sm:$0xff] }
0x1fc4   :  { %11466 = vmatprep.subr.bf16.mxu1 %v15512_v21 }
0x1fc5   :  { %v7156_v13 = vrot.slane %v7155_v28, 4 }
0x1fc7   :  { %v7157_v25 = vadd.f32 %v7156_v13, %v7155_v28  ;;  %11468 = vmatpush3.bf16.msra.mxu1 %v14459_v35 }
0x1fc8   :  { %11469 = vmatprep.subr.bf16.mxu1 %v15512_v21 }
0x1fc9   :  { %v7158_v62 = vrot.slane %v7157_v25, 2 }
0x1fcb   :  { %v11576_v27 = vpop.eup %11575  ;;  %v7159_v45 = vadd.f32 %v7158_v62, %v7157_v25  ;;  %v10916_v42 = vpop.f32.mrb[96].mxu0  ;;  %11471 = vmatpush3.bf16.msra.mxu1 %v14461_v44  ;;  %v6605_v25 = vmul.f32 0.001, %v6597_v3 }
0x1fcc   :  { %v7167_v37 = vsel %vm7165_vm1, %v11576_v27, 0.0  ;;  %v6579_v14 = vmul.f32 0.5, %v10916_v42  ;;  %v6499_v39 = vpop.f32.mrb[97].mxu0 }
0x1fcd   :  { %v7179_v32 = vmul.f32 %v7167_v37, %v14375_v0  ;;  %v7180_v10 = vmul.f32 %v7167_v37, %v14372_v53  ;;  %v7181_v46 = vmul.f32 %v7167_v37, %v14393_v38  ;;  %v7182_v41 = vmul.f32 %v7167_v37, %v14390_v1 }
0x1fce   :  { %v7160_v20 = vrot.slane %v7159_v45, 1  ;;  %v6611_v12 = vsub.f32 %v6579_v14, %v6603_v48  ;;  %v6578_v30 = vmul.f32 0.5, %v6499_v39 }
0x1fcf   :  { %7197 = vst [vmem:[%s15496_s5 + $0xd0] sm:$0xff] %v7181_v46  ;;  %7195 = vst [vmem:[%s15496_s5 + $0xc0] sm:$0xff] %v7179_v32  ;;  %v14495_v53 = vpack.c.bf16 %v7180_v10, %v7179_v32  ;;  %v14497_v0 = vpack.c.bf16 %v7182_v41, %v7181_v46  ;;  %v6598_v32 = vld [vmem:[%s15496_s5 + $0x20] sm:$0xff] }
0x1fd0   :  { %7196 = vst [vmem:[%s15496_s5 + $0xc8] sm:$0xff] %v7180_v10  ;;  %7198 = vst [vmem:[%s15496_s5 + $0xd8] sm:$0xff] %v7182_v41  ;;  %v7161_v1 = vadd.f32 %v7160_v20, %v7159_v45  ;;  %v6619_v38 = vmul.f32 %v6611_v12, %v12296_v22  ;;  %v6610_v19 = vsub.f32 %v6578_v30, %v6602_v57  ;;  %v6604_v45 = vmul.f32 0.001, %v6596_v5 }
0x1fd2   :  { %11577 = vrsqrt.f32 %v7161_v1  ;;  %v6627_v61 = vadd.f32 %v6619_v38, %v6595_v17  ;;  %v6618_v4 = vmul.f32 %v6610_v19, %v12296_v22  ;;  %vm7168_vm2 = vcmp.gt.f32.partialorder %v7161_v1, 0.0 }
0x1fd3   :  { %v10919_v43 = vpop.f32.mrb[98].mxu0  ;;  %v6606_v38 = vmul.f32 0.001, %v6598_v32 }
0x1fd4   :  { %6635 = vst [vmem:[%s15496_s5 + $0x8] sm:$0xff] %v6627_v61  ;;  %v6626_v28 = vadd.f32 %v6618_v4, %v6594_v34  ;;  %v6581_v13 = vmul.f32 0.5, %v10919_v43  ;;  %v6509_v62 = vpop.f32.mrb[99].mxu0  ;;  %v6599_v34 = vld [vmem:[%s15496_s5 + $0x28] sm:$0xff] }
0x1fd5   :  { %v6580_v27 = vmul.f32 0.5, %v6509_v62  ;;  %v6607_v12 = vmul.f32 0.001, %v6599_v34 }
0x1fd6   :  { %6634 = vst [vmem:[%s15496_s5] sm:$0xff] %v6626_v28  ;;  %v6613_v17 = vsub.f32 %v6581_v13, %v6605_v25  ;;  %v11430_v42 = vpack.c.bf16 %v6627_v61, %v6626_v28  ;;  %v6601_v28 = vld [vmem:[%s15496_s5 + $0x38] sm:$0xff]  ;;  %v6600_v13 = vld [vmem:[%s15496_s5 + $0x30] sm:$0xff] }
0x1fd7   :  { %v6612_v37 = vsub.f32 %v6580_v27, %v6604_v45  ;;  %v6609_v45 = vmul.f32 0.001, %v6601_v28 }
0x1fd8   :  { %v6621_v14 = vmul.f32 %v6613_v17, %v12296_v22  ;;  %11431 = vmatpush3.bf16.msra.mxu0 %v11430_v42 }
0x1fd9   :  { %v6620_v48 = vmul.f32 %v6612_v37, %v12296_v22  ;;  %11433 = vmatprep.subr.bf16.mxu0 %v14457_v7  ;;  %v6608_v37 = vmul.f32 0.001, %v6600_v13 }
0x1fda   :  { %v6629_v39 = vadd.f32 %v6621_v14, %v6597_v3 }
0x1fdb   :  { %v6628_v10 = vadd.f32 %v6620_v48, %v6596_v5  ;;  %v10922_v46 = vpop.f32.mrb[100].mxu0 }
0x1fdc   :  { %v11578_v41 = vpop.eup %11577  ;;  %6637 = vst [vmem:[%s15496_s5 + $0x18] sm:$0xff] %v6629_v39  ;;  %v6583_v20 = vmul.f32 0.5, %v10922_v46  ;;  %v6519_v30 = vpop.f32.mrb[101].mxu0 }
0x1fdd   :  { %v7170_v57 = vsel %vm7168_vm2, %v11578_v41, 0.0  ;;  %6636 = vst [vmem:[%s15496_s5 + $0x10] sm:$0xff] %v6628_v10  ;;  %v6582_v7 = vmul.f32 0.5, %v6519_v30  ;;  %v11434_v19 = vpack.c.bf16 %v6629_v39, %v6628_v10  ;;  %v6643_v10 = vld [vmem:[%s15496_s5 + $0x48] sm:$0xff]  ;;  %v6642_v41 = vld [vmem:[%s15496_s5 + $0x40] sm:$0xff] }
0x1fde   :  { %v14529_v3 = vmul.f32 %v7170_v57, %v14411_v16  ;;  %v14532_v1 = vmul.f32 %v7170_v57, %v14408_v29  ;;  %v14535_v61 = vmul.f32 %v7170_v57, %v14443_v24  ;;  %v14538_v4 = vmul.f32 %v7170_v57, %v14440_v18 }
0x1fdf   :  { %v6615_v5 = vsub.f32 %v6583_v20, %v6607_v12  ;;  %v6614_v43 = vsub.f32 %v6582_v7, %v6606_v38  ;;  %11435 = vmatpush3.bf16.msra.mxu0 %v11434_v19  ;;  %v6651_v57 = vmul.f32 0.001, %v6643_v10  ;;  %v6650_v38 = vmul.f32 0.001, %v6642_v41 }
0x1fe0   :  { %7199 = vst [vmem:[%s15496_s5 + $0xe0] sm:$0xff] %v14529_v3  ;;  %7200 = vst [vmem:[%s15496_s5 + $0xe8] sm:$0xff] %v14532_v1  ;;  %11437 = vmatprep.subr.bf16.mxu0 %v14459_v35  ;;  %v11452_v29 = vpack.c.bf16 %v14532_v1, %v14529_v3  ;;  %v11602_v3 = vld [vmem:[%s15498_s2 + $0x28] sm:$0xff] }
0x1fe1   :  { %7201 = vst [vmem:[%s15496_s5 + $0xf0] sm:$0xff] %v14535_v61  ;;  %7202 = vst [vmem:[%s15496_s5 + $0xf8] sm:$0xff] %v14538_v4  ;;  %v6623_v18 = vmul.f32 %v6615_v5, %v12296_v22  ;;  %v6622_v24 = vmul.f32 %v6614_v43, %v12296_v22  ;;  %v7205_v1 = vmul.f32 %v11602_v3, %v11873_v59 }
0x1fe3   :  { %v6631_v25 = vadd.f32 %v6623_v18, %v6599_v34  ;;  %v6630_v35 = vadd.f32 %v6622_v24, %v6598_v32  ;;  %v10925_v62 = vpop.f32.mrb[102].mxu0 }
0x1fe4   :  { %v6585_v27 = vmul.f32 0.5, %v10925_v62  ;;  %v6529_v17 = vpop.f32.mrb[103].mxu0 }
0x1fe5   :  { %6639 = vst [vmem:[%s15496_s5 + $0x28] sm:$0xff] %v6631_v25  ;;  %6638 = vst [vmem:[%s15496_s5 + $0x20] sm:$0xff] %v6630_v35  ;;  %v6584_v42 = vmul.f32 0.5, %v6529_v17  ;;  %v11438_v14 = vpack.c.bf16 %v6631_v25, %v6630_v35  ;;  %v6644_v25 = vld [vmem:[%s15496_s5 + $0x50] sm:$0xff] }
0x1fe6   :  { %v6617_v48 = vsub.f32 %v6585_v27, %v6609_v45 }
0x1fe7   :  { %v6616_v39 = vsub.f32 %v6584_v42, %v6608_v37  ;;  %11439 = vmatpush3.bf16.msra.mxu0 %v11438_v14 }
0x1fe8   :  { %v6625_v34 = vmul.f32 %v6617_v48, %v12296_v22  ;;  %11441 = vmatprep.subr.bf16.mxu0 %v14461_v44  ;;  %v6652_v48 = vmul.f32 0.001, %v6644_v25 }
0x1fe9   :  { %v6624_v32 = vmul.f32 %v6616_v39, %v12296_v22 }
0x1fea   :  { %v6633_v46 = vadd.f32 %v6625_v34, %v6601_v28  ;;  %v6645_v28 = vld [vmem:[%s15496_s5 + $0x58] sm:$0xff] }
0x1feb   :  { %v6632_v20 = vadd.f32 %v6624_v32, %v6600_v13  ;;  %v10928_v12 = vpop.f32.mrb[104].mxu0  ;;  %v6653_v17 = vmul.f32 0.001, %v6645_v28 }
0x1fec   :  { %6641 = vst [vmem:[%s15496_s5 + $0x38] sm:$0xff] %v6633_v46  ;;  %v6587_v30 = vmul.f32 0.5, %v10928_v12  ;;  %v6539_v44 = vpop.f32.mrb[105].mxu0  ;;  %v6647_v12 = vld [vmem:[%s15496_s5 + $0x68] sm:$0xff] }
0x1fed   :  { %6640 = vst [vmem:[%s15496_s5 + $0x30] sm:$0xff] %v6632_v20  ;;  %v6586_v7 = vmul.f32 0.5, %v6539_v44  ;;  %v11442_v19 = vpack.c.bf16 %v6633_v46, %v6632_v20 }
0x1fee   :  { %v6659_v5 = vsub.f32 %v6587_v30, %v6651_v57  ;;  %v6646_v57 = vld [vmem:[%s15496_s5 + $0x60] sm:$0xff] }
0x1fef   :  { %v6658_v43 = vsub.f32 %v6586_v7, %v6650_v38  ;;  %11443 = vmatpush3.bf16.msra.mxu0 %v11442_v19  ;;  %v6655_v19 = vmul.f32 0.001, %v6647_v12 }
0x1ff0   :  { %v6667_v18 = vmul.f32 %v6659_v5, %v12352_v31  ;;  %11445 = vmatprep.subr.bf16.mxu0 %v14495_v53 }
0x1ff1   :  { %v6666_v24 = vmul.f32 %v6658_v43, %v12352_v31 }
0x1ff2   :  { %v6675_v13 = vadd.f32 %v6667_v18, %v6643_v10 }
0x1ff3   :  { %v6674_v35 = vadd.f32 %v6666_v24, %v6642_v41  ;;  %v10931_v62 = vpop.f32.mrb[106].mxu0 }
0x1ff4   :  { %v14599_v27 = vmax.f32 %v6675_v13, 0.0  ;;  %v6589_v45 = vmul.f32 0.5, %v10931_v62  ;;  %v6549_v42 = vpop.f32.mrb[107].mxu0  ;;  %v6654_v13 = vmul.f32 0.001, %v6646_v57 }
0x1ff5   :  { %v14601_v37 = vmax.f32 %v6674_v35, 0.0  ;;  %v6588_v14 = vmul.f32 0.5, %v6549_v42 }
0x1ff6   :  { %v6691_v39 = vmul.f32 %v14599_v27, %v14599_v27  ;;  %v6661_v34 = vsub.f32 %v6589_v45, %v6653_v17 }
0x1ff7   :  { %v6690_v32 = vmul.f32 %v14601_v37, %v14601_v37  ;;  %v6660_v10 = vsub.f32 %v6588_v14, %v6652_v48 }
0x1ff8   :  { %v6669_v46 = vmul.f32 %v6661_v34, %v12352_v31 }
0x1ff9   :  { %v6698_v41 = vadd.f32 %v6691_v39, %v6690_v32  ;;  %v6668_v20 = vmul.f32 %v6660_v10, %v12352_v31  ;;  %v6648_v39 = vld [vmem:[%s15496_s5 + $0x70] sm:$0xff] }
0x1ffa   :  { %v6677_v30 = vadd.f32 %v6669_v46, %v6645_v28 }
0x1ffb   :  { %v6676_v44 = vadd.f32 %v6668_v20, %v6644_v25  ;;  %v10934_v7 = vpop.f32.mrb[108].mxu0  ;;  %v6649_v25 = vld [vmem:[%s15496_s5 + $0x78] sm:$0xff] }
0x1ffc   :  { %v6591_v38 = vmul.f32 0.5, %v10934_v7  ;;  %v6559_v5 = vpop.f32.mrb[109].mxu0  ;;  %v6685_v43 = vmax.f32 %v6677_v30, 0.0  ;;  %v6657_v20 = vmul.f32 0.001, %v6649_v25 }
0x1ffd   :  { %v6684_v18 = vmax.f32 %v6676_v44, 0.0  ;;  %v6590_v24 = vmul.f32 0.5, %v6559_v5 }
0x1ffe   :  { %v6663_v35 = vsub.f32 %v6591_v38, %v6655_v19  ;;  %v6693_v42 = vmul.f32 %v6685_v43, %v6685_v43  ;;  %v6656_v38 = vmul.f32 0.001, %v6648_v39 }
0x1fff   :  { %v6692_v62 = vmul.f32 %v6684_v18, %v6684_v18  ;;  %v6662_v45 = vsub.f32 %v6590_v24, %v6654_v13 }
0x2000   :  { %v6671_v17 = vmul.f32 %v6663_v35, %v12352_v31 }
0x2001   :  { %v6699_v28 = vadd.f32 %v6698_v41, %v6692_v62  ;;  %v6670_v14 = vmul.f32 %v6662_v45, %v12352_v31 }
0x2002   :  { %v6679_v48 = vadd.f32 %v6671_v17, %v6647_v12 }
0x2003   :  { %v6678_v34 = vadd.f32 %v6670_v14, %v6646_v57  ;;  %v6700_v32 = vadd.f32 %v6699_v28, %v6693_v42  ;;  %v10937_v10 = vpop.f32.mrb[110].mxu0 }
0x2004   :  { %v6593_v46 = vmul.f32 0.5, %v10937_v10  ;;  %v6569_v30 = vpop.f32.mrb[111].mxu0  ;;  %v6687_v44 = vmax.f32 %v6679_v48, 0.0 }
0x2005   :  { %v6686_v7 = vmax.f32 %v6678_v34, 0.0  ;;  %v6592_v41 = vmul.f32 0.5, %v6569_v30 }
0x2006   :  { %v6665_v19 = vsub.f32 %v6593_v46, %v6657_v20  ;;  %v6695_v12 = vmul.f32 %v6687_v44, %v6687_v44 }
0x2007   :  { %v6694_v5 = vmul.f32 %v6686_v7, %v6686_v7  ;;  %v6664_v24 = vsub.f32 %v6592_v41, %v6656_v38 }
0x2008   :  { %v6673_v13 = vmul.f32 %v6665_v19, %v12352_v31 }
0x2009   :  { %v6701_v35 = vadd.f32 %v6700_v32, %v6694_v5  ;;  %v6672_v62 = vmul.f32 %v6664_v24, %v12352_v31 }
0x200a   :  { %v6681_v45 = vadd.f32 %v6673_v13, %v6649_v25 }
0x200b   :  { %v6680_v57 = vadd.f32 %v6672_v62, %v6648_v39  ;;  %v6702_v17 = vadd.f32 %v6701_v35, %v6695_v12 }
0x200c   :  { %v6689_v42 = vmax.f32 %v6681_v45, 0.0 }
0x200d   :  { %v6688_v28 = vmax.f32 %v6680_v57, 0.0 }
0x200e   :  { %v6697_v10 = vmul.f32 %v6689_v42, %v6689_v42 }
0x200f   :  { %v6696_v14 = vmul.f32 %v6688_v28, %v6688_v28 }
0x2011   :  { %v6703_v48 = vadd.f32 %v6702_v17, %v6696_v14 }
0x2013   :  { %v6704_v34 = vadd.f32 %v6703_v48, %v6697_v10 }
0x2015   :  { %v6705_v30 = vrot.slane %v6704_v34, 4 }
0x2017   :  { %v6706_v16 = vadd.f32 %v6705_v30, %v6704_v34 }
0x2019   :  { %v6707_v46 = vrot.slane %v6706_v16, 2 }
0x201b   :  { %v6708_v20 = vadd.f32 %v6707_v46, %v6706_v16 }
0x201d   :  { %v6709_v41 = vrot.slane %v6708_v20, 1 }
0x201f   :  { %v6710_v38 = vadd.f32 %v6709_v41, %v6708_v20 }
0x2021   :  { %11579 = vrsqrt.f32 %v6710_v38  ;;  %vm6711_vm10 = vcmp.gt.f32.partialorder %v6710_v38, 0.0 }
0x202b   :  { %v11580_v19 = vpop.eup %11579 }
0x202c   :  { %v6713_v32 = vsel %vm6711_vm10, %v11580_v19, 0.0 }
0x202d   :  { %v6714_v25 = vmul.f32 %v6713_v32, %v14601_v37  ;;  %v6715_v39 = vmul.f32 %v6713_v32, %v14599_v27  ;;  %v6716_v5 = vmul.f32 %v6713_v32, %v6684_v18  ;;  %v6717_v24 = vmul.f32 %v6713_v32, %v6685_v43 }
0x202e   :  { %v6718_v13 = vmul.f32 %v6713_v32, %v6686_v7  ;;  %v6719_v12 = vmul.f32 %v6713_v32, %v6687_v44  ;;  %v6720_v35 = vmul.f32 %v6713_v32, %v6688_v28  ;;  %v6721_v62 = vmul.f32 %v6713_v32, %v6689_v42  ;;  %v14661_v44 = vld [vmem:[%s15497_s0 + $0x30] sm:$0xff] }
0x202f   :  { %6722 = vst [vmem:[%s15496_s5 + $0x40] sm:$0xff] %v6714_v25  ;;  %6723 = vst [vmem:[%s15496_s5 + $0x48] sm:$0xff] %v6715_v39  ;;  %v11446_v16 = vpack.c.bf16 %v6715_v39, %v6714_v25  ;;  %v11450_v27 = vpack.c.bf16 %v6717_v24, %v6716_v5  ;;  %v15516_v18 = vpack.c.bf16 %v14538_v4, %v14535_v61 }
0x2030   :  { %6724 = vst [vmem:[%s15496_s5 + $0x50] sm:$0xff] %v6716_v5  ;;  %6725 = vst [vmem:[%s15496_s5 + $0x58] sm:$0xff] %v6717_v24  ;;  %v11454_v37 = vpack.c.bf16 %v6719_v12, %v6718_v13  ;;  %v11458_v43 = vpack.c.bf16 %v6721_v62, %v6720_v35  ;;  %v7206_v61 = vsub.f32 %v7205_v1, %v14223_v6 }
0x2031   :  { %6728 = vst [vmem:[%s15496_s5 + $0x70] sm:$0xff] %v6720_v35  ;;  %6726 = vst [vmem:[%s15496_s5 + $0x60] sm:$0xff] %v6718_v13  ;;  %11447 = vmatpush3.bf16.msra.mxu0 %v11446_v16 }
0x2032   :  { %6727 = vst [vmem:[%s15496_s5 + $0x68] sm:$0xff] %v6719_v12  ;;  %6729 = vst [vmem:[%s15496_s5 + $0x78] sm:$0xff] %v6721_v62  ;;  %11449 = vmatprep.subr.bf16.mxu0 %v14497_v0  ;;  %v7207_v4 = vmul.f32 0.005, %v7206_v61 }
0x2035   :  { %11451 = vmatpush3.bf16.msra.mxu0 %v11450_v27 }
0x2036   :  { %11453 = vmatprep.subr.bf16.mxu0 %v11452_v29 }
0x2039   :  { %11455 = vmatpush3.bf16.msra.mxu0 %v11454_v37 }
0x203a   :  { %11457 = vmatprep.subr.bf16.mxu0 %v15516_v18 }
0x203d   :  { %11459 = vmatpush3.bf16.msra.mxu0 %v11458_v43 }
0x203e   :  { %11472 = vmatprep.subr.bf16.mxu0 %v15512_v21 }
0x2040   :  { %7306 = vmatmul.mubr.f32.vlgmr.msra.gmra.mrb[112].mxu0 %v14661_v44 }
0x2041   :  { %11474 = vmatpush3.bf16.msra.mxu0 %v14495_v53  ;;  %10991 = vmatprep.mubr.msk.f32.mxu0 %vm11607_vm0, %v15511_v8  ;;  %v7208_v53 = vadd.f32 %v7207_v4, %v14223_v6 }
0x2042   :  { %11475 = vmatprep.subr.bf16.mxu0 %v15512_v21 }
0x2045   :  { %11477 = vmatpush3.bf16.msra.mxu0 %v14497_v0 }
0x2113   :  { %v10338_v29 = vpop.f32.mrb[112].mxu0 }
0x2114   :  { %v10339_v7 = vpop.f32.mrb[113].mxu0 }
0x2115   :  { %v10340_v45 = vadd.f32 %v10339_v7, %v10338_v29 }
0x2117   :  { %v7311_v57 = vsub.f32 %v10340_v45, %v7208_v53 }
0x2119   :  { %v7312_v17 = vmax.f32 %v7311_v57, 0.0 }
0x211b   :  { %v7313_v42 = vsub.f32 %v7312_v17, %v11602_v3 }
0x211d   :  { %v7314_v28 = vmul.f32 %v7313_v42, %v11881_v11 }
0x211f   :  { %v7315_v0 = vadd.f32 %v11602_v3, %v7314_v28 }
0x2121   :  { %v7316_v14 = vsub.f32 %v7315_v0, %v11602_v3 }
0x2123   :  { %10981 = vmatmul.mubr.msk.f32.vlgmr.msra.gmra.mrb[116].mxu1 %vm429_vm6, %v7316_v14  ;;  %v7317_v10 = vmul.f32 %v11858_v54, %v7316_v14 }
0x2125   :  { %v7318_v46 = vadd.f32 %v11602_v3, %v7317_v10 }
0x21f6   :  { %v7396_v48 = vpop.f32.mrb[116].mxu1 }
0x21f7   :  { %v7400_v34 = vadd.f32 %v7396_v48, %v7311_v57  ;;  %v10982_v30 = vpop.f32.mrb[117].mxu1 }
0x21f9   :  { %v7401_v20 = vmax.f32 %v7400_v34, 0.0 }
0x21fb   :  { %v7402_v41 = vsub.f32 %v7401_v20, %v7318_v46 }
0x21fd   :  { %v7403_v6 = vmul.f32 %v7402_v41, %v11881_v11 }
0x21ff   :  { %v7404_v38 = vadd.f32 %v7403_v6, %v7318_v46 }
0x2201   :  { %v7405_v19 = vsub.f32 %v7404_v38, %v7318_v46 }
0x2203   :  { %7413 = vrot.lane.b32.xlu1 %v7405_v19, %s11608_s1  ;;  %v7406_v32 = vmul.f32 %v11863_v55, %v7405_v19 }
0x2205   :  { %v7407_v25 = vadd.f32 %v7406_v32, %v7318_v46 }
0x2275   :  { %v7414_v39 = vpop.permute.xlu1 %7413 }
0x2276   :  { %10992 = vmatmul.mubr.msk.f32.vlgmr.msra.gmra.mrb[114].mxu0 %vm518_vm7, %v7414_v39 }
0x2349   :  { %v7483_v5 = vpop.f32.mrb[114].mxu0 }
0x234a   :  { %v7487_v24 = vadd.f32 %v7483_v5, %v7400_v34  ;;  %v10993_v13 = vpop.f32.mrb[115].mxu0 }
0x234c   :  { %v7488_v12 = vmax.f32 %v7487_v24, 0.0 }
0x234e   :  { %v7489_v35 = vsub.f32 %v7488_v12, %v7407_v25 }
0x2350   :  { %v7490_v62 = vmul.f32 %v7489_v35, %v11881_v11 }
0x2352   :  { %v7491_v16 = vadd.f32 %v7490_v62, %v7407_v25 }
0x2354   :  { %v7492_v27 = vsub.f32 %v7491_v16, %v7407_v25 }
0x2356   :  { %v7493_v37 = vmul.f32 %v11868_v56, %v7492_v27 }
0x2358   :  { %v14685_v43 = vadd.f32 %v7493_v37, %v7407_v25  ;;  %v8121_v37 = vld [vmem:[%s15496_s5 + $0x88] sm:$0xff] }
0x235a   :  { %7879 = vxpose.xlu1.b32.start.end [1/1] (short) %v14685_v43, 128  ;;  %7498 = vrot.lane.b32.xlu0 %v14685_v43, %s11608_s1  ;;  %v8354_v18 = vmul.f32 %v14685_v43, %v11873_v59  ;;  %9739 = vst [vmem:[%s15498_s2 + $0x30] sm:$0xff] %v14685_v43 }
0x235b   :  { %10994 = vmatprep.subr.mxu1 %v14685_v43  ;;  %11020 = vmatprep.subr.mxu0 %v14685_v43 }
0x235c   :  { %10995 = vmatpush3.msra.mxu1 %v14685_v43  ;;  %11021 = vmatpush3.msra.mxu0 %v14685_v43  ;;  %v8355_v3 = vsub.f32 %v8354_v18, %v7208_v53  ;;  %v8120_v18 = vld [vmem:[%s15496_s5 + $0x80] sm:$0xff] }
0x235d   :  { %11510 = vmatprep.subr.bf16.mxu0 %v15512_v21 }
0x235e   :  { %v8356_v1 = vmul.f32 0.005, %v8355_v3 }
0x2360   :  { %v8357_v61 = vadd.f32 %v8356_v1, %v7208_v53 }
0x2362   :  { %9502 = vst [vmem:[%s15499_s4] sm:$0xff] %v8357_v61  ;;  %v8137_v61 = vmul.f32 0.001, %v8121_v37 }
0x23cc   :  { %v7499_v59 = vpop.permute.xlu0 %7498 }
0x23cd   :  { %v7501_v4 = vsel %vm429_vm6, %v14661_v44, %v7499_v59 }
0x23ce   :  { %7502 = vxpose.xlu1.b32.start.end [1/1] (short) %v7501_v4, 128 }
0x23da   :  { %v7895_v29 = vpop.trf.xlu1 }
0x23db   :  { %11022 = vmatprep.mubr.msk.f32.mxu0 %vm637_vm8, %v7895_v29  ;;  %v8136_v29 = vmul.f32 0.001, %v8120_v18 }
0x23de   :  { %v7896_v7 = vpop.trf.xlu1 }
0x23df   :  { %11023 = vmatmul.mubr.msk.f32.vlgmr.msra.gmra.mrb[116].mxu0 %vm637_vm8, %v7896_v7 }
0x23e2   :  { %v7897_v45 = vpop.trf.xlu1 }
0x23e3   :  { %11025 = vmatprep.mubr.msk.f32.mxu0 %vm637_vm8, %v7897_v45 }
0x23e6   :  { %v7898_v57 = vpop.trf.xlu1 }
0x23e7   :  { %11026 = vmatmul.mubr.msk.f32.gmra.mrb[118].mxu0 %vm637_vm8, %v7898_v57 }
0x23ea   :  { %v7899_v53 = vpop.trf.xlu1 }
0x23eb   :  { %11028 = vmatprep.mubr.msk.f32.mxu0 %vm637_vm8, %v7899_v53 }
0x23ee   :  { %v7900_v17 = vpop.trf.xlu1 }
0x23ef   :  { %11029 = vmatmul.mubr.msk.f32.gmra.mrb[120].mxu0 %vm637_vm8, %v7900_v17 }
0x23f2   :  { %v7901_v44 = vpop.trf.xlu1 }
0x23f3   :  { %11031 = vmatprep.mubr.msk.f32.mxu0 %vm637_vm8, %v7901_v44  ;;  %v8122_v44 = vld [vmem:[%s15496_s5 + $0x90] sm:$0xff] }
0x23f6   :  { %v7902_v42 = vpop.trf.xlu1 }
0x23f7   :  { %11032 = vmatmul.mubr.msk.f32.gmra.mrb[122].mxu0 %vm637_vm8, %v7902_v42 }
0x23fa   :  { %v7903_v28 = vpop.trf.xlu1 }
0x23fb   :  { %11034 = vmatprep.mubr.msk.f32.mxu0 %vm637_vm8, %v7903_v28 }
0x23fe   :  { %v7904_v0 = vpop.trf.xlu1 }
0x23ff   :  { %11035 = vmatmul.mubr.msk.f32.gmra.mrb[124].mxu0 %vm637_vm8, %v7904_v0 }
0x2402   :  { %v7905_v14 = vpop.trf.xlu1 }
0x2403   :  { %11037 = vmatprep.mubr.msk.f32.mxu0 %vm637_vm8, %v7905_v14 }
0x2406   :  { %v7906_v10 = vpop.trf.xlu1 }
0x2407   :  { %11038 = vmatmul.mubr.msk.f32.gmra.mrb[126].mxu0 %vm637_vm8, %v7906_v10 }
0x240a   :  { %v7907_v48 = vpop.trf.xlu1 }
0x240b   :  { %11040 = vmatprep.mubr.msk.f32.mxu0 %vm637_vm8, %v7907_v48 }
0x240e   :  { %v7908_v34 = vpop.trf.xlu1 }
0x240f   :  { %11041 = vmatmul.mubr.msk.f32.gmra.mrb[128].mxu0 %vm637_vm8, %v7908_v34 }
0x2412   :  { %v7909_v30 = vpop.trf.xlu1 }
0x2413   :  { %11043 = vmatprep.mubr.msk.f32.mxu0 %vm637_vm8, %v7909_v30 }
0x2416   :  { %v7910_v46 = vpop.trf.xlu1 }
0x2417   :  { %11044 = vmatmul.mubr.msk.f32.gmra.mrb[130].mxu0 %vm637_vm8, %v7910_v46  ;;  %v8138_v46 = vmul.f32 0.001, %v8122_v44 }
0x2418   :  { %11062 = vmatprep.mubr.msk.f32.mxu0 %vm11607_vm0, %v15511_v8 }
0x244e   :  { %v7518_v20 = vpop.trf.xlu1 }
0x244f   :  { %10996 = vmatprep.mubr.msk.f32.mxu1 %vm637_vm8, %v7518_v20 }
0x2452   :  { %v7519_v41 = vpop.trf.xlu1 }
0x2453   :  { %10997 = vmatmul.mubr.msk.f32.vlgmr.msra.gmra.mrb[118].mxu1 %vm637_vm8, %v7519_v41 }
0x2456   :  { %v7520_v6 = vpop.trf.xlu1 }
0x2457   :  { %10999 = vmatprep.mubr.msk.f32.mxu1 %vm637_vm8, %v7520_v6 }
0x245a   :  { %v7521_v38 = vpop.trf.xlu1 }
0x245b   :  { %11000 = vmatmul.mubr.msk.f32.gmra.mrb[120].mxu1 %vm637_vm8, %v7521_v38 }
0x245e   :  { %v7522_v19 = vpop.trf.xlu1 }
0x245f   :  { %11002 = vmatprep.mubr.msk.f32.mxu1 %vm637_vm8, %v7522_v19 }
0x2462   :  { %v7523_v32 = vpop.trf.xlu1 }
0x2463   :  { %11003 = vmatmul.mubr.msk.f32.gmra.mrb[122].mxu1 %vm637_vm8, %v7523_v32 }
0x2466   :  { %v7524_v25 = vpop.trf.xlu1 }
0x2467   :  { %11005 = vmatprep.mubr.msk.f32.mxu1 %vm637_vm8, %v7524_v25 }
0x246a   :  { %v7525_v39 = vpop.trf.xlu1 }
0x246b   :  { %11006 = vmatmul.mubr.msk.f32.gmra.mrb[124].mxu1 %vm637_vm8, %v7525_v39 }
0x246e   :  { %v7526_v5 = vpop.trf.xlu1 }
0x246f   :  { %11008 = vmatprep.mubr.msk.f32.mxu1 %vm637_vm8, %v7526_v5  ;;  %v8125_v5 = vld [vmem:[%s15496_s5 + $0xa8] sm:$0xff] }
0x2472   :  { %v7527_v24 = vpop.trf.xlu1 }
0x2473   :  { %11009 = vmatmul.mubr.msk.f32.gmra.mrb[126].mxu1 %vm637_vm8, %v7527_v24 }
0x2476   :  { %v7528_v13 = vpop.trf.xlu1 }
0x2477   :  { %11011 = vmatprep.mubr.msk.f32.mxu1 %vm637_vm8, %v7528_v13 }
0x247a   :  { %v7529_v12 = vpop.trf.xlu1 }
0x247b   :  { %11012 = vmatmul.mubr.msk.f32.gmra.mrb[128].mxu1 %vm637_vm8, %v7529_v12  ;;  %v8124_v12 = vld [vmem:[%s15496_s5 + $0xa0] sm:$0xff] }
0x247e   :  { %v7530_v35 = vpop.trf.xlu1 }
0x247f   :  { %11014 = vmatprep.mubr.msk.f32.mxu1 %vm637_vm8, %v7530_v35 }
0x2482   :  { %v7531_v62 = vpop.trf.xlu1 }
0x2483   :  { %11015 = vmatmul.mubr.msk.f32.gmra.mrb[130].mxu1 %vm637_vm8, %v7531_v62 }
0x2486   :  { %v7532_v16 = vpop.trf.xlu1 }
0x2487   :  { %11017 = vmatprep.mubr.msk.f32.mxu1 %vm637_vm8, %v7532_v16 }
0x248a   :  { %v7533_v27 = vpop.trf.xlu1 }
0x248b   :  { %11018 = vmatmul.mubr.msk.f32.gmra.mrb[132].mxu1 %vm637_vm8, %v7533_v27 }
0x248c   :  { %8454 = vmatprep.mubr.f32.mxu1 %v14685_v43  ;;  %v8123_v43 = vld [vmem:[%s15496_s5 + $0x98] sm:$0xff] }
0x248d   :  { %v8139_v10 = vmul.f32 0.001, %v8123_v43 }
0x24b2   :  { %v11024_v3 = vpop.f32.mrb[116].mxu0 }
0x24b3   :  { %v8105_v1 = vmul.f32 0.5, %v11024_v3  ;;  %v8025_v59 = vpop.f32.mrb[117].mxu0 }
0x24b4   :  { %v8104_v4 = vmul.f32 0.5, %v8025_v59 }
0x24b5   :  { %v8153_v7 = vsub.f32 %v8105_v1, %v8137_v61 }
0x24b6   :  { %v8152_v45 = vsub.f32 %v8104_v4, %v8136_v29  ;;  %v8140_v4 = vmul.f32 0.001, %v8124_v12 }
0x24b7   :  { %v8169_v57 = vmul.f32 0.001, %v8153_v7 }
0x24b8   :  { %v8168_v53 = vmul.f32 0.001, %v8152_v45 }
0x24b9   :  { %v8185_v17 = vadd.f32 %v8169_v57, %v8121_v37 }
0x24ba   :  { %v8184_v42 = vadd.f32 %v8168_v53, %v8120_v18  ;;  %v11027_v28 = vpop.f32.mrb[118].mxu0  ;;  %v8141_v18 = vmul.f32 0.001, %v8125_v5 }
0x24bb   :  { %v8217_v0 = vmul.f32 %v8185_v17, %v11970_v9  ;;  %v8107_v14 = vmul.f32 0.5, %v11027_v28  ;;  %v8035_v48 = vpop.f32.mrb[119].mxu0  ;;  %v8126_v28 = vld [vmem:[%s15496_s5 + $0xb0] sm:$0xff] }
0x24bc   :  { %v8216_v34 = vmul.f32 %v8184_v42, %v11974_v15  ;;  %v8106_v30 = vmul.f32 0.5, %v8035_v48  ;;  %v8127_v42 = vld [vmem:[%s15496_s5 + $0xb8] sm:$0xff] }
0x24bd   :  { %v8233_v20 = vmax.f32 %v8217_v0, 0.0  ;;  %v8155_v41 = vsub.f32 %v8107_v14, %v8139_v10 }
0x24be   :  { %v8232_v6 = vmax.f32 %v8216_v34, 0.0  ;;  %v8154_v38 = vsub.f32 %v8106_v30, %v8138_v46  ;;  %v8143_v46 = vmul.f32 0.001, %v8127_v42 }
0x24bf   :  { %v14756_v19 = vmul.f32 %v8233_v20, %v11970_v9  ;;  %v8171_v32 = vmul.f32 0.001, %v8155_v41  ;;  %v8142_v41 = vmul.f32 0.001, %v8126_v28 }
0x24c0   :  { %v14759_v25 = vmul.f32 %v8232_v6, %v11974_v15  ;;  %v8170_v39 = vmul.f32 0.001, %v8154_v38 }
0x24c1   :  { %v8265_v24 = vmul.f32 %v14756_v19, %v14756_v19  ;;  %v8187_v13 = vadd.f32 %v8171_v32, %v8123_v43 }
0x24c2   :  { %v8264_v35 = vmul.f32 %v14759_v25, %v14759_v25  ;;  %v8186_v62 = vadd.f32 %v8170_v39, %v8122_v44  ;;  %v11030_v16 = vpop.f32.mrb[120].mxu0 }
0x24c3   :  { %v8219_v27 = vmul.f32 %v8187_v13, %v11996_v36  ;;  %v8109_v37 = vmul.f32 0.5, %v11030_v16  ;;  %v8045_v3 = vpop.f32.mrb[121].mxu0 }
0x24c4   :  { %v8280_v1 = vadd.f32 %v8265_v24, %v8264_v35  ;;  %v8218_v61 = vmul.f32 %v8186_v62, %v12002_v47  ;;  %v8108_v59 = vmul.f32 0.5, %v8045_v3  ;;  %v8128_v3 = vld [vmem:[%s15496_s5 + $0xc0] sm:$0xff] }
0x24c5   :  { %v8235_v29 = vmax.f32 %v8219_v27, 0.0  ;;  %v8157_v7 = vsub.f32 %v8109_v37, %v8141_v18  ;;  %v8129_v18 = vld [vmem:[%s15496_s5 + $0xc8] sm:$0xff] }
0x24c6   :  { %v8234_v45 = vmax.f32 %v8218_v61, 0.0  ;;  %v8156_v57 = vsub.f32 %v8108_v59, %v8140_v4 }
0x24c7   :  { %v8173_v53 = vmul.f32 0.001, %v8157_v7  ;;  %v14774_v43 = vmul.f32 %v8235_v29, %v11996_v36 }
0x24c8   :  { %v14777_v17 = vmul.f32 %v8234_v45, %v12002_v47  ;;  %v8172_v44 = vmul.f32 0.001, %v8156_v57  ;;  %v8145_v45 = vmul.f32 0.001, %v8129_v18 }
0x24c9   :  { %v8189_v0 = vadd.f32 %v8173_v53, %v8125_v5  ;;  %v8267_v6 = vmul.f32 %v14774_v43, %v14774_v43  ;;  %v8144_v53 = vmul.f32 0.001, %v8128_v3 }
0x24ca   :  { %v8266_v14 = vmul.f32 %v14777_v17, %v14777_v17  ;;  %v8188_v10 = vadd.f32 %v8172_v44, %v8124_v12  ;;  %v11033_v48 = vpop.f32.mrb[122].mxu0 }
0x24cb   :  { %v8221_v34 = vmul.f32 %v8189_v0, %v12026_v23  ;;  %v8111_v30 = vmul.f32 0.5, %v11033_v48  ;;  %v8055_v20 = vpop.f32.mrb[123].mxu0 }
0x24cc   :  { %v8281_v38 = vadd.f32 %v8280_v1, %v8266_v14  ;;  %v8220_v32 = vmul.f32 %v8188_v10, %v12031_v26  ;;  %v8110_v39 = vmul.f32 0.5, %v8055_v20 }
0x24cd   :  { %v8237_v24 = vmax.f32 %v8221_v34, 0.0  ;;  %v8159_v5 = vsub.f32 %v8111_v30, %v8143_v46 }
0x24ce   :  { %v8236_v13 = vmax.f32 %v8220_v32, 0.0  ;;  %v8282_v35 = vadd.f32 %v8281_v38, %v8267_v6  ;;  %v8158_v62 = vsub.f32 %v8110_v39, %v8142_v41  ;;  %v8131_v38 = vld [vmem:[%s15496_s5 + $0xd8] sm:$0xff]  ;;  %v8130_v32 = vld [vmem:[%s15496_s5 + $0xd0] sm:$0xff] }
0x24cf   :  { %v8175_v12 = vmul.f32 0.001, %v8159_v5  ;;  %v14792_v16 = vmul.f32 %v8237_v24, %v12026_v23 }
0x24d0   :  { %v14795_v27 = vmul.f32 %v8236_v13, %v12031_v26  ;;  %v8174_v37 = vmul.f32 0.001, %v8158_v62 }
0x24d1   :  { %v8191_v1 = vadd.f32 %v8175_v12, %v8127_v42  ;;  %v8269_v44 = vmul.f32 %v14792_v16, %v14792_v16  ;;  %v8147_v12 = vmul.f32 0.001, %v8131_v38 }
0x24d2   :  { %v8268_v61 = vmul.f32 %v14795_v27, %v14795_v27  ;;  %v8190_v59 = vadd.f32 %v8174_v37, %v8126_v28  ;;  %v11036_v4 = vpop.f32.mrb[124].mxu0 }
0x24d3   :  { %v8223_v29 = vmul.f32 %v8191_v1, %v12054_v63  ;;  %v8113_v7 = vmul.f32 0.5, %v11036_v4  ;;  %v8065_v57 = vpop.f32.mrb[125].mxu0  ;;  %v8146_v1 = vmul.f32 0.001, %v8130_v32 }
0x24d4   :  { %v8283_v0 = vadd.f32 %v8282_v35, %v8268_v61  ;;  %v8222_v14 = vmul.f32 %v8190_v59, %v12057_v2  ;;  %v8112_v10 = vmul.f32 0.5, %v8065_v57 }
0x24d5   :  { %v8239_v48 = vmax.f32 %v8223_v29, 0.0  ;;  %v8161_v42 = vsub.f32 %v8113_v7, %v8145_v45 }
0x24d6   :  { %v8238_v34 = vmax.f32 %v8222_v14, 0.0  ;;  %v8284_v30 = vadd.f32 %v8283_v0, %v8269_v44  ;;  %v8160_v46 = vsub.f32 %v8112_v10, %v8144_v53 }
0x24d7   :  { %v8177_v28 = vmul.f32 0.001, %v8161_v42  ;;  %v14810_v20 = vmul.f32 %v8239_v48, %v12054_v63  ;;  %v8133_v48 = vld [vmem:[%s15496_s5 + $0xe8] sm:$0xff]  ;;  %v8132_v42 = vld [vmem:[%s15496_s5 + $0xe0] sm:$0xff] }
0x24d8   :  { %v14813_v41 = vmul.f32 %v8238_v34, %v12057_v2  ;;  %v8176_v6 = vmul.f32 0.001, %v8160_v46 }
0x24d9   :  { %v8193_v39 = vadd.f32 %v8177_v28, %v8129_v18  ;;  %v8271_v61 = vmul.f32 %v14810_v20, %v14810_v20 }
0x24da   :  { %v8270_v24 = vmul.f32 %v14813_v41, %v14813_v41  ;;  %v8192_v5 = vadd.f32 %v8176_v6, %v8128_v3  ;;  %v11039_v13 = vpop.f32.mrb[126].mxu0 }
0x24db   :  { %v8225_v35 = vmul.f32 %v8193_v39, %v12080_v49  ;;  %v8115_v62 = vmul.f32 0.5, %v11039_v13  ;;  %v8075_v37 = vpop.f32.mrb[127].mxu0  ;;  %v8149_v13 = vmul.f32 0.001, %v8133_v48 }
0x24dc   :  { %v8285_v59 = vadd.f32 %v8284_v30, %v8270_v24  ;;  %v8224_v4 = vmul.f32 %v8192_v5, %v12085_v60  ;;  %v8114_v29 = vmul.f32 0.5, %v8075_v37 }
0x24dd   :  { %v8241_v7 = vmax.f32 %v8225_v35, 0.0  ;;  %v8163_v18 = vsub.f32 %v8115_v62, %v8147_v12  ;;  %v8148_v62 = vmul.f32 0.001, %v8132_v42 }
0x24de   :  { %v8286_v45 = vadd.f32 %v8285_v59, %v8271_v61  ;;  %v8240_v57 = vmax.f32 %v8224_v4, 0.0  ;;  %v8162_v53 = vsub.f32 %v8114_v29, %v8146_v1 }
0x24df   :  { %v14828_v3 = vmul.f32 %v8241_v7, %v12080_v49  ;;  %v8179_v44 = vmul.f32 0.001, %v8163_v18 }
0x24e0   :  { %v8287_v0 = vrot.slane %v8286_v45, 4  ;;  %v14831_v14 = vmul.f32 %v8240_v57, %v12085_v60  ;;  %v8178_v10 = vmul.f32 0.001, %v8162_v53 }
0x24e1   :  { %v8273_v34 = vmul.f32 %v14828_v3, %v14828_v3  ;;  %v8195_v30 = vadd.f32 %v8179_v44, %v8131_v38  ;;  %v8135_v44 = vld [vmem:[%s15496_s5 + $0xf8] sm:$0xff] }
0x24e2   :  { %v8288_v46 = vadd.f32 %v8287_v0, %v8286_v45  ;;  %v8272_v28 = vmul.f32 %v14831_v14, %v14831_v14  ;;  %v8194_v6 = vadd.f32 %v8178_v10, %v8130_v32  ;;  %v11042_v39 = vpop.f32.mrb[128].mxu0 }
0x24e3   :  { %v8227_v24 = vmul.f32 %v8195_v30, %v12111_v40  ;;  %v8117_v5 = vmul.f32 0.5, %v11042_v39  ;;  %v8085_v35 = vpop.f32.mrb[129].mxu0 }
0x24e4   :  { %v8289_v12 = vrot.slane %v8288_v46, 2  ;;  %v8293_v37 = vadd.f32 %v8273_v34, %v8272_v28  ;;  %v8226_v1 = vmul.f32 %v8194_v6, %v12104_v33  ;;  %v8116_v61 = vmul.f32 0.5, %v8085_v35  ;;  %v8134_v28 = vld [vmem:[%s15496_s5 + $0xf0] sm:$0xff] }
0x24e5   :  { %v8243_v59 = vmax.f32 %v8227_v24, 0.0  ;;  %v8165_v4 = vsub.f32 %v8117_v5, %v8149_v13  ;;  %v8151_v24 = vmul.f32 0.001, %v8135_v44 }
0x24e6   :  { %v8290_v38 = vadd.f32 %v8289_v12, %v8288_v46  ;;  %v8242_v29 = vmax.f32 %v8226_v1, 0.0  ;;  %v8164_v7 = vsub.f32 %v8116_v61, %v8148_v62  ;;  %v8150_v1 = vmul.f32 0.001, %v8134_v28 }
0x24e7   :  { %v8181_v18 = vmul.f32 0.001, %v8165_v4  ;;  %v14846_v32 = vmul.f32 %v8243_v59, %v12111_v40 }
0x24e8   :  { %v8291_v45 = vrot.slane %v8290_v38, 1  ;;  %v14849_v57 = vmul.f32 %v8242_v29, %v12104_v33  ;;  %v8180_v53 = vmul.f32 0.001, %v8164_v7 }
0x24e9   :  { %v8197_v0 = vadd.f32 %v8181_v18, %v8133_v48  ;;  %v8275_v13 = vmul.f32 %v14846_v32, %v14846_v32 }
0x24ea   :  { %v8292_v10 = vadd.f32 %v8291_v45, %v8290_v38  ;;  %v8274_v34 = vmul.f32 %v14849_v57, %v14849_v57  ;;  %v8196_v30 = vadd.f32 %v8180_v53, %v8132_v42  ;;  %v11045_v46 = vpop.f32.mrb[130].mxu0 }
0x24eb   :  { %v8229_v6 = vmul.f32 %v8197_v0, %v12145_v58  ;;  %v8119_v39 = vmul.f32 0.5, %v11045_v46  ;;  %v8095_v5 = vpop.f32.mrb[131].mxu0 }
0x24ec   :  { %11581 = vrsqrt.f32 %v8292_v10  ;;  %v8294_v48 = vadd.f32 %v8293_v37, %v8274_v34  ;;  %v8228_v35 = vmul.f32 %v8196_v30, %v12149_v51  ;;  %v8118_v42 = vmul.f32 0.5, %v8095_v5 }
0x24ed   :  { %v8245_v62 = vmax.f32 %v8229_v6, 0.0  ;;  %v8167_v12 = vsub.f32 %v8119_v39, %v8151_v24  ;;  %vm8311_vm3 = vcmp.gt.f32.partialorder %v8292_v10, 0.0 }
0x24ee   :  { %v8295_v61 = vadd.f32 %v8294_v48, %v8275_v13  ;;  %v8244_v59 = vmax.f32 %v8228_v35, 0.0  ;;  %v8166_v29 = vsub.f32 %v8118_v42, %v8150_v1 }
0x24ef   :  { %v14864_v4 = vmul.f32 %v8245_v62, %v12145_v58  ;;  %v8183_v38 = vmul.f32 0.001, %v8167_v12 }
0x24f0   :  { %v8296_v7 = vrot.slane %v8295_v61, 4  ;;  %v14867_v18 = vmul.f32 %v8244_v59, %v12149_v51  ;;  %v8182_v53 = vmul.f32 0.001, %v8166_v29 }
0x24f1   :  { %v8277_v37 = vmul.f32 %v14864_v4, %v14864_v4  ;;  %v8199_v45 = vadd.f32 %v8183_v38, %v8135_v44 }
0x24f2   :  { %v8297_v0 = vadd.f32 %v8296_v7, %v8295_v61  ;;  %v8276_v34 = vmul.f32 %v14867_v18, %v14867_v18  ;;  %v8198_v46 = vadd.f32 %v8182_v53, %v8134_v28 }
0x24f3   :  { %v8231_v30 = vmul.f32 %v8199_v45, %v12175_v52 }
0x24f4   :  { %v8298_v6 = vrot.slane %v8297_v0, 2  ;;  %v8302_v39 = vadd.f32 %v8277_v37, %v8276_v34  ;;  %v8230_v24 = vmul.f32 %v8198_v46, %v12183_v50 }
0x24f5   :  { %v8247_v48 = vmax.f32 %v8231_v30, 0.0 }
0x24f6   :  { %v11582_v5 = vpop.eup %11581  ;;  %v8299_v13 = vadd.f32 %v8298_v6, %v8297_v0  ;;  %v8246_v62 = vmax.f32 %v8230_v24, 0.0 }
0x24f7   :  { %v8313_v35 = vsel %vm8311_vm3, %v11582_v5, 0.0 }
0x24f8   :  { %v8320_v44 = vmul.f32 %v8313_v35, %v14759_v25  ;;  %v8321_v12 = vmul.f32 %v8313_v35, %v14756_v19  ;;  %v8322_v42 = vmul.f32 %v8313_v35, %v14777_v17  ;;  %v8323_v1 = vmul.f32 %v8313_v35, %v14774_v43 }
0x24f9   :  { %v8324_v28 = vmul.f32 %v8313_v35, %v14795_v27  ;;  %v8325_v61 = vmul.f32 %v8313_v35, %v14792_v16  ;;  %v8326_v59 = vmul.f32 %v8313_v35, %v14813_v41  ;;  %v8327_v10 = vmul.f32 %v8313_v35, %v14810_v20 }
0x24fa   :  { %8336 = vst [vmem:[%s15496_s5 + $0x80] sm:$0xff] %v8320_v44  ;;  %8337 = vst [vmem:[%s15496_s5 + $0x88] sm:$0xff] %v8321_v12  ;;  %v8300_v19 = vrot.slane %v8299_v13, 1  ;;  %v8263_v25 = vmul.f32 %v8247_v48, %v12175_v52  ;;  %v8262_v43 = vmul.f32 %v8246_v62, %v12183_v50  ;;  %v11478_v17 = vpack.c.bf16 %v8321_v12, %v8320_v44 }
0x24fb   :  { %8338 = vst [vmem:[%s15496_s5 + $0x90] sm:$0xff] %v8322_v42  ;;  %8339 = vst [vmem:[%s15496_s5 + $0x98] sm:$0xff] %v8323_v1  ;;  %v14909_v16 = vpack.c.bf16 %v8323_v1, %v8322_v42  ;;  %v14911_v27 = vpack.c.bf16 %v8325_v61, %v8324_v28  ;;  %v14913_v20 = vpack.c.bf16 %v8327_v10, %v8326_v59  ;;  %v7744_v42 = vld [vmem:[%s15496_s5 + $0x8] sm:$0xff]  ;;  %v7743_v1 = vld [vmem:[%s15496_s5] sm:$0xff] }
0x24fc   :  { %8342 = vst [vmem:[%s15496_s5 + $0xb0] sm:$0xff] %v8326_v59  ;;  %8340 = vst [vmem:[%s15496_s5 + $0xa0] sm:$0xff] %v8324_v28  ;;  %v8301_v41 = vadd.f32 %v8300_v19, %v8299_v13  ;;  %v8278_v38 = vmul.f32 %v8262_v43, %v8262_v43  ;;  %11479 = vmatprep.subr.bf16.mxu1 %v11478_v17  ;;  %11512 = vmatpush3.bf16.msra.mxu0 %v11478_v17  ;;  %v7752_v59 = vmul.f32 0.001, %v7744_v42 }
0x24fd   :  { %8341 = vst [vmem:[%s15496_s5 + $0xa8] sm:$0xff] %v8325_v61  ;;  %8343 = vst [vmem:[%s15496_s5 + $0xb8] sm:$0xff] %v8327_v10  ;;  %11513 = vmatprep.subr.bf16.mxu0 %v15512_v21  ;;  %v8279_v29 = vmul.f32 %v8263_v25, %v8263_v25 }
0x24fe   :  { %11583 = vrsqrt.f32 %v8301_v41  ;;  %v8303_v7 = vadd.f32 %v8302_v39, %v8278_v38  ;;  %vm8314_vm5 = vcmp.gt.f32.partialorder %v8301_v41, 0.0 }
0x2500   :  { %v8304_v37 = vadd.f32 %v8303_v7, %v8279_v29  ;;  %11515 = vmatpush3.bf16.msra.mxu0 %v14909_v16  ;;  %v7746_v29 = vld [vmem:[%s15496_s5 + $0x18] sm:$0xff] }
0x2501   :  { %11516 = vmatprep.subr.bf16.mxu0 %v15512_v21 }
0x2502   :  { %v8305_v45 = vrot.slane %v8304_v37, 4 }
0x2504   :  { %v8306_v53 = vadd.f32 %v8305_v45, %v8304_v37  ;;  %11518 = vmatpush3.bf16.msra.mxu0 %v14911_v27  ;;  %v7745_v37 = vld [vmem:[%s15496_s5 + $0x10] sm:$0xff] }
0x2505   :  { %11519 = vmatprep.subr.bf16.mxu0 %v15512_v21 }
0x2506   :  { %v8307_v0 = vrot.slane %v8306_v53, 2 }
0x2508   :  { %v11584_v34 = vpop.eup %11583  ;;  %v8308_v30 = vadd.f32 %v8307_v0, %v8306_v53  ;;  %11521 = vmatpush3.bf16.msra.mxu0 %v14913_v20 }
0x2509   :  { %v8316_v46 = vsel %vm8314_vm5, %v11584_v34, 0.0  ;;  %v7754_v34 = vmul.f32 0.001, %v7746_v29 }
0x250a   :  { %v8328_v6 = vmul.f32 %v8316_v46, %v14831_v14  ;;  %v8329_v39 = vmul.f32 %v8316_v46, %v14828_v3  ;;  %v8330_v24 = vmul.f32 %v8316_v46, %v14849_v57  ;;  %v8331_v5 = vmul.f32 %v8316_v46, %v14846_v32 }
0x250b   :  { %v8309_v13 = vrot.slane %v8308_v30, 1 }
0x250c   :  { %8346 = vst [vmem:[%s15496_s5 + $0xd0] sm:$0xff] %v8330_v24  ;;  %8344 = vst [vmem:[%s15496_s5 + $0xc0] sm:$0xff] %v8328_v6  ;;  %v14937_v3 = vpack.c.bf16 %v8329_v39, %v8328_v6  ;;  %v14939_v14 = vpack.c.bf16 %v8331_v5, %v8330_v24  ;;  %v7753_v6 = vmul.f32 0.001, %v7745_v37 }
0x250d   :  { %8345 = vst [vmem:[%s15496_s5 + $0xc8] sm:$0xff] %v8329_v39  ;;  %8347 = vst [vmem:[%s15496_s5 + $0xd8] sm:$0xff] %v8331_v5  ;;  %v8310_v32 = vadd.f32 %v8309_v13, %v8308_v30 }
0x250f   :  { %11585 = vrsqrt.f32 %v8310_v32  ;;  %vm8317_vm11 = vcmp.gt.f32.partialorder %v8310_v32, 0.0 }
0x2519   :  { %v11586_v57 = vpop.eup %11585 }
0x251a   :  { %v8319_v48 = vsel %vm8317_vm11, %v11586_v57, 0.0  ;;  %v7748_v57 = vld [vmem:[%s15496_s5 + $0x28] sm:$0xff] }
0x251b   :  { %v14942_v35 = vmul.f32 %v8319_v48, %v14867_v18  ;;  %v14945_v62 = vmul.f32 %v8319_v48, %v14864_v4  ;;  %v14947_v44 = vmul.f32 %v8319_v48, %v8262_v43  ;;  %v14949_v12 = vmul.f32 %v8319_v48, %v8263_v25 }
0x251c   :  { %v7751_v25 = vmul.f32 0.001, %v7743_v1 }
0x251d   :  { %8348 = vst [vmem:[%s15496_s5 + $0xe0] sm:$0xff] %v14942_v35  ;;  %8349 = vst [vmem:[%s15496_s5 + $0xe8] sm:$0xff] %v14945_v62  ;;  %v11502_v4 = vpack.c.bf16 %v14945_v62, %v14942_v35  ;;  %v11506_v18 = vpack.c.bf16 %v14949_v12, %v14947_v44 }
0x251e   :  { %8350 = vst [vmem:[%s15496_s5 + $0xf0] sm:$0xff] %v14947_v44  ;;  %8351 = vst [vmem:[%s15496_s5 + $0xf8] sm:$0xff] %v14949_v12  ;;  %v11603_v12 = vld [vmem:[%s15499_s4] sm:$0xff] }
0x2526   :  { %v10998_v28 = vpop.f32.mrb[118].mxu1 }
0x2527   :  { %v7728_v61 = vmul.f32 0.5, %v10998_v28  ;;  %v7648_v10 = vpop.f32.mrb[119].mxu1 }
0x2528   :  { %v7727_v19 = vmul.f32 0.5, %v7648_v10 }
0x2529   :  { %v7760_v43 = vsub.f32 %v7728_v61, %v7752_v59  ;;  %v7756_v59 = vmul.f32 0.001, %v7748_v57 }
0x252a   :  { %v7759_v17 = vsub.f32 %v7727_v19, %v7751_v25 }
0x252b   :  { %v7768_v41 = vmul.f32 %v7760_v43, %v12296_v22 }
0x252c   :  { %v7767_v38 = vmul.f32 %v7759_v17, %v12296_v22 }
0x252d   :  { %v7776_v7 = vadd.f32 %v7768_v41, %v7744_v42  ;;  %v7747_v42 = vld [vmem:[%s15496_s5 + $0x20] sm:$0xff] }
0x252e   :  { %v7775_v45 = vadd.f32 %v7767_v38, %v7743_v1  ;;  %v11001_v53 = vpop.f32.mrb[120].mxu1  ;;  %v7755_v19 = vmul.f32 0.001, %v7747_v42 }
0x252f   :  { %7784 = vst [vmem:[%s15496_s5 + $0x8] sm:$0xff] %v7776_v7  ;;  %v7730_v0 = vmul.f32 0.5, %v11001_v53  ;;  %v7658_v30 = vpop.f32.mrb[121].mxu1 }
0x2530   :  { %7783 = vst [vmem:[%s15496_s5] sm:$0xff] %v7775_v45  ;;  %v7729_v46 = vmul.f32 0.5, %v7658_v30  ;;  %v11480_v39 = vpack.c.bf16 %v7776_v7, %v7775_v45 }
0x2531   :  { %v7762_v24 = vsub.f32 %v7730_v0, %v7754_v34 }
0x2532   :  { %v7761_v5 = vsub.f32 %v7729_v46, %v7753_v6  ;;  %11481 = vmatpush3.bf16.msra.mxu1 %v11480_v39 }
0x2533   :  { %v7770_v13 = vmul.f32 %v7762_v24, %v12296_v22  ;;  %11483 = vmatprep.subr.bf16.mxu1 %v14909_v16 }
0x2534   :  { %v7769_v32 = vmul.f32 %v7761_v5, %v12296_v22 }
0x2535   :  { %v7778_v48 = vadd.f32 %v7770_v13, %v7746_v29  ;;  %v7750_v29 = vld [vmem:[%s15496_s5 + $0x38] sm:$0xff] }
0x2536   :  { %v7777_v1 = vadd.f32 %v7769_v32, %v7745_v37  ;;  %v11004_v28 = vpop.f32.mrb[122].mxu1  ;;  %v7749_v37 = vld [vmem:[%s15496_s5 + $0x30] sm:$0xff]  ;;  %v7758_v34 = vmul.f32 0.001, %v7750_v29  ;;  %v7792_v32 = vld [vmem:[%s15496_s5 + $0x48] sm:$0xff] }
0x2537   :  { %7786 = vst [vmem:[%s15496_s5 + $0x18] sm:$0xff] %v7778_v48  ;;  %v7732_v61 = vmul.f32 0.5, %v11004_v28  ;;  %v7668_v16 = vpop.f32.mrb[123].mxu1  ;;  %v7757_v46 = vmul.f32 0.001, %v7749_v37 }
0x2538   :  { %7785 = vst [vmem:[%s15496_s5 + $0x10] sm:$0xff] %v7777_v1  ;;  %v7731_v10 = vmul.f32 0.5, %v7668_v16  ;;  %v11484_v25 = vpack.c.bf16 %v7778_v48, %v7777_v1  ;;  %v7791_v48 = vld [vmem:[%s15496_s5 + $0x40] sm:$0xff] }
0x2539   :  { %v7764_v43 = vsub.f32 %v7732_v61, %v7756_v59  ;;  %v7800_v61 = vmul.f32 0.001, %v7792_v32  ;;  %v7799_v16 = vmul.f32 0.001, %v7791_v48 }
0x253a   :  { %v7763_v17 = vsub.f32 %v7731_v10, %v7755_v19  ;;  %11485 = vmatpush3.bf16.msra.mxu1 %v11484_v25 }
0x253b   :  { %v7772_v41 = vmul.f32 %v7764_v43, %v12296_v22  ;;  %11487 = vmatprep.subr.bf16.mxu1 %v14911_v27 }
0x253c   :  { %v7771_v38 = vmul.f32 %v7763_v17, %v12296_v22 }
0x253d   :  { %v7780_v7 = vadd.f32 %v7772_v41, %v7748_v57  ;;  %v7794_v41 = vld [vmem:[%s15496_s5 + $0x58] sm:$0xff] }
0x253e   :  { %v7779_v45 = vadd.f32 %v7771_v38, %v7747_v42  ;;  %v11007_v53 = vpop.f32.mrb[124].mxu1 }
0x253f   :  { %7788 = vst [vmem:[%s15496_s5 + $0x28] sm:$0xff] %v7780_v7  ;;  %v7734_v0 = vmul.f32 0.5, %v11007_v53  ;;  %v7678_v27 = vpop.f32.mrb[125].mxu1 }
0x2540   :  { %7787 = vst [vmem:[%s15496_s5 + $0x20] sm:$0xff] %v7779_v45  ;;  %v7733_v30 = vmul.f32 0.5, %v7678_v27  ;;  %v11488_v6 = vpack.c.bf16 %v7780_v7, %v7779_v45 }
0x2541   :  { %v7766_v39 = vsub.f32 %v7734_v0, %v7758_v34  ;;  %v7802_v0 = vmul.f32 0.001, %v7794_v41 }
0x2542   :  { %v7765_v24 = vsub.f32 %v7733_v30, %v7757_v46  ;;  %11489 = vmatpush3.bf16.msra.mxu1 %v11488_v6 }
0x2543   :  { %v7774_v5 = vmul.f32 %v7766_v39, %v12296_v22  ;;  %11491 = vmatprep.subr.bf16.mxu1 %v14913_v20 }
0x2544   :  { %v7773_v13 = vmul.f32 %v7765_v24, %v12296_v22 }
0x2545   :  { %v7782_v57 = vadd.f32 %v7774_v5, %v7750_v29  ;;  %v7793_v29 = vld [vmem:[%s15496_s5 + $0x50] sm:$0xff] }
0x2546   :  { %v7781_v42 = vadd.f32 %v7773_v13, %v7749_v37  ;;  %v11010_v1 = vpop.f32.mrb[126].mxu1  ;;  %v7801_v46 = vmul.f32 0.001, %v7793_v29 }
0x2547   :  { %7790 = vst [vmem:[%s15496_s5 + $0x38] sm:$0xff] %v7782_v57  ;;  %v7736_v28 = vmul.f32 0.5, %v11010_v1  ;;  %v7688_v20 = vpop.f32.mrb[127].mxu1  ;;  %v7795_v1 = vld [vmem:[%s15496_s5 + $0x60] sm:$0xff] }
0x2548   :  { %7789 = vst [vmem:[%s15496_s5 + $0x30] sm:$0xff] %v7781_v42  ;;  %v7735_v59 = vmul.f32 0.5, %v7688_v20  ;;  %v11492_v10 = vpack.c.bf16 %v7782_v57, %v7781_v42 }
0x2549   :  { %v7808_v19 = vsub.f32 %v7736_v28, %v7800_v61 }
0x254a   :  { %v7807_v25 = vsub.f32 %v7735_v59, %v7799_v16  ;;  %11493 = vmatpush3.bf16.msra.mxu1 %v11492_v10 }
0x254b   :  { %v7816_v43 = vmul.f32 %v7808_v19, %v12352_v31  ;;  %11495 = vmatprep.subr.bf16.mxu1 %v14937_v3 }
0x254c   :  { %v7815_v17 = vmul.f32 %v7807_v25, %v12352_v31 }
0x254d   :  { %v7824_v38 = vadd.f32 %v7816_v43, %v7792_v32  ;;  %v7803_v43 = vmul.f32 0.001, %v7795_v1 }
0x254e   :  { %v7823_v7 = vadd.f32 %v7815_v17, %v7791_v48  ;;  %v11013_v37 = vpop.f32.mrb[128].mxu1  ;;  %v7796_v48 = vld [vmem:[%s15496_s5 + $0x68] sm:$0xff] }
0x254f   :  { %v15045_v45 = vmax.f32 %v7824_v38, 0.0  ;;  %v7738_v53 = vmul.f32 0.5, %v11013_v37  ;;  %v7698_v34 = vpop.f32.mrb[129].mxu1  ;;  %v7804_v59 = vmul.f32 0.001, %v7796_v48 }
0x2550   :  { %v15047_v27 = vmax.f32 %v7823_v7, 0.0  ;;  %v7737_v30 = vmul.f32 0.5, %v7698_v34 }
0x2551   :  { %v7840_v6 = vmul.f32 %v15045_v45, %v15045_v45  ;;  %v7810_v39 = vsub.f32 %v7738_v53, %v7802_v0 }
0x2552   :  { %v7839_v24 = vmul.f32 %v15047_v27, %v15047_v27  ;;  %v7809_v5 = vsub.f32 %v7737_v30, %v7801_v46  ;;  %v7797_v30 = vld [vmem:[%s15496_s5 + $0x70] sm:$0xff] }
0x2553   :  { %v7818_v13 = vmul.f32 %v7810_v39, %v12352_v31 }
0x2554   :  { %v7847_v32 = vadd.f32 %v7840_v6, %v7839_v24  ;;  %v7817_v57 = vmul.f32 %v7809_v5, %v12352_v31 }
0x2555   :  { %v7826_v42 = vadd.f32 %v7818_v13, %v7794_v41 }
0x2556   :  { %v7825_v28 = vadd.f32 %v7817_v57, %v7793_v29  ;;  %v11016_v61 = vpop.f32.mrb[130].mxu1  ;;  %v7798_v29 = vld [vmem:[%s15496_s5 + $0x78] sm:$0xff] }
0x2557   :  { %v7740_v20 = vmul.f32 0.5, %v11016_v61  ;;  %v7708_v16 = vpop.f32.mrb[131].mxu1  ;;  %v7834_v10 = vmax.f32 %v7826_v42, 0.0  ;;  %v7806_v5 = vmul.f32 0.001, %v7798_v29 }
0x2558   :  { %v7833_v19 = vmax.f32 %v7825_v28, 0.0  ;;  %v7739_v25 = vmul.f32 0.5, %v7708_v16  ;;  %v7805_v28 = vmul.f32 0.001, %v7797_v30 }
0x2559   :  { %v7812_v17 = vsub.f32 %v7740_v20, %v7804_v59  ;;  %v7842_v53 = vmul.f32 %v7834_v10, %v7834_v10 }
0x255a   :  { %v7841_v38 = vmul.f32 %v7833_v19, %v7833_v19  ;;  %v7811_v7 = vsub.f32 %v7739_v25, %v7803_v43 }
0x255b   :  { %v7820_v37 = vmul.f32 %v7812_v17, %v12352_v31 }
0x255c   :  { %v7848_v41 = vadd.f32 %v7847_v32, %v7841_v38  ;;  %v7819_v0 = vmul.f32 %v7811_v7, %v12352_v31 }
0x255d   :  { %v7828_v34 = vadd.f32 %v7820_v37, %v7796_v48 }
0x255e   :  { %v7827_v46 = vadd.f32 %v7819_v0, %v7795_v1  ;;  %v7849_v6 = vadd.f32 %v7848_v41, %v7842_v53  ;;  %v11019_v39 = vpop.f32.mrb[132].mxu1 }
0x255f   :  { %v7742_v24 = vmul.f32 0.5, %v11019_v39  ;;  %v7718_v13 = vpop.f32.mrb[133].mxu1  ;;  %v7836_v57 = vmax.f32 %v7828_v34, 0.0 }
0x2560   :  { %v7835_v42 = vmax.f32 %v7827_v46, 0.0  ;;  %v7741_v32 = vmul.f32 0.5, %v7718_v13 }
0x2561   :  { %v7814_v61 = vsub.f32 %v7742_v24, %v7806_v5  ;;  %v7844_v48 = vmul.f32 %v7836_v57, %v7836_v57 }
0x2562   :  { %v7843_v20 = vmul.f32 %v7835_v42, %v7835_v42  ;;  %v7813_v59 = vsub.f32 %v7741_v32, %v7805_v28 }
0x2563   :  { %v7822_v16 = vmul.f32 %v7814_v61, %v12352_v31 }
0x2564   :  { %v7850_v25 = vadd.f32 %v7849_v6, %v7843_v20  ;;  %v7821_v43 = vmul.f32 %v7813_v59, %v12352_v31 }
0x2565   :  { %v7830_v17 = vadd.f32 %v7822_v16, %v7798_v29 }
0x2566   :  { %v7829_v1 = vadd.f32 %v7821_v43, %v7797_v30  ;;  %v7851_v38 = vadd.f32 %v7850_v25, %v7844_v48 }
0x2567   :  { %v7838_v7 = vmax.f32 %v7830_v17, 0.0 }
0x2568   :  { %v7837_v37 = vmax.f32 %v7829_v1, 0.0 }
0x2569   :  { %v7846_v41 = vmul.f32 %v7838_v7, %v7838_v7 }
0x256a   :  { %v7845_v53 = vmul.f32 %v7837_v37, %v7837_v37 }
0x256c   :  { %v7852_v0 = vadd.f32 %v7851_v38, %v7845_v53 }
0x256e   :  { %v7853_v34 = vadd.f32 %v7852_v0, %v7846_v41 }
0x2570   :  { %v7854_v46 = vrot.slane %v7853_v34, 4 }
0x2572   :  { %v7855_v39 = vadd.f32 %v7854_v46, %v7853_v34 }
0x2574   :  { %v7856_v24 = vrot.slane %v7855_v39, 2 }
0x2576   :  { %v7857_v5 = vadd.f32 %v7856_v24, %v7855_v39 }
0x2578   :  { %v7858_v13 = vrot.slane %v7857_v5, 1 }
0x257a   :  { %v7859_v32 = vadd.f32 %v7858_v13, %v7857_v5 }
0x257c   :  { %11587 = vrsqrt.f32 %v7859_v32  ;;  %vm7860_vm12 = vcmp.gt.f32.partialorder %v7859_v32, 0.0 }
0x2586   :  { %v11588_v28 = vpop.eup %11587 }
0x2587   :  { %v7862_v6 = vsel %vm7860_vm12, %v11588_v28, 0.0 }
0x2588   :  { %v15072_v29 = vmul.f32 %v7862_v6, %v15047_v27  ;;  %v15075_v30 = vmul.f32 %v7862_v6, %v15045_v45  ;;  %v7865_v61 = vmul.f32 %v7862_v6, %v7833_v19  ;;  %v15077_v20 = vmul.f32 %v7862_v6, %v7834_v10  ;;  %v9772_v19 = vld [vmem:[%s15497_s0 + $0x38] sm:$0xff] }
0x2589   :  { %v7867_v59 = vmul.f32 %v7862_v6, %v7835_v42  ;;  %v7868_v16 = vmul.f32 %v7862_v6, %v7836_v57  ;;  %v7869_v48 = vmul.f32 %v7862_v6, %v7837_v37  ;;  %v7870_v25 = vmul.f32 %v7862_v6, %v7838_v7 }
0x258a   :  { %7873 = vst [vmem:[%s15496_s5 + $0x50] sm:$0xff] %v7865_v61  ;;  %v11496_v43 = vpack.c.bf16 %v15075_v30, %v15072_v29  ;;  %v11500_v10 = vpack.c.bf16 %v15077_v20, %v7865_v61 }
0x258b   :  { %7877 = vst [vmem:[%s15496_s5 + $0x70] sm:$0xff] %v7869_v48  ;;  %7875 = vst [vmem:[%s15496_s5 + $0x60] sm:$0xff] %v7867_v59  ;;  %v11504_v45 = vpack.c.bf16 %v7868_v16, %v7867_v59  ;;  %v11508_v27 = vpack.c.bf16 %v7870_v25, %v7869_v48 }
0x258c   :  { %7876 = vst [vmem:[%s15496_s5 + $0x68] sm:$0xff] %v7868_v16  ;;  %7878 = vst [vmem:[%s15496_s5 + $0x78] sm:$0xff] %v7870_v25  ;;  %11497 = vmatpush3.bf16.msra.mxu1 %v11496_v43 }
0x258d   :  { %11499 = vmatprep.subr.bf16.mxu1 %v14939_v14 }
0x2590   :  { %11501 = vmatpush3.bf16.msra.mxu1 %v11500_v10 }
0x2591   :  { %11503 = vmatprep.subr.bf16.mxu1 %v11502_v4 }
0x2594   :  { %11505 = vmatpush3.bf16.msra.mxu1 %v11504_v45 }
0x2595   :  { %11507 = vmatprep.subr.bf16.mxu1 %v11506_v18 }
0x2598   :  { %11509 = vmatpush3.bf16.msra.mxu1 %v11508_v27 }
0x2599   :  { %11522 = vmatprep.subr.bf16.mxu1 %v15512_v21 }
0x259b   :  { %8455 = vmatmul.mubr.f32.vlgmr.msra.gmra.mrb[134].mxu1 %v9772_v19 }
0x259c   :  { %11524 = vmatpush3.bf16.msra.mxu1 %v14937_v3  ;;  %11073 = vmatprep.mubr.msk.f32.mxu1 %vm11607_vm0, %v15511_v8  ;;  %v11604_v3 = vld [vmem:[%s15498_s2 + $0x30] sm:$0xff] }
0x259d   :  { %11525 = vmatprep.subr.bf16.mxu1 %v15512_v21 }
0x25a0   :  { %11527 = vmatpush3.bf16.msra.mxu1 %v14939_v14 }
0x266e   :  { %v10421_v35 = vpop.f32.mrb[134].mxu1 }
0x266f   :  { %v10422_v62 = vpop.f32.mrb[135].mxu1 }
0x2670   :  { %v10423_v44 = vadd.f32 %v10422_v62, %v10421_v35 }
0x2672   :  { %v8460_v4 = vsub.f32 %v10423_v44, %v11603_v12 }
0x2674   :  { %v8461_v18 = vmax.f32 %v8460_v4, 0.0 }
0x2676   :  { %v8462_v57 = vsub.f32 %v8461_v18, %v11604_v3 }
0x2678   :  { %v8463_v8 = vmul.f32 %v8462_v57, %v11881_v11 }
0x267a   :  { %v8464_v42 = vadd.f32 %v11604_v3, %v8463_v8 }
0x267c   :  { %v8465_v21 = vsub.f32 %v8464_v42, %v11604_v3 }
0x267e   :  { %11063 = vmatmul.mubr.msk.f32.vlgmr.msra.gmra.mrb[132].mxu0 %vm429_vm6, %v8465_v21  ;;  %v8466_v14 = vmul.f32 %v11858_v54, %v8465_v21 }
0x2680   :  { %v8467_v7 = vadd.f32 %v11604_v3, %v8466_v14 }
0x2751   :  { %v8545_v17 = vpop.f32.mrb[132].mxu0 }
0x2752   :  { %v8549_v1 = vadd.f32 %v8545_v17, %v8460_v4  ;;  %v11064_v38 = vpop.f32.mrb[133].mxu0 }
0x2754   :  { %v8550_v37 = vmax.f32 %v8549_v1, 0.0 }
0x2756   :  { %v8551_v53 = vsub.f32 %v8550_v37, %v8467_v7 }
0x2758   :  { %v8552_v41 = vmul.f32 %v8551_v53, %v11881_v11 }
0x275a   :  { %v8553_v0 = vadd.f32 %v8552_v41, %v8467_v7 }
0x275c   :  { %v8554_v34 = vsub.f32 %v8553_v0, %v8467_v7 }
0x275e   :  { %8562 = vrot.lane.b32.xlu0 %v8554_v34, %s11608_s1  ;;  %v8555_v46 = vmul.f32 %v11863_v55, %v8554_v34 }
0x2760   :  { %v8556_v39 = vadd.f32 %v8555_v46, %v8467_v7 }
0x27d0   :  { %v8563_v24 = vpop.permute.xlu0 %8562 }
0x27d1   :  { %11074 = vmatmul.mubr.msk.f32.vlgmr.msra.gmra.mrb[136].mxu1 %vm518_vm7, %v8563_v24 }
0x28a4   :  { %v8632_v5 = vpop.f32.mrb[136].mxu1 }
0x28a5   :  { %v8636_v54 = vadd.f32 %v8632_v5, %v8549_v1  ;;  %v11075_v13 = vpop.f32.mrb[137].mxu1 }
0x28a6   :  { %v9269_v13 = vld [vmem:[%s15496_s5 + $0x80] sm:$0xff] }
0x28a7   :  { %v8637_v32 = vmax.f32 %v8636_v54, 0.0  ;;  %v9270_v54 = vld [vmem:[%s15496_s5 + $0x88] sm:$0xff] }
0x28a9   :  { %v8638_v28 = vsub.f32 %v8637_v32, %v8556_v39 }
0x28ab   :  { %v8639_v6 = vmul.f32 %v8638_v28, %v11881_v11 }
0x28ad   :  { %v8640_v61 = vadd.f32 %v8639_v6, %v8556_v39  ;;  %v9286_v6 = vmul.f32 0.001, %v9270_v54 }
0x28af   :  { %v8641_v59 = vsub.f32 %v8640_v61, %v8556_v39 }
0x28b1   :  { %v8642_v16 = vmul.f32 %v11868_v56, %v8641_v59 }
0x28b3   :  { %v8643_v48 = vadd.f32 %v8642_v16, %v8556_v39  ;;  %v9285_v16 = vmul.f32 0.001, %v9269_v13 }
0x28b5   :  { %9775 = vst [vmem:[%s15498_s2 + $0x38] sm:$0xff] %v8643_v48  ;;  %9501 = vst [vmem:[%s15500_s3] sm:$0xff] %v8643_v48  ;;  %8647 = vrot.lane.b32.xlu0 %v8643_v48, %s11608_s1  ;;  %11076 = vmatprep.subr.mxu0 %v8643_v48 }
0x28b6   :  { %11102 = vmatprep.subr.mxu1 %v8643_v48  ;;  %11077 = vmatpush3.msra.mxu0 %v8643_v48 }
0x28b7   :  { %11103 = vmatpush3.msra.mxu1 %v8643_v48 }
0x28d3   :  { %9028 = vxpose.xlu0.b32.start.end [1/1] (short) %v8643_v48, 128 }
0x2927   :  { %v8648_v55 = vpop.permute.xlu0 %8647 }
0x2928   :  { %v8650_v11 = vsel %vm429_vm6, %v9772_v19, %v8648_v55 }
0x2929   :  { %8651 = vxpose.xlu1.b32.start.end [1/1] (short) %v8650_v11, 128 }
0x2953   :  { %v9044_v56 = vpop.trf.xlu0 }
0x2954   :  { %11104 = vmatprep.mubr.msk.f32.mxu1 %vm637_vm8, %v9044_v56 }
0x2957   :  { %v9045_v25 = vpop.trf.xlu0 }
0x2958   :  { %11105 = vmatmul.mubr.msk.f32.vlgmr.msra.gmra.mrb[138].mxu1 %vm637_vm8, %v9045_v25  ;;  %v9272_v25 = vld [vmem:[%s15496_s5 + $0x98] sm:$0xff] }
0x295b   :  { %v9046_v43 = vpop.trf.xlu0 }
0x295c   :  { %11107 = vmatprep.mubr.msk.f32.mxu1 %vm637_vm8, %v9046_v43 }
0x295f   :  { %v9047_v45 = vpop.trf.xlu0 }
0x2960   :  { %11108 = vmatmul.mubr.msk.f32.gmra.mrb[140].mxu1 %vm637_vm8, %v9047_v45  ;;  %v9271_v45 = vld [vmem:[%s15496_s5 + $0x90] sm:$0xff] }
0x2963   :  { %v9048_v27 = vpop.trf.xlu0 }
0x2964   :  { %11110 = vmatprep.mubr.msk.f32.mxu1 %vm637_vm8, %v9048_v27 }
0x2967   :  { %v9049_v10 = vpop.trf.xlu0 }
0x2968   :  { %11111 = vmatmul.mubr.msk.f32.gmra.mrb[142].mxu1 %vm637_vm8, %v9049_v10 }
0x296b   :  { %v9050_v19 = vpop.trf.xlu0 }
0x296c   :  { %11113 = vmatprep.mubr.msk.f32.mxu1 %vm637_vm8, %v9050_v19 }
0x296f   :  { %v9051_v35 = vpop.trf.xlu0 }
0x2970   :  { %11114 = vmatmul.mubr.msk.f32.gmra.mrb[144].mxu1 %vm637_vm8, %v9051_v35 }
0x2973   :  { %v9052_v62 = vpop.trf.xlu0 }
0x2974   :  { %11116 = vmatprep.mubr.msk.f32.mxu1 %vm637_vm8, %v9052_v62  ;;  %v9288_v62 = vmul.f32 0.001, %v9272_v25 }
0x2977   :  { %v9053_v44 = vpop.trf.xlu0 }
0x2978   :  { %11117 = vmatmul.mubr.msk.f32.gmra.mrb[146].mxu1 %vm637_vm8, %v9053_v44 }
0x297b   :  { %v9054_v12 = vpop.trf.xlu0 }
0x297c   :  { %11119 = vmatprep.mubr.msk.f32.mxu1 %vm637_vm8, %v9054_v12 }
0x297f   :  { %v9055_v4 = vpop.trf.xlu0 }
0x2980   :  { %11120 = vmatmul.mubr.msk.f32.gmra.mrb[148].mxu1 %vm637_vm8, %v9055_v4 }
0x2983   :  { %v9056_v18 = vpop.trf.xlu0 }
0x2984   :  { %11122 = vmatprep.mubr.msk.f32.mxu1 %vm637_vm8, %v9056_v18  ;;  %v9287_v18 = vmul.f32 0.001, %v9271_v45 }
0x2987   :  { %v9057_v3 = vpop.trf.xlu0 }
0x2988   :  { %11123 = vmatmul.mubr.msk.f32.gmra.mrb[150].mxu1 %vm637_vm8, %v9057_v3 }
0x298b   :  { %v9058_v57 = vpop.trf.xlu0 }
0x298c   :  { %11125 = vmatprep.mubr.msk.f32.mxu1 %vm637_vm8, %v9058_v57 }
0x298f   :  { %v9059_v8 = vpop.trf.xlu0 }
0x2990   :  { %11126 = vmatmul.mubr.msk.f32.gmra.mrb[152].mxu1 %vm637_vm8, %v9059_v8 }
0x29a9   :  { %v8667_v42 = vpop.trf.xlu1 }
0x29aa   :  { %11078 = vmatprep.mubr.msk.f32.mxu0 %vm637_vm8, %v8667_v42 }
0x29ad   :  { %v8668_v21 = vpop.trf.xlu1 }
0x29ae   :  { %11079 = vmatmul.mubr.msk.f32.vlgmr.msra.gmra.mrb[134].mxu0 %vm637_vm8, %v8668_v21 }
0x29b1   :  { %v8669_v14 = vpop.trf.xlu1 }
0x29b2   :  { %11081 = vmatprep.mubr.msk.f32.mxu0 %vm637_vm8, %v8669_v14 }
0x29b5   :  { %v8670_v17 = vpop.trf.xlu1 }
0x29b6   :  { %11082 = vmatmul.mubr.msk.f32.gmra.mrb[136].mxu0 %vm637_vm8, %v8670_v17 }
0x29b9   :  { %v8671_v1 = vpop.trf.xlu1 }
0x29ba   :  { %11084 = vmatprep.mubr.msk.f32.mxu0 %vm637_vm8, %v8671_v1 }
0x29bd   :  { %v8672_v38 = vpop.trf.xlu1 }
0x29be   :  { %11085 = vmatmul.mubr.msk.f32.gmra.mrb[138].mxu0 %vm637_vm8, %v8672_v38  ;;  %v9274_v38 = vld [vmem:[%s15496_s5 + $0xa8] sm:$0xff] }
0x29c1   :  { %v8673_v7 = vpop.trf.xlu1 }
0x29c2   :  { %11087 = vmatprep.mubr.msk.f32.mxu0 %vm637_vm8, %v8673_v7 }
0x29c5   :  { %v8674_v37 = vpop.trf.xlu1 }
0x29c6   :  { %11088 = vmatmul.mubr.msk.f32.gmra.mrb[140].mxu0 %vm637_vm8, %v8674_v37 }
0x29c9   :  { %v8675_v53 = vpop.trf.xlu1 }
0x29ca   :  { %11090 = vmatprep.mubr.msk.f32.mxu0 %vm637_vm8, %v8675_v53  ;;  %v9273_v53 = vld [vmem:[%s15496_s5 + $0xa0] sm:$0xff] }
0x29cd   :  { %v8676_v41 = vpop.trf.xlu1 }
0x29ce   :  { %11091 = vmatmul.mubr.msk.f32.gmra.mrb[142].mxu0 %vm637_vm8, %v8676_v41 }
0x29d1   :  { %v8677_v0 = vpop.trf.xlu1 }
0x29d2   :  { %11093 = vmatprep.mubr.msk.f32.mxu0 %vm637_vm8, %v8677_v0 }
0x29d5   :  { %v8678_v34 = vpop.trf.xlu1 }
0x29d6   :  { %11094 = vmatmul.mubr.msk.f32.gmra.mrb[144].mxu0 %vm637_vm8, %v8678_v34 }
0x29d9   :  { %v8679_v46 = vpop.trf.xlu1 }
0x29da   :  { %11096 = vmatprep.mubr.msk.f32.mxu0 %vm637_vm8, %v8679_v46  ;;  %v9290_v46 = vmul.f32 0.001, %v9274_v38 }
0x29dd   :  { %v8680_v39 = vpop.trf.xlu1 }
0x29de   :  { %11097 = vmatmul.mubr.msk.f32.gmra.mrb[146].mxu0 %vm637_vm8, %v8680_v39 }
0x29e1   :  { %v8681_v24 = vpop.trf.xlu1 }
0x29e2   :  { %11099 = vmatprep.mubr.msk.f32.mxu0 %vm637_vm8, %v8681_v24 }
0x29e5   :  { %v8682_v5 = vpop.trf.xlu1 }
0x29e6   :  { %11100 = vmatmul.mubr.msk.f32.gmra.mrb[148].mxu0 %vm637_vm8, %v8682_v5 }
0x2a2b   :  { %v11106_v32 = vpop.f32.mrb[138].mxu1 }
0x2a2c   :  { %v9254_v28 = vmul.f32 0.5, %v11106_v32  ;;  %v9174_v61 = vpop.f32.mrb[139].mxu1 }
0x2a2d   :  { %v9253_v59 = vmul.f32 0.5, %v9174_v61 }
0x2a2e   :  { %v9302_v48 = vsub.f32 %v9254_v28, %v9286_v6 }
0x2a2f   :  { %v9301_v55 = vsub.f32 %v9253_v59, %v9285_v16 }
0x2a30   :  { %v9318_v11 = vmul.f32 0.001, %v9302_v48 }
0x2a31   :  { %v9317_v56 = vmul.f32 0.001, %v9301_v55 }
0x2a32   :  { %v9334_v43 = vadd.f32 %v9318_v11, %v9270_v54  ;;  %v9276_v11 = vld [vmem:[%s15496_s5 + $0xb8] sm:$0xff] }
0x2a33   :  { %v9333_v27 = vadd.f32 %v9317_v56, %v9269_v13  ;;  %v11109_v10 = vpop.f32.mrb[140].mxu1  ;;  %v9289_v13 = vmul.f32 0.001, %v9273_v53  ;;  %v9275_v56 = vld [vmem:[%s15496_s5 + $0xb0] sm:$0xff] }
0x2a34   :  { %v9366_v19 = vmul.f32 %v9334_v43, %v11970_v9  ;;  %v9256_v35 = vmul.f32 0.5, %v11109_v10  ;;  %v9184_v44 = vpop.f32.mrb[141].mxu1 }
0x2a35   :  { %v9365_v12 = vmul.f32 %v9333_v27, %v11974_v15  ;;  %v9255_v4 = vmul.f32 0.5, %v9184_v44 }
0x2a36   :  { %v9382_v3 = vmax.f32 %v9366_v19, 0.0  ;;  %v9304_v57 = vsub.f32 %v9256_v35, %v9288_v62  ;;  %v9291_v35 = vmul.f32 0.001, %v9275_v56 }
0x2a37   :  { %v9381_v8 = vmax.f32 %v9365_v12, 0.0  ;;  %v9303_v42 = vsub.f32 %v9255_v4, %v9287_v18 }
0x2a38   :  { %v15183_v21 = vmul.f32 %v9382_v3, %v11970_v9  ;;  %v9320_v14 = vmul.f32 0.001, %v9304_v57 }
0x2a39   :  { %v15186_v17 = vmul.f32 %v9381_v8, %v11974_v15  ;;  %v9319_v1 = vmul.f32 0.001, %v9303_v42 }
0x2a3a   :  { %v9414_v7 = vmul.f32 %v15183_v21, %v15183_v21  ;;  %v9336_v37 = vadd.f32 %v9320_v14, %v9272_v25 }
0x2a3b   :  { %v9413_v9 = vmul.f32 %v15186_v17, %v15186_v17  ;;  %v9335_v41 = vadd.f32 %v9319_v1, %v9271_v45  ;;  %v11112_v0 = vpop.f32.mrb[142].mxu1 }
0x2a3c   :  { %v9368_v15 = vmul.f32 %v9336_v37, %v11996_v36  ;;  %v9258_v34 = vmul.f32 0.5, %v11112_v0  ;;  %v9194_v39 = vpop.f32.mrb[143].mxu1  ;;  %v9278_v37 = vld [vmem:[%s15496_s5 + $0xc8] sm:$0xff] }
0x2a3d   :  { %v9429_v24 = vadd.f32 %v9414_v7, %v9413_v9  ;;  %v9367_v5 = vmul.f32 %v9335_v41, %v12002_v47  ;;  %v9257_v54 = vmul.f32 0.5, %v9194_v39 }
0x2a3e   :  { %v9384_v32 = vmax.f32 %v9368_v15, 0.0  ;;  %v9306_v28 = vsub.f32 %v9258_v34, %v9290_v46 }
0x2a3f   :  { %v9383_v6 = vmax.f32 %v9367_v5, 0.0  ;;  %v9305_v61 = vsub.f32 %v9257_v54, %v9289_v13 }
0x2a40   :  { %v9322_v59 = vmul.f32 0.001, %v9306_v28  ;;  %v15201_v16 = vmul.f32 %v9384_v32, %v11996_v36 }
0x2a41   :  { %v15204_v48 = vmul.f32 %v9383_v6, %v12002_v47  ;;  %v9321_v55 = vmul.f32 0.001, %v9305_v61  ;;  %v9292_v47 = vmul.f32 0.001, %v9276_v11 }
0x2a42   :  { %v9338_v25 = vadd.f32 %v9322_v59, %v9274_v38  ;;  %v9416_v62 = vmul.f32 %v15201_v16, %v15201_v16 }
0x2a43   :  { %v9415_v43 = vmul.f32 %v15204_v48, %v15204_v48  ;;  %v9337_v45 = vadd.f32 %v9321_v55, %v9273_v53  ;;  %v11115_v27 = vpop.f32.mrb[144].mxu1  ;;  %v9277_v53 = vld [vmem:[%s15496_s5 + $0xc0] sm:$0xff] }
0x2a44   :  { %v9370_v36 = vmul.f32 %v9338_v25, %v12026_v23  ;;  %v9260_v10 = vmul.f32 0.5, %v11115_v27  ;;  %v9204_v19 = vpop.f32.mrb[145].mxu1  ;;  %v9293_v39 = vmul.f32 0.001, %v9277_v53 }
0x2a45   :  { %v9430_v44 = vadd.f32 %v9429_v24, %v9415_v43  ;;  %v9369_v12 = vmul.f32 %v9337_v45, %v12031_v26  ;;  %v9259_v4 = vmul.f32 0.5, %v9204_v19  ;;  %v9280_v43 = vld [vmem:[%s15496_s5 + $0xd8] sm:$0xff]  ;;  %v9279_v45 = vld [vmem:[%s15496_s5 + $0xd0] sm:$0xff] }
0x2a46   :  { %v9386_v18 = vmax.f32 %v9370_v36, 0.0  ;;  %v9308_v3 = vsub.f32 %v9260_v10, %v9292_v47 }
0x2a47   :  { %v9385_v57 = vmax.f32 %v9369_v12, 0.0  ;;  %v9431_v8 = vadd.f32 %v9430_v44, %v9416_v62  ;;  %v9307_v42 = vsub.f32 %v9259_v4, %v9291_v35  ;;  %v9295_v62 = vmul.f32 0.001, %v9279_v45 }
0x2a48   :  { %v9324_v14 = vmul.f32 0.001, %v9308_v3  ;;  %v15219_v1 = vmul.f32 %v9386_v18, %v12026_v23 }
0x2a49   :  { %v15222_v38 = vmul.f32 %v9385_v57, %v12031_v26  ;;  %v9323_v7 = vmul.f32 0.001, %v9307_v42  ;;  %v9294_v26 = vmul.f32 0.001, %v9278_v37 }
0x2a4a   :  { %v9340_v9 = vadd.f32 %v9324_v14, %v9276_v11  ;;  %v9418_v24 = vmul.f32 %v15219_v1, %v15219_v1 }
0x2a4b   :  { %v9417_v41 = vmul.f32 %v15222_v38, %v15222_v38  ;;  %v9339_v0 = vadd.f32 %v9323_v7, %v9275_v56  ;;  %v11118_v15 = vpop.f32.mrb[146].mxu1 }
0x2a4c   :  { %v9372_v23 = vmul.f32 %v9340_v9, %v12054_v63  ;;  %v9262_v34 = vmul.f32 0.5, %v11118_v15  ;;  %v9214_v46 = vpop.f32.mrb[147].mxu1  ;;  %v9281_v15 = vld [vmem:[%s15496_s5 + $0xe0] sm:$0xff] }
0x2a4d   :  { %v9432_v5 = vadd.f32 %v9431_v8, %v9417_v41  ;;  %v9371_v54 = vmul.f32 %v9339_v0, %v12057_v2  ;;  %v9261_v13 = vmul.f32 0.5, %v9214_v46  ;;  %v9282_v0 = vld [vmem:[%s15496_s5 + $0xe8] sm:$0xff] }
0x2a4e   :  { %v9388_v32 = vmax.f32 %v9372_v23, 0.0  ;;  %v9310_v28 = vsub.f32 %v9262_v34, %v9294_v26 }
0x2a4f   :  { %v9387_v6 = vmax.f32 %v9371_v54, 0.0  ;;  %v9433_v61 = vadd.f32 %v9432_v5, %v9418_v24  ;;  %v9309_v59 = vsub.f32 %v9261_v13, %v9293_v39  ;;  %v9298_v5 = vmul.f32 0.001, %v9282_v0 }
0x2a50   :  { %v9326_v55 = vmul.f32 0.001, %v9310_v28  ;;  %v15237_v11 = vmul.f32 %v9388_v32, %v12054_v63  ;;  %v9297_v13 = vmul.f32 0.001, %v9281_v15 }
0x2a51   :  { %v15240_v56 = vmul.f32 %v9387_v6, %v12057_v2  ;;  %v9325_v25 = vmul.f32 0.001, %v9309_v59  ;;  %v9296_v2 = vmul.f32 0.001, %v9280_v43 }
0x2a52   :  { %v9342_v27 = vadd.f32 %v9326_v55, %v9278_v37  ;;  %v9420_v44 = vmul.f32 %v15237_v11, %v15237_v11 }
0x2a53   :  { %v9419_v36 = vmul.f32 %v15240_v56, %v15240_v56  ;;  %v9341_v10 = vadd.f32 %v9325_v25, %v9277_v53  ;;  %v11121_v47 = vpop.f32.mrb[148].mxu1 }
0x2a54   :  { %v9374_v63 = vmul.f32 %v9342_v27, %v12080_v49  ;;  %v9264_v19 = vmul.f32 0.5, %v11121_v47  ;;  %v9224_v35 = vpop.f32.mrb[149].mxu1 }
0x2a55   :  { %v9434_v12 = vadd.f32 %v9433_v61, %v9419_v36  ;;  %v9373_v4 = vmul.f32 %v9341_v10, %v12085_v60  ;;  %v9263_v18 = vmul.f32 0.5, %v9224_v35 }
0x2a56   :  { %v9390_v3 = vmax.f32 %v9374_v63, 0.0  ;;  %v9312_v57 = vsub.f32 %v9264_v19, %v9296_v2  ;;  %v9284_v19 = vld [vmem:[%s15496_s5 + $0xf8] sm:$0xff] }
0x2a57   :  { %v9435_v8 = vadd.f32 %v9434_v12, %v9420_v44  ;;  %v9389_v42 = vmax.f32 %v9373_v4, 0.0  ;;  %v9311_v14 = vsub.f32 %v9263_v18, %v9295_v62  ;;  %v9300_v18 = vmul.f32 0.001, %v9284_v19 }
0x2a58   :  { %v15255_v7 = vmul.f32 %v9390_v3, %v12080_v49  ;;  %v9328_v37 = vmul.f32 0.001, %v9312_v57 }
0x2a59   :  { %v9436_v53 = vrot.slane %v9435_v8, 4  ;;  %v15258_v9 = vmul.f32 %v9389_v42, %v12085_v60  ;;  %v9327_v41 = vmul.f32 0.001, %v9311_v14 }
0x2a5a   :  { %v9422_v23 = vmul.f32 %v15255_v7, %v15255_v7  ;;  %v9344_v34 = vadd.f32 %v9328_v37, %v9280_v43 }
0x2a5b   :  { %v9437_v49 = vadd.f32 %v9436_v53, %v9435_v8  ;;  %v9421_v26 = vmul.f32 %v15258_v9, %v15258_v9  ;;  %v9343_v46 = vadd.f32 %v9327_v41, %v9279_v45  ;;  %v11124_v60 = vpop.f32.mrb[150].mxu1 }
0x2a5c   :  { %v9376_v39 = vmul.f32 %v9344_v34, %v12111_v40  ;;  %v9266_v24 = vmul.f32 0.5, %v11124_v60  ;;  %v9234_v54 = vpop.f32.mrb[151].mxu1 }
0x2a5d   :  { %v9438_v32 = vrot.slane %v9437_v49, 2  ;;  %v9442_v28 = vadd.f32 %v9422_v23, %v9421_v26  ;;  %v9375_v6 = vmul.f32 %v9343_v46, %v12104_v33  ;;  %v9265_v61 = vmul.f32 0.5, %v9234_v54 }
0x2a5e   :  { %v9392_v59 = vmax.f32 %v9376_v39, 0.0  ;;  %v9314_v55 = vsub.f32 %v9266_v24, %v9298_v5 }
0x2a5f   :  { %v9439_v25 = vadd.f32 %v9438_v32, %v9437_v49  ;;  %v9391_v43 = vmax.f32 %v9375_v6, 0.0  ;;  %v9313_v27 = vsub.f32 %v9265_v61, %v9297_v13 }
0x2a60   :  { %v9330_v36 = vmul.f32 0.001, %v9314_v55  ;;  %v15273_v45 = vmul.f32 %v9392_v59, %v12111_v40  ;;  %v9283_v40 = vld [vmem:[%s15496_s5 + $0xf0] sm:$0xff] }
0x2a61   :  { %v9440_v10 = vrot.slane %v9439_v25, 1  ;;  %v15276_v47 = vmul.f32 %v9391_v43, %v12104_v33  ;;  %v9329_v63 = vmul.f32 0.001, %v9313_v27  ;;  %v9299_v41 = vmul.f32 0.001, %v9283_v40 }
0x2a62   :  { %v9346_v2 = vadd.f32 %v9330_v36, %v9282_v0  ;;  %v9424_v57 = vmul.f32 %v15273_v45, %v15273_v45 }
0x2a63   :  { %v9441_v35 = vadd.f32 %v9440_v10, %v9439_v25  ;;  %v9423_v62 = vmul.f32 %v15276_v47, %v15276_v47  ;;  %v9345_v44 = vadd.f32 %v9329_v63, %v9281_v15  ;;  %v11127_v12 = vpop.f32.mrb[152].mxu1 }
0x2a64   :  { %v9378_v4 = vmul.f32 %v9346_v2, %v12145_v58  ;;  %v9268_v33 = vmul.f32 0.5, %v11127_v12  ;;  %v9244_v3 = vpop.f32.mrb[153].mxu1 }
0x2a65   :  { %11589 = vrsqrt.f32 %v9441_v35  ;;  %v9443_v8 = vadd.f32 %v9442_v28, %v9423_v62  ;;  %v9377_v42 = vmul.f32 %v9345_v44, %v12149_v51  ;;  %v9267_v53 = vmul.f32 0.5, %v9244_v3  ;;  %v8893_v44 = vld [vmem:[%s15496_s5 + $0x8] sm:$0xff] }
0x2a66   :  { %v9394_v14 = vmax.f32 %v9378_v4, 0.0  ;;  %v9316_v37 = vsub.f32 %v9268_v33, %v9300_v18  ;;  %vm9460_vm0 = vcmp.gt.f32.partialorder %v9441_v35, 0.0  ;;  %v8892_v33 = vld [vmem:[%s15496_s5] sm:$0xff] }
0x2a67   :  { %v9444_v0 = vadd.f32 %v9443_v8, %v9424_v57  ;;  %v9393_v15 = vmax.f32 %v9377_v42, 0.0  ;;  %v9315_v49 = vsub.f32 %v9267_v53, %v9299_v41  ;;  %v8901_v57 = vmul.f32 0.001, %v8893_v44 }
0x2a68   :  { %v15291_v23 = vmul.f32 %v9394_v14, %v12145_v58  ;;  %v9332_v34 = vmul.f32 0.001, %v9316_v37 }
0x2a69   :  { %v9445_v26 = vrot.slane %v9444_v0, 4  ;;  %v15294_v46 = vmul.f32 %v9393_v15, %v12149_v51  ;;  %v9331_v24 = vmul.f32 0.001, %v9315_v49 }
0x2a6a   :  { %v9426_v60 = vmul.f32 %v15291_v23, %v15291_v23  ;;  %v9348_v39 = vadd.f32 %v9332_v34, %v9284_v19  ;;  %v8900_v34 = vmul.f32 0.001, %v8892_v33 }
0x2a6b   :  { %v9446_v5 = vadd.f32 %v9445_v26, %v9444_v0  ;;  %v9425_v54 = vmul.f32 %v15294_v46, %v15294_v46  ;;  %v9347_v32 = vadd.f32 %v9331_v24, %v9283_v40 }
0x2a6c   :  { %v9380_v13 = vmul.f32 %v9348_v39, %v12175_v52 }
0x2a6d   :  { %v9447_v58 = vrot.slane %v9446_v5, 2  ;;  %v9451_v28 = vadd.f32 %v9426_v60, %v9425_v54  ;;  %v9379_v6 = vmul.f32 %v9347_v32, %v12183_v50  ;;  %v8894_v60 = vld [vmem:[%s15496_s5 + $0x10] sm:$0xff] }
0x2a6e   :  { %v9396_v59 = vmax.f32 %v9380_v13, 0.0 }
0x2a6f   :  { %v11590_v61 = vpop.eup %11589  ;;  %v9448_v51 = vadd.f32 %v9447_v58, %v9446_v5  ;;  %v9395_v25 = vmax.f32 %v9379_v6, 0.0  ;;  %v8902_v58 = vmul.f32 0.001, %v8894_v60 }
0x2a70   :  { %v9462_v55 = vsel %vm9460_vm0, %v11590_v61, 0.0 }
0x2a71   :  { %v9469_v43 = vmul.f32 %v9462_v55, %v15186_v17  ;;  %v9470_v27 = vmul.f32 %v9462_v55, %v15183_v21  ;;  %v9471_v36 = vmul.f32 %v9462_v55, %v15204_v48  ;;  %v9472_v10 = vmul.f32 %v9462_v55, %v15201_v16 }
0x2a72   :  { %v9473_v63 = vmul.f32 %v9462_v55, %v15222_v38  ;;  %v9474_v19 = vmul.f32 %v9462_v55, %v15219_v1  ;;  %v9475_v2 = vmul.f32 %v9462_v55, %v15240_v56  ;;  %v9476_v35 = vmul.f32 %v9462_v55, %v15237_v11  ;;  %v8897_v55 = vld [vmem:[%s15496_s5 + $0x28] sm:$0xff] }
0x2a73   :  { %9485 = vst [vmem:[%s15496_s5 + $0x80] sm:$0xff] %v9469_v43  ;;  %9486 = vst [vmem:[%s15496_s5 + $0x88] sm:$0xff] %v9470_v27  ;;  %v9449_v21 = vrot.slane %v9448_v51, 1  ;;  %v15323_v17 = vmul.f32 %v9396_v59, %v12175_v52  ;;  %v15326_v16 = vmul.f32 %v9395_v25, %v12183_v50  ;;  %v8896_v25 = vld [vmem:[%s15496_s5 + $0x20] sm:$0xff] }
0x2a74   :  { %9487 = vst [vmem:[%s15496_s5 + $0x90] sm:$0xff] %v9471_v36  ;;  %9488 = vst [vmem:[%s15496_s5 + $0x98] sm:$0xff] %v9472_v10 }
0x2a75   :  { %9489 = vst [vmem:[%s15496_s5 + $0xa0] sm:$0xff] %v9473_v63  ;;  %9490 = vst [vmem:[%s15496_s5 + $0xa8] sm:$0xff] %v9474_v19  ;;  %v9450_v52 = vadd.f32 %v9449_v21, %v9448_v51  ;;  %v9427_v50 = vmul.f32 %v15326_v16, %v15326_v16  ;;  %v9428_v48 = vmul.f32 %v15323_v17, %v15323_v17  ;;  %v8904_v21 = vmul.f32 0.001, %v8896_v25 }
0x2a76   :  { %9491 = vst [vmem:[%s15496_s5 + $0xb0] sm:$0xff] %v9475_v2  ;;  %9492 = vst [vmem:[%s15496_s5 + $0xb8] sm:$0xff] %v9476_v35  ;;  %v8905_v2 = vmul.f32 0.001, %v8897_v55 }
0x2a77   :  { %11591 = vrsqrt.f32 %v9450_v52  ;;  %v9452_v1 = vadd.f32 %v9451_v28, %v9427_v50  ;;  %vm9463_vm6 = vcmp.gt.f32.partialorder %v9450_v52, 0.0 }
0x2a79   :  { %v9453_v38 = vadd.f32 %v9452_v1, %v9428_v48 }
0x2a7b   :  { %v9454_v11 = vrot.slane %v9453_v38, 4 }
0x2a7d   :  { %v9455_v56 = vadd.f32 %v9454_v11, %v9453_v38 }
0x2a7f   :  { %v9456_v62 = vrot.slane %v9455_v56, 2 }
0x2a81   :  { %v11592_v12 = vpop.eup %11591  ;;  %v9457_v40 = vadd.f32 %v9456_v62, %v9455_v56  ;;  %v11080_v4 = vpop.f32.mrb[134].mxu0 }
0x2a82   :  { %v9465_v18 = vsel %vm9463_vm6, %v11592_v12, 0.0  ;;  %v8877_v3 = vmul.f32 0.5, %v11080_v4  ;;  %v8797_v8 = vpop.f32.mrb[135].mxu0 }
0x2a83   :  { %v9477_v42 = vmul.f32 %v9465_v18, %v15258_v9  ;;  %v9478_v14 = vmul.f32 %v9465_v18, %v15255_v7  ;;  %v9479_v37 = vmul.f32 %v9465_v18, %v15276_v47  ;;  %v9480_v53 = vmul.f32 %v9465_v18, %v15273_v45  ;;  %v8895_v47 = vld [vmem:[%s15496_s5 + $0x18] sm:$0xff] }
0x2a84   :  { %v9458_v41 = vrot.slane %v9457_v40, 1  ;;  %v8909_v0 = vsub.f32 %v8877_v3, %v8901_v57  ;;  %v8876_v15 = vmul.f32 0.5, %v8797_v8  ;;  %v8903_v54 = vmul.f32 0.001, %v8895_v47 }
0x2a85   :  { %9493 = vst [vmem:[%s15496_s5 + $0xc0] sm:$0xff] %v9477_v42  ;;  %9494 = vst [vmem:[%s15496_s5 + $0xc8] sm:$0xff] %v9478_v14 }
0x2a86   :  { %9495 = vst [vmem:[%s15496_s5 + $0xd0] sm:$0xff] %v9479_v37  ;;  %9496 = vst [vmem:[%s15496_s5 + $0xd8] sm:$0xff] %v9480_v53  ;;  %v9459_v7 = vadd.f32 %v9458_v41, %v9457_v40  ;;  %v8917_v9 = vmul.f32 %v8909_v0, %v12296_v22  ;;  %v8908_v45 = vsub.f32 %v8876_v15, %v8900_v34  ;;  %v8949_v0 = vmul.f32 0.001, %v15075_v30 }
0x2a88   :  { %11593 = vrsqrt.f32 %v9459_v7  ;;  %v8925_v49 = vadd.f32 %v8917_v9, %v8893_v44  ;;  %v8916_v26 = vmul.f32 %v8908_v45, %v12296_v22  ;;  %vm9466_vm7 = vcmp.gt.f32.partialorder %v9459_v7, 0.0 }
0x2a89   :  { %v11083_v39 = vpop.f32.mrb[136].mxu0  ;;  %v8948_v7 = vmul.f32 0.001, %v15072_v29 }
0x2a8a   :  { %8933 = vst [vmem:[%s15496_s5 + $0x8] sm:$0xff] %v8925_v49  ;;  %v8924_v24 = vadd.f32 %v8916_v26, %v8892_v33  ;;  %v8879_v5 = vmul.f32 0.5, %v11083_v39  ;;  %v8807_v13 = vpop.f32.mrb[137].mxu0  ;;  %v8942_v26 = vld [vmem:[%s15496_s5 + $0x50] sm:$0xff] }
0x2a8b   :  { %v8878_v32 = vmul.f32 0.5, %v8807_v13 }
0x2a8c   :  { %8932 = vst [vmem:[%s15496_s5] sm:$0xff] %v8924_v24  ;;  %v8911_v28 = vsub.f32 %v8879_v5, %v8903_v54  ;;  %v8951_v54 = vmul.f32 0.001, %v15077_v20 }
0x2a8d   :  { %v8910_v6 = vsub.f32 %v8878_v32, %v8902_v58 }
0x2a8e   :  { %v8919_v61 = vmul.f32 %v8911_v28, %v12296_v22  ;;  %v8950_v28 = vmul.f32 0.001, %v8942_v26 }
0x2a8f   :  { %v8918_v51 = vmul.f32 %v8910_v6, %v12296_v22 }
0x2a90   :  { %v8927_v59 = vadd.f32 %v8919_v61, %v8895_v47 }
0x2a91   :  { %v8926_v43 = vadd.f32 %v8918_v51, %v8894_v60  ;;  %v11086_v27 = vpop.f32.mrb[138].mxu0 }
0x2a92   :  { %v11594_v36 = vpop.eup %11593  ;;  %8935 = vst [vmem:[%s15496_s5 + $0x18] sm:$0xff] %v8927_v59  ;;  %v8881_v10 = vmul.f32 0.5, %v11086_v27  ;;  %v8817_v63 = vpop.f32.mrb[139].mxu0  ;;  %v8944_v27 = vld [vmem:[%s15496_s5 + $0x60] sm:$0xff] }
0x2a93   :  { %v9468_v19 = vsel %vm9466_vm7, %v11594_v36, 0.0  ;;  %8934 = vst [vmem:[%s15496_s5 + $0x10] sm:$0xff] %v8926_v43  ;;  %v8880_v35 = vmul.f32 0.5, %v8817_v63 }
0x2a94   :  { %v9481_v52 = vmul.f32 %v9468_v19, %v15294_v46  ;;  %v9482_v50 = vmul.f32 %v9468_v19, %v15291_v23  ;;  %v9483_v48 = vmul.f32 %v9468_v19, %v15326_v16  ;;  %v9484_v1 = vmul.f32 %v9468_v19, %v15323_v17  ;;  %v8899_v17 = vld [vmem:[%s15496_s5 + $0x38] sm:$0xff]  ;;  %v8898_v16 = vld [vmem:[%s15496_s5 + $0x30] sm:$0xff] }
0x2a95   :  { %v8913_v38 = vsub.f32 %v8881_v10, %v8905_v2  ;;  %v8912_v11 = vsub.f32 %v8880_v35, %v8904_v21  ;;  %v8907_v40 = vmul.f32 0.001, %v8899_v17  ;;  %v8906_v18 = vmul.f32 0.001, %v8898_v16 }
0x2a96   :  { %9497 = vst [vmem:[%s15496_s5 + $0xe0] sm:$0xff] %v9481_v52  ;;  %9498 = vst [vmem:[%s15496_s5 + $0xe8] sm:$0xff] %v9482_v50  ;;  %v8952_v50 = vmul.f32 0.001, %v8944_v27 }
0x2a97   :  { %9499 = vst [vmem:[%s15496_s5 + $0xf0] sm:$0xff] %v9483_v48  ;;  %9500 = vst [vmem:[%s15496_s5 + $0xf8] sm:$0xff] %v9484_v1  ;;  %v8921_v23 = vmul.f32 %v8913_v38, %v12296_v22  ;;  %v8920_v46 = vmul.f32 %v8912_v11, %v12296_v22 }
0x2a99   :  { %v8929_v56 = vadd.f32 %v8921_v23, %v8897_v55  ;;  %v8928_v62 = vadd.f32 %v8920_v46, %v8896_v25  ;;  %v11089_v44 = vpop.f32.mrb[140].mxu0  ;;  %v8945_v25 = vld [vmem:[%s15496_s5 + $0x68] sm:$0xff] }
0x2a9a   :  { %v8883_v12 = vmul.f32 0.5, %v11089_v44  ;;  %v8827_v4 = vpop.f32.mrb[141].mxu0  ;;  %v8953_v19 = vmul.f32 0.001, %v8945_v25 }
0x2a9b   :  { %8937 = vst [vmem:[%s15496_s5 + $0x28] sm:$0xff] %v8929_v56  ;;  %8936 = vst [vmem:[%s15496_s5 + $0x20] sm:$0xff] %v8928_v62  ;;  %v8882_v33 = vmul.f32 0.5, %v8827_v4  ;;  %v8946_v56 = vld [vmem:[%s15496_s5 + $0x70] sm:$0xff] }
0x2a9c   :  { %v8915_v3 = vsub.f32 %v8883_v12, %v8907_v40 }
0x2a9d   :  { %v8914_v57 = vsub.f32 %v8882_v33, %v8906_v18 }
0x2a9e   :  { %v8923_v8 = vmul.f32 %v8915_v3, %v12296_v22 }
0x2a9f   :  { %v8922_v42 = vmul.f32 %v8914_v57, %v12296_v22 }
0x2aa0   :  { %v8931_v14 = vadd.f32 %v8923_v8, %v8899_v17  ;;  %v8947_v17 = vld [vmem:[%s15496_s5 + $0x78] sm:$0xff]  ;;  %v8954_v8 = vmul.f32 0.001, %v8946_v56 }
0x2aa1   :  { %v8930_v37 = vadd.f32 %v8922_v42, %v8898_v16  ;;  %v11092_v53 = vpop.f32.mrb[142].mxu0  ;;  %v8955_v4 = vmul.f32 0.001, %v8947_v17 }
0x2aa2   :  { %8939 = vst [vmem:[%s15496_s5 + $0x38] sm:$0xff] %v8931_v14  ;;  %v8885_v41 = vmul.f32 0.5, %v11092_v53  ;;  %v8837_v15 = vpop.f32.mrb[143].mxu0 }
0x2aa3   :  { %8938 = vst [vmem:[%s15496_s5 + $0x30] sm:$0xff] %v8930_v37  ;;  %v8884_v34 = vmul.f32 0.5, %v8837_v15 }
0x2aa4   :  { %v8957_v9 = vsub.f32 %v8885_v41, %v8949_v0 }
0x2aa5   :  { %v8956_v22 = vsub.f32 %v8884_v34, %v8948_v7 }
0x2aa6   :  { %v8965_v45 = vmul.f32 %v8957_v9, %v12352_v31 }
0x2aa7   :  { %v8964_v47 = vmul.f32 %v8956_v22, %v12352_v31 }
0x2aa8   :  { %v8973_v49 = vadd.f32 %v8965_v45, %v15075_v30 }
0x2aa9   :  { %v8972_v60 = vadd.f32 %v8964_v47, %v15072_v29  ;;  %v11095_v39 = vpop.f32.mrb[144].mxu0 }
0x2aaa   :  { %v15441_v24 = vmax.f32 %v8973_v49, 0.0  ;;  %v8887_v5 = vmul.f32 0.5, %v11095_v39  ;;  %v8847_v13 = vpop.f32.mrb[145].mxu0 }
0x2aab   :  { %v15444_v32 = vmax.f32 %v8972_v60, 0.0  ;;  %v8886_v58 = vmul.f32 0.5, %v8847_v13 }
0x2aac   :  { %v8989_v30 = vmul.f32 %v15441_v24, %v15441_v24  ;;  %v8959_v6 = vsub.f32 %v8887_v5, %v8951_v54 }
0x2aad   :  { %v8988_v61 = vmul.f32 %v15444_v32, %v15444_v32  ;;  %v8958_v51 = vsub.f32 %v8886_v58, %v8950_v28 }
0x2aae   :  { %v8967_v29 = vmul.f32 %v8959_v6, %v12352_v31 }
0x2aaf   :  { %v8996_v59 = vadd.f32 %v8989_v30, %v8988_v61  ;;  %v8966_v55 = vmul.f32 %v8958_v51, %v12352_v31 }
0x2ab0   :  { %v8975_v43 = vadd.f32 %v8967_v29, %v15077_v20 }
0x2ab1   :  { %v8974_v36 = vadd.f32 %v8966_v55, %v8942_v26  ;;  %v11098_v10 = vpop.f32.mrb[146].mxu0 }
0x2ab2   :  { %v8889_v63 = vmul.f32 0.5, %v11098_v10  ;;  %v8857_v2 = vpop.f32.mrb[147].mxu0  ;;  %v8983_v35 = vmax.f32 %v8975_v43, 0.0 }
0x2ab3   :  { %v8982_v21 = vmax.f32 %v8974_v36, 0.0  ;;  %v8888_v52 = vmul.f32 0.5, %v8857_v2 }
0x2ab4   :  { %v8961_v48 = vsub.f32 %v8889_v63, %v8953_v19  ;;  %v8991_v23 = vmul.f32 %v8983_v35, %v8983_v35 }
0x2ab5   :  { %v8990_v1 = vmul.f32 %v8982_v21, %v8982_v21  ;;  %v8960_v38 = vsub.f32 %v8888_v52, %v8952_v50 }
0x2ab6   :  { %v8969_v11 = vmul.f32 %v8961_v48, %v12352_v31 }
0x2ab7   :  { %v8997_v20 = vadd.f32 %v8996_v59, %v8990_v1  ;;  %v8968_v46 = vmul.f32 %v8960_v38, %v12352_v31 }
0x2ab8   :  { %v8977_v16 = vadd.f32 %v8969_v11, %v8945_v25 }
0x2ab9   :  { %v8976_v62 = vadd.f32 %v8968_v46, %v8944_v27  ;;  %v8998_v44 = vadd.f32 %v8997_v20, %v8991_v23  ;;  %v11101_v12 = vpop.f32.mrb[148].mxu0 }
0x2aba   :  { %v8891_v40 = vmul.f32 0.5, %v11101_v12  ;;  %v8867_v33 = vpop.f32.mrb[149].mxu0  ;;  %v8985_v18 = vmax.f32 %v8977_v16, 0.0 }
0x2abb   :  { %v8984_v3 = vmax.f32 %v8976_v62, 0.0  ;;  %v8890_v57 = vmul.f32 0.5, %v8867_v33 }
0x2abc   :  { %v8963_v42 = vsub.f32 %v8891_v40, %v8955_v4  ;;  %v8993_v41 = vmul.f32 %v8985_v18, %v8985_v18 }
0x2abd   :  { %v8992_v14 = vmul.f32 %v8984_v3, %v8984_v3  ;;  %v8962_v37 = vsub.f32 %v8890_v57, %v8954_v8 }
0x2abe   :  { %v8971_v53 = vmul.f32 %v8963_v42, %v12352_v31 }
0x2abf   :  { %v8999_v0 = vadd.f32 %v8998_v44, %v8992_v14  ;;  %v8970_v15 = vmul.f32 %v8962_v37, %v12352_v31 }
0x2ac0   :  { %v8979_v34 = vadd.f32 %v8971_v53, %v8947_v17 }
0x2ac1   :  { %v8978_v7 = vadd.f32 %v8970_v15, %v8946_v56  ;;  %v9000_v9 = vadd.f32 %v8999_v0, %v8993_v41 }
0x2ac2   :  { %v8987_v22 = vmax.f32 %v8979_v34, 0.0 }
0x2ac3   :  { %v8986_v45 = vmax.f32 %v8978_v7, 0.0 }
0x2ac4   :  { %v8995_v49 = vmul.f32 %v8987_v22, %v8987_v22 }
0x2ac5   :  { %v8994_v47 = vmul.f32 %v8986_v45, %v8986_v45 }
0x2ac7   :  { %v9001_v26 = vadd.f32 %v9000_v9, %v8994_v47 }
0x2ac9   :  { %v9002_v60 = vadd.f32 %v9001_v26, %v8995_v49 }
0x2acb   :  { %v9003_v39 = vrot.slane %v9002_v60, 4 }
0x2acd   :  { %v9004_v5 = vadd.f32 %v9003_v39, %v9002_v60 }
0x2acf   :  { %v9005_v54 = vrot.slane %v9004_v5, 2 }
0x2ad1   :  { %v9006_v13 = vadd.f32 %v9005_v54, %v9004_v5 }
0x2ad3   :  { %v9007_v58 = vrot.slane %v9006_v13, 1 }
0x2ad5   :  { %v9008_v28 = vadd.f32 %v9007_v58, %v9006_v13 }
0x2ad7   :  { %11595 = vrsqrt.f32 %v9008_v28  ;;  %vm9009_vm8 = vcmp.gt.f32.partialorder %v9008_v28, 0.0 }
0x2ae1   :  { %v11596_v30 = vpop.eup %11595 }
0x2ae2   :  { %v9011_v6 = vsel %vm9009_vm8, %v11596_v30, 0.0 }
0x2ae3   :  { %v9012_v31 = vmul.f32 %v9011_v6, %v15444_v32  ;;  %v9013_v61 = vmul.f32 %v9011_v6, %v15441_v24  ;;  %v9014_v51 = vmul.f32 %v9011_v6, %v8982_v21  ;;  %v9015_v29 = vmul.f32 %v9011_v6, %v8983_v35 }
0x2ae4   :  { %v9016_v59 = vmul.f32 %v9011_v6, %v8984_v3  ;;  %v9017_v55 = vmul.f32 %v9011_v6, %v8985_v18  ;;  %v9018_v25 = vmul.f32 %v9011_v6, %v8986_v45  ;;  %v9019_v43 = vmul.f32 %v9011_v6, %v8987_v22 }
0x2ae5   :  { %9020 = vst [vmem:[%s15496_s5 + $0x40] sm:$0xff] %v9012_v31  ;;  %9021 = vst [vmem:[%s15496_s5 + $0x48] sm:$0xff] %v9013_v61 }
0x2ae6   :  { %9022 = vst [vmem:[%s15496_s5 + $0x50] sm:$0xff] %v9014_v51  ;;  %9023 = vst [vmem:[%s15496_s5 + $0x58] sm:$0xff] %v9015_v29 }
0x2ae7   :  { %9024 = vst [vmem:[%s15496_s5 + $0x60] sm:$0xff] %v9016_v59  ;;  %9025 = vst [vmem:[%s15496_s5 + $0x68] sm:$0xff] %v9017_v55 }
0x2ae8   :  { %9026 = vst [vmem:[%s15496_s5 + $0x70] sm:$0xff] %v9018_v25  ;;  %9027 = vst [vmem:[%s15496_s5 + $0x78] sm:$0xff] %v9019_v43 }

</bundles_post_ra>
